<compile_context>
chip_gen: v7x
topology: tpu7x:2x2x1
jax: 0.10.0
libtpu: 0.0.40
codegen_flags: <defaults>
</compile_context>

<pallas_src>
import functools

import jax
import jax.numpy as jnp
import numpy as np
from jax import lax
from jax.experimental import pallas as pl
from jax.experimental.pallas import tpu as pltpu

LN_EPS = 1e-5      # nn.LayerNorm default
ATTN_EPS = 1e-6    # causal_linear_attn eps
FF_HID = 2048      # FeedForward default hid_dim


def _layernorm(t, w, b):
    mu = jnp.mean(t, axis=-1, keepdims=True)
    var = jnp.mean((t - mu) ** 2, axis=-1, keepdims=True)
    return (t - mu) * lax.rsqrt(var + LN_EPS) * w + b


def decoder_layer_kernel(
    x_ref, ctx_ref,
    wqvk_ref, bqvk_ref, ln1w_ref, ln1b_ref,
    wq_ref, bq_ref, ln2w_ref, ln2b_ref,
    w1_ref, b1_ref, w2_ref, b2_ref, ln3w_ref, ln3b_ref,
    out_ref,
    kvstate_ref, ksum_ref,
    *, head_num: int, fast_layout: bool,
):
    f32, bf16 = jnp.float32, jnp.bfloat16
    c = pl.program_id(1)              # sequential chunk index within a batch elem
    x = x_ref[0]                      # (tq, dim) f32 chunk of queries
    tq, dim = x.shape
    h = head_num
    dh = dim // h
    scale = dh ** -0.5

    if fast_layout:
        def split_heads(t):           # (tq, dim) -> (h, tq, dh): single relayout
            return t.reshape(tq, h, dh).transpose(1, 0, 2)

        def merge_heads(t):           # (h, tq, dh) -> (tq, dim)   (= concat_head)
            return t.transpose(1, 0, 2).reshape(tq, dim)
    else:                             # conservative fallback: lane slices
        def split_heads(t):
            return jnp.stack([t[:, i * dh:(i + 1) * dh] for i in range(h)], axis=0)

        def merge_heads(t):
            return jnp.concatenate([t[i] for i in range(h)], axis=-1)

    def softmax_last(t):              # row softmax; divide goes to the EUP slot
        mx = jnp.max(t, axis=-1, keepdims=True)
        e = jnp.exp(t - mx)
        return e * pl.reciprocal(jnp.sum(e, axis=-1, keepdims=True), approx=True)

    # reset the causal running state at the start of every batch element
    @pl.when(c == 0)
    def _init():
        kvstate_ref[...] = jnp.zeros_like(kvstate_ref)
        ksum_ref[...] = jnp.zeros_like(ksum_ref)

    # ---------------- block 1: causal linear self-attention ----------------
    res = x
    qvk = jnp.dot(x.astype(bf16), wqvk_ref[...],
                  preferred_element_type=f32) + bqvk_ref[...]     # (tq, 3*dim)
    # chunk order in the PyTorch code is (q, v, k)
    q_h = split_heads(qvk[:, 0 * dim:1 * dim])                    # (h, tq, dh)
    v_h = split_heads(qvk[:, 1 * dim:2 * dim])
    k_h = split_heads(qvk[:, 2 * dim:3 * dim])

    qs = softmax_last(q_h) * scale                                # f32
    ke = jnp.exp(k_h)                                             # f32
    qs_b, ke_b, v_b = qs.astype(bf16), ke.astype(bf16), v_h.astype(bf16)

    # intra-chunk: causally masked (tq x tq) scores, batched over heads.
    # mask is built once in 2-D and broadcast over heads.
    row = lax.broadcasted_iota(jnp.int32, (tq, tq), 0)
    col = lax.broadcasted_iota(jnp.int32, (tq, tq), 1)
    causal = (col <= row)[None]                                   # (1, tq, tq)

    s = jnp.einsum('hqd,hkd->hqk', qs_b, ke_b,
                   preferred_element_type=f32)                    # (h, tq, tq)
    s = jnp.where(causal, s, 0.0)
    num = jnp.einsum('hqk,hkd->hqd', s.astype(bf16), v_b,
                     preferred_element_type=f32)                  # (h, tq, dh)
    den = jnp.sum(s, axis=-1, keepdims=True)                      # (h, tq, 1)

    # inter-chunk: contribution of all previous chunks via the running state
    num = num + jnp.einsum('hqd,hde->hqe', qs_b,
                           kvstate_ref[...].astype(bf16),
                           preferred_element_type=f32)
    den = den + jnp.sum(qs * ksum_ref[...], axis=-1, keepdims=True)
    den = den + ATTN_EPS * jnp.sum(qs, axis=-1, keepdims=True)

    attn = num * pl.reciprocal(den, approx=True)                  # (h, tq, dh)

    # update running state with this chunk's keys/values
    if fast_layout:
        kvstate_ref[...] = kvstate_ref[...] + jnp.einsum(
            'hqd,hqe->hde', ke_b, v_b, preferred_element_type=f32)
    else:
        for i in range(h):
            kvstate_ref[i] = kvstate_ref[i] + jnp.dot(
                ke_b[i].T, v_b[i], preferred_element_type=f32)
    ksum_ref[...] = ksum_ref[...] + jnp.sum(ke, axis=1, keepdims=True)

    out = merge_heads(attn) + res
    out = _layernorm(out, ln1w_ref[...], ln1b_ref[...])

    # -------- block 2: linear cross-attention (context precomputed) --------
    res = out
    qp = jnp.dot(out.astype(bf16), wq_ref[...],
                 preferred_element_type=f32) + bq_ref[...]        # (tq, dim)
    qcs = (softmax_last(split_heads(qp)) * scale).astype(bf16)    # (h, tq, dh)
    xattn = jnp.einsum('hqd,hde->hqe', qcs, ctx_ref[0].astype(bf16),
                       preferred_element_type=f32)
    out = merge_heads(xattn) + res
    out = _layernorm(out, ln2w_ref[...], ln2b_ref[...])

    # ------------- block 3: feed-forward (dropout p=0 => identity) ---------
    res = out
    hid = jnp.maximum(
        jnp.dot(out.astype(bf16), w1_ref[...], preferred_element_type=f32)
        + b1_ref[...], 0.0)
    ffn = jnp.dot(hid.astype(bf16), w2_ref[...],
                  preferred_element_type=f32) + b2_ref[...]
    out = _layernorm(ffn + res, ln3w_ref[...], ln3b_ref[...])

    out_ref[0] = out.astype(out_ref.dtype)


def _round_up(x, m):
    return ((x + m - 1) // m) * m


def _choose_chunk(n, target):
    """Largest multiple of 8 that divides n and is <= target; otherwise pick a
    padded chunk (never the full sequence for large n)."""
    best = 0
    c = 8
    while c <= min(n, target):
        if n % c == 0:
            best = c
        c += 8
    if best:
        return best
    return min(target, _round_up(n, 8))


def _vmem_capacity_bytes():
    try:
        return int(pltpu.get_tpu_info().vmem_capacity_bytes)
    except Exception:
        try:
            kind = jax.devices()[0].device_kind.lower()
        except Exception:
            kind = ""
        return (64 << 20) if "v7" in kind else (128 << 20)


def decoder_layer_pallas(x, memory, params, head_num, *, q_chunk=None):
    B, n, dim = x.shape
    m = memory.shape[1]
    assert dim % head_num == 0
    h = head_num
    dh = dim // h

    # ---- cross-attention context depends only on `memory`: build it once
    # ---- wrapper-side with plain XLA and hand the kernel a (B, h, dh, dh)
    # ---- tensor.  This removes memory + to_kv weights from kernel VMEM.
    kv = memory @ params["wkv"] + params["bkv"]                       # (B, m, 2*dim)
    k_m = kv[..., :dim].reshape(B, m, h, dh).transpose(0, 2, 1, 3)    # (B, h, m, dh)
    v_m = kv[..., dim:].reshape(B, m, h, dh).transpose(0, 2, 1, 3)
    ctx = jnp.einsum('bhmd,bhme->bhde',
                     jax.nn.softmax(k_m, axis=-2), v_m).astype(jnp.float32)

    # ---- generation-aware chunk size (v5e and older: 128-wide MXU; else 256)
    kind = jax.devices()[0].device_kind.lower()
    old_gen = any(t in kind for t in ("v2", "v3", "v4", "v5"))
    target = 128 if old_gen else 256
    if q_chunk is None:
        q_chunk = _choose_chunk(n, target)
    assert q_chunk % 8 == 0 or q_chunk == n, \
        "q_chunk must be a multiple of 8 (or the full sequence)"
    n_pad = _round_up(n, q_chunk)
    # padding at the end is exact for causal linear attention; padded rows are
    # sliced off the output.
    x_in = x if n_pad == n else jnp.pad(x, ((0, 0), (0, n_pad - n), (0, 0)))
    n_chunks = n_pad // q_chunk

    # Matmul weights feed the MXU in bf16 (native rate, half the HBM->VMEM
    # traffic); biases and LayerNorm params stay f32.
    bf = jnp.bfloat16
    param_list = [
        params["wqvk"].astype(bf), params["bqvk"],
        params["ln1w"], params["ln1b"],
        params["wq"].astype(bf), params["bq"],
        params["ln2w"], params["ln2b"],
        params["w1"].astype(bf), params["b1"],
        params["w2"].astype(bf), params["b2"],
        params["ln3w"], params["ln3b"],
    ]

    # ---- scoped-VMEM budget: params (worst case: double-buffered), activation
    # ---- blocks, the (h, tq, tq) score block + mask, bf16 copies, FFN hidden,
    # ---- running-state scratch.
    def _nbytes(a):
        return int(np.prod(a.shape)) * a.dtype.itemsize

    ff_hid = params["w1"].shape[1]
    need = 2 * sum(_nbytes(p) for p in param_list)                    # params
    need += 2 * h * dh * dh * 4                                       # ctx block
    need += 2 * 4 * (2 * q_chunk * dim)                               # x / out blocks
    need += h * q_chunk * q_chunk * (4 + 2) + q_chunk * q_chunk * 4   # scores + mask
    need += q_chunk * ff_hid * (4 + 2)                                # FFN hidden
    need += q_chunk * 3 * dim * (4 + 2)                               # qvk (+bf16 copy)
    need += q_chunk * dim * (10 * 4 + 4 * 2)                          # head/attn temps
    need += h * dh * (dh + 1) * 4                                     # running state

    cap = _vmem_capacity_bytes()
    ceiling = min(cap * 3 // 4, cap - (16 << 20))   # ~48 MiB on v7x, ~96 MiB on 128-MiB parts
    vmem_limit = int(min(max(need + (8 << 20), 32 << 20), ceiling))

    def _build(fast_layout, single_buffer):
        def _const_spec(p):
            idx = lambda b, c, _nd=p.ndim: (0,) * _nd
            if single_buffer:
                # constant index_map => the second pipeline buffer is pure waste
                return pl.BlockSpec(p.shape, idx, pipeline_mode=pl.Buffered(1))
            return pl.BlockSpec(p.shape, idx)

        in_specs = [
            pl.BlockSpec((1, q_chunk, dim), lambda b, c: (b, c, 0)),    # x chunk
            pl.BlockSpec((1, h, dh, dh), lambda b, c: (b, 0, 0, 0)),    # cross ctx
        ] + [_const_spec(p) for p in param_list]

        kernel = functools.partial(decoder_layer_kernel, head_num=h,
                                   fast_layout=fast_layout)
        return pl.pallas_call(
            kernel,
            out_shape=jax.ShapeDtypeStruct((B, n_pad, dim), x.dtype),
            grid=(B, n_chunks),      # batch parallel (feeds both v7x TCs when
                                     # B >= 2); chunk axis carries state -> sequential
            in_specs=in_specs,
            out_specs=pl.BlockSpec((1, q_chunk, dim), lambda b, c: (b, c, 0)),
            scratch_shapes=[
                pltpu.VMEM((h, dh, dh), jnp.float32),   # running sum_j k_j v_j^T
                pltpu.VMEM((h, 1, dh), jnp.float32),    # running sum_j k_j
            ],
            compiler_params=pltpu.CompilerParams(
                dimension_semantics=("parallel", "arbitrary"),
                vmem_limit_bytes=vmem_limit),
        )(x_in, ctx, *param_list)

    # Try the optimized lowering first; fall back to progressively more
    # conservative (but numerically equivalent) variants if the installed
    # Pallas/Mosaic rejects Buffered(1) or the reshape/transpose head layout.
    out = None
    errs = []
    for fast_layout, single_buffer in ((True, True), (True, False), (False, False)):
        try:
            out = jax.block_until_ready(_build(fast_layout, single_buffer))
            break
        except Exception as e:      # version-dependent lowering support
            errs.append(e)
    if out is None:
        raise errs[-1]

    return out if n_pad == n else out[:, :n, :]


def init_params(key, dim, hid=FF_HID):
    ks = jax.random.split(key, 8)

    def lin(k, fan_in, fan_out):
        kw, kb = jax.random.split(k)
        w = jax.random.normal(kw, (fan_in, fan_out), jnp.float32) * (fan_in ** -0.5)
        b = jax.random.normal(kb, (1, fan_out), jnp.float32) * 0.02
        return w, b

    def ln(k):
        kw, kb = jax.random.split(k)
        return (1.0 + 0.1 * jax.random.normal(kw, (1, dim), jnp.float32),
                0.1 * jax.random.normal(kb, (1, dim), jnp.float32))

    wqvk, bqvk = lin(ks[0], dim, 3 * dim)
    wkv, bkv = lin(ks[1], dim, 2 * dim)
    wq, bq = lin(ks[2], dim, dim)
    w1, b1 = lin(ks[3], dim, hid)
    w2, b2 = lin(ks[4], hid, dim)
    ln1w, ln1b = ln(ks[5])
    ln2w, ln2b = ln(ks[6])
    ln3w, ln3b = ln(ks[7])
    return dict(wqvk=wqvk, bqvk=bqvk, wkv=wkv, bkv=bkv, wq=wq, bq=bq,
                w1=w1, b1=b1, w2=w2, b2=b2,
                ln1w=ln1w, ln1b=ln1b, ln2w=ln2w, ln2b=ln2b, ln3w=ln3w, ln3b=ln3b)


# ---------------- pure-JAX reference faithful to the PyTorch code -----------
def reference_forward(x, memory, params, h):
    def to_eachhead(t, split):
        B, n, _d = t.shape
        d = _d // split
        outs = []
        for i in range(split):
            c = t[:, :, i * d:(i + 1) * d]
            outs.append(c.reshape(B, n, h, d // h).transpose(0, 2, 1, 3))
        return outs

    def concat_head(t):
        B, hh, n, dd = t.shape
        return t.transpose(0, 2, 1, 3).reshape(B, n, hh * dd)

    def layernorm(t, w, b):
        mu = t.mean(-1, keepdims=True)
        var = ((t - mu) ** 2).mean(-1, keepdims=True)
        return (t - mu) / jnp.sqrt(var + LN_EPS) * w + b

    def causal_linear_attn(q, k, v):  # bucket_size = 1, cumsum formulation
        e = q.shape[-1]
        q = jax.nn.softmax(q, -1) * e ** -0.5
        k = jnp.exp(k)
        b_q = q[:, :, :, None, :]
        b_k = k[:, :, :, None, :]
        b_v = v[:, :, :, None, :]
        b_k_cumsum = jnp.cumsum(b_k.sum(-2), axis=-2)
        context = jnp.einsum('bhund,bhune->bhude', b_k, b_v)
        context = jnp.cumsum(context, axis=-3)
        D_inv = 1.0 / jnp.einsum('bhud,bhund->bhun', b_k_cumsum + ATTN_EPS, b_q)
        attn = jnp.einsum('bhund,bhude,bhun->bhune', b_q, context, D_inv)
        return attn.reshape(q.shape)

    def linear_attn(q, k, v):
        d = q.shape[-1]
        q = jax.nn.softmax(q, -1) * d ** -0.5
        k = jax.nn.softmax(k, -2)
        context = jnp.einsum('bhnd,bhne->bhde', k, v)
        return jnp.einsum('bhnd,bhde->bhne', q, context)

    p = params
    res = x
    qvk = x @ p["wqvk"] + p["bqvk"]
    q, v, k = to_eachhead(qvk, 3)
    out = concat_head(causal_linear_attn(q, k, v)) + res
    out = layernorm(out, p["ln1w"], p["ln1b"])
    res = out
    kv = memory @ p["wkv"] + p["bkv"]
    k, v = to_eachhead(kv, 2)
    q = to_eachhead(out @ p["wq"] + p["bq"], 1)[0]
    out = concat_head(linear_attn(q, k, v)) + res
    out = layernorm(out, p["ln2w"], p["ln2b"])
    res = out
    hid = jax.nn.relu(out @ p["w1"] + p["b1"])
    out = hid @ p["w2"] + p["b2"] + res
    return layernorm(out, p["ln3w"], p["ln3b"])


if __name__ == "__main__":
    B, n, m, dim, h = 2, 16, 8, 32, 4
    key = jax.random.PRNGKey(0)
    kx, kmem, kp = jax.random.split(key, 3)
    x = jax.random.normal(kx, (B, n, dim), jnp.float32)
    memory = jax.random.normal(kmem, (B, m, dim), jnp.float32)
    params = init_params(kp, dim)

    # q_chunk=8 -> two sequential chunks per batch element: exercises the
    # running-state carry across the "arbitrary" grid axis.
    out = decoder_layer_pallas(x, memory, params, h, q_chunk=8)
    out = jax.block_until_ready(out)

    ref = reference_forward(x, memory, params, h)
    assert out.shape == (B, n, dim)
    # bf16 MXU inputs + approx reciprocals => slightly looser tolerance than f32
    np.testing.assert_allclose(np.asarray(out), np.asarray(ref), rtol=3e-2, atol=3e-2)
    print("KERNEL_OK")
</pallas_src>

<mosaic_0001>
module attributes {stable_mosaic.version = 11 : i64} {
  func.func @decoder_layer_kernel(%arg0: i32, %arg1: i32, %arg2: memref<1x8x32xf32, #tpu.memory_space<vmem>>, %arg3: memref<1x4x8x8xf32, #tpu.memory_space<vmem>>, %arg4: memref<32x96xbf16, #tpu.memory_space<vmem>>, %arg5: memref<1x96xf32, #tpu.memory_space<vmem>>, %arg6: memref<1x32xf32, #tpu.memory_space<vmem>>, %arg7: memref<1x32xf32, #tpu.memory_space<vmem>>, %arg8: memref<32x32xbf16, #tpu.memory_space<vmem>>, %arg9: memref<1x32xf32, #tpu.memory_space<vmem>>, %arg10: memref<1x32xf32, #tpu.memory_space<vmem>>, %arg11: memref<1x32xf32, #tpu.memory_space<vmem>>, %arg12: memref<32x2048xbf16, #tpu.memory_space<vmem>>, %arg13: memref<1x2048xf32, #tpu.memory_space<vmem>>, %arg14: memref<2048x32xbf16, #tpu.memory_space<vmem>>, %arg15: memref<1x32xf32, #tpu.memory_space<vmem>>, %arg16: memref<1x32xf32, #tpu.memory_space<vmem>>, %arg17: memref<1x32xf32, #tpu.memory_space<vmem>>, %arg18: memref<1x8x32xf32, #tpu.memory_space<vmem>>, %arg19: memref<4x8x8xf32, #tpu.memory_space<vmem>>, %arg20: memref<4x1x8xf32, #tpu.memory_space<vmem>>) attributes {dimension_semantics = [#tpu.dimension_semantics<parallel>, #tpu.dimension_semantics<arbitrary>], iteration_bounds = array<i64: 2, 2>, scalar_prefetch = 0 : i64, scratch_operands = 2 : i64, tpu.core_type = #tpu.core_type<tc>, window_params = [{transform_indices = @transform_0, window_bounds = array<i64: 1, 8, 32>}, {transform_indices = @transform_1, window_bounds = array<i64: 1, 4, 8, 8>}, {pipeline_mode = #tpu.pipeline_mode<synchronous>, transform_indices = @transform_2, window_bounds = array<i64: 32, 96>}, {pipeline_mode = #tpu.pipeline_mode<synchronous>, transform_indices = @transform_3, window_bounds = array<i64: 1, 96>}, {pipeline_mode = #tpu.pipeline_mode<synchronous>, transform_indices = @transform_4, window_bounds = array<i64: 1, 32>}, {pipeline_mode = #tpu.pipeline_mode<synchronous>, transform_indices = @transform_5, window_bounds = array<i64: 1, 32>}, {pipeline_mode = #tpu.pipeline_mode<synchronous>, transform_indices = @transform_6, window_bounds = array<i64: 32, 32>}, {pipeline_mode = #tpu.pipeline_mode<synchronous>, transform_indices = @transform_7, window_bounds = array<i64: 1, 32>}, {pipeline_mode = #tpu.pipeline_mode<synchronous>, transform_indices = @transform_8, window_bounds = array<i64: 1, 32>}, {pipeline_mode = #tpu.pipeline_mode<synchronous>, transform_indices = @transform_9, window_bounds = array<i64: 1, 32>}, {pipeline_mode = #tpu.pipeline_mode<synchronous>, transform_indices = @transform_10, window_bounds = array<i64: 32, 2048>}, {pipeline_mode = #tpu.pipeline_mode<synchronous>, transform_indices = @transform_11, window_bounds = array<i64: 1, 2048>}, {pipeline_mode = #tpu.pipeline_mode<synchronous>, transform_indices = @transform_12, window_bounds = array<i64: 2048, 32>}, {pipeline_mode = #tpu.pipeline_mode<synchronous>, transform_indices = @transform_13, window_bounds = array<i64: 1, 32>}, {pipeline_mode = #tpu.pipeline_mode<synchronous>, transform_indices = @transform_14, window_bounds = array<i64: 1, 32>}, {pipeline_mode = #tpu.pipeline_mode<synchronous>, transform_indices = @transform_15, window_bounds = array<i64: 1, 32>}, {transform_indices = @transform_16, window_bounds = array<i64: 1, 8, 32>}]} {
    %c0 = arith.constant 0 : index
    %c0_0 = arith.constant 0 : index
    %c0_1 = arith.constant 0 : index
    %0 = vector.load %arg2[%c0, %c0_0, %c0_1] : memref<1x8x32xf32, #tpu.memory_space<vmem>>, vector<1x8x32xf32>
    %1 = vector.shape_cast %0 : vector<1x8x32xf32> to vector<8x32xf32>
    %c0_i32 = arith.constant 0 : i32
    %2 = arith.cmpi eq, %arg1, %c0_i32 : i32
    %3 = arith.extui %2 : i1 to i32
    %c0_i32_2 = arith.constant 0 : i32
    %4 = arith.cmpi ne, %3, %c0_i32_2 : i32
    scf.if %4 {
      %cst_92 = arith.constant 0.000000e+00 : f32
      %197 = vector.broadcast %cst_92 : f32 to vector<4x8x8xf32>
      %c0_93 = arith.constant 0 : index
      %c0_94 = arith.constant 0 : index
      %c0_95 = arith.constant 0 : index
      %198 = vector.load %arg19[%c0_93, %c0_94, %c0_95] : memref<4x8x8xf32, #tpu.memory_space<vmem>>, vector<4x8x8xf32>
      tpu.vector_store %arg19[%c0_93, %c0_94, %c0_95], %197 {strides = array<i32>} : memref<4x8x8xf32, #tpu.memory_space<vmem>>, vector<4x8x8xf32>,
      %cst_96 = arith.constant 0.000000e+00 : f32
      %199 = vector.broadcast %cst_96 : f32 to vector<4x1x8xf32>
      %c0_97 = arith.constant 0 : index
      %c0_98 = arith.constant 0 : index
      %c0_99 = arith.constant 0 : index
      %200 = vector.load %arg20[%c0_97, %c0_98, %c0_99] : memref<4x1x8xf32, #tpu.memory_space<vmem>>, vector<4x1x8xf32>
      tpu.vector_store %arg20[%c0_97, %c0_98, %c0_99], %199 {strides = array<i32>} : memref<4x1x8xf32, #tpu.memory_space<vmem>>, vector<4x1x8xf32>,
    } else {
    }
    %5 = arith.truncf %1 : vector<8x32xf32> to vector<8x32xbf16>
    %c0_3 = arith.constant 0 : index
    %c0_4 = arith.constant 0 : index
    %6 = vector.load %arg4[%c0_3, %c0_4] : memref<32x96xbf16, #tpu.memory_space<vmem>>, vector<32x96xbf16>
    %cst = arith.constant dense<0.000000e+00> : vector<8x96xf32>
    %7 = tpu.matmul %5, %6, %cst {dimension_numbers = #tpu.dot_dimension_numbers<[1], [0], [0], [1], [0, 0, 1, 1], [], []>} : vector<8x32xbf16>, vector<32x96xbf16>, vector<8x96xf32> -> vector<8x96xf32>
    %c0_5 = arith.constant 0 : index
    %c0_6 = arith.constant 0 : index
    %8 = vector.load %arg5[%c0_5, %c0_6] : memref<1x96xf32, #tpu.memory_space<vmem>>, vector<1x96xf32>
    %9 = vector.broadcast %8 : vector<1x96xf32> to vector<8x96xf32>
    %10 = arith.addf %7, %9 : vector<8x96xf32>
    %11 = vector.extract_strided_slice %10 {offsets = [0, 0], sizes = [8, 32], strides = [1, 1]} : vector<8x96xf32> to vector<8x32xf32>
    %12 = vector.shape_cast %11 : vector<8x32xf32> to vector<8x4x8xf32>
    %13 = tpu.transpose %12, [1, 0, 2] : vector<8x4x8xf32> -> vector<4x8x8xf32>
    %14 = vector.extract_strided_slice %10 {offsets = [0, 32], sizes = [8, 32], strides = [1, 1]} : vector<8x96xf32> to vector<8x32xf32>
    %15 = vector.shape_cast %14 : vector<8x32xf32> to vector<8x4x8xf32>
    %16 = tpu.transpose %15, [1, 0, 2] : vector<8x4x8xf32> -> vector<4x8x8xf32>
    %17 = vector.extract_strided_slice %10 {offsets = [0, 64], sizes = [8, 32], strides = [1, 1]} : vector<8x96xf32> to vector<8x32xf32>
    %18 = vector.shape_cast %17 : vector<8x32xf32> to vector<8x4x8xf32>
    %19 = tpu.transpose %18, [1, 0, 2] : vector<8x4x8xf32> -> vector<4x8x8xf32>
    %cst_7 = arith.constant dense<0xFF800000> : vector<4x8xf32>
    %20 = vector.multi_reduction <maximumf>, %13, %cst_7 [2] : vector<4x8x8xf32> to vector<4x8xf32>
    %21 = vector.shape_cast %20 : vector<4x8xf32> to vector<4x8x1xf32>
    %22 = vector.broadcast %21 : vector<4x8x1xf32> to vector<4x8x8xf32>
    %23 = arith.subf %13, %22 : vector<4x8x8xf32>
    %24 = math.exp %23 : vector<4x8x8xf32>
    %cst_8 = arith.constant dense<0.000000e+00> : vector<4x8xf32>
    %25 = vector.multi_reduction <add>, %24, %cst_8 [2] : vector<4x8x8xf32> to vector<4x8xf32>
    %26 = vector.shape_cast %25 : vector<4x8xf32> to vector<4x8x1xf32>
    %27 = tpu.reciprocal %26 {approx = true} : vector<4x8x1xf32> -> vector<4x8x1xf32>
    %28 = vector.broadcast %27 : vector<4x8x1xf32> to vector<4x8x8xf32>
    %29 = arith.mulf %24, %28 : vector<4x8x8xf32>
    %cst_9 = arith.constant 0.353553385 : f32
    %30 = vector.broadcast %cst_9 : f32 to vector<4x8x8xf32>
    %31 = arith.mulf %29, %30 : vector<4x8x8xf32>
    %32 = math.exp %19 : vector<4x8x8xf32>
    %33 = arith.truncf %31 : vector<4x8x8xf32> to vector<4x8x8xbf16>
    %34 = arith.truncf %32 : vector<4x8x8xf32> to vector<4x8x8xbf16>
    %35 = arith.truncf %16 : vector<4x8x8xf32> to vector<4x8x8xbf16>
    %36 = tpu.iota {dimensions = array<i32: 0>} : vector<8x8xi32>
    %37 = tpu.iota {dimensions = array<i32: 1>} : vector<8x8xi32>
    %38 = arith.cmpi sle, %37, %36 : vector<8x8xi32>
    %39 = vector.shape_cast %38 : vector<8x8xi1> to vector<1x8x8xi1>
    "tpu.trace_start"() <{level = 10 : i32, message = "hqd,hkd->hqk"}> : () -> ()
    %cst_10 = arith.constant dense<0.000000e+00> : vector<4x8x8xf32>
    %40 = tpu.matmul %33, %34, %cst_10 {dimension_numbers = #tpu.dot_dimension_numbers<[2], [2], [1], [1], [0, 0, 0, 1, 1, 1], [0], [0]>} : vector<4x8x8xbf16>, vector<4x8x8xbf16>, vector<4x8x8xf32> -> vector<4x8x8xf32>
    %cst_11 = arith.constant 0.000000e+00 : f32
    "tpu.trace_stop"() : () -> ()
    %41 = vector.shape_cast %39 : vector<1x8x8xi1> to vector<1x8x8xi1>
    %42 = vector.broadcast %41 : vector<1x8x8xi1> to vector<4x8x8xi1>
    %43 = vector.broadcast %cst_11 : f32 to vector<4x8x8xf32>
    %44 = arith.select %42, %40, %43 : vector<4x8x8xi1>, vector<4x8x8xf32>
    %45 = arith.truncf %44 : vector<4x8x8xf32> to vector<4x8x8xbf16>
    "tpu.trace_start"() <{level = 10 : i32, message = "hqk,hkd->hqd"}> : () -> ()
    %cst_12 = arith.constant dense<0.000000e+00> : vector<4x8x8xf32>
    %46 = tpu.matmul %45, %35, %cst_12 {dimension_numbers = #tpu.dot_dimension_numbers<[2], [1], [1], [2], [0, 0, 0, 1, 1, 2], [0], [0]>} : vector<4x8x8xbf16>, vector<4x8x8xbf16>, vector<4x8x8xf32> -> vector<4x8x8xf32>
    "tpu.trace_stop"() : () -> ()
    %cst_13 = arith.constant dense<0.000000e+00> : vector<4x8xf32>
    %47 = vector.multi_reduction <add>, %44, %cst_13 [2] : vector<4x8x8xf32> to vector<4x8xf32>
    %48 = vector.shape_cast %47 : vector<4x8xf32> to vector<4x8x1xf32>
    %c0_14 = arith.constant 0 : index
    %c0_15 = arith.constant 0 : index
    %c0_16 = arith.constant 0 : index
    %49 = vector.load %arg19[%c0_14, %c0_15, %c0_16] : memref<4x8x8xf32, #tpu.memory_space<vmem>>, vector<4x8x8xf32>
    %50 = arith.truncf %49 : vector<4x8x8xf32> to vector<4x8x8xbf16>
    "tpu.trace_start"() <{level = 10 : i32, message = "hqd,hde->hqe"}> : () -> ()
    %cst_17 = arith.constant dense<0.000000e+00> : vector<4x8x8xf32>
    %51 = tpu.matmul %33, %50, %cst_17 {dimension_numbers = #tpu.dot_dimension_numbers<[2], [1], [1], [2], [0, 0, 0, 1, 1, 2], [0], [0]>} : vector<4x8x8xbf16>, vector<4x8x8xbf16>, vector<4x8x8xf32> -> vector<4x8x8xf32>
    "tpu.trace_stop"() : () -> ()
    %52 = arith.addf %46, %51 : vector<4x8x8xf32>
    %c0_18 = arith.constant 0 : index
    %c0_19 = arith.constant 0 : index
    %c0_20 = arith.constant 0 : index
    %53 = vector.load %arg20[%c0_18, %c0_19, %c0_20] : memref<4x1x8xf32, #tpu.memory_space<vmem>>, vector<4x1x8xf32>
    %54 = vector.broadcast %53 : vector<4x1x8xf32> to vector<4x8x8xf32>
    %55 = arith.mulf %31, %54 : vector<4x8x8xf32>
    %cst_21 = arith.constant dense<0.000000e+00> : vector<4x8xf32>
    %56 = vector.multi_reduction <add>, %55, %cst_21 [2] : vector<4x8x8xf32> to vector<4x8xf32>
    %57 = vector.shape_cast %56 : vector<4x8xf32> to vector<4x8x1xf32>
    %58 = arith.addf %48, %57 : vector<4x8x1xf32>
    %cst_22 = arith.constant dense<0.000000e+00> : vector<4x8xf32>
    %59 = vector.multi_reduction <add>, %31, %cst_22 [2] : vector<4x8x8xf32> to vector<4x8xf32>
    %60 = vector.shape_cast %59 : vector<4x8xf32> to vector<4x8x1xf32>
    %cst_23 = arith.constant 9.99999997E-7 : f32
    %61 = vector.broadcast %cst_23 : f32 to vector<4x8x1xf32>
    %62 = arith.mulf %61, %60 : vector<4x8x1xf32>
    %63 = arith.addf %58, %62 : vector<4x8x1xf32>
    %64 = tpu.reciprocal %63 {approx = true} : vector<4x8x1xf32> -> vector<4x8x1xf32>
    %65 = vector.broadcast %64 : vector<4x8x1xf32> to vector<4x8x8xf32>
    %66 = arith.mulf %52, %65 : vector<4x8x8xf32>
    %c0_24 = arith.constant 0 : index
    %c0_25 = arith.constant 0 : index
    %c0_26 = arith.constant 0 : index
    %67 = vector.load %arg19[%c0_24, %c0_25, %c0_26] : memref<4x8x8xf32, #tpu.memory_space<vmem>>, vector<4x8x8xf32>
    "tpu.trace_start"() <{level = 10 : i32, message = "hqd,hqe->hde"}> : () -> ()
    %cst_27 = arith.constant dense<0.000000e+00> : vector<4x8x8xf32>
    %68 = tpu.matmul %34, %35, %cst_27 {dimension_numbers = #tpu.dot_dimension_numbers<[1], [1], [2], [2], [0, 0, 0, 2, 1, 2], [0], [0]>} : vector<4x8x8xbf16>, vector<4x8x8xbf16>, vector<4x8x8xf32> -> vector<4x8x8xf32>
    "tpu.trace_stop"() : () -> ()
    %69 = arith.addf %67, %68 : vector<4x8x8xf32>
    %c0_28 = arith.constant 0 : index
    %c0_29 = arith.constant 0 : index
    %c0_30 = arith.constant 0 : index
    %70 = vector.load %arg19[%c0_28, %c0_29, %c0_30] : memref<4x8x8xf32, #tpu.memory_space<vmem>>, vector<4x8x8xf32>
    tpu.vector_store %arg19[%c0_28, %c0_29, %c0_30], %69 {strides = array<i32>} : memref<4x8x8xf32, #tpu.memory_space<vmem>>, vector<4x8x8xf32>,
    %c0_31 = arith.constant 0 : index
    %c0_32 = arith.constant 0 : index
    %c0_33 = arith.constant 0 : index
    %71 = vector.load %arg20[%c0_31, %c0_32, %c0_33] : memref<4x1x8xf32, #tpu.memory_space<vmem>>, vector<4x1x8xf32>
    %cst_34 = arith.constant dense<0.000000e+00> : vector<4x8xf32>
    %72 = vector.multi_reduction <add>, %32, %cst_34 [1] : vector<4x8x8xf32> to vector<4x8xf32>
    %73 = vector.shape_cast %72 : vector<4x8xf32> to vector<4x1x8xf32>
    %74 = arith.addf %71, %73 : vector<4x1x8xf32>
    %c0_35 = arith.constant 0 : index
    %c0_36 = arith.constant 0 : index
    %c0_37 = arith.constant 0 : index
    %75 = vector.load %arg20[%c0_35, %c0_36, %c0_37] : memref<4x1x8xf32, #tpu.memory_space<vmem>>, vector<4x1x8xf32>
    tpu.vector_store %arg20[%c0_35, %c0_36, %c0_37], %74 {strides = array<i32>} : memref<4x1x8xf32, #tpu.memory_space<vmem>>, vector<4x1x8xf32>,
    %76 = tpu.transpose %66, [1, 0, 2] : vector<4x8x8xf32> -> vector<8x4x8xf32>
    %77 = vector.shape_cast %76 : vector<8x4x8xf32> to vector<8x32xf32>
    %78 = arith.addf %77, %1 : vector<8x32xf32>
    %c0_38 = arith.constant 0 : index
    %c0_39 = arith.constant 0 : index
    %79 = vector.load %arg6[%c0_38, %c0_39] : memref<1x32xf32, #tpu.memory_space<vmem>>, vector<1x32xf32>
    %c0_40 = arith.constant 0 : index
    %c0_41 = arith.constant 0 : index
    %80 = vector.load %arg7[%c0_40, %c0_41] : memref<1x32xf32, #tpu.memory_space<vmem>>, vector<1x32xf32>
    %cst_42 = arith.constant dense<0.000000e+00> : vector<8xf32>
    %81 = vector.multi_reduction <add>, %78, %cst_42 [1] : vector<8x32xf32> to vector<8xf32>
    %82 = vector.shape_cast %81 : vector<8xf32> to vector<8x1xf32>
    %cst_43 = arith.constant 3.200000e+01 : f32
    %83 = vector.broadcast %cst_43 : f32 to vector<8x1xf32>
    %84 = arith.divf %82, %83 : vector<8x1xf32>
    %85 = vector.broadcast %84 : vector<8x1xf32> to vector<8x32xf32>
    %86 = arith.subf %78, %85 : vector<8x32xf32>
    %87 = arith.mulf %86, %86 : vector<8x32xf32>
    %cst_44 = arith.constant dense<0.000000e+00> : vector<8xf32>
    %88 = vector.multi_reduction <add>, %87, %cst_44 [1] : vector<8x32xf32> to vector<8xf32>
    %89 = vector.shape_cast %88 : vector<8xf32> to vector<8x1xf32>
    %cst_45 = arith.constant 3.200000e+01 : f32
    %90 = vector.broadcast %cst_45 : f32 to vector<8x1xf32>
    %91 = arith.divf %89, %90 : vector<8x1xf32>
    %92 = vector.broadcast %84 : vector<8x1xf32> to vector<8x32xf32>
    %93 = arith.subf %78, %92 : vector<8x32xf32>
    %cst_46 = arith.constant 9.99999974E-6 : f32
    %94 = vector.broadcast %cst_46 : f32 to vector<8x1xf32>
    %95 = arith.addf %91, %94 : vector<8x1xf32>
    %96 = math.rsqrt %95 : vector<8x1xf32>
    %97 = vector.broadcast %96 : vector<8x1xf32> to vector<8x32xf32>
    %98 = arith.mulf %93, %97 : vector<8x32xf32>
    %99 = vector.broadcast %79 : vector<1x32xf32> to vector<8x32xf32>
    %100 = arith.mulf %98, %99 : vector<8x32xf32>
    %101 = vector.broadcast %80 : vector<1x32xf32> to vector<8x32xf32>
    %102 = arith.addf %100, %101 : vector<8x32xf32>
    %103 = arith.truncf %102 : vector<8x32xf32> to vector<8x32xbf16>
    %c0_47 = arith.constant 0 : index
    %c0_48 = arith.constant 0 : index
    %104 = vector.load %arg8[%c0_47, %c0_48] : memref<32x32xbf16, #tpu.memory_space<vmem>>, vector<32x32xbf16>
    %cst_49 = arith.constant dense<0.000000e+00> : vector<8x32xf32>
    %105 = tpu.matmul %103, %104, %cst_49 {dimension_numbers = #tpu.dot_dimension_numbers<[1], [0], [0], [1], [0, 0, 1, 1], [], []>} : vector<8x32xbf16>, vector<32x32xbf16>, vector<8x32xf32> -> vector<8x32xf32>
    %c0_50 = arith.constant 0 : index
    %c0_51 = arith.constant 0 : index
    %106 = vector.load %arg9[%c0_50, %c0_51] : memref<1x32xf32, #tpu.memory_space<vmem>>, vector<1x32xf32>
    %107 = vector.broadcast %106 : vector<1x32xf32> to vector<8x32xf32>
    %108 = arith.addf %105, %107 : vector<8x32xf32>
    %109 = vector.shape_cast %108 : vector<8x32xf32> to vector<8x4x8xf32>
    %110 = tpu.transpose %109, [1, 0, 2] : vector<8x4x8xf32> -> vector<4x8x8xf32>
    %cst_52 = arith.constant dense<0xFF800000> : vector<4x8xf32>
    %111 = vector.multi_reduction <maximumf>, %110, %cst_52 [2] : vector<4x8x8xf32> to vector<4x8xf32>
    %112 = vector.shape_cast %111 : vector<4x8xf32> to vector<4x8x1xf32>
    %113 = vector.broadcast %112 : vector<4x8x1xf32> to vector<4x8x8xf32>
    %114 = arith.subf %110, %113 : vector<4x8x8xf32>
    %115 = math.exp %114 : vector<4x8x8xf32>
    %cst_53 = arith.constant dense<0.000000e+00> : vector<4x8xf32>
    %116 = vector.multi_reduction <add>, %115, %cst_53 [2] : vector<4x8x8xf32> to vector<4x8xf32>
    %117 = vector.shape_cast %116 : vector<4x8xf32> to vector<4x8x1xf32>
    %118 = tpu.reciprocal %117 {approx = true} : vector<4x8x1xf32> -> vector<4x8x1xf32>
    %119 = vector.broadcast %118 : vector<4x8x1xf32> to vector<4x8x8xf32>
    %120 = arith.mulf %115, %119 : vector<4x8x8xf32>
    %cst_54 = arith.constant 0.353553385 : f32
    %121 = vector.broadcast %cst_54 : f32 to vector<4x8x8xf32>
    %122 = arith.mulf %120, %121 : vector<4x8x8xf32>
    %123 = arith.truncf %122 : vector<4x8x8xf32> to vector<4x8x8xbf16>
    %c0_55 = arith.constant 0 : index
    %c0_56 = arith.constant 0 : index
    %c0_57 = arith.constant 0 : index
    %c0_58 = arith.constant 0 : index
    %124 = vector.load %arg3[%c0_55, %c0_56, %c0_57, %c0_58] : memref<1x4x8x8xf32, #tpu.memory_space<vmem>>, vector<1x4x8x8xf32>
    %125 = vector.shape_cast %124 : vector<1x4x8x8xf32> to vector<4x8x8xf32>
    %126 = arith.truncf %125 : vector<4x8x8xf32> to vector<4x8x8xbf16>
    "tpu.trace_start"() <{level = 10 : i32, message = "hqd,hde->hqe"}> : () -> ()
    %cst_59 = arith.constant dense<0.000000e+00> : vector<4x8x8xf32>
    %127 = tpu.matmul %123, %126, %cst_59 {dimension_numbers = #tpu.dot_dimension_numbers<[2], [1], [1], [2], [0, 0, 0, 1, 1, 2], [0], [0]>} : vector<4x8x8xbf16>, vector<4x8x8xbf16>, vector<4x8x8xf32> -> vector<4x8x8xf32>
    "tpu.trace_stop"() : () -> ()
    %128 = tpu.transpose %127, [1, 0, 2] : vector<4x8x8xf32> -> vector<8x4x8xf32>
    %129 = vector.shape_cast %128 : vector<8x4x8xf32> to vector<8x32xf32>
    %130 = arith.addf %129, %102 : vector<8x32xf32>
    %c0_60 = arith.constant 0 : index
    %c0_61 = arith.constant 0 : index
    %131 = vector.load %arg10[%c0_60, %c0_61] : memref<1x32xf32, #tpu.memory_space<vmem>>, vector<1x32xf32>
    %c0_62 = arith.constant 0 : index
    %c0_63 = arith.constant 0 : index
    %132 = vector.load %arg11[%c0_62, %c0_63] : memref<1x32xf32, #tpu.memory_space<vmem>>, vector<1x32xf32>
    %cst_64 = arith.constant dense<0.000000e+00> : vector<8xf32>
    %133 = vector.multi_reduction <add>, %130, %cst_64 [1] : vector<8x32xf32> to vector<8xf32>
    %134 = vector.shape_cast %133 : vector<8xf32> to vector<8x1xf32>
    %cst_65 = arith.constant 3.200000e+01 : f32
    %135 = vector.broadcast %cst_65 : f32 to vector<8x1xf32>
    %136 = arith.divf %134, %135 : vector<8x1xf32>
    %137 = vector.broadcast %136 : vector<8x1xf32> to vector<8x32xf32>
    %138 = arith.subf %130, %137 : vector<8x32xf32>
    %139 = arith.mulf %138, %138 : vector<8x32xf32>
    %cst_66 = arith.constant dense<0.000000e+00> : vector<8xf32>
    %140 = vector.multi_reduction <add>, %139, %cst_66 [1] : vector<8x32xf32> to vector<8xf32>
    %141 = vector.shape_cast %140 : vector<8xf32> to vector<8x1xf32>
    %cst_67 = arith.constant 3.200000e+01 : f32
    %142 = vector.broadcast %cst_67 : f32 to vector<8x1xf32>
    %143 = arith.divf %141, %142 : vector<8x1xf32>
    %144 = vector.broadcast %136 : vector<8x1xf32> to vector<8x32xf32>
    %145 = arith.subf %130, %144 : vector<8x32xf32>
    %cst_68 = arith.constant 9.99999974E-6 : f32
    %146 = vector.broadcast %cst_68 : f32 to vector<8x1xf32>
    %147 = arith.addf %143, %146 : vector<8x1xf32>
    %148 = math.rsqrt %147 : vector<8x1xf32>
    %149 = vector.broadcast %148 : vector<8x1xf32> to vector<8x32xf32>
    %150 = arith.mulf %145, %149 : vector<8x32xf32>
    %151 = vector.broadcast %131 : vector<1x32xf32> to vector<8x32xf32>
    %152 = arith.mulf %150, %151 : vector<8x32xf32>
    %153 = vector.broadcast %132 : vector<1x32xf32> to vector<8x32xf32>
    %154 = arith.addf %152, %153 : vector<8x32xf32>
    %155 = arith.truncf %154 : vector<8x32xf32> to vector<8x32xbf16>
    %c0_69 = arith.constant 0 : index
    %c0_70 = arith.constant 0 : index
    %156 = vector.load %arg12[%c0_69, %c0_70] : memref<32x2048xbf16, #tpu.memory_space<vmem>>, vector<32x2048xbf16>
    %cst_71 = arith.constant dense<0.000000e+00> : vector<8x2048xf32>
    %157 = tpu.matmul %155, %156, %cst_71 {dimension_numbers = #tpu.dot_dimension_numbers<[1], [0], [0], [1], [0, 0, 1, 1], [], []>} : vector<8x32xbf16>, vector<32x2048xbf16>, vector<8x2048xf32> -> vector<8x2048xf32>
    %c0_72 = arith.constant 0 : index
    %c0_73 = arith.constant 0 : index
    %158 = vector.load %arg13[%c0_72, %c0_73] : memref<1x2048xf32, #tpu.memory_space<vmem>>, vector<1x2048xf32>
    %159 = vector.broadcast %158 : vector<1x2048xf32> to vector<8x2048xf32>
    %160 = arith.addf %157, %159 : vector<8x2048xf32>
    %cst_74 = arith.constant 0.000000e+00 : f32
    %161 = vector.broadcast %cst_74 : f32 to vector<8x2048xf32>
    %162 = arith.maximumf %160, %161 : vector<8x2048xf32>
    %163 = arith.truncf %162 : vector<8x2048xf32> to vector<8x2048xbf16>
    %c0_75 = arith.constant 0 : index
    %c0_76 = arith.constant 0 : index
    %164 = vector.load %arg14[%c0_75, %c0_76] : memref<2048x32xbf16, #tpu.memory_space<vmem>>, vector<2048x32xbf16>
    %cst_77 = arith.constant dense<0.000000e+00> : vector<8x32xf32>
    %165 = tpu.matmul %163, %164, %cst_77 {dimension_numbers = #tpu.dot_dimension_numbers<[1], [0], [0], [1], [0, 0, 1, 1], [], []>} : vector<8x2048xbf16>, vector<2048x32xbf16>, vector<8x32xf32> -> vector<8x32xf32>
    %c0_78 = arith.constant 0 : index
    %c0_79 = arith.constant 0 : index
    %166 = vector.load %arg15[%c0_78, %c0_79] : memref<1x32xf32, #tpu.memory_space<vmem>>, vector<1x32xf32>
    %167 = vector.broadcast %166 : vector<1x32xf32> to vector<8x32xf32>
    %168 = arith.addf %165, %167 : vector<8x32xf32>
    %169 = arith.addf %168, %154 : vector<8x32xf32>
    %c0_80 = arith.constant 0 : index
    %c0_81 = arith.constant 0 : index
    %170 = vector.load %arg16[%c0_80, %c0_81] : memref<1x32xf32, #tpu.memory_space<vmem>>, vector<1x32xf32>
    %c0_82 = arith.constant 0 : index
    %c0_83 = arith.constant 0 : index
    %171 = vector.load %arg17[%c0_82, %c0_83] : memref<1x32xf32, #tpu.memory_space<vmem>>, vector<1x32xf32>
    %cst_84 = arith.constant dense<0.000000e+00> : vector<8xf32>
    %172 = vector.multi_reduction <add>, %169, %cst_84 [1] : vector<8x32xf32> to vector<8xf32>
    %173 = vector.shape_cast %172 : vector<8xf32> to vector<8x1xf32>
    %cst_85 = arith.constant 3.200000e+01 : f32
    %174 = vector.broadcast %cst_85 : f32 to vector<8x1xf32>
    %175 = arith.divf %173, %174 : vector<8x1xf32>
    %176 = vector.broadcast %175 : vector<8x1xf32> to vector<8x32xf32>
    %177 = arith.subf %169, %176 : vector<8x32xf32>
    %178 = arith.mulf %177, %177 : vector<8x32xf32>
    %cst_86 = arith.constant dense<0.000000e+00> : vector<8xf32>
    %179 = vector.multi_reduction <add>, %178, %cst_86 [1] : vector<8x32xf32> to vector<8xf32>
    %180 = vector.shape_cast %179 : vector<8xf32> to vector<8x1xf32>
    %cst_87 = arith.constant 3.200000e+01 : f32
    %181 = vector.broadcast %cst_87 : f32 to vector<8x1xf32>
    %182 = arith.divf %180, %181 : vector<8x1xf32>
    %183 = vector.broadcast %175 : vector<8x1xf32> to vector<8x32xf32>
    %184 = arith.subf %169, %183 : vector<8x32xf32>
    %cst_88 = arith.constant 9.99999974E-6 : f32
    %185 = vector.broadcast %cst_88 : f32 to vector<8x1xf32>
    %186 = arith.addf %182, %185 : vector<8x1xf32>
    %187 = math.rsqrt %186 : vector<8x1xf32>
    %188 = vector.broadcast %187 : vector<8x1xf32> to vector<8x32xf32>
    %189 = arith.mulf %184, %188 : vector<8x32xf32>
    %190 = vector.broadcast %170 : vector<1x32xf32> to vector<8x32xf32>
    %191 = arith.mulf %189, %190 : vector<8x32xf32>
    %192 = vector.broadcast %171 : vector<1x32xf32> to vector<8x32xf32>
    %193 = arith.addf %191, %192 : vector<8x32xf32>
    %c0_89 = arith.constant 0 : index
    %c0_90 = arith.constant 0 : index
    %c0_91 = arith.constant 0 : index
    %194 = vector.load %arg18[%c0_89, %c0_90, %c0_91] : memref<1x8x32xf32, #tpu.memory_space<vmem>>, vector<1x8x32xf32>
    %195 = vector.shape_cast %194 : vector<1x8x32xf32> to vector<8x32xf32>
    %196 = vector.shape_cast %193 : vector<8x32xf32> to vector<1x8x32xf32>
    tpu.vector_store %arg18[%c0_89, %c0_90, %c0_91], %196 {strides = array<i32>} : memref<1x8x32xf32, #tpu.memory_space<vmem>>, vector<1x8x32xf32>,
    return
  }
  func.func @transform_0(%arg0: i32, %arg1: i32) -> (i32, i32, i32) {
    %c0_i32 = arith.constant 0 : i32
    %c0_i32_0 = arith.constant 0 : i32
    return %arg0, %arg1, %c0_i32 : i32, i32, i32
  }
  func.func @transform_1(%arg0: i32, %arg1: i32) -> (i32, i32, i32, i32) {
    %c0_i32 = arith.constant 0 : i32
    %c0_i32_0 = arith.constant 0 : i32
    %c0_i32_1 = arith.constant 0 : i32
    %c0_i32_2 = arith.constant 0 : i32
    return %arg0, %c0_i32, %c0_i32_0, %c0_i32_1 : i32, i32, i32, i32
  }
  func.func @transform_2(%arg0: i32, %arg1: i32) -> (i32, i32) {
    %c0_i32 = arith.constant 0 : i32
    %c0_i32_0 = arith.constant 0 : i32
    %c0_i32_1 = arith.constant 0 : i32
    return %c0_i32, %c0_i32_0 : i32, i32
  }
  func.func @transform_3(%arg0: i32, %arg1: i32) -> (i32, i32) {
    %c0_i32 = arith.constant 0 : i32
    %c0_i32_0 = arith.constant 0 : i32
    %c0_i32_1 = arith.constant 0 : i32
    return %c0_i32, %c0_i32_0 : i32, i32
  }
  func.func @transform_4(%arg0: i32, %arg1: i32) -> (i32, i32) {
    %c0_i32 = arith.constant 0 : i32
    %c0_i32_0 = arith.constant 0 : i32
    %c0_i32_1 = arith.constant 0 : i32
    return %c0_i32, %c0_i32_0 : i32, i32
  }
  func.func @transform_5(%arg0: i32, %arg1: i32) -> (i32, i32) {
    %c0_i32 = arith.constant 0 : i32
    %c0_i32_0 = arith.constant 0 : i32
    %c0_i32_1 = arith.constant 0 : i32
    return %c0_i32, %c0_i32_0 : i32, i32
  }
  func.func @transform_6(%arg0: i32, %arg1: i32) -> (i32, i32) {
    %c0_i32 = arith.constant 0 : i32
    %c0_i32_0 = arith.constant 0 : i32
    %c0_i32_1 = arith.constant 0 : i32
    return %c0_i32, %c0_i32_0 : i32, i32
  }
  func.func @transform_7(%arg0: i32, %arg1: i32) -> (i32, i32) {
    %c0_i32 = arith.constant 0 : i32
    %c0_i32_0 = arith.constant 0 : i32
    %c0_i32_1 = arith.constant 0 : i32
    return %c0_i32, %c0_i32_0 : i32, i32
  }
  func.func @transform_8(%arg0: i32, %arg1: i32) -> (i32, i32) {
    %c0_i32 = arith.constant 0 : i32
    %c0_i32_0 = arith.constant 0 : i32
    %c0_i32_1 = arith.constant 0 : i32
    return %c0_i32, %c0_i32_0 : i32, i32
  }
  func.func @transform_9(%arg0: i32, %arg1: i32) -> (i32, i32) {
    %c0_i32 = arith.constant 0 : i32
    %c0_i32_0 = arith.constant 0 : i32
    %c0_i32_1 = arith.constant 0 : i32
    return %c0_i32, %c0_i32_0 : i32, i32
  }
  func.func @transform_10(%arg0: i32, %arg1: i32) -> (i32, i32) {
    %c0_i32 = arith.constant 0 : i32
    %c0_i32_0 = arith.constant 0 : i32
    %c0_i32_1 = arith.constant 0 : i32
    return %c0_i32, %c0_i32_0 : i32, i32
  }
  func.func @transform_11(%arg0: i32, %arg1: i32) -> (i32, i32) {
    %c0_i32 = arith.constant 0 : i32
    %c0_i32_0 = arith.constant 0 : i32
    %c0_i32_1 = arith.constant 0 : i32
    return %c0_i32, %c0_i32_0 : i32, i32
  }
  func.func @transform_12(%arg0: i32, %arg1: i32) -> (i32, i32) {
    %c0_i32 = arith.constant 0 : i32
    %c0_i32_0 = arith.constant 0 : i32
    %c0_i32_1 = arith.constant 0 : i32
    return %c0_i32, %c0_i32_0 : i32, i32
  }
  func.func @transform_13(%arg0: i32, %arg1: i32) -> (i32, i32) {
    %c0_i32 = arith.constant 0 : i32
    %c0_i32_0 = arith.constant 0 : i32
    %c0_i32_1 = arith.constant 0 : i32
    return %c0_i32, %c0_i32_0 : i32, i32
  }
  func.func @transform_14(%arg0: i32, %arg1: i32) -> (i32, i32) {
    %c0_i32 = arith.constant 0 : i32
    %c0_i32_0 = arith.constant 0 : i32
    %c0_i32_1 = arith.constant 0 : i32
    return %c0_i32, %c0_i32_0 : i32, i32
  }
  func.func @transform_15(%arg0: i32, %arg1: i32) -> (i32, i32) {
    %c0_i32 = arith.constant 0 : i32
    %c0_i32_0 = arith.constant 0 : i32
    %c0_i32_1 = arith.constant 0 : i32
    return %c0_i32, %c0_i32_0 : i32, i32
  }
  func.func @transform_16(%arg0: i32, %arg1: i32) -> (i32, i32, i32) {
    %c0_i32 = arith.constant 0 : i32
    %c0_i32_0 = arith.constant 0 : i32
    return %arg0, %arg1, %c0_i32 : i32, i32, i32
  }
}

module attributes {stable_mosaic.version = 11 : i64} {
  func.func @decoder_layer_kernel(%arg0: i32, %arg1: i32, %arg2: memref<1x8x32xf32, #tpu.memory_space<vmem>>, %arg3: memref<1x4x8x8xf32, #tpu.memory_space<vmem>>, %arg4: memref<32x96xbf16, #tpu.memory_space<vmem>>, %arg5: memref<1x96xf32, #tpu.memory_space<vmem>>, %arg6: memref<1x32xf32, #tpu.memory_space<vmem>>, %arg7: memref<1x32xf32, #tpu.memory_space<vmem>>, %arg8: memref<32x32xbf16, #tpu.memory_space<vmem>>, %arg9: memref<1x32xf32, #tpu.memory_space<vmem>>, %arg10: memref<1x32xf32, #tpu.memory_space<vmem>>, %arg11: memref<1x32xf32, #tpu.memory_space<vmem>>, %arg12: memref<32x2048xbf16, #tpu.memory_space<vmem>>, %arg13: memref<1x2048xf32, #tpu.memory_space<vmem>>, %arg14: memref<2048x32xbf16, #tpu.memory_space<vmem>>, %arg15: memref<1x32xf32, #tpu.memory_space<vmem>>, %arg16: memref<1x32xf32, #tpu.memory_space<vmem>>, %arg17: memref<1x32xf32, #tpu.memory_space<vmem>>, %arg18: memref<1x8x32xf32, #tpu.memory_space<vmem>>, %arg19: memref<4x8x8xf32, #tpu.memory_space<vmem>>, %arg20: memref<4x1x8xf32, #tpu.memory_space<vmem>>) attributes {dimension_semantics = [#tpu.dimension_semantics<parallel>, #tpu.dimension_semantics<arbitrary>], iteration_bounds = array<i64: 2, 2>, scalar_prefetch = 0 : i64, scratch_operands = 2 : i64, tpu.core_type = #tpu.core_type<tc>, window_params = [{transform_indices = @transform_0, window_bounds = array<i64: 1, 8, 32>}, {transform_indices = @transform_1, window_bounds = array<i64: 1, 4, 8, 8>}, {pipeline_mode = #tpu.pipeline_mode<synchronous>, transform_indices = @transform_2, window_bounds = array<i64: 32, 96>}, {pipeline_mode = #tpu.pipeline_mode<synchronous>, transform_indices = @transform_3, window_bounds = array<i64: 1, 96>}, {pipeline_mode = #tpu.pipeline_mode<synchronous>, transform_indices = @transform_4, window_bounds = array<i64: 1, 32>}, {pipeline_mode = #tpu.pipeline_mode<synchronous>, transform_indices = @transform_5, window_bounds = array<i64: 1, 32>}, {pipeline_mode = #tpu.pipeline_mode<synchronous>, transform_indices = @transform_6, window_bounds = array<i64: 32, 32>}, {pipeline_mode = #tpu.pipeline_mode<synchronous>, transform_indices = @transform_7, window_bounds = array<i64: 1, 32>}, {pipeline_mode = #tpu.pipeline_mode<synchronous>, transform_indices = @transform_8, window_bounds = array<i64: 1, 32>}, {pipeline_mode = #tpu.pipeline_mode<synchronous>, transform_indices = @transform_9, window_bounds = array<i64: 1, 32>}, {pipeline_mode = #tpu.pipeline_mode<synchronous>, transform_indices = @transform_10, window_bounds = array<i64: 32, 2048>}, {pipeline_mode = #tpu.pipeline_mode<synchronous>, transform_indices = @transform_11, window_bounds = array<i64: 1, 2048>}, {pipeline_mode = #tpu.pipeline_mode<synchronous>, transform_indices = @transform_12, window_bounds = array<i64: 2048, 32>}, {pipeline_mode = #tpu.pipeline_mode<synchronous>, transform_indices = @transform_13, window_bounds = array<i64: 1, 32>}, {pipeline_mode = #tpu.pipeline_mode<synchronous>, transform_indices = @transform_14, window_bounds = array<i64: 1, 32>}, {pipeline_mode = #tpu.pipeline_mode<synchronous>, transform_indices = @transform_15, window_bounds = array<i64: 1, 32>}, {transform_indices = @transform_16, window_bounds = array<i64: 1, 8, 32>}]} {
    %c0 = arith.constant 0 : index
    %c0_0 = arith.constant 0 : index
    %c0_1 = arith.constant 0 : index
    %0 = vector.load %arg2[%c0, %c0_0, %c0_1] : memref<1x8x32xf32, #tpu.memory_space<vmem>>, vector<1x8x32xf32>
    %1 = vector.shape_cast %0 : vector<1x8x32xf32> to vector<8x32xf32>
    %c0_i32 = arith.constant 0 : i32
    %2 = arith.cmpi eq, %arg1, %c0_i32 : i32
    %3 = arith.extui %2 : i1 to i32
    %c0_i32_2 = arith.constant 0 : i32
    %4 = arith.cmpi ne, %3, %c0_i32_2 : i32
    scf.if %4 {
      %cst_92 = arith.constant 0.000000e+00 : f32
      %197 = vector.broadcast %cst_92 : f32 to vector<4x8x8xf32>
      %c0_93 = arith.constant 0 : index
      %c0_94 = arith.constant 0 : index
      %c0_95 = arith.constant 0 : index
      %198 = vector.load %arg19[%c0_93, %c0_94, %c0_95] : memref<4x8x8xf32, #tpu.memory_space<vmem>>, vector<4x8x8xf32>
      tpu.vector_store %arg19[%c0_93, %c0_94, %c0_95], %197 {strides = array<i32>} : memref<4x8x8xf32, #tpu.memory_space<vmem>>, vector<4x8x8xf32>,
      %cst_96 = arith.constant 0.000000e+00 : f32
      %199 = vector.broadcast %cst_96 : f32 to vector<4x1x8xf32>
      %c0_97 = arith.constant 0 : index
      %c0_98 = arith.constant 0 : index
      %c0_99 = arith.constant 0 : index
      %200 = vector.load %arg20[%c0_97, %c0_98, %c0_99] : memref<4x1x8xf32, #tpu.memory_space<vmem>>, vector<4x1x8xf32>
      tpu.vector_store %arg20[%c0_97, %c0_98, %c0_99], %199 {strides = array<i32>} : memref<4x1x8xf32, #tpu.memory_space<vmem>>, vector<4x1x8xf32>,
    } else {
    }
    %5 = arith.truncf %1 : vector<8x32xf32> to vector<8x32xbf16>
    %c0_3 = arith.constant 0 : index
    %c0_4 = arith.constant 0 : index
    %6 = vector.load %arg4[%c0_3, %c0_4] : memref<32x96xbf16, #tpu.memory_space<vmem>>, vector<32x96xbf16>
    %cst = arith.constant dense<0.000000e+00> : vector<8x96xf32>
    %7 = tpu.matmul %5, %6, %cst {dimension_numbers = #tpu.dot_dimension_numbers<[1], [0], [0], [1], [0, 0, 1, 1], [], []>} : vector<8x32xbf16>, vector<32x96xbf16>, vector<8x96xf32> -> vector<8x96xf32>
    %c0_5 = arith.constant 0 : index
    %c0_6 = arith.constant 0 : index
    %8 = vector.load %arg5[%c0_5, %c0_6] : memref<1x96xf32, #tpu.memory_space<vmem>>, vector<1x96xf32>
    %9 = vector.broadcast %8 : vector<1x96xf32> to vector<8x96xf32>
    %10 = arith.addf %7, %9 : vector<8x96xf32>
    %11 = vector.extract_strided_slice %10 {offsets = [0, 0], sizes = [8, 32], strides = [1, 1]} : vector<8x96xf32> to vector<8x32xf32>
    %12 = vector.shape_cast %11 : vector<8x32xf32> to vector<8x4x8xf32>
    %13 = tpu.transpose %12, [1, 0, 2] : vector<8x4x8xf32> -> vector<4x8x8xf32>
    %14 = vector.extract_strided_slice %10 {offsets = [0, 32], sizes = [8, 32], strides = [1, 1]} : vector<8x96xf32> to vector<8x32xf32>
    %15 = vector.shape_cast %14 : vector<8x32xf32> to vector<8x4x8xf32>
    %16 = tpu.transpose %15, [1, 0, 2] : vector<8x4x8xf32> -> vector<4x8x8xf32>
    %17 = vector.extract_strided_slice %10 {offsets = [0, 64], sizes = [8, 32], strides = [1, 1]} : vector<8x96xf32> to vector<8x32xf32>
    %18 = vector.shape_cast %17 : vector<8x32xf32> to vector<8x4x8xf32>
    %19 = tpu.transpose %18, [1, 0, 2] : vector<8x4x8xf32> -> vector<4x8x8xf32>
    %cst_7 = arith.constant dense<0xFF800000> : vector<4x8xf32>
    %20 = vector.multi_reduction <maximumf>, %13, %cst_7 [2] : vector<4x8x8xf32> to vector<4x8xf32>
    %21 = vector.shape_cast %20 : vector<4x8xf32> to vector<4x8x1xf32>
    %22 = vector.broadcast %21 : vector<4x8x1xf32> to vector<4x8x8xf32>
    %23 = arith.subf %13, %22 : vector<4x8x8xf32>
    %24 = math.exp %23 : vector<4x8x8xf32>
    %cst_8 = arith.constant dense<0.000000e+00> : vector<4x8xf32>
    %25 = vector.multi_reduction <add>, %24, %cst_8 [2] : vector<4x8x8xf32> to vector<4x8xf32>
    %26 = vector.shape_cast %25 : vector<4x8xf32> to vector<4x8x1xf32>
    %27 = tpu.reciprocal %26 {approx = true} : vector<4x8x1xf32> -> vector<4x8x1xf32>
    %28 = vector.broadcast %27 : vector<4x8x1xf32> to vector<4x8x8xf32>
    %29 = arith.mulf %24, %28 : vector<4x8x8xf32>
    %cst_9 = arith.constant 0.353553385 : f32
    %30 = vector.broadcast %cst_9 : f32 to vector<4x8x8xf32>
    %31 = arith.mulf %29, %30 : vector<4x8x8xf32>
    %32 = math.exp %19 : vector<4x8x8xf32>
    %33 = arith.truncf %31 : vector<4x8x8xf32> to vector<4x8x8xbf16>
    %34 = arith.truncf %32 : vector<4x8x8xf32> to vector<4x8x8xbf16>
    %35 = arith.truncf %16 : vector<4x8x8xf32> to vector<4x8x8xbf16>
    %36 = tpu.iota {dimensions = array<i32: 0>} : vector<8x8xi32>
    %37 = tpu.iota {dimensions = array<i32: 1>} : vector<8x8xi32>
    %38 = arith.cmpi sle, %37, %36 : vector<8x8xi32>
    %39 = vector.shape_cast %38 : vector<8x8xi1> to vector<1x8x8xi1>
    "tpu.trace_start"() <{level = 10 : i32, message = "hqd,hkd->hqk"}> : () -> ()
    %cst_10 = arith.constant dense<0.000000e+00> : vector<4x8x8xf32>
    %40 = tpu.matmul %33, %34, %cst_10 {dimension_numbers = #tpu.dot_dimension_numbers<[2], [2], [1], [1], [0, 0, 0, 1, 1, 1], [0], [0]>} : vector<4x8x8xbf16>, vector<4x8x8xbf16>, vector<4x8x8xf32> -> vector<4x8x8xf32>
    %cst_11 = arith.constant 0.000000e+00 : f32
    "tpu.trace_stop"() : () -> ()
    %41 = vector.shape_cast %39 : vector<1x8x8xi1> to vector<1x8x8xi1>
    %42 = vector.broadcast %41 : vector<1x8x8xi1> to vector<4x8x8xi1>
    %43 = vector.broadcast %cst_11 : f32 to vector<4x8x8xf32>
    %44 = arith.select %42, %40, %43 : vector<4x8x8xi1>, vector<4x8x8xf32>
    %45 = arith.truncf %44 : vector<4x8x8xf32> to vector<4x8x8xbf16>
    "tpu.trace_start"() <{level = 10 : i32, message = "hqk,hkd->hqd"}> : () -> ()
    %cst_12 = arith.constant dense<0.000000e+00> : vector<4x8x8xf32>
    %46 = tpu.matmul %45, %35, %cst_12 {dimension_numbers = #tpu.dot_dimension_numbers<[2], [1], [1], [2], [0, 0, 0, 1, 1, 2], [0], [0]>} : vector<4x8x8xbf16>, vector<4x8x8xbf16>, vector<4x8x8xf32> -> vector<4x8x8xf32>
    "tpu.trace_stop"() : () -> ()
    %cst_13 = arith.constant dense<0.000000e+00> : vector<4x8xf32>
    %47 = vector.multi_reduction <add>, %44, %cst_13 [2] : vector<4x8x8xf32> to vector<4x8xf32>
    %48 = vector.shape_cast %47 : vector<4x8xf32> to vector<4x8x1xf32>
    %c0_14 = arith.constant 0 : index
    %c0_15 = arith.constant 0 : index
    %c0_16 = arith.constant 0 : index
    %49 = vector.load %arg19[%c0_14, %c0_15, %c0_16] : memref<4x8x8xf32, #tpu.memory_space<vmem>>, vector<4x8x8xf32>
    %50 = arith.truncf %49 : vector<4x8x8xf32> to vector<4x8x8xbf16>
    "tpu.trace_start"() <{level = 10 : i32, message = "hqd,hde->hqe"}> : () -> ()
    %cst_17 = arith.constant dense<0.000000e+00> : vector<4x8x8xf32>
    %51 = tpu.matmul %33, %50, %cst_17 {dimension_numbers = #tpu.dot_dimension_numbers<[2], [1], [1], [2], [0, 0, 0, 1, 1, 2], [0], [0]>} : vector<4x8x8xbf16>, vector<4x8x8xbf16>, vector<4x8x8xf32> -> vector<4x8x8xf32>
    "tpu.trace_stop"() : () -> ()
    %52 = arith.addf %46, %51 : vector<4x8x8xf32>
    %c0_18 = arith.constant 0 : index
    %c0_19 = arith.constant 0 : index
    %c0_20 = arith.constant 0 : index
    %53 = vector.load %arg20[%c0_18, %c0_19, %c0_20] : memref<4x1x8xf32, #tpu.memory_space<vmem>>, vector<4x1x8xf32>
    %54 = vector.broadcast %53 : vector<4x1x8xf32> to vector<4x8x8xf32>
    %55 = arith.mulf %31, %54 : vector<4x8x8xf32>
    %cst_21 = arith.constant dense<0.000000e+00> : vector<4x8xf32>
    %56 = vector.multi_reduction <add>, %55, %cst_21 [2] : vector<4x8x8xf32> to vector<4x8xf32>
    %57 = vector.shape_cast %56 : vector<4x8xf32> to vector<4x8x1xf32>
    %58 = arith.addf %48, %57 : vector<4x8x1xf32>
    %cst_22 = arith.constant dense<0.000000e+00> : vector<4x8xf32>
    %59 = vector.multi_reduction <add>, %31, %cst_22 [2] : vector<4x8x8xf32> to vector<4x8xf32>
    %60 = vector.shape_cast %59 : vector<4x8xf32> to vector<4x8x1xf32>
    %cst_23 = arith.constant 9.99999997E-7 : f32
    %61 = vector.broadcast %cst_23 : f32 to vector<4x8x1xf32>
    %62 = arith.mulf %61, %60 : vector<4x8x1xf32>
    %63 = arith.addf %58, %62 : vector<4x8x1xf32>
    %64 = tpu.reciprocal %63 {approx = true} : vector<4x8x1xf32> -> vector<4x8x1xf32>
    %65 = vector.broadcast %64 : vector<4x8x1xf32> to vector<4x8x8xf32>
    %66 = arith.mulf %52, %65 : vector<4x8x8xf32>
    %c0_24 = arith.constant 0 : index
    %c0_25 = arith.constant 0 : index
    %c0_26 = arith.constant 0 : index
    %67 = vector.load %arg19[%c0_24, %c0_25, %c0_26] : memref<4x8x8xf32, #tpu.memory_space<vmem>>, vector<4x8x8xf32>
    "tpu.trace_start"() <{level = 10 : i32, message = "hqd,hqe->hde"}> : () -> ()
    %cst_27 = arith.constant dense<0.000000e+00> : vector<4x8x8xf32>
    %68 = tpu.matmul %34, %35, %cst_27 {dimension_numbers = #tpu.dot_dimension_numbers<[1], [1], [2], [2], [0, 0, 0, 2, 1, 2], [0], [0]>} : vector<4x8x8xbf16>, vector<4x8x8xbf16>, vector<4x8x8xf32> -> vector<4x8x8xf32>
    "tpu.trace_stop"() : () -> ()
    %69 = arith.addf %67, %68 : vector<4x8x8xf32>
    %c0_28 = arith.constant 0 : index
    %c0_29 = arith.constant 0 : index
    %c0_30 = arith.constant 0 : index
    %70 = vector.load %arg19[%c0_28, %c0_29, %c0_30] : memref<4x8x8xf32, #tpu.memory_space<vmem>>, vector<4x8x8xf32>
    tpu.vector_store %arg19[%c0_28, %c0_29, %c0_30], %69 {strides = array<i32>} : memref<4x8x8xf32, #tpu.memory_space<vmem>>, vector<4x8x8xf32>,
    %c0_31 = arith.constant 0 : index
    %c0_32 = arith.constant 0 : index
    %c0_33 = arith.constant 0 : index
    %71 = vector.load %arg20[%c0_31, %c0_32, %c0_33] : memref<4x1x8xf32, #tpu.memory_space<vmem>>, vector<4x1x8xf32>
    %cst_34 = arith.constant dense<0.000000e+00> : vector<4x8xf32>
    %72 = vector.multi_reduction <add>, %32, %cst_34 [1] : vector<4x8x8xf32> to vector<4x8xf32>
    %73 = vector.shape_cast %72 : vector<4x8xf32> to vector<4x1x8xf32>
    %74 = arith.addf %71, %73 : vector<4x1x8xf32>
    %c0_35 = arith.constant 0 : index
    %c0_36 = arith.constant 0 : index
    %c0_37 = arith.constant 0 : index
    %75 = vector.load %arg20[%c0_35, %c0_36, %c0_37] : memref<4x1x8xf32, #tpu.memory_space<vmem>>, vector<4x1x8xf32>
    tpu.vector_store %arg20[%c0_35, %c0_36, %c0_37], %74 {strides = array<i32>} : memref<4x1x8xf32, #tpu.memory_space<vmem>>, vector<4x1x8xf32>,
    %76 = tpu.transpose %66, [1, 0, 2] : vector<4x8x8xf32> -> vector<8x4x8xf32>
    %77 = vector.shape_cast %76 : vector<8x4x8xf32> to vector<8x32xf32>
    %78 = arith.addf %77, %1 : vector<8x32xf32>
    %c0_38 = arith.constant 0 : index
    %c0_39 = arith.constant 0 : index
    %79 = vector.load %arg6[%c0_38, %c0_39] : memref<1x32xf32, #tpu.memory_space<vmem>>, vector<1x32xf32>
    %c0_40 = arith.constant 0 : index
    %c0_41 = arith.constant 0 : index
    %80 = vector.load %arg7[%c0_40, %c0_41] : memref<1x32xf32, #tpu.memory_space<vmem>>, vector<1x32xf32>
    %cst_42 = arith.constant dense<0.000000e+00> : vector<8xf32>
    %81 = vector.multi_reduction <add>, %78, %cst_42 [1] : vector<8x32xf32> to vector<8xf32>
    %82 = vector.shape_cast %81 : vector<8xf32> to vector<8x1xf32>
    %cst_43 = arith.constant 3.200000e+01 : f32
    %83 = vector.broadcast %cst_43 : f32 to vector<8x1xf32>
    %84 = arith.divf %82, %83 : vector<8x1xf32>
    %85 = vector.broadcast %84 : vector<8x1xf32> to vector<8x32xf32>
    %86 = arith.subf %78, %85 : vector<8x32xf32>
    %87 = arith.mulf %86, %86 : vector<8x32xf32>
    %cst_44 = arith.constant dense<0.000000e+00> : vector<8xf32>
    %88 = vector.multi_reduction <add>, %87, %cst_44 [1] : vector<8x32xf32> to vector<8xf32>
    %89 = vector.shape_cast %88 : vector<8xf32> to vector<8x1xf32>
    %cst_45 = arith.constant 3.200000e+01 : f32
    %90 = vector.broadcast %cst_45 : f32 to vector<8x1xf32>
    %91 = arith.divf %89, %90 : vector<8x1xf32>
    %92 = vector.broadcast %84 : vector<8x1xf32> to vector<8x32xf32>
    %93 = arith.subf %78, %92 : vector<8x32xf32>
    %cst_46 = arith.constant 9.99999974E-6 : f32
    %94 = vector.broadcast %cst_46 : f32 to vector<8x1xf32>
    %95 = arith.addf %91, %94 : vector<8x1xf32>
    %96 = math.rsqrt %95 : vector<8x1xf32>
    %97 = vector.broadcast %96 : vector<8x1xf32> to vector<8x32xf32>
    %98 = arith.mulf %93, %97 : vector<8x32xf32>
    %99 = vector.broadcast %79 : vector<1x32xf32> to vector<8x32xf32>
    %100 = arith.mulf %98, %99 : vector<8x32xf32>
    %101 = vector.broadcast %80 : vector<1x32xf32> to vector<8x32xf32>
    %102 = arith.addf %100, %101 : vector<8x32xf32>
    %103 = arith.truncf %102 : vector<8x32xf32> to vector<8x32xbf16>
    %c0_47 = arith.constant 0 : index
    %c0_48 = arith.constant 0 : index
    %104 = vector.load %arg8[%c0_47, %c0_48] : memref<32x32xbf16, #tpu.memory_space<vmem>>, vector<32x32xbf16>
    %cst_49 = arith.constant dense<0.000000e+00> : vector<8x32xf32>
    %105 = tpu.matmul %103, %104, %cst_49 {dimension_numbers = #tpu.dot_dimension_numbers<[1], [0], [0], [1], [0, 0, 1, 1], [], []>} : vector<8x32xbf16>, vector<32x32xbf16>, vector<8x32xf32> -> vector<8x32xf32>
    %c0_50 = arith.constant 0 : index
    %c0_51 = arith.constant 0 : index
    %106 = vector.load %arg9[%c0_50, %c0_51] : memref<1x32xf32, #tpu.memory_space<vmem>>, vector<1x32xf32>
    %107 = vector.broadcast %106 : vector<1x32xf32> to vector<8x32xf32>
    %108 = arith.addf %105, %107 : vector<8x32xf32>
    %109 = vector.shape_cast %108 : vector<8x32xf32> to vector<8x4x8xf32>
    %110 = tpu.transpose %109, [1, 0, 2] : vector<8x4x8xf32> -> vector<4x8x8xf32>
    %cst_52 = arith.constant dense<0xFF800000> : vector<4x8xf32>
    %111 = vector.multi_reduction <maximumf>, %110, %cst_52 [2] : vector<4x8x8xf32> to vector<4x8xf32>
    %112 = vector.shape_cast %111 : vector<4x8xf32> to vector<4x8x1xf32>
    %113 = vector.broadcast %112 : vector<4x8x1xf32> to vector<4x8x8xf32>
    %114 = arith.subf %110, %113 : vector<4x8x8xf32>
    %115 = math.exp %114 : vector<4x8x8xf32>
    %cst_53 = arith.constant dense<0.000000e+00> : vector<4x8xf32>
    %116 = vector.multi_reduction <add>, %115, %cst_53 [2] : vector<4x8x8xf32> to vector<4x8xf32>
    %117 = vector.shape_cast %116 : vector<4x8xf32> to vector<4x8x1xf32>
    %118 = tpu.reciprocal %117 {approx = true} : vector<4x8x1xf32> -> vector<4x8x1xf32>
    %119 = vector.broadcast %118 : vector<4x8x1xf32> to vector<4x8x8xf32>
    %120 = arith.mulf %115, %119 : vector<4x8x8xf32>
    %cst_54 = arith.constant 0.353553385 : f32
    %121 = vector.broadcast %cst_54 : f32 to vector<4x8x8xf32>
    %122 = arith.mulf %120, %121 : vector<4x8x8xf32>
    %123 = arith.truncf %122 : vector<4x8x8xf32> to vector<4x8x8xbf16>
    %c0_55 = arith.constant 0 : index
    %c0_56 = arith.constant 0 : index
    %c0_57 = arith.constant 0 : index
    %c0_58 = arith.constant 0 : index
    %124 = vector.load %arg3[%c0_55, %c0_56, %c0_57, %c0_58] : memref<1x4x8x8xf32, #tpu.memory_space<vmem>>, vector<1x4x8x8xf32>
    %125 = vector.shape_cast %124 : vector<1x4x8x8xf32> to vector<4x8x8xf32>
    %126 = arith.truncf %125 : vector<4x8x8xf32> to vector<4x8x8xbf16>
    "tpu.trace_start"() <{level = 10 : i32, message = "hqd,hde->hqe"}> : () -> ()
    %cst_59 = arith.constant dense<0.000000e+00> : vector<4x8x8xf32>
    %127 = tpu.matmul %123, %126, %cst_59 {dimension_numbers = #tpu.dot_dimension_numbers<[2], [1], [1], [2], [0, 0, 0, 1, 1, 2], [0], [0]>} : vector<4x8x8xbf16>, vector<4x8x8xbf16>, vector<4x8x8xf32> -> vector<4x8x8xf32>
    "tpu.trace_stop"() : () -> ()
    %128 = tpu.transpose %127, [1, 0, 2] : vector<4x8x8xf32> -> vector<8x4x8xf32>
    %129 = vector.shape_cast %128 : vector<8x4x8xf32> to vector<8x32xf32>
    %130 = arith.addf %129, %102 : vector<8x32xf32>
    %c0_60 = arith.constant 0 : index
    %c0_61 = arith.constant 0 : index
    %131 = vector.load %arg10[%c0_60, %c0_61] : memref<1x32xf32, #tpu.memory_space<vmem>>, vector<1x32xf32>
    %c0_62 = arith.constant 0 : index
    %c0_63 = arith.constant 0 : index
    %132 = vector.load %arg11[%c0_62, %c0_63] : memref<1x32xf32, #tpu.memory_space<vmem>>, vector<1x32xf32>
    %cst_64 = arith.constant dense<0.000000e+00> : vector<8xf32>
    %133 = vector.multi_reduction <add>, %130, %cst_64 [1] : vector<8x32xf32> to vector<8xf32>
    %134 = vector.shape_cast %133 : vector<8xf32> to vector<8x1xf32>
    %cst_65 = arith.constant 3.200000e+01 : f32
    %135 = vector.broadcast %cst_65 : f32 to vector<8x1xf32>
    %136 = arith.divf %134, %135 : vector<8x1xf32>
    %137 = vector.broadcast %136 : vector<8x1xf32> to vector<8x32xf32>
    %138 = arith.subf %130, %137 : vector<8x32xf32>
    %139 = arith.mulf %138, %138 : vector<8x32xf32>
    %cst_66 = arith.constant dense<0.000000e+00> : vector<8xf32>
    %140 = vector.multi_reduction <add>, %139, %cst_66 [1] : vector<8x32xf32> to vector<8xf32>
    %141 = vector.shape_cast %140 : vector<8xf32> to vector<8x1xf32>
    %cst_67 = arith.constant 3.200000e+01 : f32
    %142 = vector.broadcast %cst_67 : f32 to vector<8x1xf32>
    %143 = arith.divf %141, %142 : vector<8x1xf32>
    %144 = vector.broadcast %136 : vector<8x1xf32> to vector<8x32xf32>
    %145 = arith.subf %130, %144 : vector<8x32xf32>
    %cst_68 = arith.constant 9.99999974E-6 : f32
    %146 = vector.broadcast %cst_68 : f32 to vector<8x1xf32>
    %147 = arith.addf %143, %146 : vector<8x1xf32>
    %148 = math.rsqrt %147 : vector<8x1xf32>
    %149 = vector.broadcast %148 : vector<8x1xf32> to vector<8x32xf32>
    %150 = arith.mulf %145, %149 : vector<8x32xf32>
    %151 = vector.broadcast %131 : vector<1x32xf32> to vector<8x32xf32>
    %152 = arith.mulf %150, %151 : vector<8x32xf32>
    %153 = vector.broadcast %132 : vector<1x32xf32> to vector<8x32xf32>
    %154 = arith.addf %152, %153 : vector<8x32xf32>
    %155 = arith.truncf %154 : vector<8x32xf32> to vector<8x32xbf16>
    %c0_69 = arith.constant 0 : index
    %c0_70 = arith.constant 0 : index
    %156 = vector.load %arg12[%c0_69, %c0_70] : memref<32x2048xbf16, #tpu.memory_space<vmem>>, vector<32x2048xbf16>
    %cst_71 = arith.constant dense<0.000000e+00> : vector<8x2048xf32>
    %157 = tpu.matmul %155, %156, %cst_71 {dimension_numbers = #tpu.dot_dimension_numbers<[1], [0], [0], [1], [0, 0, 1, 1], [], []>} : vector<8x32xbf16>, vector<32x2048xbf16>, vector<8x2048xf32> -> vector<8x2048xf32>
    %c0_72 = arith.constant 0 : index
    %c0_73 = arith.constant 0 : index
    %158 = vector.load %arg13[%c0_72, %c0_73] : memref<1x2048xf32, #tpu.memory_space<vmem>>, vector<1x2048xf32>
    %159 = vector.broadcast %158 : vector<1x2048xf32> to vector<8x2048xf32>
    %160 = arith.addf %157, %159 : vector<8x2048xf32>
    %cst_74 = arith.constant 0.000000e+00 : f32
    %161 = vector.broadcast %cst_74 : f32 to vector<8x2048xf32>
    %162 = arith.maximumf %160, %161 : vector<8x2048xf32>
    %163 = arith.truncf %162 : vector<8x2048xf32> to vector<8x2048xbf16>
    %c0_75 = arith.constant 0 : index
    %c0_76 = arith.constant 0 : index
    %164 = vector.load %arg14[%c0_75, %c0_76] : memref<2048x32xbf16, #tpu.memory_space<vmem>>, vector<2048x32xbf16>
    %cst_77 = arith.constant dense<0.000000e+00> : vector<8x32xf32>
    %165 = tpu.matmul %163, %164, %cst_77 {dimension_numbers = #tpu.dot_dimension_numbers<[1], [0], [0], [1], [0, 0, 1, 1], [], []>} : vector<8x2048xbf16>, vector<2048x32xbf16>, vector<8x32xf32> -> vector<8x32xf32>
    %c0_78 = arith.constant 0 : index
    %c0_79 = arith.constant 0 : index
    %166 = vector.load %arg15[%c0_78, %c0_79] : memref<1x32xf32, #tpu.memory_space<vmem>>, vector<1x32xf32>
    %167 = vector.broadcast %166 : vector<1x32xf32> to vector<8x32xf32>
    %168 = arith.addf %165, %167 : vector<8x32xf32>
    %169 = arith.addf %168, %154 : vector<8x32xf32>
    %c0_80 = arith.constant 0 : index
    %c0_81 = arith.constant 0 : index
    %170 = vector.load %arg16[%c0_80, %c0_81] : memref<1x32xf32, #tpu.memory_space<vmem>>, vector<1x32xf32>
    %c0_82 = arith.constant 0 : index
    %c0_83 = arith.constant 0 : index
    %171 = vector.load %arg17[%c0_82, %c0_83] : memref<1x32xf32, #tpu.memory_space<vmem>>, vector<1x32xf32>
    %cst_84 = arith.constant dense<0.000000e+00> : vector<8xf32>
    %172 = vector.multi_reduction <add>, %169, %cst_84 [1] : vector<8x32xf32> to vector<8xf32>
    %173 = vector.shape_cast %172 : vector<8xf32> to vector<8x1xf32>
    %cst_85 = arith.constant 3.200000e+01 : f32
    %174 = vector.broadcast %cst_85 : f32 to vector<8x1xf32>
    %175 = arith.divf %173, %174 : vector<8x1xf32>
    %176 = vector.broadcast %175 : vector<8x1xf32> to vector<8x32xf32>
    %177 = arith.subf %169, %176 : vector<8x32xf32>
    %178 = arith.mulf %177, %177 : vector<8x32xf32>
    %cst_86 = arith.constant dense<0.000000e+00> : vector<8xf32>
    %179 = vector.multi_reduction <add>, %178, %cst_86 [1] : vector<8x32xf32> to vector<8xf32>
    %180 = vector.shape_cast %179 : vector<8xf32> to vector<8x1xf32>
    %cst_87 = arith.constant 3.200000e+01 : f32
    %181 = vector.broadcast %cst_87 : f32 to vector<8x1xf32>
    %182 = arith.divf %180, %181 : vector<8x1xf32>
    %183 = vector.broadcast %175 : vector<8x1xf32> to vector<8x32xf32>
    %184 = arith.subf %169, %183 : vector<8x32xf32>
    %cst_88 = arith.constant 9.99999974E-6 : f32
    %185 = vector.broadcast %cst_88 : f32 to vector<8x1xf32>
    %186 = arith.addf %182, %185 : vector<8x1xf32>
    %187 = math.rsqrt %186 : vector<8x1xf32>
    %188 = vector.broadcast %187 : vector<8x1xf32> to vector<8x32xf32>
    %189 = arith.mulf %184, %188 : vector<8x32xf32>
    %190 = vector.broadcast %170 : vector<1x32xf32> to vector<8x32xf32>
    %191 = arith.mulf %189, %190 : vector<8x32xf32>
    %192 = vector.broadcast %171 : vector<1x32xf32> to vector<8x32xf32>
    %193 = arith.addf %191, %192 : vector<8x32xf32>
    %c0_89 = arith.constant 0 : index
    %c0_90 = arith.constant 0 : index
    %c0_91 = arith.constant 0 : index
    %194 = vector.load %arg18[%c0_89, %c0_90, %c0_91] : memref<1x8x32xf32, #tpu.memory_space<vmem>>, vector<1x8x32xf32>
    %195 = vector.shape_cast %194 : vector<1x8x32xf32> to vector<8x32xf32>
    %196 = vector.shape_cast %193 : vector<8x32xf32> to vector<1x8x32xf32>
    tpu.vector_store %arg18[%c0_89, %c0_90, %c0_91], %196 {strides = array<i32>} : memref<1x8x32xf32, #tpu.memory_space<vmem>>, vector<1x8x32xf32>,
    return
  }
  func.func @transform_0(%arg0: i32, %arg1: i32) -> (i32, i32, i32) {
    %c0_i32 = arith.constant 0 : i32
    %c0_i32_0 = arith.constant 0 : i32
    return %arg0, %arg1, %c0_i32 : i32, i32, i32
  }
  func.func @transform_1(%arg0: i32, %arg1: i32) -> (i32, i32, i32, i32) {
    %c0_i32 = arith.constant 0 : i32
    %c0_i32_0 = arith.constant 0 : i32
    %c0_i32_1 = arith.constant 0 : i32
    %c0_i32_2 = arith.constant 0 : i32
    return %arg0, %c0_i32, %c0_i32_0, %c0_i32_1 : i32, i32, i32, i32
  }
  func.func @transform_2(%arg0: i32, %arg1: i32) -> (i32, i32) {
    %c0_i32 = arith.constant 0 : i32
    %c0_i32_0 = arith.constant 0 : i32
    %c0_i32_1 = arith.constant 0 : i32
    return %c0_i32, %c0_i32_0 : i32, i32
  }
  func.func @transform_3(%arg0: i32, %arg1: i32) -> (i32, i32) {
    %c0_i32 = arith.constant 0 : i32
    %c0_i32_0 = arith.constant 0 : i32
    %c0_i32_1 = arith.constant 0 : i32
    return %c0_i32, %c0_i32_0 : i32, i32
  }
  func.func @transform_4(%arg0: i32, %arg1: i32) -> (i32, i32) {
    %c0_i32 = arith.constant 0 : i32
    %c0_i32_0 = arith.constant 0 : i32
    %c0_i32_1 = arith.constant 0 : i32
    return %c0_i32, %c0_i32_0 : i32, i32
  }
  func.func @transform_5(%arg0: i32, %arg1: i32) -> (i32, i32) {
    %c0_i32 = arith.constant 0 : i32
    %c0_i32_0 = arith.constant 0 : i32
    %c0_i32_1 = arith.constant 0 : i32
    return %c0_i32, %c0_i32_0 : i32, i32
  }
  func.func @transform_6(%arg0: i32, %arg1: i32) -> (i32, i32) {
    %c0_i32 = arith.constant 0 : i32
    %c0_i32_0 = arith.constant 0 : i32
    %c0_i32_1 = arith.constant 0 : i32
    return %c0_i32, %c0_i32_0 : i32, i32
  }
  func.func @transform_7(%arg0: i32, %arg1: i32) -> (i32, i32) {
    %c0_i32 = arith.constant 0 : i32
    %c0_i32_0 = arith.constant 0 : i32
    %c0_i32_1 = arith.constant 0 : i32
    return %c0_i32, %c0_i32_0 : i32, i32
  }
  func.func @transform_8(%arg0: i32, %arg1: i32) -> (i32, i32) {
    %c0_i32 = arith.constant 0 : i32
    %c0_i32_0 = arith.constant 0 : i32
    %c0_i32_1 = arith.constant 0 : i32
    return %c0_i32, %c0_i32_0 : i32, i32
  }
  func.func @transform_9(%arg0: i32, %arg1: i32) -> (i32, i32) {
    %c0_i32 = arith.constant 0 : i32
    %c0_i32_0 = arith.constant 0 : i32
    %c0_i32_1 = arith.constant 0 : i32
    return %c0_i32, %c0_i32_0 : i32, i32
  }
  func.func @transform_10(%arg0: i32, %arg1: i32) -> (i32, i32) {
    %c0_i32 = arith.constant 0 : i32
    %c0_i32_0 = arith.constant 0 : i32
    %c0_i32_1 = arith.constant 0 : i32
    return %c0_i32, %c0_i32_0 : i32, i32
  }
  func.func @transform_11(%arg0: i32, %arg1: i32) -> (i32, i32) {
    %c0_i32 = arith.constant 0 : i32
    %c0_i32_0 = arith.constant 0 : i32
    %c0_i32_1 = arith.constant 0 : i32
    return %c0_i32, %c0_i32_0 : i32, i32
  }
  func.func @transform_12(%arg0: i32, %arg1: i32) -> (i32, i32) {
    %c0_i32 = arith.constant 0 : i32
    %c0_i32_0 = arith.constant 0 : i32
    %c0_i32_1 = arith.constant 0 : i32
    return %c0_i32, %c0_i32_0 : i32, i32
  }
  func.func @transform_13(%arg0: i32, %arg1: i32) -> (i32, i32) {
    %c0_i32 = arith.constant 0 : i32
    %c0_i32_0 = arith.constant 0 : i32
    %c0_i32_1 = arith.constant 0 : i32
    return %c0_i32, %c0_i32_0 : i32, i32
  }
  func.func @transform_14(%arg0: i32, %arg1: i32) -> (i32, i32) {
    %c0_i32 = arith.constant 0 : i32
    %c0_i32_0 = arith.constant 0 : i32
    %c0_i32_1 = arith.constant 0 : i32
    return %c0_i32, %c0_i32_0 : i32, i32
  }
  func.func @transform_15(%arg0: i32, %arg1: i32) -> (i32, i32) {
    %c0_i32 = arith.constant 0 : i32
    %c0_i32_0 = arith.constant 0 : i32
    %c0_i32_1 = arith.constant 0 : i32
    return %c0_i32, %c0_i32_0 : i32, i32
  }
  func.func @transform_16(%arg0: i32, %arg1: i32) -> (i32, i32, i32) {
    %c0_i32 = arith.constant 0 : i32
    %c0_i32_0 = arith.constant 0 : i32
    return %arg0, %arg1, %c0_i32 : i32, i32, i32
  }
}

module attributes {stable_mosaic.version = 11 : i64} {
  func.func @decoder_layer_kernel(%arg0: i32, %arg1: i32, %arg2: memref<1x8x32xf32, #tpu.memory_space<vmem>>, %arg3: memref<1x4x8x8xf32, #tpu.memory_space<vmem>>, %arg4: memref<32x96xbf16, #tpu.memory_space<vmem>>, %arg5: memref<1x96xf32, #tpu.memory_space<vmem>>, %arg6: memref<1x32xf32, #tpu.memory_space<vmem>>, %arg7: memref<1x32xf32, #tpu.memory_space<vmem>>, %arg8: memref<32x32xbf16, #tpu.memory_space<vmem>>, %arg9: memref<1x32xf32, #tpu.memory_space<vmem>>, %arg10: memref<1x32xf32, #tpu.memory_space<vmem>>, %arg11: memref<1x32xf32, #tpu.memory_space<vmem>>, %arg12: memref<32x2048xbf16, #tpu.memory_space<vmem>>, %arg13: memref<1x2048xf32, #tpu.memory_space<vmem>>, %arg14: memref<2048x32xbf16, #tpu.memory_space<vmem>>, %arg15: memref<1x32xf32, #tpu.memory_space<vmem>>, %arg16: memref<1x32xf32, #tpu.memory_space<vmem>>, %arg17: memref<1x32xf32, #tpu.memory_space<vmem>>, %arg18: memref<1x8x32xf32, #tpu.memory_space<vmem>>, %arg19: memref<4x8x8xf32, #tpu.memory_space<vmem>>, %arg20: memref<4x1x8xf32, #tpu.memory_space<vmem>>) attributes {dimension_semantics = [#tpu.dimension_semantics<parallel>, #tpu.dimension_semantics<arbitrary>], iteration_bounds = array<i64: 2, 2>, scalar_prefetch = 0 : i64, scratch_operands = 2 : i64, tpu.core_type = #tpu.core_type<tc>, window_params = [{transform_indices = @transform_0, window_bounds = array<i64: 1, 8, 32>}, {transform_indices = @transform_1, window_bounds = array<i64: 1, 4, 8, 8>}, {pipeline_mode = #tpu.pipeline_mode<synchronous>, transform_indices = @transform_2, window_bounds = array<i64: 32, 96>}, {pipeline_mode = #tpu.pipeline_mode<synchronous>, transform_indices = @transform_3, window_bounds = array<i64: 1, 96>}, {pipeline_mode = #tpu.pipeline_mode<synchronous>, transform_indices = @transform_4, window_bounds = array<i64: 1, 32>}, {pipeline_mode = #tpu.pipeline_mode<synchronous>, transform_indices = @transform_5, window_bounds = array<i64: 1, 32>}, {pipeline_mode = #tpu.pipeline_mode<synchronous>, transform_indices = @transform_6, window_bounds = array<i64: 32, 32>}, {pipeline_mode = #tpu.pipeline_mode<synchronous>, transform_indices = @transform_7, window_bounds = array<i64: 1, 32>}, {pipeline_mode = #tpu.pipeline_mode<synchronous>, transform_indices = @transform_8, window_bounds = array<i64: 1, 32>}, {pipeline_mode = #tpu.pipeline_mode<synchronous>, transform_indices = @transform_9, window_bounds = array<i64: 1, 32>}, {pipeline_mode = #tpu.pipeline_mode<synchronous>, transform_indices = @transform_10, window_bounds = array<i64: 32, 2048>}, {pipeline_mode = #tpu.pipeline_mode<synchronous>, transform_indices = @transform_11, window_bounds = array<i64: 1, 2048>}, {pipeline_mode = #tpu.pipeline_mode<synchronous>, transform_indices = @transform_12, window_bounds = array<i64: 2048, 32>}, {pipeline_mode = #tpu.pipeline_mode<synchronous>, transform_indices = @transform_13, window_bounds = array<i64: 1, 32>}, {pipeline_mode = #tpu.pipeline_mode<synchronous>, transform_indices = @transform_14, window_bounds = array<i64: 1, 32>}, {pipeline_mode = #tpu.pipeline_mode<synchronous>, transform_indices = @transform_15, window_bounds = array<i64: 1, 32>}, {transform_indices = @transform_16, window_bounds = array<i64: 1, 8, 32>}]} {
    %c0 = arith.constant 0 : index
    %c0_0 = arith.constant 0 : index
    %c0_1 = arith.constant 0 : index
    %0 = vector.load %arg2[%c0, %c0_0, %c0_1] : memref<1x8x32xf32, #tpu.memory_space<vmem>>, vector<1x8x32xf32>
    %1 = vector.shape_cast %0 : vector<1x8x32xf32> to vector<8x32xf32>
    %c0_i32 = arith.constant 0 : i32
    %2 = arith.cmpi eq, %arg1, %c0_i32 : i32
    %3 = arith.extui %2 : i1 to i32
    %c0_i32_2 = arith.constant 0 : i32
    %4 = arith.cmpi ne, %3, %c0_i32_2 : i32
    scf.if %4 {
      %cst_110 = arith.constant 0.000000e+00 : f32
      %283 = vector.broadcast %cst_110 : f32 to vector<4x8x8xf32>
      %c0_111 = arith.constant 0 : index
      %c0_112 = arith.constant 0 : index
      %c0_113 = arith.constant 0 : index
      %284 = vector.load %arg19[%c0_111, %c0_112, %c0_113] : memref<4x8x8xf32, #tpu.memory_space<vmem>>, vector<4x8x8xf32>
      tpu.vector_store %arg19[%c0_111, %c0_112, %c0_113], %283 {strides = array<i32>} : memref<4x8x8xf32, #tpu.memory_space<vmem>>, vector<4x8x8xf32>,
      %cst_114 = arith.constant 0.000000e+00 : f32
      %285 = vector.broadcast %cst_114 : f32 to vector<4x1x8xf32>
      %c0_115 = arith.constant 0 : index
      %c0_116 = arith.constant 0 : index
      %c0_117 = arith.constant 0 : index
      %286 = vector.load %arg20[%c0_115, %c0_116, %c0_117] : memref<4x1x8xf32, #tpu.memory_space<vmem>>, vector<4x1x8xf32>
      tpu.vector_store %arg20[%c0_115, %c0_116, %c0_117], %285 {strides = array<i32>} : memref<4x1x8xf32, #tpu.memory_space<vmem>>, vector<4x1x8xf32>,
    } else {
    }
    %5 = arith.truncf %1 : vector<8x32xf32> to vector<8x32xbf16>
    %c0_3 = arith.constant 0 : index
    %c0_4 = arith.constant 0 : index
    %6 = vector.load %arg4[%c0_3, %c0_4] : memref<32x96xbf16, #tpu.memory_space<vmem>>, vector<32x96xbf16>
    %cst = arith.constant dense<0.000000e+00> : vector<8x96xf32>
    %7 = tpu.matmul %5, %6, %cst {dimension_numbers = #tpu.dot_dimension_numbers<[1], [0], [0], [1], [0, 0, 1, 1], [], []>} : vector<8x32xbf16>, vector<32x96xbf16>, vector<8x96xf32> -> vector<8x96xf32>
    %c0_5 = arith.constant 0 : index
    %c0_6 = arith.constant 0 : index
    %8 = vector.load %arg5[%c0_5, %c0_6] : memref<1x96xf32, #tpu.memory_space<vmem>>, vector<1x96xf32>
    %9 = vector.broadcast %8 : vector<1x96xf32> to vector<8x96xf32>
    %10 = arith.addf %7, %9 : vector<8x96xf32>
    %11 = vector.extract_strided_slice %10 {offsets = [0, 0], sizes = [8, 32], strides = [1, 1]} : vector<8x96xf32> to vector<8x32xf32>
    %12 = vector.extract_strided_slice %11 {offsets = [0, 0], sizes = [8, 8], strides = [1, 1]} : vector<8x32xf32> to vector<8x8xf32>
    %13 = vector.extract_strided_slice %11 {offsets = [0, 8], sizes = [8, 8], strides = [1, 1]} : vector<8x32xf32> to vector<8x8xf32>
    %14 = vector.extract_strided_slice %11 {offsets = [0, 16], sizes = [8, 8], strides = [1, 1]} : vector<8x32xf32> to vector<8x8xf32>
    %15 = vector.extract_strided_slice %11 {offsets = [0, 24], sizes = [8, 8], strides = [1, 1]} : vector<8x32xf32> to vector<8x8xf32>
    %16 = vector.shape_cast %12 : vector<8x8xf32> to vector<1x8x8xf32>
    %17 = vector.shape_cast %13 : vector<8x8xf32> to vector<1x8x8xf32>
    %18 = vector.shape_cast %14 : vector<8x8xf32> to vector<1x8x8xf32>
    %19 = vector.shape_cast %15 : vector<8x8xf32> to vector<1x8x8xf32>
    %20 = tpu.concatenate %16, %17, %18, %19 in 0 : vector<1x8x8xf32>, vector<1x8x8xf32>, vector<1x8x8xf32>, vector<1x8x8xf32> -> vector<4x8x8xf32>
    %21 = vector.extract_strided_slice %10 {offsets = [0, 32], sizes = [8, 32], strides = [1, 1]} : vector<8x96xf32> to vector<8x32xf32>
    %22 = vector.extract_strided_slice %21 {offsets = [0, 0], sizes = [8, 8], strides = [1, 1]} : vector<8x32xf32> to vector<8x8xf32>
    %23 = vector.extract_strided_slice %21 {offsets = [0, 8], sizes = [8, 8], strides = [1, 1]} : vector<8x32xf32> to vector<8x8xf32>
    %24 = vector.extract_strided_slice %21 {offsets = [0, 16], sizes = [8, 8], strides = [1, 1]} : vector<8x32xf32> to vector<8x8xf32>
    %25 = vector.extract_strided_slice %21 {offsets = [0, 24], sizes = [8, 8], strides = [1, 1]} : vector<8x32xf32> to vector<8x8xf32>
    %26 = vector.shape_cast %22 : vector<8x8xf32> to vector<1x8x8xf32>
    %27 = vector.shape_cast %23 : vector<8x8xf32> to vector<1x8x8xf32>
    %28 = vector.shape_cast %24 : vector<8x8xf32> to vector<1x8x8xf32>
    %29 = vector.shape_cast %25 : vector<8x8xf32> to vector<1x8x8xf32>
    %30 = tpu.concatenate %26, %27, %28, %29 in 0 : vector<1x8x8xf32>, vector<1x8x8xf32>, vector<1x8x8xf32>, vector<1x8x8xf32> -> vector<4x8x8xf32>
    %31 = vector.extract_strided_slice %10 {offsets = [0, 64], sizes = [8, 32], strides = [1, 1]} : vector<8x96xf32> to vector<8x32xf32>
    %32 = vector.extract_strided_slice %31 {offsets = [0, 0], sizes = [8, 8], strides = [1, 1]} : vector<8x32xf32> to vector<8x8xf32>
    %33 = vector.extract_strided_slice %31 {offsets = [0, 8], sizes = [8, 8], strides = [1, 1]} : vector<8x32xf32> to vector<8x8xf32>
    %34 = vector.extract_strided_slice %31 {offsets = [0, 16], sizes = [8, 8], strides = [1, 1]} : vector<8x32xf32> to vector<8x8xf32>
    %35 = vector.extract_strided_slice %31 {offsets = [0, 24], sizes = [8, 8], strides = [1, 1]} : vector<8x32xf32> to vector<8x8xf32>
    %36 = vector.shape_cast %32 : vector<8x8xf32> to vector<1x8x8xf32>
    %37 = vector.shape_cast %33 : vector<8x8xf32> to vector<1x8x8xf32>
    %38 = vector.shape_cast %34 : vector<8x8xf32> to vector<1x8x8xf32>
    %39 = vector.shape_cast %35 : vector<8x8xf32> to vector<1x8x8xf32>
    %40 = tpu.concatenate %36, %37, %38, %39 in 0 : vector<1x8x8xf32>, vector<1x8x8xf32>, vector<1x8x8xf32>, vector<1x8x8xf32> -> vector<4x8x8xf32>
    %cst_7 = arith.constant dense<0xFF800000> : vector<4x8xf32>
    %41 = vector.multi_reduction <maximumf>, %20, %cst_7 [2] : vector<4x8x8xf32> to vector<4x8xf32>
    %42 = vector.shape_cast %41 : vector<4x8xf32> to vector<4x8x1xf32>
    %43 = vector.broadcast %42 : vector<4x8x1xf32> to vector<4x8x8xf32>
    %44 = arith.subf %20, %43 : vector<4x8x8xf32>
    %45 = math.exp %44 : vector<4x8x8xf32>
    %cst_8 = arith.constant dense<0.000000e+00> : vector<4x8xf32>
    %46 = vector.multi_reduction <add>, %45, %cst_8 [2] : vector<4x8x8xf32> to vector<4x8xf32>
    %47 = vector.shape_cast %46 : vector<4x8xf32> to vector<4x8x1xf32>
    %48 = tpu.reciprocal %47 {approx = true} : vector<4x8x1xf32> -> vector<4x8x1xf32>
    %49 = vector.broadcast %48 : vector<4x8x1xf32> to vector<4x8x8xf32>
    %50 = arith.mulf %45, %49 : vector<4x8x8xf32>
    %cst_9 = arith.constant 0.353553385 : f32
    %51 = vector.broadcast %cst_9 : f32 to vector<4x8x8xf32>
    %52 = arith.mulf %50, %51 : vector<4x8x8xf32>
    %53 = math.exp %40 : vector<4x8x8xf32>
    %54 = arith.truncf %52 : vector<4x8x8xf32> to vector<4x8x8xbf16>
    %55 = arith.truncf %53 : vector<4x8x8xf32> to vector<4x8x8xbf16>
    %56 = arith.truncf %30 : vector<4x8x8xf32> to vector<4x8x8xbf16>
    %57 = tpu.iota {dimensions = array<i32: 0>} : vector<8x8xi32>
    %58 = tpu.iota {dimensions = array<i32: 1>} : vector<8x8xi32>
    %59 = arith.cmpi sle, %58, %57 : vector<8x8xi32>
    %60 = vector.shape_cast %59 : vector<8x8xi1> to vector<1x8x8xi1>
    "tpu.trace_start"() <{level = 10 : i32, message = "hqd,hkd->hqk"}> : () -> ()
    %cst_10 = arith.constant dense<0.000000e+00> : vector<4x8x8xf32>
    %61 = tpu.matmul %54, %55, %cst_10 {dimension_numbers = #tpu.dot_dimension_numbers<[2], [2], [1], [1], [0, 0, 0, 1, 1, 1], [0], [0]>} : vector<4x8x8xbf16>, vector<4x8x8xbf16>, vector<4x8x8xf32> -> vector<4x8x8xf32>
    %cst_11 = arith.constant 0.000000e+00 : f32
    "tpu.trace_stop"() : () -> ()
    %62 = vector.shape_cast %60 : vector<1x8x8xi1> to vector<1x8x8xi1>
    %63 = vector.broadcast %62 : vector<1x8x8xi1> to vector<4x8x8xi1>
    %64 = vector.broadcast %cst_11 : f32 to vector<4x8x8xf32>
    %65 = arith.select %63, %61, %64 : vector<4x8x8xi1>, vector<4x8x8xf32>
    %66 = arith.truncf %65 : vector<4x8x8xf32> to vector<4x8x8xbf16>
    "tpu.trace_start"() <{level = 10 : i32, message = "hqk,hkd->hqd"}> : () -> ()
    %cst_12 = arith.constant dense<0.000000e+00> : vector<4x8x8xf32>
    %67 = tpu.matmul %66, %56, %cst_12 {dimension_numbers = #tpu.dot_dimension_numbers<[2], [1], [1], [2], [0, 0, 0, 1, 1, 2], [0], [0]>} : vector<4x8x8xbf16>, vector<4x8x8xbf16>, vector<4x8x8xf32> -> vector<4x8x8xf32>
    "tpu.trace_stop"() : () -> ()
    %cst_13 = arith.constant dense<0.000000e+00> : vector<4x8xf32>
    %68 = vector.multi_reduction <add>, %65, %cst_13 [2] : vector<4x8x8xf32> to vector<4x8xf32>
    %69 = vector.shape_cast %68 : vector<4x8xf32> to vector<4x8x1xf32>
    %c0_14 = arith.constant 0 : index
    %c0_15 = arith.constant 0 : index
    %c0_16 = arith.constant 0 : index
    %70 = vector.load %arg19[%c0_14, %c0_15, %c0_16] : memref<4x8x8xf32, #tpu.memory_space<vmem>>, vector<4x8x8xf32>
    %71 = arith.truncf %70 : vector<4x8x8xf32> to vector<4x8x8xbf16>
    "tpu.trace_start"() <{level = 10 : i32, message = "hqd,hde->hqe"}> : () -> ()
    %cst_17 = arith.constant dense<0.000000e+00> : vector<4x8x8xf32>
    %72 = tpu.matmul %54, %71, %cst_17 {dimension_numbers = #tpu.dot_dimension_numbers<[2], [1], [1], [2], [0, 0, 0, 1, 1, 2], [0], [0]>} : vector<4x8x8xbf16>, vector<4x8x8xbf16>, vector<4x8x8xf32> -> vector<4x8x8xf32>
    "tpu.trace_stop"() : () -> ()
    %73 = arith.addf %67, %72 : vector<4x8x8xf32>
    %c0_18 = arith.constant 0 : index
    %c0_19 = arith.constant 0 : index
    %c0_20 = arith.constant 0 : index
    %74 = vector.load %arg20[%c0_18, %c0_19, %c0_20] : memref<4x1x8xf32, #tpu.memory_space<vmem>>, vector<4x1x8xf32>
    %75 = vector.broadcast %74 : vector<4x1x8xf32> to vector<4x8x8xf32>
    %76 = arith.mulf %52, %75 : vector<4x8x8xf32>
    %cst_21 = arith.constant dense<0.000000e+00> : vector<4x8xf32>
    %77 = vector.multi_reduction <add>, %76, %cst_21 [2] : vector<4x8x8xf32> to vector<4x8xf32>
    %78 = vector.shape_cast %77 : vector<4x8xf32> to vector<4x8x1xf32>
    %79 = arith.addf %69, %78 : vector<4x8x1xf32>
    %cst_22 = arith.constant dense<0.000000e+00> : vector<4x8xf32>
    %80 = vector.multi_reduction <add>, %52, %cst_22 [2] : vector<4x8x8xf32> to vector<4x8xf32>
    %81 = vector.shape_cast %80 : vector<4x8xf32> to vector<4x8x1xf32>
    %cst_23 = arith.constant 9.99999997E-7 : f32
    %82 = vector.broadcast %cst_23 : f32 to vector<4x8x1xf32>
    %83 = arith.mulf %82, %81 : vector<4x8x1xf32>
    %84 = arith.addf %79, %83 : vector<4x8x1xf32>
    %85 = tpu.reciprocal %84 {approx = true} : vector<4x8x1xf32> -> vector<4x8x1xf32>
    %86 = vector.broadcast %85 : vector<4x8x1xf32> to vector<4x8x8xf32>
    %87 = arith.mulf %73, %86 : vector<4x8x8xf32>
    %c0_24 = arith.constant 0 : index
    %c0_25 = arith.constant 0 : index
    %c0_26 = arith.constant 0 : index
    %88 = vector.load %arg19[%c0_24, %c0_25, %c0_26] : memref<4x8x8xf32, #tpu.memory_space<vmem>>, vector<1x8x8xf32>
    %89 = vector.shape_cast %88 : vector<1x8x8xf32> to vector<8x8xf32>
    %90 = vector.extract_strided_slice %55 {offsets = [0, 0, 0], sizes = [1, 8, 8], strides = [1, 1, 1]} : vector<4x8x8xbf16> to vector<1x8x8xbf16>
    %91 = vector.shape_cast %90 : vector<1x8x8xbf16> to vector<8x8xbf16>
    %92 = tpu.transpose %91, [1, 0] : vector<8x8xbf16> -> vector<8x8xbf16>
    %93 = vector.extract_strided_slice %56 {offsets = [0, 0, 0], sizes = [1, 8, 8], strides = [1, 1, 1]} : vector<4x8x8xbf16> to vector<1x8x8xbf16>
    %94 = vector.shape_cast %93 : vector<1x8x8xbf16> to vector<8x8xbf16>
    %cst_27 = arith.constant dense<0.000000e+00> : vector<8x8xf32>
    %95 = tpu.matmul %92, %94, %cst_27 {dimension_numbers = #tpu.dot_dimension_numbers<[1], [0], [0], [1], [0, 0, 1, 1], [], []>} : vector<8x8xbf16>, vector<8x8xbf16>, vector<8x8xf32> -> vector<8x8xf32>
    %96 = arith.addf %89, %95 : vector<8x8xf32>
    %c0_28 = arith.constant 0 : index
    %c0_29 = arith.constant 0 : index
    %c0_30 = arith.constant 0 : index
    %97 = vector.load %arg19[%c0_28, %c0_29, %c0_30] : memref<4x8x8xf32, #tpu.memory_space<vmem>>, vector<1x8x8xf32>
    %98 = vector.shape_cast %97 : vector<1x8x8xf32> to vector<8x8xf32>
    %99 = vector.shape_cast %96 : vector<8x8xf32> to vector<1x8x8xf32>
    tpu.vector_store %arg19[%c0_28, %c0_29, %c0_30], %99 {strides = array<i32>} : memref<4x8x8xf32, #tpu.memory_space<vmem>>, vector<1x8x8xf32>,
    %c1 = arith.constant 1 : index
    %c0_31 = arith.constant 0 : index
    %c0_32 = arith.constant 0 : index
    %100 = vector.load %arg19[%c1, %c0_31, %c0_32] : memref<4x8x8xf32, #tpu.memory_space<vmem>>, vector<1x8x8xf32>
    %101 = vector.shape_cast %100 : vector<1x8x8xf32> to vector<8x8xf32>
    %102 = vector.extract_strided_slice %55 {offsets = [1, 0, 0], sizes = [1, 8, 8], strides = [1, 1, 1]} : vector<4x8x8xbf16> to vector<1x8x8xbf16>
    %103 = vector.shape_cast %102 : vector<1x8x8xbf16> to vector<8x8xbf16>
    %104 = tpu.transpose %103, [1, 0] : vector<8x8xbf16> -> vector<8x8xbf16>
    %105 = vector.extract_strided_slice %56 {offsets = [1, 0, 0], sizes = [1, 8, 8], strides = [1, 1, 1]} : vector<4x8x8xbf16> to vector<1x8x8xbf16>
    %106 = vector.shape_cast %105 : vector<1x8x8xbf16> to vector<8x8xbf16>
    %cst_33 = arith.constant dense<0.000000e+00> : vector<8x8xf32>
    %107 = tpu.matmul %104, %106, %cst_33 {dimension_numbers = #tpu.dot_dimension_numbers<[1], [0], [0], [1], [0, 0, 1, 1], [], []>} : vector<8x8xbf16>, vector<8x8xbf16>, vector<8x8xf32> -> vector<8x8xf32>
    %108 = arith.addf %101, %107 : vector<8x8xf32>
    %c1_34 = arith.constant 1 : index
    %c0_35 = arith.constant 0 : index
    %c0_36 = arith.constant 0 : index
    %109 = vector.load %arg19[%c1_34, %c0_35, %c0_36] : memref<4x8x8xf32, #tpu.memory_space<vmem>>, vector<1x8x8xf32>
    %110 = vector.shape_cast %109 : vector<1x8x8xf32> to vector<8x8xf32>
    %111 = vector.shape_cast %108 : vector<8x8xf32> to vector<1x8x8xf32>
    tpu.vector_store %arg19[%c1_34, %c0_35, %c0_36], %111 {strides = array<i32>} : memref<4x8x8xf32, #tpu.memory_space<vmem>>, vector<1x8x8xf32>,
    %c2 = arith.constant 2 : index
    %c0_37 = arith.constant 0 : index
    %c0_38 = arith.constant 0 : index
    %112 = vector.load %arg19[%c2, %c0_37, %c0_38] : memref<4x8x8xf32, #tpu.memory_space<vmem>>, vector<1x8x8xf32>
    %113 = vector.shape_cast %112 : vector<1x8x8xf32> to vector<8x8xf32>
    %114 = vector.extract_strided_slice %55 {offsets = [2, 0, 0], sizes = [1, 8, 8], strides = [1, 1, 1]} : vector<4x8x8xbf16> to vector<1x8x8xbf16>
    %115 = vector.shape_cast %114 : vector<1x8x8xbf16> to vector<8x8xbf16>
    %116 = tpu.transpose %115, [1, 0] : vector<8x8xbf16> -> vector<8x8xbf16>
    %117 = vector.extract_strided_slice %56 {offsets = [2, 0, 0], sizes = [1, 8, 8], strides = [1, 1, 1]} : vector<4x8x8xbf16> to vector<1x8x8xbf16>
    %118 = vector.shape_cast %117 : vector<1x8x8xbf16> to vector<8x8xbf16>
    %cst_39 = arith.constant dense<0.000000e+00> : vector<8x8xf32>
    %119 = tpu.matmul %116, %118, %cst_39 {dimension_numbers = #tpu.dot_dimension_numbers<[1], [0], [0], [1], [0, 0, 1, 1], [], []>} : vector<8x8xbf16>, vector<8x8xbf16>, vector<8x8xf32> -> vector<8x8xf32>
    %120 = arith.addf %113, %119 : vector<8x8xf32>
    %c2_40 = arith.constant 2 : index
    %c0_41 = arith.constant 0 : index
    %c0_42 = arith.constant 0 : index
    %121 = vector.load %arg19[%c2_40, %c0_41, %c0_42] : memref<4x8x8xf32, #tpu.memory_space<vmem>>, vector<1x8x8xf32>
    %122 = vector.shape_cast %121 : vector<1x8x8xf32> to vector<8x8xf32>
    %123 = vector.shape_cast %120 : vector<8x8xf32> to vector<1x8x8xf32>
    tpu.vector_store %arg19[%c2_40, %c0_41, %c0_42], %123 {strides = array<i32>} : memref<4x8x8xf32, #tpu.memory_space<vmem>>, vector<1x8x8xf32>,
    %c3 = arith.constant 3 : index
    %c0_43 = arith.constant 0 : index
    %c0_44 = arith.constant 0 : index
    %124 = vector.load %arg19[%c3, %c0_43, %c0_44] : memref<4x8x8xf32, #tpu.memory_space<vmem>>, vector<1x8x8xf32>
    %125 = vector.shape_cast %124 : vector<1x8x8xf32> to vector<8x8xf32>
    %126 = vector.extract_strided_slice %55 {offsets = [3, 0, 0], sizes = [1, 8, 8], strides = [1, 1, 1]} : vector<4x8x8xbf16> to vector<1x8x8xbf16>
    %127 = vector.shape_cast %126 : vector<1x8x8xbf16> to vector<8x8xbf16>
    %128 = tpu.transpose %127, [1, 0] : vector<8x8xbf16> -> vector<8x8xbf16>
    %129 = vector.extract_strided_slice %56 {offsets = [3, 0, 0], sizes = [1, 8, 8], strides = [1, 1, 1]} : vector<4x8x8xbf16> to vector<1x8x8xbf16>
    %130 = vector.shape_cast %129 : vector<1x8x8xbf16> to vector<8x8xbf16>
    %cst_45 = arith.constant dense<0.000000e+00> : vector<8x8xf32>
    %131 = tpu.matmul %128, %130, %cst_45 {dimension_numbers = #tpu.dot_dimension_numbers<[1], [0], [0], [1], [0, 0, 1, 1], [], []>} : vector<8x8xbf16>, vector<8x8xbf16>, vector<8x8xf32> -> vector<8x8xf32>
    %132 = arith.addf %125, %131 : vector<8x8xf32>
    %c3_46 = arith.constant 3 : index
    %c0_47 = arith.constant 0 : index
    %c0_48 = arith.constant 0 : index
    %133 = vector.load %arg19[%c3_46, %c0_47, %c0_48] : memref<4x8x8xf32, #tpu.memory_space<vmem>>, vector<1x8x8xf32>
    %134 = vector.shape_cast %133 : vector<1x8x8xf32> to vector<8x8xf32>
    %135 = vector.shape_cast %132 : vector<8x8xf32> to vector<1x8x8xf32>
    tpu.vector_store %arg19[%c3_46, %c0_47, %c0_48], %135 {strides = array<i32>} : memref<4x8x8xf32, #tpu.memory_space<vmem>>, vector<1x8x8xf32>,
    %c0_49 = arith.constant 0 : index
    %c0_50 = arith.constant 0 : index
    %c0_51 = arith.constant 0 : index
    %136 = vector.load %arg20[%c0_49, %c0_50, %c0_51] : memref<4x1x8xf32, #tpu.memory_space<vmem>>, vector<4x1x8xf32>
    %cst_52 = arith.constant dense<0.000000e+00> : vector<4x8xf32>
    %137 = vector.multi_reduction <add>, %53, %cst_52 [1] : vector<4x8x8xf32> to vector<4x8xf32>
    %138 = vector.shape_cast %137 : vector<4x8xf32> to vector<4x1x8xf32>
    %139 = arith.addf %136, %138 : vector<4x1x8xf32>
    %c0_53 = arith.constant 0 : index
    %c0_54 = arith.constant 0 : index
    %c0_55 = arith.constant 0 : index
    %140 = vector.load %arg20[%c0_53, %c0_54, %c0_55] : memref<4x1x8xf32, #tpu.memory_space<vmem>>, vector<4x1x8xf32>
    tpu.vector_store %arg20[%c0_53, %c0_54, %c0_55], %139 {strides = array<i32>} : memref<4x1x8xf32, #tpu.memory_space<vmem>>, vector<4x1x8xf32>,
    %141 = vector.extract_strided_slice %87 {offsets = [0, 0, 0], sizes = [1, 8, 8], strides = [1, 1, 1]} : vector<4x8x8xf32> to vector<1x8x8xf32>
    %142 = vector.shape_cast %141 : vector<1x8x8xf32> to vector<8x8xf32>
    %143 = vector.extract_strided_slice %87 {offsets = [1, 0, 0], sizes = [1, 8, 8], strides = [1, 1, 1]} : vector<4x8x8xf32> to vector<1x8x8xf32>
    %144 = vector.shape_cast %143 : vector<1x8x8xf32> to vector<8x8xf32>
    %145 = vector.extract_strided_slice %87 {offsets = [2, 0, 0], sizes = [1, 8, 8], strides = [1, 1, 1]} : vector<4x8x8xf32> to vector<1x8x8xf32>
    %146 = vector.shape_cast %145 : vector<1x8x8xf32> to vector<8x8xf32>
    %147 = vector.extract_strided_slice %87 {offsets = [3, 0, 0], sizes = [1, 8, 8], strides = [1, 1, 1]} : vector<4x8x8xf32> to vector<1x8x8xf32>
    %148 = vector.shape_cast %147 : vector<1x8x8xf32> to vector<8x8xf32>
    %149 = tpu.concatenate %142, %144, %146, %148 in 1 : vector<8x8xf32>, vector<8x8xf32>, vector<8x8xf32>, vector<8x8xf32> -> vector<8x32xf32>
    %150 = arith.addf %149, %1 : vector<8x32xf32>
    %c0_56 = arith.constant 0 : index
    %c0_57 = arith.constant 0 : index
    %151 = vector.load %arg6[%c0_56, %c0_57] : memref<1x32xf32, #tpu.memory_space<vmem>>, vector<1x32xf32>
    %c0_58 = arith.constant 0 : index
    %c0_59 = arith.constant 0 : index
    %152 = vector.load %arg7[%c0_58, %c0_59] : memref<1x32xf32, #tpu.memory_space<vmem>>, vector<1x32xf32>
    %cst_60 = arith.constant dense<0.000000e+00> : vector<8xf32>
    %153 = vector.multi_reduction <add>, %150, %cst_60 [1] : vector<8x32xf32> to vector<8xf32>
    %154 = vector.shape_cast %153 : vector<8xf32> to vector<8x1xf32>
    %cst_61 = arith.constant 3.200000e+01 : f32
    %155 = vector.broadcast %cst_61 : f32 to vector<8x1xf32>
    %156 = arith.divf %154, %155 : vector<8x1xf32>
    %157 = vector.broadcast %156 : vector<8x1xf32> to vector<8x32xf32>
    %158 = arith.subf %150, %157 : vector<8x32xf32>
    %159 = arith.mulf %158, %158 : vector<8x32xf32>
    %cst_62 = arith.constant dense<0.000000e+00> : vector<8xf32>
    %160 = vector.multi_reduction <add>, %159, %cst_62 [1] : vector<8x32xf32> to vector<8xf32>
    %161 = vector.shape_cast %160 : vector<8xf32> to vector<8x1xf32>
    %cst_63 = arith.constant 3.200000e+01 : f32
    %162 = vector.broadcast %cst_63 : f32 to vector<8x1xf32>
    %163 = arith.divf %161, %162 : vector<8x1xf32>
    %164 = vector.broadcast %156 : vector<8x1xf32> to vector<8x32xf32>
    %165 = arith.subf %150, %164 : vector<8x32xf32>
    %cst_64 = arith.constant 9.99999974E-6 : f32
    %166 = vector.broadcast %cst_64 : f32 to vector<8x1xf32>
    %167 = arith.addf %163, %166 : vector<8x1xf32>
    %168 = math.rsqrt %167 : vector<8x1xf32>
    %169 = vector.broadcast %168 : vector<8x1xf32> to vector<8x32xf32>
    %170 = arith.mulf %165, %169 : vector<8x32xf32>
    %171 = vector.broadcast %151 : vector<1x32xf32> to vector<8x32xf32>
    %172 = arith.mulf %170, %171 : vector<8x32xf32>
    %173 = vector.broadcast %152 : vector<1x32xf32> to vector<8x32xf32>
    %174 = arith.addf %172, %173 : vector<8x32xf32>
    %175 = arith.truncf %174 : vector<8x32xf32> to vector<8x32xbf16>
    %c0_65 = arith.constant 0 : index
    %c0_66 = arith.constant 0 : index
    %176 = vector.load %arg8[%c0_65, %c0_66] : memref<32x32xbf16, #tpu.memory_space<vmem>>, vector<32x32xbf16>
    %cst_67 = arith.constant dense<0.000000e+00> : vector<8x32xf32>
    %177 = tpu.matmul %175, %176, %cst_67 {dimension_numbers = #tpu.dot_dimension_numbers<[1], [0], [0], [1], [0, 0, 1, 1], [], []>} : vector<8x32xbf16>, vector<32x32xbf16>, vector<8x32xf32> -> vector<8x32xf32>
    %c0_68 = arith.constant 0 : index
    %c0_69 = arith.constant 0 : index
    %178 = vector.load %arg9[%c0_68, %c0_69] : memref<1x32xf32, #tpu.memory_space<vmem>>, vector<1x32xf32>
    %179 = vector.broadcast %178 : vector<1x32xf32> to vector<8x32xf32>
    %180 = arith.addf %177, %179 : vector<8x32xf32>
    %181 = vector.extract_strided_slice %180 {offsets = [0, 0], sizes = [8, 8], strides = [1, 1]} : vector<8x32xf32> to vector<8x8xf32>
    %182 = vector.extract_strided_slice %180 {offsets = [0, 8], sizes = [8, 8], strides = [1, 1]} : vector<8x32xf32> to vector<8x8xf32>
    %183 = vector.extract_strided_slice %180 {offsets = [0, 16], sizes = [8, 8], strides = [1, 1]} : vector<8x32xf32> to vector<8x8xf32>
    %184 = vector.extract_strided_slice %180 {offsets = [0, 24], sizes = [8, 8], strides = [1, 1]} : vector<8x32xf32> to vector<8x8xf32>
    %185 = vector.shape_cast %181 : vector<8x8xf32> to vector<1x8x8xf32>
    %186 = vector.shape_cast %182 : vector<8x8xf32> to vector<1x8x8xf32>
    %187 = vector.shape_cast %183 : vector<8x8xf32> to vector<1x8x8xf32>
    %188 = vector.shape_cast %184 : vector<8x8xf32> to vector<1x8x8xf32>
    %189 = tpu.concatenate %185, %186, %187, %188 in 0 : vector<1x8x8xf32>, vector<1x8x8xf32>, vector<1x8x8xf32>, vector<1x8x8xf32> -> vector<4x8x8xf32>
    %cst_70 = arith.constant dense<0xFF800000> : vector<4x8xf32>
    %190 = vector.multi_reduction <maximumf>, %189, %cst_70 [2] : vector<4x8x8xf32> to vector<4x8xf32>
    %191 = vector.shape_cast %190 : vector<4x8xf32> to vector<4x8x1xf32>
    %192 = vector.broadcast %191 : vector<4x8x1xf32> to vector<4x8x8xf32>
    %193 = arith.subf %189, %192 : vector<4x8x8xf32>
    %194 = math.exp %193 : vector<4x8x8xf32>
    %cst_71 = arith.constant dense<0.000000e+00> : vector<4x8xf32>
    %195 = vector.multi_reduction <add>, %194, %cst_71 [2] : vector<4x8x8xf32> to vector<4x8xf32>
    %196 = vector.shape_cast %195 : vector<4x8xf32> to vector<4x8x1xf32>
    %197 = tpu.reciprocal %196 {approx = true} : vector<4x8x1xf32> -> vector<4x8x1xf32>
    %198 = vector.broadcast %197 : vector<4x8x1xf32> to vector<4x8x8xf32>
    %199 = arith.mulf %194, %198 : vector<4x8x8xf32>
    %cst_72 = arith.constant 0.353553385 : f32
    %200 = vector.broadcast %cst_72 : f32 to vector<4x8x8xf32>
    %201 = arith.mulf %199, %200 : vector<4x8x8xf32>
    %202 = arith.truncf %201 : vector<4x8x8xf32> to vector<4x8x8xbf16>
    %c0_73 = arith.constant 0 : index
    %c0_74 = arith.constant 0 : index
    %c0_75 = arith.constant 0 : index
    %c0_76 = arith.constant 0 : index
    %203 = vector.load %arg3[%c0_73, %c0_74, %c0_75, %c0_76] : memref<1x4x8x8xf32, #tpu.memory_space<vmem>>, vector<1x4x8x8xf32>
    %204 = vector.shape_cast %203 : vector<1x4x8x8xf32> to vector<4x8x8xf32>
    %205 = arith.truncf %204 : vector<4x8x8xf32> to vector<4x8x8xbf16>
    "tpu.trace_start"() <{level = 10 : i32, message = "hqd,hde->hqe"}> : () -> ()
    %cst_77 = arith.constant dense<0.000000e+00> : vector<4x8x8xf32>
    %206 = tpu.matmul %202, %205, %cst_77 {dimension_numbers = #tpu.dot_dimension_numbers<[2], [1], [1], [2], [0, 0, 0, 1, 1, 2], [0], [0]>} : vector<4x8x8xbf16>, vector<4x8x8xbf16>, vector<4x8x8xf32> -> vector<4x8x8xf32>
    "tpu.trace_stop"() : () -> ()
    %207 = vector.extract_strided_slice %206 {offsets = [0, 0, 0], sizes = [1, 8, 8], strides = [1, 1, 1]} : vector<4x8x8xf32> to vector<1x8x8xf32>
    %208 = vector.shape_cast %207 : vector<1x8x8xf32> to vector<8x8xf32>
    %209 = vector.extract_strided_slice %206 {offsets = [1, 0, 0], sizes = [1, 8, 8], strides = [1, 1, 1]} : vector<4x8x8xf32> to vector<1x8x8xf32>
    %210 = vector.shape_cast %209 : vector<1x8x8xf32> to vector<8x8xf32>
    %211 = vector.extract_strided_slice %206 {offsets = [2, 0, 0], sizes = [1, 8, 8], strides = [1, 1, 1]} : vector<4x8x8xf32> to vector<1x8x8xf32>
    %212 = vector.shape_cast %211 : vector<1x8x8xf32> to vector<8x8xf32>
    %213 = vector.extract_strided_slice %206 {offsets = [3, 0, 0], sizes = [1, 8, 8], strides = [1, 1, 1]} : vector<4x8x8xf32> to vector<1x8x8xf32>
    %214 = vector.shape_cast %213 : vector<1x8x8xf32> to vector<8x8xf32>
    %215 = tpu.concatenate %208, %210, %212, %214 in 1 : vector<8x8xf32>, vector<8x8xf32>, vector<8x8xf32>, vector<8x8xf32> -> vector<8x32xf32>
    %216 = arith.addf %215, %174 : vector<8x32xf32>
    %c0_78 = arith.constant 0 : index
    %c0_79 = arith.constant 0 : index
    %217 = vector.load %arg10[%c0_78, %c0_79] : memref<1x32xf32, #tpu.memory_space<vmem>>, vector<1x32xf32>
    %c0_80 = arith.constant 0 : index
    %c0_81 = arith.constant 0 : index
    %218 = vector.load %arg11[%c0_80, %c0_81] : memref<1x32xf32, #tpu.memory_space<vmem>>, vector<1x32xf32>
    %cst_82 = arith.constant dense<0.000000e+00> : vector<8xf32>
    %219 = vector.multi_reduction <add>, %216, %cst_82 [1] : vector<8x32xf32> to vector<8xf32>
    %220 = vector.shape_cast %219 : vector<8xf32> to vector<8x1xf32>
    %cst_83 = arith.constant 3.200000e+01 : f32
    %221 = vector.broadcast %cst_83 : f32 to vector<8x1xf32>
    %222 = arith.divf %220, %221 : vector<8x1xf32>
    %223 = vector.broadcast %222 : vector<8x1xf32> to vector<8x32xf32>
    %224 = arith.subf %216, %223 : vector<8x32xf32>
    %225 = arith.mulf %224, %224 : vector<8x32xf32>
    %cst_84 = arith.constant dense<0.000000e+00> : vector<8xf32>
    %226 = vector.multi_reduction <add>, %225, %cst_84 [1] : vector<8x32xf32> to vector<8xf32>
    %227 = vector.shape_cast %226 : vector<8xf32> to vector<8x1xf32>
    %cst_85 = arith.constant 3.200000e+01 : f32
    %228 = vector.broadcast %cst_85 : f32 to vector<8x1xf32>
    %229 = arith.divf %227, %228 : vector<8x1xf32>
    %230 = vector.broadcast %222 : vector<8x1xf32> to vector<8x32xf32>
    %231 = arith.subf %216, %230 : vector<8x32xf32>
    %cst_86 = arith.constant 9.99999974E-6 : f32
    %232 = vector.broadcast %cst_86 : f32 to vector<8x1xf32>
    %233 = arith.addf %229, %232 : vector<8x1xf32>
    %234 = math.rsqrt %233 : vector<8x1xf32>
    %235 = vector.broadcast %234 : vector<8x1xf32> to vector<8x32xf32>
    %236 = arith.mulf %231, %235 : vector<8x32xf32>
    %237 = vector.broadcast %217 : vector<1x32xf32> to vector<8x32xf32>
    %238 = arith.mulf %236, %237 : vector<8x32xf32>
    %239 = vector.broadcast %218 : vector<1x32xf32> to vector<8x32xf32>
    %240 = arith.addf %238, %239 : vector<8x32xf32>
    %241 = arith.truncf %240 : vector<8x32xf32> to vector<8x32xbf16>
    %c0_87 = arith.constant 0 : index
    %c0_88 = arith.constant 0 : index
    %242 = vector.load %arg12[%c0_87, %c0_88] : memref<32x2048xbf16, #tpu.memory_space<vmem>>, vector<32x2048xbf16>
    %cst_89 = arith.constant dense<0.000000e+00> : vector<8x2048xf32>
    %243 = tpu.matmul %241, %242, %cst_89 {dimension_numbers = #tpu.dot_dimension_numbers<[1], [0], [0], [1], [0, 0, 1, 1], [], []>} : vector<8x32xbf16>, vector<32x2048xbf16>, vector<8x2048xf32> -> vector<8x2048xf32>
    %c0_90 = arith.constant 0 : index
    %c0_91 = arith.constant 0 : index
    %244 = vector.load %arg13[%c0_90, %c0_91] : memref<1x2048xf32, #tpu.memory_space<vmem>>, vector<1x2048xf32>
    %245 = vector.broadcast %244 : vector<1x2048xf32> to vector<8x2048xf32>
    %246 = arith.addf %243, %245 : vector<8x2048xf32>
    %cst_92 = arith.constant 0.000000e+00 : f32
    %247 = vector.broadcast %cst_92 : f32 to vector<8x2048xf32>
    %248 = arith.maximumf %246, %247 : vector<8x2048xf32>
    %249 = arith.truncf %248 : vector<8x2048xf32> to vector<8x2048xbf16>
    %c0_93 = arith.constant 0 : index
    %c0_94 = arith.constant 0 : index
    %250 = vector.load %arg14[%c0_93, %c0_94] : memref<2048x32xbf16, #tpu.memory_space<vmem>>, vector<2048x32xbf16>
    %cst_95 = arith.constant dense<0.000000e+00> : vector<8x32xf32>
    %251 = tpu.matmul %249, %250, %cst_95 {dimension_numbers = #tpu.dot_dimension_numbers<[1], [0], [0], [1], [0, 0, 1, 1], [], []>} : vector<8x2048xbf16>, vector<2048x32xbf16>, vector<8x32xf32> -> vector<8x32xf32>
    %c0_96 = arith.constant 0 : index
    %c0_97 = arith.constant 0 : index
    %252 = vector.load %arg15[%c0_96, %c0_97] : memref<1x32xf32, #tpu.memory_space<vmem>>, vector<1x32xf32>
    %253 = vector.broadcast %252 : vector<1x32xf32> to vector<8x32xf32>
    %254 = arith.addf %251, %253 : vector<8x32xf32>
    %255 = arith.addf %254, %240 : vector<8x32xf32>
    %c0_98 = arith.constant 0 : index
    %c0_99 = arith.constant 0 : index
    %256 = vector.load %arg16[%c0_98, %c0_99] : memref<1x32xf32, #tpu.memory_space<vmem>>, vector<1x32xf32>
    %c0_100 = arith.constant 0 : index
    %c0_101 = arith.constant 0 : index
    %257 = vector.load %arg17[%c0_100, %c0_101] : memref<1x32xf32, #tpu.memory_space<vmem>>, vector<1x32xf32>
    %cst_102 = arith.constant dense<0.000000e+00> : vector<8xf32>
    %258 = vector.multi_reduction <add>, %255, %cst_102 [1] : vector<8x32xf32> to vector<8xf32>
    %259 = vector.shape_cast %258 : vector<8xf32> to vector<8x1xf32>
    %cst_103 = arith.constant 3.200000e+01 : f32
    %260 = vector.broadcast %cst_103 : f32 to vector<8x1xf32>
    %261 = arith.divf %259, %260 : vector<8x1xf32>
    %262 = vector.broadcast %261 : vector<8x1xf32> to vector<8x32xf32>
    %263 = arith.subf %255, %262 : vector<8x32xf32>
    %264 = arith.mulf %263, %263 : vector<8x32xf32>
    %cst_104 = arith.constant dense<0.000000e+00> : vector<8xf32>
    %265 = vector.multi_reduction <add>, %264, %cst_104 [1] : vector<8x32xf32> to vector<8xf32>
    %266 = vector.shape_cast %265 : vector<8xf32> to vector<8x1xf32>
    %cst_105 = arith.constant 3.200000e+01 : f32
    %267 = vector.broadcast %cst_105 : f32 to vector<8x1xf32>
    %268 = arith.divf %266, %267 : vector<8x1xf32>
    %269 = vector.broadcast %261 : vector<8x1xf32> to vector<8x32xf32>
    %270 = arith.subf %255, %269 : vector<8x32xf32>
    %cst_106 = arith.constant 9.99999974E-6 : f32
    %271 = vector.broadcast %cst_106 : f32 to vector<8x1xf32>
    %272 = arith.addf %268, %271 : vector<8x1xf32>
    %273 = math.rsqrt %272 : vector<8x1xf32>
    %274 = vector.broadcast %273 : vector<8x1xf32> to vector<8x32xf32>
    %275 = arith.mulf %270, %274 : vector<8x32xf32>
    %276 = vector.broadcast %256 : vector<1x32xf32> to vector<8x32xf32>
    %277 = arith.mulf %275, %276 : vector<8x32xf32>
    %278 = vector.broadcast %257 : vector<1x32xf32> to vector<8x32xf32>
    %279 = arith.addf %277, %278 : vector<8x32xf32>
    %c0_107 = arith.constant 0 : index
    %c0_108 = arith.constant 0 : index
    %c0_109 = arith.constant 0 : index
    %280 = vector.load %arg18[%c0_107, %c0_108, %c0_109] : memref<1x8x32xf32, #tpu.memory_space<vmem>>, vector<1x8x32xf32>
    %281 = vector.shape_cast %280 : vector<1x8x32xf32> to vector<8x32xf32>
    %282 = vector.shape_cast %279 : vector<8x32xf32> to vector<1x8x32xf32>
    tpu.vector_store %arg18[%c0_107, %c0_108, %c0_109], %282 {strides = array<i32>} : memref<1x8x32xf32, #tpu.memory_space<vmem>>, vector<1x8x32xf32>,
    return
  }
  func.func @transform_0(%arg0: i32, %arg1: i32) -> (i32, i32, i32) {
    %c0_i32 = arith.constant 0 : i32
    %c0_i32_0 = arith.constant 0 : i32
    return %arg0, %arg1, %c0_i32 : i32, i32, i32
  }
  func.func @transform_1(%arg0: i32, %arg1: i32) -> (i32, i32, i32, i32) {
    %c0_i32 = arith.constant 0 : i32
    %c0_i32_0 = arith.constant 0 : i32
    %c0_i32_1 = arith.constant 0 : i32
    %c0_i32_2 = arith.constant 0 : i32
    return %arg0, %c0_i32, %c0_i32_0, %c0_i32_1 : i32, i32, i32, i32
  }
  func.func @transform_2(%arg0: i32, %arg1: i32) -> (i32, i32) {
    %c0_i32 = arith.constant 0 : i32
    %c0_i32_0 = arith.constant 0 : i32
    %c0_i32_1 = arith.constant 0 : i32
    return %c0_i32, %c0_i32_0 : i32, i32
  }
  func.func @transform_3(%arg0: i32, %arg1: i32) -> (i32, i32) {
    %c0_i32 = arith.constant 0 : i32
    %c0_i32_0 = arith.constant 0 : i32
    %c0_i32_1 = arith.constant 0 : i32
    return %c0_i32, %c0_i32_0 : i32, i32
  }
  func.func @transform_4(%arg0: i32, %arg1: i32) -> (i32, i32) {
    %c0_i32 = arith.constant 0 : i32
    %c0_i32_0 = arith.constant 0 : i32
    %c0_i32_1 = arith.constant 0 : i32
    return %c0_i32, %c0_i32_0 : i32, i32
  }
  func.func @transform_5(%arg0: i32, %arg1: i32) -> (i32, i32) {
    %c0_i32 = arith.constant 0 : i32
    %c0_i32_0 = arith.constant 0 : i32
    %c0_i32_1 = arith.constant 0 : i32
    return %c0_i32, %c0_i32_0 : i32, i32
  }
  func.func @transform_6(%arg0: i32, %arg1: i32) -> (i32, i32) {
    %c0_i32 = arith.constant 0 : i32
    %c0_i32_0 = arith.constant 0 : i32
    %c0_i32_1 = arith.constant 0 : i32
    return %c0_i32, %c0_i32_0 : i32, i32
  }
  func.func @transform_7(%arg0: i32, %arg1: i32) -> (i32, i32) {
    %c0_i32 = arith.constant 0 : i32
    %c0_i32_0 = arith.constant 0 : i32
    %c0_i32_1 = arith.constant 0 : i32
    return %c0_i32, %c0_i32_0 : i32, i32
  }
  func.func @transform_8(%arg0: i32, %arg1: i32) -> (i32, i32) {
    %c0_i32 = arith.constant 0 : i32
    %c0_i32_0 = arith.constant 0 : i32
    %c0_i32_1 = arith.constant 0 : i32
    return %c0_i32, %c0_i32_0 : i32, i32
  }
  func.func @transform_9(%arg0: i32, %arg1: i32) -> (i32, i32) {
    %c0_i32 = arith.constant 0 : i32
    %c0_i32_0 = arith.constant 0 : i32
    %c0_i32_1 = arith.constant 0 : i32
    return %c0_i32, %c0_i32_0 : i32, i32
  }
  func.func @transform_10(%arg0: i32, %arg1: i32) -> (i32, i32) {
    %c0_i32 = arith.constant 0 : i32
    %c0_i32_0 = arith.constant 0 : i32
    %c0_i32_1 = arith.constant 0 : i32
    return %c0_i32, %c0_i32_0 : i32, i32
  }
  func.func @transform_11(%arg0: i32, %arg1: i32) -> (i32, i32) {
    %c0_i32 = arith.constant 0 : i32
    %c0_i32_0 = arith.constant 0 : i32
    %c0_i32_1 = arith.constant 0 : i32
    return %c0_i32, %c0_i32_0 : i32, i32
  }
  func.func @transform_12(%arg0: i32, %arg1: i32) -> (i32, i32) {
    %c0_i32 = arith.constant 0 : i32
    %c0_i32_0 = arith.constant 0 : i32
    %c0_i32_1 = arith.constant 0 : i32
    return %c0_i32, %c0_i32_0 : i32, i32
  }
  func.func @transform_13(%arg0: i32, %arg1: i32) -> (i32, i32) {
    %c0_i32 = arith.constant 0 : i32
    %c0_i32_0 = arith.constant 0 : i32
    %c0_i32_1 = arith.constant 0 : i32
    return %c0_i32, %c0_i32_0 : i32, i32
  }
  func.func @transform_14(%arg0: i32, %arg1: i32) -> (i32, i32) {
    %c0_i32 = arith.constant 0 : i32
    %c0_i32_0 = arith.constant 0 : i32
    %c0_i32_1 = arith.constant 0 : i32
    return %c0_i32, %c0_i32_0 : i32, i32
  }
  func.func @transform_15(%arg0: i32, %arg1: i32) -> (i32, i32) {
    %c0_i32 = arith.constant 0 : i32
    %c0_i32_0 = arith.constant 0 : i32
    %c0_i32_1 = arith.constant 0 : i32
    return %c0_i32, %c0_i32_0 : i32, i32
  }
  func.func @transform_16(%arg0: i32, %arg1: i32) -> (i32, i32, i32) {
    %c0_i32 = arith.constant 0 : i32
    %c0_i32_0 = arith.constant 0 : i32
    return %arg0, %arg1, %c0_i32 : i32, i32, i32
  }
}

</mosaic_0001>

<bundles_post_ra>
// kernel: tpu_custom_call.1
= control target key start
LH: loop header
LB: loop body
LE: loop exit
PB: predicated region body
PF: predicated region fallthrough
CT: control target
= control target key end

     0   :  { %s7331_s0 = inlined_call_operand.vmem [shape: f32[2,16,32], index: 0, kind: input, shape index: {}]   ;;  %s7332_s1 = inlined_call_operand.vmem [shape: f32[2,4,8,8], index: 1, kind: input, shape index: {}]   ;;  %s7333_s2 = inlined_call_operand.vmem [shape: bf16[32,96], index: 2, kind: input, shape index: {}]   ;;  %s7334_s3 = inlined_call_operand.vmem [shape: f32[1,96], index: 3, kind: input, shape index: {}]   ;;  %s7335_s4 = inlined_call_operand.vmem [shape: f32[1,32], index: 4, kind: input, shape index: {}]   ;;  %s7336_s5 = inlined_call_operand.vmem [shape: f32[1,32], index: 5, kind: input, shape index: {}]   ;;  %s7337_s6 = inlined_call_operand.vmem [shape: bf16[32,32], index: 6, kind: input, shape index: {}]   ;;  %s7338_s7 = inlined_call_operand.vmem [shape: f32[1,32], index: 7, kind: input, shape index: {}]   ;;  %s7339_s8 = inlined_call_operand.vmem [shape: f32[1,32], index: 8, kind: input, shape index: {}]   ;;  %s7340_s9 = inlined_call_operand.vmem [shape: f32[1,32], index: 9, kind: input, shape index: {}]   ;;  %s7341_s10 = inlined_call_operand.vmem [shape: bf16[32,2048], index: 10, kind: input, shape index: {}]   ;;  %s7342_s11 = inlined_call_operand.vmem [shape: f32[1,2048], index: 11, kind: input, shape index: {}]   ;;  %s7343_s12 = inlined_call_operand.vmem [shape: bf16[2048,32], index: 12, kind: input, shape index: {}]   ;;  %s7344_s13 = inlined_call_operand.vmem [shape: f32[1,32], index: 13, kind: input, shape index: {}]   ;;  %s7345_s14 = inlined_call_operand.vmem [shape: f32[1,32], index: 14, kind: input, shape index: {}]   ;;  %s7346_s15 = inlined_call_operand.vmem [shape: f32[1,32], index: 15, kind: input, shape index: {}]   ;;  %s7347_s16 = inlined_call_operand.hbm [shape: f32[2,16,32], index: 16, kind: output, shape index: {}]  }
   0x1   :  { %7361 = sst [smem:[#allocation17_spill]] %s7331_s0 }
   0x2   :  { %7362 = sst [smem:[#allocation18_spill]] %s7332_s1 }
   0x3   :  { %7363 = sst [smem:[#allocation19_spill]] %s7333_s2 }
   0x4   :  { %7364 = sst [smem:[#allocation20_spill]] %s7345_s14 }
   0x5   :  { %7365 = sst [smem:[#allocation21_spill]] %s7346_s15 }
   0x6   :  { %7366 = sst [smem:[#allocation22_spill]] %s7347_s16 }
   0x7   :  { %21 = vsyncpa [#allocation5], 0 }
   0x8   :  { %23 = vsyncpa [#allocation5 + $0x1], 0  ;;  %s6128_s21 = smov 0   ;;  %s6130_s22 = smov 0  }
   0x9   :  { %s6132_s23 = smov 0   ;;  %s6134_s24 = smov 0  }
   0xa   :  { %s6136_s25 = smov 0   ;;  %s6138_s26 = smov 0  }
   0xb   :  { %s6140_s27 = smov 0   ;;  %s6142_s28 = smov 0  }
   0xc LB: > { %7367 = sst [smem:[#allocation7_spill]] %s5998_s21  ;;  %s5051_s29 = sadd.s32 4294967295, %s6026_s28   ;;  %s6026_s28 = sphi %s6142_s28, %s29_s28   ;;  %s6022_s27 = sphi %s6140_s27, %s7396_s27   ;;  %s6018_s26 = sphi %s6138_s26, %s7395_s26   ;;  %s6014_s25 = sphi %s6136_s25, %s7394_s25   ;;  %s6010_s24 = sphi %s6134_s24, %s7393_s24   ;;  %s6006_s23 = sphi %s6132_s23, %s7392_s23   ;;  %s6002_s22 = sphi %s6130_s22, %s7398_s22   ;;  %s5998_s21 = sphi %s6128_s21, %s7397_s21  }
   0xd   : > { %7368 = sst [smem:[#allocation8_spill]] %s6006_s23  ;;  %s5052_s30 = sadd.s32 4294967294, %s6026_s28  }
   0xe   : > { %7369 = sst [smem:[#allocation9_spill]] %s6018_s26  ;;  %s38_s0 = sadd.s32 1, %s6018_s26 }
   0xf   : > { %7370 = sst [smem:[#allocation10_spill]] %s6022_s27  ;;  %p39_p0 = scmp.ge.s32.totalorder %s38_s0, 2 }
  0x10   : > { %7371 = sst [smem:[#allocation11_spill]] %s6026_s28  ;;  %s41_s17 = sadd.s32 1, %s6022_s27 }
  0x11   : > { %p408_p1 = scmp.ne.s32.totalorder %s6006_s23, %s6002_s22  ;;  %p409_p2 = scmp.eq.s32.totalorder %s5051_s29, 3 }
  0x12   : > { %s7400_s0 = smov (%p39_p0, %s38_s0), 0  ;;  %s7402_s17 = smov (!%p39_p0, %s41_s17), %s6022_s27 }
  0x13   : > { %7372 = sst [smem:[#allocation12_spill]] %s7400_s0  ;;  %s394_s18 = ssub.s32 %s6018_s26, %s7400_s0 }
  0x14   : > { %p6179_p3 = por %p409_p2, %p408_p1  ;;  %p43_p4 = scmp.ge.s32.totalorder %s7402_s17, 2 }
  0x15   : > { %p414_p5 = scmp.ne.s32.totalorder %s6002_s22, %s5998_s21  ;;  %p415_p6 = scmp.eq.s32.totalorder %s5052_s30, 3 }
  0x16   : > { %s7373_s19 = scalar_select %p6179_p3, 1, 0 }
  0x17   : > { %p5055_p7 = scmp.ge.s32.totalorder %s6026_s28, 1  ;;  %s7404_s17 = smov (%p43_p4, %s7402_s17), 0 }
  0x18   : > { %7374 = sst [smem:[#allocation13_spill]] %s7373_s19  ;;  %p6188_p8 = por %p415_p6, %p414_p5 }
  0x19   : > { %7375 = sst [smem:[#allocation14_spill]] %s7404_s17  ;;  %p494_p9 = scmp.lt.s32.totalorder %s6026_s28, 5 }
  0x1a   : > { %s7376_s20 = scalar_select %p6188_p8, 1, 0 }
  0x1b   : > { %s393_s29 = ssub.s32 %s6022_s27, %s7404_s17  ;;  %s398_s16 = sadd.s32 1, %s6006_s23 }
  0x1c   : > { %7377 = sst [smem:[#allocation15_spill]] %s7376_s20  ;;  %s395_s15 = sor.u32 %s394_s18, %s393_s29 }
  0x1d   : > { %p495_p10 = pnand %p5055_p7, %p494_p9  ;;  %p396_p11 = scmp.eq.s32.totalorder %s395_s15, 0 }
  0x1e   : > { %s7360_s30 = sand.u32 (!%p495_p10), 1, %s6002_s22   ;;  %p552_p12 = scmp.lt.s32.totalorder (!%p495_p10), %s6014_s25, 1 }
  0x1f   : > { %s6197_s0 = scalar_select %p396_p11, %s6006_s23, %s398_s16  }
  0x20   : > { %498 = sbr.rel (%p495_p10) target bundleno = 3845 (0xf05), region = 84  ;;  %s6203_s26 = sshll.u32 (!%p495_p10), %s7360_s30, 3 }
  0x21   : > { %7378 = sst [smem:[#allocation16_spill]] %s6197_s0  ;;  %p554_p13 = scmp.lt.s32.totalorder (!%p495_p10), %s6010_s24, 1 }
  0x22   : > { %s7379_s1 = sld [smem:[#allocation18_spill]] (!%p495_p10)  ;;  %s7380_s14 = sld [smem:[#allocation17_spill]] (!%p495_p10) }
  0x23   : > { %s551_s30 = scalar_lea.vmem (!%p495_p10), [#allocation4], %s6203_s26  ;;  %p5061_p0 = scmp.ne.s32.totalorder (!%p495_p10), %s6010_s24, 0 }
  0x27   : > { %s553_s17 = scalar_select %p552_p12, %s6014_s25, 1 }
  0x28   : > { %s555_s18 = scalar_select %p554_p13, %s6010_s24, 1 }
  0x29   : > { %s5057_s29 = sshll.u32 %s553_s17, 1  ;;  %s5286_s15 = sshll.u32 %s553_s17, 5  ;;  %vm571_vm0 = vcmask (!%p5061_p0), 64512   ;;  %vm576_vm1 = vcmask (!%p5061_p0), 57344   ;;  %v6028_v1 = vmov (!%p5061_p0), 0.0  }
  0x2a   : > { %s557_s16 = sadd.s32 %s5057_s29, %s555_s18  ;;  %s6211_s23 = scalar_lea.vmem %s7379_s1, %s5286_s15  ;;  %572 = vst.msk [vmem:[#allocation2] sm:$0xff] (!%p5061_p0), %vm571_vm0, %v6028_v1  ;;  %573 = vst.msk [vmem:[#allocation2 + $0x8] sm:$0xff] (!%p5061_p0), %vm571_vm0, %v6028_v1 }
  0x2b   : > { %s5058_s20 = sshll.u32 %s557_s16, 3  ;;  %570 = sbr.rel (%p5061_p0) target bundleno = 50 (0x32), region = 88  ;;  %574 = vst.msk [vmem:[#allocation2 + $0x10] sm:$0xff] (!%p5061_p0), %vm571_vm0, %v6028_v1  ;;  %575 = vst.msk [vmem:[#allocation2 + $0x18] sm:$0xff] (!%p5061_p0), %vm571_vm0, %v6028_v1 }
  0x2c   : > { %s559_s19 = scalar_lea.vmem %s7380_s14, %s5058_s20  ;;  %577 = vst.msk [vmem:[#allocation3] sm:$0x1] (!%p5061_p0), %vm576_vm1, %v6028_v1  ;;  %578 = vst.msk [vmem:[#allocation3 + $0x1] sm:$0x1] (!%p5061_p0), %vm576_vm1, %v6028_v1 }
  0x2d   : > { %v6216_v0 = vld [vmem:[%s559_s19] sm:$0xff]  ;;  %579 = vst.msk [vmem:[#allocation3 + $0x2] sm:$0x1] (!%p5061_p0), %vm576_vm1, %v6028_v1  ;;  %580 = vst.msk [vmem:[#allocation3 + $0x3] sm:$0x1] (!%p5061_p0), %vm576_vm1, %v6028_v1 }
  0x32 PF: > { %s7381_s2 = sld [smem:[#allocation19_spill]]  ;;  %v6029_v3 = vmov 0.0   ;;  %vm6030_vm2 = vmmov 0   ;;  %vm605_vm3 = vcmask 261120   ;;  %v581_v5 = vpack.c.bf16 %v6216_v0, %v6216_v0  ;;  %v5062_v6 = vld [vmem:[%s7334_s3] ss:$0 sm:$0xff] }
  0x33   : > { %5509 = vmatprep.subr.bf16.mxu0 %v6029_v3  ;;  %5517 = vmatprep.subr.bf16.mxu1 %v6029_v3  ;;  %s6031_s19 = smov 104   ;;  %s6032_s20 = smov 120   ;;  %v6034_v12 = vmov 1983009808   ;;  %v664_v14 = vlaneseq  ;;  %v6035_v15 = vmov 1934713408  }
  0x34   : > { %5513 = vmatprep.mubr.msk.bf16.mxu0 %vm6030_vm2, %v6029_v3  ;;  %5519 = vmatprep.mubr.msk.bf16.mxu1 %vm6030_vm2, %v6029_v3  ;;  %s6033_s18 = smov 112   ;;  %v662_v13 = vunpack.c.l.s4 %v6034_v12  ;;  %v694_v16 = vunpack.c.l.s4 %v6035_v15  ;;  %vm1091_vm4 = vcmask 64512   ;;  %s6036_s29 = smov 64   ;;  %vm2096_vm5 = vcmask 57344  }
  0x35   : > { %v6251_v18 = vshrl.u32 %v664_v14, 7  ;;  %s6037_s15 = smov 96   ;;  %vm1379_vm6 = vcmask 1043456   ;;  %s6038_s16 = smov 16   ;;  %vm2250_vm8 = vcmask 130048   ;;  %vm2252_vm9 = vcmask 195584  }
  0x36   : > { %v663_v17 = vunpack.c.0.s8 %v662_v13  ;;  %v695_v21 = vunpack.c.0.s8 %v694_v16  ;;  %s6039_s21 = smov 8   ;;  %s6040_s14 = smov 24  }
  0x37   : > { %s7383_s28 = sld [smem:[#allocation20_spill]] }
  0x38   : > { %v5746_v2 = vld [vmem:[%s7381_s2] sm:$0xff]   ;;  %v5747_v4 = vld [vmem:[%s7381_s2 + $0x8] sm:$0xff]   ;;  %v6258_v22 = vsub.s32 %v663_v17, %v6251_v18  ;;  %v6271_v28 = vsub.s32 %v695_v21, %v6251_v18 }
  0x39   : > { %5510 = vmatpush3.bf16.msra.mxu0 %v5746_v2 }
  0x3a   : > { %5511 = vmatprep.subr.bf16.mxu0 %v6029_v3 }
  0x3d   : > { %5512 = vmatpush3.bf16.msra.mxu0 %v5747_v4 }
  0x3e   : > { %5523 = vmatprep.subr.bf16.mxu0 %v6029_v3 }
  0x40   : > { %5514 = vmatmul.mubr.msk.bf16.vlgmr.msra.gmra.mrb[0].mxu0 %vm605_vm3, %v581_v5 }
  0x41   : > { %5525 = vmatprep.mubr.msk.bf16.mxu0 %vm6030_vm2, %v6029_v3 }
 0x113   : > { %v643_v7 = vpop.f32.mrb[0].mxu0 }
 0x114   : > { %v6242_v8 = vadd.f32 %v5062_v6, %v643_v7  ;;  %v5515_v9 = vpop.f32.mrb[1].mxu0 }
 0x115   : > { %v646_v10 = vpop.f32.mrb[2].mxu0 }
 0x116   : > { %656 = vrot.lane.b32.xlu1 %v6242_v8, %s6031_s19  ;;  %650 = vrot.lane.b32.xlu0 %v6242_v8, %s6032_s20  ;;  %v5516_v11 = vpop.f32.mrb[3].mxu0 }
 0x11a   : > { %653 = vrot.lane.b32.xlu0 %v6242_v8, %s6033_s18 }
 0x188   : > { %v6253_v19 = vpop.permute.xlu1 %656  ;;  %v6255_v20 = vpop.permute.xlu0 %650 }
 0x189   : > { %v675_v23 = vcombine.low %v6255_v20, %v6253_v19  ;;  %v676_v24 = vcombine.high %v6255_v20, %v6253_v19 }
 0x18b   : > { %v683_v29 = vrot.slane %v675_v23, %v6258_v22  ;;  %v690_v30 = vrot.slane %v676_v24, %v6258_v22 }
 0x18c   : > { %v6264_v25 = vpop.permute.xlu0 %653 }
 0x18d   : > { %v659_v26 = vcombine.low %v6242_v8, %v6264_v25  ;;  %v660_v27 = vcombine.high %v6242_v8, %v6264_v25 }
 0x18f   : > { %v667_v31 = vrot.slane %v659_v26, %v6258_v22  ;;  %v674_v32 = vrot.slane %v660_v27, %v6258_v22 }
 0x191   : > { %v691_v33 = vcombine.low %v667_v31, %v683_v29  ;;  %v692_v34 = vcombine.high %v667_v31, %v683_v29  ;;  %v707_v35 = vcombine.low %v674_v32, %v690_v30  ;;  %v708_v36 = vcombine.high %v674_v32, %v690_v30 }
 0x193   : > { %v699_v37 = vrot.slane %v691_v33, %v6271_v28  ;;  %v706_v38 = vrot.slane %v692_v34, %v6271_v28  ;;  %v715_v39 = vrot.slane %v707_v35, %v6271_v28  ;;  %v722_v40 = vrot.slane %v708_v36, %v6271_v28 }
 0x195   : > { %v727_v41 = vcombine.low %v699_v37, %v706_v38  ;;  %v5066_v42 = vcombine.high %v699_v37, %v706_v38  ;;  %v743_v43 = vcombine.low %v715_v39, %v722_v40  ;;  %v5067_v44 = vcombine.high %v715_v39, %v722_v40 }
 0x197   : > { %v734_v45 = vrot.slane %v727_v41, %v6258_v22  ;;  %v742_v46 = vrot.slane %v5066_v42, %v6258_v22  ;;  %v750_v47 = vrot.slane %v743_v43, %v6258_v22  ;;  %v758_v48 = vrot.slane %v5067_v44, %v6258_v22 }
 0x199   : > { %v759_v49 = vcombine.low %v734_v45, %v742_v46  ;;  %v775_v50 = vcombine.low %v750_v47, %v758_v48  ;;  %v760_v51 = vcombine.high %v734_v45, %v742_v46  ;;  %v776_v52 = vcombine.high %v750_v47, %v758_v48 }
 0x19b   : > { %v767_v53 = vrot.slane %v759_v49, %v6271_v28  ;;  %v783_v54 = vrot.slane %v775_v50, %v6271_v28  ;;  %v774_v55 = vrot.slane %v760_v51, %v6271_v28  ;;  %v790_v56 = vrot.slane %v776_v52, %v6271_v28 }
 0x19d   : > { %v792_v57 = vcombine.high %v767_v53, %v783_v54  ;;  %v791_v58 = vcombine.low %v767_v53, %v783_v54  ;;  %v793_v61 = vcombine.low %v774_v55, %v790_v56  ;;  %v794_v62 = vcombine.high %v774_v55, %v790_v56 }
 0x19f   : > { %v1095_v59 = vsel %vm1091_vm4, %v792_v57, -inf  ;;  %v1092_v60 = vsel %vm1091_vm4, %v791_v58, -inf  ;;  %v1098_v63 = vsel %vm1091_vm4, %v793_v61, -inf  ;;  %v1101_v1 = vsel %vm1091_vm4, %v794_v62, -inf }
 0x1a0   : > { %1096 = vmax.xlane.f32.xlu0 %v1095_v59  ;;  %1093 = vmax.xlane.f32.xlu1 %v1092_v60 }
 0x1a4   : > { %1099 = vmax.xlane.f32.xlu0 %v1098_v63  ;;  %1102 = vmax.xlane.f32.xlu1 %v1101_v1 }
 0x1b5   : > { %945 = vrot.lane.b32.xlu1 %v6255_v20, %s6036_s29 }
 0x1b9   : > { %947 = vrot.lane.b32.xlu1 %v6264_v25, %s6036_s29 }
 0x1ba   : > { %943 = vrot.lane.b32.xlu0 %v6242_v8, %s6036_s29 }
 0x1be   : > { %949 = vrot.lane.b32.xlu0 %v6253_v19, %s6036_s29 }
 0x22d   : > { %v1097_v2 = vpop.xlane.xlu0 %1096  ;;  %v1094_v4 = vpop.xlane.xlu1 %1093 }
 0x22e   : > { %v1105_v5 = vsub.f32 %v792_v57, %v1097_v2  ;;  %v1104_v6 = vsub.f32 %v791_v58, %v1094_v4 }
 0x230   : > { %v1110_v7 = vmul.f32 1.442695, %v1105_v5  ;;  %v1108_v9 = vmul.f32 1.442695, %v1104_v6 }
 0x231   : > { %v1100_v10 = vpop.xlane.xlu0 %1099  ;;  %v1103_v11 = vpop.xlane.xlu1 %1102 }
 0x232   : > { %5878 = vpow2.f32 %v1110_v7  ;;  %v1106_v12 = vsub.f32 %v793_v61, %v1100_v10  ;;  %v1107_v13 = vsub.f32 %v794_v62, %v1103_v11 }
 0x233   : > { %5880 = vpow2.f32 %v1108_v9 }
 0x234   : > { %v1112_v15 = vmul.f32 1.442695, %v1106_v12  ;;  %v1114_v16 = vmul.f32 1.442695, %v1107_v13 }
 0x235   : > { %v944_v17 = vpop.permute.xlu0 %943  ;;  %v946_v21 = vpop.permute.xlu1 %945 }
 0x236   : > { %5882 = vpow2.f32 %v1112_v15 }
 0x237   : > { %5884 = vpow2.f32 %v1114_v16 }
 0x239   : > { %v950_v23 = vpop.permute.xlu0 %949  ;;  %v948_v24 = vpop.permute.xlu1 %947 }
 0x23a   : > { %v971_v26 = vcombine.low %v946_v21, %v950_v23  ;;  %v972_v27 = vcombine.high %v946_v21, %v950_v23  ;;  %v955_v29 = vcombine.low %v944_v17, %v948_v24  ;;  %v956_v30 = vcombine.high %v944_v17, %v948_v24 }
 0x23c   : > { %v6297_v31 = vpop.eup %5878  ;;  %v979_v32 = vrot.slane %v971_v26, %v6258_v22  ;;  %v986_v33 = vrot.slane %v972_v27, %v6258_v22  ;;  %v963_v34 = vrot.slane %v955_v29, %v6258_v22  ;;  %v970_v35 = vrot.slane %v956_v30, %v6258_v22 }
 0x23d   : > { %v6303_v36 = vpop.eup %5880  ;;  %v1119_v37 = vsel %vm1091_vm4, %v6297_v31, 0.0 }
 0x23e   : > { %v987_v38 = vcombine.low %v963_v34, %v979_v32  ;;  %v988_v39 = vcombine.high %v963_v34, %v979_v32  ;;  %v1003_v40 = vcombine.low %v970_v35, %v986_v33  ;;  %v1004_v41 = vcombine.high %v970_v35, %v986_v33  ;;  %1120 = vadd.xlane.f32.xlu0 %v1119_v37 }
 0x23f   : > { %v1116_v42 = vsel %vm1091_vm4, %v6303_v36, 0.0 }
 0x240   : > { %v6309_v43 = vpop.eup %5882  ;;  %v995_v44 = vrot.slane %v987_v38, %v6271_v28  ;;  %v1002_v45 = vrot.slane %v988_v39, %v6271_v28  ;;  %v1011_v46 = vrot.slane %v1003_v40, %v6271_v28  ;;  %v1018_v47 = vrot.slane %v1004_v41, %v6271_v28  ;;  %1117 = vadd.xlane.f32.xlu1 %v1116_v42 }
 0x241   : > { %v6315_v48 = vpop.eup %5884  ;;  %v1122_v49 = vsel %vm1091_vm4, %v6309_v43, 0.0 }
 0x242   : > { %v1023_v50 = vcombine.low %v995_v44, %v1002_v45  ;;  %v5070_v51 = vcombine.high %v995_v44, %v1002_v45  ;;  %v1039_v52 = vcombine.low %v1011_v46, %v1018_v47  ;;  %v5071_v53 = vcombine.high %v1011_v46, %v1018_v47  ;;  %1123 = vadd.xlane.f32.xlu0 %v1122_v49 }
 0x243   : > { %v1125_v54 = vsel %vm1091_vm4, %v6315_v48, 0.0 }
 0x244   : > { %v1030_v55 = vrot.slane %v1023_v50, %v6258_v22  ;;  %v1038_v56 = vrot.slane %v5070_v51, %v6258_v22  ;;  %v1046_v57 = vrot.slane %v1039_v52, %v6258_v22  ;;  %v1054_v58 = vrot.slane %v5071_v53, %v6258_v22  ;;  %1126 = vadd.xlane.f32.xlu1 %v1125_v54  ;;  %v2060_v50 = vld [vmem:[#allocation3] sm:$0x1]  ;;  %v2061_v51 = vld [vmem:[#allocation3 + $0x1] sm:$0x1] }
 0x246   : > { %v1055_v59 = vcombine.low %v1030_v55, %v1038_v56  ;;  %v1056_v60 = vcombine.high %v1030_v55, %v1038_v56  ;;  %v1071_v61 = vcombine.low %v1046_v57, %v1054_v58  ;;  %v1072_v62 = vcombine.high %v1046_v57, %v1054_v58  ;;  %v5084_v56 = vld [vmem:[#allocation3] ss:$0 sm:$0xff]  ;;  %v2062_v57 = vld [vmem:[#allocation3 + $0x2] sm:$0x1]  ;;  %v5085_v58 = vld [vmem:[#allocation3 + $0x1] ss:$0 sm:$0xff] }
 0x248   : > { %v1063_v63 = vrot.slane %v1055_v59, %v6271_v28  ;;  %v1070_v1 = vrot.slane %v1056_v60, %v6271_v28  ;;  %v1079_v2 = vrot.slane %v1071_v61, %v6271_v28  ;;  %v1086_v4 = vrot.slane %v1072_v62, %v6271_v28 }
 0x24a   : > { %v1087_v5 = vcombine.low %v1063_v63, %v1079_v2  ;;  %v1088_v6 = vcombine.high %v1063_v63, %v1079_v2  ;;  %v1089_v7 = vcombine.low %v1070_v1, %v1086_v4  ;;  %v1090_v9 = vcombine.high %v1070_v1, %v1086_v4  ;;  %v6350_v63 = vld [vmem:[#allocation3 + $0x2] ss:$0 sm:$0xff]  ;;  %v2063_v1 = vld [vmem:[#allocation3 + $0x3] sm:$0x1] }
 0x24c   : > { %v1140_v10 = vmul.f32 1.442695, %v1087_v5  ;;  %v1142_v11 = vmul.f32 1.442695, %v1088_v6  ;;  %v1144_v12 = vmul.f32 1.442695, %v1089_v7 }
 0x24d   : > { %v1146_v13 = vmul.f32 1.442695, %v1090_v9  ;;  %v6354_v5 = vld [vmem:[#allocation3 + $0x3] ss:$0 sm:$0xff] }
 0x24e   : > { %5886 = vpow2.f32 %v1140_v10 }
 0x24f   : > { %5888 = vpow2.f32 %v1142_v11 }
 0x250   : > { %5890 = vpow2.f32 %v1144_v12 }
 0x251   : > { %5892 = vpow2.f32 %v1146_v13 }
 0x255   : > { %797 = vrot.lane.b32.xlu1 %v6255_v20, %s6037_s15 }
 0x258   : > { %v5887_v15 = vpop.eup %5886  ;;  %795 = vrot.lane.b32.xlu0 %v6242_v8, %s6037_s15 }
 0x259   : > { %v5889_v16 = vpop.eup %5888  ;;  %799 = vrot.lane.b32.xlu1 %v6264_v25, %s6037_s15  ;;  %v6332_v17 = vpack.c.bf16 %v5887_v15, %v5887_v15  ;;  %v2064_v21 = vsel %vm1091_vm4, %v5887_v15, 0.0 }
 0x25a   : > { %v6335_v23 = vpop.eup %5890  ;;  %v6337_v24 = vpack.c.bf16 %v5889_v16, %v5889_v16  ;;  %v2071_v26 = vsel %vm1091_vm4, %v5889_v16, 0.0  ;;  %v2065_v27 = vrot.slane %v2064_v21, 4 }
 0x25b   : > { %v5893_v29 = vpop.eup %5892  ;;  %v1169_v20 = vsel %vm1091_vm4, %v6332_v17, 0  ;;  %v2072_v30 = vrot.slane %v2071_v26, 4  ;;  %v2078_v8 = vsel %vm1091_vm4, %v6335_v23, 0.0  ;;  %v6360_v15 = vpack.c.bf16 %v6335_v23, %v6335_v23 }
 0x25c   : > { %801 = vrot.lane.b32.xlu0 %v6253_v19, %s6037_s15  ;;  %5518 = vmatpush3.bf16.xpose.msra.mxu1 %v1169_v20  ;;  %v1215_v25 = vsel %vm1091_vm4, %v6337_v24, 0  ;;  %v2066_v32 = vadd.f32 %v2065_v27, %v2064_v21  ;;  %v2079_v33 = vrot.slane %v2078_v8, 4  ;;  %v2085_v35 = vsel %vm1091_vm4, %v5893_v29, 0.0  ;;  %s6042_s15 = smov [#allocation4]  }
 0x25d   : > { %5524 = vmatpush3.bf16.xpose.msra.mxu0 %v1215_v25  ;;  %5529 = vmatprep.subr.bf16.mxu1 %v6029_v3  ;;  %v2073_v34 = vadd.f32 %v2072_v30, %v2071_v26  ;;  %v2086_v39 = vrot.slane %v2085_v35, 4  ;;  %v6362_v16 = vpack.c.bf16 %v5893_v29, %v5893_v29  ;;  %s5936_s27 = sshll.u32 %s6042_s15, 4  ;;  %s5937_s27 = int_to_ptr.vmem [resolvable:$false] %s5936_s27 }
 0x25e   : > { %5535 = vmatprep.subr.bf16.mxu0 %v6029_v3  ;;  %v2067_v37 = vrot.slane %v2066_v32, 2  ;;  %v2080_v38 = vadd.f32 %v2079_v33, %v2078_v8 }
 0x25f   : > { %v2074_v40 = vrot.slane %v2073_v34, 2  ;;  %v2087_v42 = vadd.f32 %v2086_v39, %v2085_v35  ;;  %v1307_v23 = vsel %vm1091_vm4, %v6362_v16, 0  ;;  %v6372_v39 = vld [vmem:[#allocation2] sm:$0xff] }
 0x260   : > { %v2068_v41 = vadd.f32 %v2067_v37, %v2066_v32  ;;  %v2081_v19 = vrot.slane %v2080_v38, 2 }
 0x261   : > { %v2075_v44 = vadd.f32 %v2074_v40, %v2073_v34  ;;  %v2088_v47 = vrot.slane %v2087_v42, 2  ;;  %v1261_v34 = vsel %vm1091_vm4, %v6360_v15, 0 }
 0x262   : > { %v2069_v45 = vrot.slane %v2068_v41, 1  ;;  %v2082_v46 = vadd.f32 %v2081_v19, %v2080_v38 }
 0x263   : > { %v2076_v49 = vrot.slane %v2075_v44, 1  ;;  %v2089_v54 = vadd.f32 %v2088_v47, %v2087_v42  ;;  %v6380_v47 = vld [vmem:[#allocation2 + $0x8] sm:$0xff] }
 0x264   : > { %v2070_v52 = vadd.f32 %v2069_v45, %v2068_v41  ;;  %v2083_v53 = vrot.slane %v2082_v46, 1 }
 0x265   : > { %v2077_v55 = vadd.f32 %v2076_v49, %v2075_v44  ;;  %v2090_v61 = vrot.slane %v2089_v54, 1 }
 0x266   : > { %v2092_v59 = vadd.f32 %v2070_v52, %v2060_v50  ;;  %v2084_v60 = vadd.f32 %v2083_v53, %v2082_v46  ;;  %v1375_v52 = vpack.c.bf16 %v6372_v39, %v6372_v39 }
 0x267   : > { %v2093_v62 = vadd.f32 %v2077_v55, %v2061_v51  ;;  %v2091_v4 = vadd.f32 %v2090_v61, %v2089_v54 }
 0x268   : > { %2097 = vst.msk [vmem:[#allocation3] sm:$0x1] %vm2096_vm5, %v2092_v59  ;;  %v2094_v2 = vadd.f32 %v2084_v60, %v2062_v57 }
 0x269   : > { %2098 = vst.msk [vmem:[#allocation3 + $0x1] sm:$0x1] %vm2096_vm5, %v2093_v62  ;;  %v2095_v6 = vadd.f32 %v2091_v4, %v2063_v1 }
 0x26a   : > { %2099 = vst.msk [vmem:[#allocation3 + $0x2] sm:$0x1] %vm2096_vm5, %v2094_v2 }
 0x26b   : > { %2100 = vst.msk [vmem:[#allocation3 + $0x3] sm:$0x1] %vm2096_vm5, %v2095_v6 }
 0x2cb   : > { %v1121_v7 = vpop.xlane.xlu0 %1120 }
 0x2cc   : > { %5894 = vrcp.f32 %v1121_v7 }
 0x2cd   : > { %v1118_v9 = vpop.xlane.xlu1 %1117 }
 0x2ce   : > { %5896 = vrcp.f32 %v1118_v9 }
 0x2cf   : > { %v1124_v10 = vpop.xlane.xlu0 %1123 }
 0x2d0   : > { %5898 = vrcp.f32 %v1124_v10 }
 0x2d1   : > { %v1127_v11 = vpop.xlane.xlu1 %1126 }
 0x2d2   : > { %5900 = vrcp.f32 %v1127_v11 }
 0x2d3   : > { %v796_v12 = vpop.permute.xlu0 %795 }
 0x2d5   : > { %v798_v13 = vpop.permute.xlu1 %797 }
 0x2d6   : > { %v5895_v21 = vpop.eup %5894 }
 0x2d7   : > { %v802_v26 = vpop.permute.xlu0 %801  ;;  %v1133_v27 = vmul.f32 %v5895_v21, %v6297_v31 }
 0x2d8   : > { %v5897_v20 = vpop.eup %5896  ;;  %v823_v30 = vcombine.low %v798_v13, %v802_v26  ;;  %v824_v8 = vcombine.high %v798_v13, %v802_v26 }
 0x2d9   : > { %v800_v25 = vpop.permute.xlu1 %799  ;;  %v1137_v32 = vmul.f32 0.35355338, %v1133_v27  ;;  %v1132_v33 = vmul.f32 %v5897_v20, %v6303_v36 }
 0x2da   : > { %v5899_v35 = vpop.eup %5898  ;;  %v831_v29 = vrot.slane %v823_v30, %v6258_v22  ;;  %v838_v37 = vrot.slane %v824_v8, %v6258_v22  ;;  %v807_v38 = vcombine.low %v796_v12, %v800_v25  ;;  %v808_v31 = vcombine.high %v796_v12, %v800_v25  ;;  %v6426_v25 = vld [vmem:[#allocation2 + $0x10] sm:$0xff] }
 0x2db   : > { %v6374_v40 = vpack.c.bf16 %v1137_v32, %v1137_v32  ;;  %v1787_v41 = vsel %vm1091_vm4, %v1137_v32, 0.0  ;;  %v1136_v36 = vmul.f32 0.35355338, %v1132_v33  ;;  %v1765_v19 = vmul.f32 %v5085_v58, %v1137_v32  ;;  %v6428_v32 = vld [vmem:[#allocation2 + $0x18] sm:$0xff] }
 0x2dc   : > { %v5901_v42 = vpop.eup %5900  ;;  %v815_v44 = vrot.slane %v807_v38, %v6258_v22  ;;  %v822_v45 = vrot.slane %v808_v31, %v6258_v22  ;;  %1788 = vadd.xlane.f32.xlu1 %v1787_v41  ;;  %v1134_v46 = vmul.f32 %v5899_v35, %v6309_v43  ;;  %v1381_v12 = vsel %vm1379_vm6, %v1375_v52, 0 }
 0x2dd   : > { %v1784_v49 = vsel %vm1091_vm4, %v1136_v36, 0.0  ;;  %v6383_v50 = vpack.c.bf16 %v1136_v36, %v1136_v36  ;;  %5526 = vmatmul.mubr.msk.bf16.vlgmr.msra.gmra.mrb[4].mxu0 %vm1091_vm4, %v6374_v40  ;;  %v1764_v51 = vmul.f32 %v5084_v56, %v1136_v36  ;;  %v1771_v43 = vsel %vm1091_vm4, %v1765_v19, 0.0 }
 0x2de   : > { %v839_v53 = vcombine.low %v815_v44, %v831_v29  ;;  %v840_v54 = vcombine.high %v815_v44, %v831_v29  ;;  %v855_v55 = vcombine.low %v822_v45, %v838_v37  ;;  %v856_v57 = vcombine.high %v822_v45, %v838_v37  ;;  %1785 = vadd.xlane.f32.xlu0 %v1784_v49 }
 0x2df   : > { %5520 = vmatmul.mubr.msk.bf16.vlgmr.msra.gmra.mrb[0].mxu1 %vm1091_vm4, %v6383_v50  ;;  %5536 = vmatpush3.bf16.xpose.msra.mxu0 %v1307_v23  ;;  %v6392_v58 = vmul.f32 0.35355338, %v1134_v46  ;;  %v1135_v59 = vmul.f32 %v5901_v42, %v6315_v48  ;;  %v1376_v56 = vpack.c.bf16 %v6380_v47, %v6380_v47  ;;  %v1768_v2 = vsel %vm1091_vm4, %v1764_v51, 0.0 }
 0x2e0   : > { %v847_v60 = vrot.slane %v839_v53, %v6271_v28  ;;  %v854_v61 = vrot.slane %v840_v54, %v6271_v28  ;;  %v863_v62 = vrot.slane %v855_v55, %v6271_v28  ;;  %v870_v1 = vrot.slane %v856_v57, %v6271_v28  ;;  %5530 = vmatpush3.bf16.xpose.msra.mxu1 %v1261_v34 }
 0x2e1   : > { %1772 = vadd.xlane.f32.xlu1 %v1771_v43  ;;  %5537 = vmatprep.mubr.msk.bf16.mxu0 %vm6030_vm2, %v6029_v3  ;;  %v1766_v48 = vmul.f32 %v6350_v63, %v6392_v58  ;;  %v6406_v4 = vmul.f32 0.35355338, %v1135_v59  ;;  %v1424_v13 = vsel %vm1379_vm6, %v1376_v56, 0  ;;  %v1150_v20 = vpack.c.bf16 %v6392_v58, %v6392_v58 }
 0x2e2   : > { %v875_v6 = vcombine.low %v847_v60, %v854_v61  ;;  %v5068_v7 = vcombine.high %v847_v60, %v854_v61  ;;  %v891_v9 = vcombine.low %v863_v62, %v870_v1  ;;  %v5069_v10 = vcombine.high %v863_v62, %v870_v1  ;;  %1769 = vadd.xlane.f32.xlu0 %v1768_v2 }
 0x2e3   : > { %5531 = vmatprep.mubr.msk.bf16.mxu1 %vm6030_vm2, %v6029_v3  ;;  %v1767_v11 = vmul.f32 %v6354_v5, %v6406_v4  ;;  %5541 = vmatprep.subr.bf16.mxu1 %v6029_v3  ;;  %v1774_v5 = vsel %vm1091_vm4, %v1766_v48, 0.0  ;;  %v1151_v8 = vpack.c.bf16 %v6406_v4, %v6406_v4  ;;  %v1377_v37 = vpack.c.bf16 %v6426_v25, %v6426_v25 }
 0x2e4   : > { %v882_v63 = vrot.slane %v875_v6, %v6258_v22  ;;  %v890_v21 = vrot.slane %v5068_v7, %v6258_v22  ;;  %v898_v26 = vrot.slane %v891_v9, %v6258_v22  ;;  %v906_v27 = vrot.slane %v5069_v10, %v6258_v22  ;;  %5547 = vmatprep.subr.bf16.mxu0 %v6029_v3 }
 0x2e5   : > { %v1777_v30 = vsel %vm1091_vm4, %v1767_v11, 0.0  ;;  %v1378_v38 = vpack.c.bf16 %v6428_v32, %v6428_v32  ;;  %v1467_v44 = vsel %vm1379_vm6, %v1377_v37, 0  ;;  %v1163_v53 = vand.u32 127, %v664_v14 }
 0x2e6   : > { %1775 = vadd.xlane.f32.xlu0 %v1774_v5  ;;  %1778 = vadd.xlane.f32.xlu1 %v1777_v30  ;;  %v908_v33 = vcombine.high %v882_v63, %v890_v21  ;;  %v907_v34 = vcombine.low %v882_v63, %v890_v21  ;;  %v923_v23 = vcombine.low %v898_v26, %v906_v27  ;;  %v1793_v37 = vsel %vm1091_vm4, %v6406_v4, 0.0 }
 0x2e7   : > { %5532 = vmatmul.mubr.msk.bf16.vlgmr.msra.gmra.mrb[4].mxu1 %vm1091_vm4, %v1150_v20  ;;  %5538 = vmatmul.mubr.msk.bf16.vlgmr.msra.gmra.mrb[8].mxu0 %vm1091_vm4, %v1151_v8  ;;  %v924_v35 = vcombine.high %v898_v26, %v906_v27  ;;  %v1510_v45 = vsel %vm1379_vm6, %v1378_v38, 0  ;;  %vm1164_vm7 = vcmp.le.s32.totalorder %v1163_v53, %v6251_v18 }
 0x2e8   : > { %5542 = vmatpush3.bf16.msra.mxu1 %v1381_v12  ;;  %5548 = vmatpush3.bf16.msra.mxu0 %v1424_v13  ;;  %v922_v29 = vrot.slane %v908_v33, %v6271_v28  ;;  %v915_v41 = vrot.slane %v907_v34, %v6271_v28  ;;  %v931_v36 = vrot.slane %v923_v23, %v6271_v28 }
 0x2e9   : > { %5543 = vmatprep.mubr.msk.bf16.mxu1 %vm6030_vm2, %v6029_v3  ;;  %5549 = vmatprep.mubr.msk.bf16.mxu0 %vm6030_vm2, %v6029_v3  ;;  %v938_v31 = vrot.slane %v924_v35, %v6271_v28 }
 0x2ea   : > { %5553 = vmatprep.subr.bf16.mxu1 %v6029_v3  ;;  %5559 = vmatprep.subr.bf16.mxu0 %v6029_v3  ;;  %v939_v46 = vcombine.low %v915_v41, %v931_v36  ;;  %v940_v49 = vcombine.high %v915_v41, %v931_v36 }
 0x2eb   : > { %v941_v19 = vcombine.low %v922_v29, %v938_v31  ;;  %v942_v42 = vcombine.high %v922_v29, %v938_v31  ;;  %v1790_v29 = vsel %vm1091_vm4, %v6392_v58, 0.0 }
 0x2ec   : > { %v1156_v51 = vpack.c.bf16 %v939_v46, %v939_v46  ;;  %v1157_v52 = vpack.c.bf16 %v940_v49, %v940_v49 }
 0x2ed   : > { %v1159_v55 = vpack.c.bf16 %v942_v42, %v942_v42  ;;  %v1158_v62 = vpack.c.bf16 %v941_v19, %v941_v19 }
 0x2ef   : > { %5544 = vmatmul.mubr.msk.bf16.vlgmr.msra.gmra.mrb[8].mxu1 %vm1091_vm4, %v6383_v50  ;;  %5550 = vmatmul.mubr.msk.bf16.vlgmr.msra.gmra.mrb[12].mxu0 %vm1091_vm4, %v6374_v40  ;;  %v1556_v40 = vsel %vm1379_vm6, %v1156_v51, 0  ;;  %v1602_v50 = vsel %vm1379_vm6, %v1157_v52, 0  ;;  %v6478_v9 = vsel %vm1379_vm6, %v1159_v55, 0  ;;  %v6483_v11 = vsel %vm1379_vm6, %v1158_v62, 0 }
 0x2f0   : > { %5554 = vmatpush3.bf16.msra.mxu1 %v1467_v44  ;;  %5560 = vmatpush3.bf16.msra.mxu0 %v1510_v45 }
 0x2f1   : > { %5555 = vmatprep.mubr.msk.bf16.mxu1 %vm6030_vm2, %v6029_v3  ;;  %5561 = vmatprep.mubr.msk.bf16.mxu0 %vm6030_vm2, %v6029_v3 }
 0x2f2   : > { %5565 = vmatprep.subr.bf16.mxu1 %v6029_v3  ;;  %5571 = vmatprep.subr.bf16.mxu0 %v6029_v3 }
 0x2f7   : > { %5556 = vmatmul.mubr.msk.bf16.vlgmr.msra.gmra.mrb[12].mxu1 %vm1091_vm4, %v1150_v20  ;;  %5562 = vmatmul.mubr.msk.bf16.vlgmr.msra.gmra.mrb[16].mxu0 %vm1091_vm4, %v1151_v8 }
 0x2f8   : > { %5566 = vmatpush3.bf16.msra.mxu1 %v1556_v40  ;;  %5572 = vmatpush3.bf16.msra.mxu0 %v1602_v50 }
 0x2f9   : > { %5567 = vmatprep.mubr.msk.bf16.mxu1 %vm6030_vm2, %v6029_v3  ;;  %5573 = vmatprep.mubr.msk.bf16.mxu0 %vm6030_vm2, %v6029_v3 }
 0x2fa   : > { %5577 = vmatprep.subr.bf16.mxu1 %v6029_v3  ;;  %5583 = vmatprep.subr.bf16.mxu0 %v6029_v3 }
 0x369   : > { %v1789_v31 = vpop.xlane.xlu1 %1788 }
 0x36b   : > { %v1786_v38 = vpop.xlane.xlu0 %1785 }
 0x36c   : > { %v1796_v53 = vmul.f32 1e-06, %v1786_v38 }
 0x36e   : > { %v1773_v36 = vpop.xlane.xlu1 %1772 }
 0x36f   : > { %v1770_v41 = vpop.xlane.xlu0 %1769 }
 0x373   : > { %v1776_v58 = vpop.xlane.xlu0 %1775  ;;  %v1779_v19 = vpop.xlane.xlu1 %1778 }
 0x3b0   : > { %v1251_v54 = vpop.f32.mrb[4].mxu0 }
 0x3b1   : > { %v1352_v57 = vsel %vm1164_vm7, %v1251_v54, 0.0  ;;  %v5527_v43 = vpop.f32.mrb[5].mxu0 }
 0x3b2   : > { %v1205_v59 = vpop.f32.mrb[0].mxu1  ;;  %v1356_v56 = vpack.c.bf16 %v1352_v57, %v1352_v57  ;;  %v1254_v60 = vpop.f32.mrb[6].mxu0  ;;  %v1362_v61 = vsel %vm1091_vm4, %v1352_v57, 0.0 }
 0x3b3   : > { %v1351_v1 = vsel %vm1164_vm7, %v1205_v59, 0.0  ;;  %v5521_v2 = vpop.f32.mrb[1].mxu1  ;;  %1363 = vadd.xlane.f32.xlu0 %v1362_v61  ;;  %v5528_v14 = vpop.f32.mrb[7].mxu0 }
 0x3b4   : > { %v1355_v48 = vpack.c.bf16 %v1351_v1, %v1351_v1  ;;  %v1208_v6 = vpop.f32.mrb[2].mxu1  ;;  %v1359_v7 = vsel %vm1091_vm4, %v1351_v1, 0.0  ;;  %5574 = vmatmul.mubr.msk.bf16.vlgmr.msra.gmra.mrb[12].mxu0 %vm1091_vm4, %v1356_v56 }
 0x3b5   : > { %v5522_v10 = vpop.f32.mrb[3].mxu1  ;;  %1360 = vadd.xlane.f32.xlu1 %v1359_v7  ;;  %5584 = vmatpush3.bf16.msra.mxu0 %v6478_v9 }
 0x3b6   : > { %5568 = vmatmul.mubr.msk.bf16.vlgmr.msra.gmra.mrb[8].mxu1 %vm1091_vm4, %v1355_v48  ;;  %5585 = vmatprep.mubr.msk.bf16.mxu0 %vm6030_vm2, %v6029_v3 }
 0x3b7   : > { %5578 = vmatpush3.bf16.msra.mxu1 %v6483_v11  ;;  %5579 = vmatprep.mubr.msk.bf16.mxu1 %vm6030_vm2, %v6029_v3 }
 0x3b8   : > { %5589 = vmatprep.subr.bf16.mxu1 %v6029_v3  ;;  %5595 = vmatprep.subr.bf16.mxu0 %v6029_v3 }
 0x3ba   : > { %v1297_v12 = vpop.f32.mrb[4].mxu1  ;;  %v1343_v13 = vpop.f32.mrb[8].mxu0 }
 0x3bb   : > { %v1353_v63 = vsel %vm1164_vm7, %v1297_v12, 0.0  ;;  %v1354_v21 = vsel %vm1164_vm7, %v1343_v13, 0.0  ;;  %v5533_v26 = vpop.f32.mrb[5].mxu1  ;;  %v5539_v27 = vpop.f32.mrb[9].mxu0 }
 0x3bc   : > { %v1357_v20 = vpack.c.bf16 %v1353_v63, %v1353_v63  ;;  %v1358_v5 = vpack.c.bf16 %v1354_v21, %v1354_v21  ;;  %v1300_v30 = vpop.f32.mrb[6].mxu1  ;;  %v1346_v8 = vpop.f32.mrb[10].mxu0  ;;  %v1365_v33 = vsel %vm1091_vm4, %v1353_v63, 0.0  ;;  %v1368_v34 = vsel %vm1091_vm4, %v1354_v21, 0.0 }
 0x3bd   : > { %v5534_v23 = vpop.f32.mrb[7].mxu1  ;;  %1366 = vadd.xlane.f32.xlu0 %v1365_v33  ;;  %1369 = vadd.xlane.f32.xlu1 %v1368_v34  ;;  %v5540_v35 = vpop.f32.mrb[11].mxu0 }
 0x3be   : > { %5580 = vmatmul.mubr.msk.bf16.vlgmr.msra.gmra.mrb[12].mxu1 %vm1091_vm4, %v1357_v20  ;;  %5586 = vmatmul.mubr.msk.bf16.vlgmr.msra.gmra.mrb[16].mxu0 %vm1091_vm4, %v1358_v5 }
 0x3bf   : > { %5590 = vmatpush3.bf16.msra.mxu1 %v1556_v40  ;;  %5596 = vmatpush3.bf16.msra.mxu0 %v1602_v50  ;;  %v1797_v40 = vmul.f32 1e-06, %v1789_v31 }
 0x3c0   : > { %5591 = vmatprep.mubr.msk.bf16.mxu1 %vm6030_vm2, %v6029_v3  ;;  %5601 = vmatprep.subr.bf16.mxu1 %v6029_v3 }
 0x3c1   : > { %1791 = vadd.xlane.f32.xlu0 %v1790_v29  ;;  %1794 = vadd.xlane.f32.xlu1 %v1793_v37 }
 0x3c2   : > { %5597 = vmatprep.mubr.msk.bf16.mxu0 %vm6030_vm2, %v6029_v3  ;;  %5607 = vmatprep.subr.bf16.mxu0 %v6029_v3 }
 0x440   : > { %v1364_v42 = vpop.xlane.xlu0 %1363 }
 0x441   : > { %v1781_v49 = vadd.f32 %v1773_v36, %v1364_v42 }
 0x442   : > { %v1361_v4 = vpop.xlane.xlu1 %1360 }
 0x443   : > { %v1780_v52 = vadd.f32 %v1770_v41, %v1361_v4  ;;  %v1801_v55 = vadd.f32 %v1797_v40, %v1781_v49 }
 0x445   : > { %v1800_v43 = vadd.f32 %v1796_v53, %v1780_v52  ;;  %5902 = vrcp.f32 %v1801_v55 }
 0x447   : > { %5904 = vrcp.f32 %v1800_v43 }
 0x44a   : > { %v1367_v44 = vpop.xlane.xlu0 %1366  ;;  %v1370_v45 = vpop.xlane.xlu1 %1369 }
 0x44b   : > { %v1782_v57 = vadd.f32 %v1776_v58, %v1367_v44  ;;  %v1783_v59 = vadd.f32 %v1779_v19, %v1370_v45 }
 0x44e   : > { %v1792_v46 = vpop.xlane.xlu0 %1791  ;;  %v1795_v51 = vpop.xlane.xlu1 %1794 }
 0x44f   : > { %v1798_v50 = vmul.f32 1e-06, %v1792_v46  ;;  %v1799_v54 = vmul.f32 1e-06, %v1795_v51  ;;  %v5903_v10 = vpop.eup %5902 }
 0x451   : > { %v1802_v56 = vadd.f32 %v1798_v50, %v1782_v57  ;;  %v1803_v60 = vadd.f32 %v1799_v54, %v1783_v59  ;;  %v5905_v12 = vpop.eup %5904 }
 0x453   : > { %5906 = vrcp.f32 %v1802_v56 }
 0x454   : > { %5908 = vrcp.f32 %v1803_v60 }
 0x45d   : > { %v5907_v13 = vpop.eup %5906 }
 0x45e   : > { %v5909_v63 = vpop.eup %5908 }
 0x487   : > { %v1638_v61 = vpop.f32.mrb[12].mxu0 }
 0x488   : > { %v5575_v62 = vpop.f32.mrb[13].mxu0  ;;  %v1809_v20 = vmul.f32 %v5903_v10, %v1638_v61 }
 0x489   : > { %v1592_v1 = vpop.f32.mrb[8].mxu1  ;;  %v1641_v2 = vpop.f32.mrb[14].mxu0 }
 0x48a   : > { %v5569_v14 = vpop.f32.mrb[9].mxu1  ;;  %v5576_v48 = vpop.f32.mrb[15].mxu0  ;;  %v1808_v27 = vmul.f32 %v5905_v12, %v1592_v1 }
 0x48b   : > { %v1595_v6 = vpop.f32.mrb[10].mxu1 }
 0x48c   : > { %v5570_v7 = vpop.f32.mrb[11].mxu1 }
 0x491   : > { %v1684_v21 = vpop.f32.mrb[12].mxu1  ;;  %v1730_v26 = vpop.f32.mrb[16].mxu0 }
 0x492   : > { %v1810_v5 = vmul.f32 %v5907_v13, %v1684_v21  ;;  %v1811_v30 = vmul.f32 %v5909_v63, %v1730_v26  ;;  %v5581_v8 = vpop.f32.mrb[13].mxu1  ;;  %v5587_v33 = vpop.f32.mrb[17].mxu0 }
 0x493   : > { %v1687_v34 = vpop.f32.mrb[14].mxu1  ;;  %v1733_v23 = vpop.f32.mrb[18].mxu0 }
 0x494   : > { %v2101_v35 = vcombine.low %v1808_v27, %v1810_v5  ;;  %v2102_v29 = vcombine.high %v1808_v27, %v1810_v5  ;;  %v2117_v37 = vcombine.low %v1809_v20, %v1811_v30  ;;  %v2118_v38 = vcombine.high %v1809_v20, %v1811_v30  ;;  %v5582_v31 = vpop.f32.mrb[15].mxu1  ;;  %v5588_v41 = vpop.f32.mrb[19].mxu0 }
 0x495   : > { %v5748_v31 = vld [vmem:[%s7337_s6] sm:$0xff]  }
 0x496   : > { %v2109_v36 = vrot.slane %v2101_v35, %v6258_v22  ;;  %v2116_v58 = vrot.slane %v2102_v29, %v6258_v22  ;;  %v2125_v19 = vrot.slane %v2117_v37, %v6258_v22  ;;  %v2132_v42 = vrot.slane %v2118_v38, %v6258_v22 }
 0x498   : > { %v2133_v4 = vcombine.low %v2109_v36, %v2125_v19  ;;  %v2134_v44 = vcombine.high %v2109_v36, %v2125_v19  ;;  %v2149_v45 = vcombine.low %v2116_v58, %v2132_v42  ;;  %v2150_v46 = vcombine.high %v2116_v58, %v2132_v42  ;;  %v5094_v36 = vld [vmem:[%s7335_s4] ss:$0 sm:$0xff] }
 0x499   : > { %v5095_v19 = vld [vmem:[%s7336_s5] ss:$0 sm:$0xff] }
 0x49a   : > { %v2141_v49 = vrot.slane %v2133_v4, %v6271_v28  ;;  %v2148_v51 = vrot.slane %v2134_v44, %v6271_v28  ;;  %v2157_v52 = vrot.slane %v2149_v45, %v6271_v28  ;;  %v2164_v40 = vrot.slane %v2150_v46, %v6271_v28 }
 0x49c   : > { %v2169_v50 = vcombine.low %v2141_v49, %v2148_v51  ;;  %v5092_v53 = vcombine.high %v2141_v49, %v2148_v51  ;;  %v2185_v54 = vcombine.low %v2157_v52, %v2164_v40  ;;  %v5093_v55 = vcombine.high %v2157_v52, %v2164_v40 }
 0x49e   : > { %v2176_v57 = vrot.slane %v2169_v50, %v6258_v22  ;;  %v2184_v43 = vrot.slane %v5092_v53, %v6258_v22  ;;  %v2192_v59 = vrot.slane %v2185_v54, %v6258_v22  ;;  %v2200_v56 = vrot.slane %v5093_v55, %v6258_v22 }
 0x4a0   : > { %v2202_v60 = vcombine.high %v2176_v57, %v2184_v43  ;;  %v2218_v61 = vcombine.high %v2192_v59, %v2200_v56  ;;  %v2201_v62 = vcombine.low %v2176_v57, %v2184_v43  ;;  %v2217_v1 = vcombine.low %v2192_v59, %v2200_v56  ;;  %v5096_v57 = vld [vmem:[%s7338_s7] ss:$0 sm:$0xff] }
 0x4a2   : > { %v2216_v2 = vrot.slane %v2202_v60, %v6271_v28  ;;  %v2232_v14 = vrot.slane %v2218_v61, %v6271_v28  ;;  %v2209_v48 = vrot.slane %v2201_v62, %v6271_v28  ;;  %v2225_v6 = vrot.slane %v2217_v1, %v6271_v28 }
 0x4a4   : > { %v2235_v7 = vcombine.low %v2216_v2, %v2232_v14  ;;  %v2234_v10 = vcombine.high %v2209_v48, %v2225_v6  ;;  %v2236_v12 = vcombine.high %v2216_v2, %v2232_v14  ;;  %v2233_v13 = vcombine.low %v2209_v48, %v2225_v6 }
 0x4a6   : > { %2242 = vrot.lane.b32.xlu1 %v2235_v7, %s6038_s16  ;;  %2238 = vrot.lane.b32.xlu0 %v2234_v10, %s6039_s21 }
 0x4aa   : > { %2246 = vrot.lane.b32.xlu1 %v2236_v12, %s6040_s14 }
 0x518   : > { %v2243_v63 = vpop.permute.xlu1 %2242  ;;  %v2239_v21 = vpop.permute.xlu0 %2238 }
 0x519   : > { %v2249_v26 = vsel %vm1091_vm4, %v2233_v13, %v2239_v21 }
 0x51a   : > { %v2251_v20 = vsel %vm2250_vm8, %v2249_v26, %v2243_v63 }
 0x51c   : > { %v2247_v27 = vpop.permute.xlu1 %2246 }
 0x51d   : > { %v2253_v5 = vsel %vm2252_vm9, %v2251_v20, %v2247_v27 }
 0x51e   : > { %v2254_v30 = vadd.f32 %v2253_v5, %v6216_v0 }
 0x520   : > { %v2257_v8 = vsel %vm605_vm3, %v2254_v30, 0.0 }
 0x521   : > { %2258 = vadd.xlane.f32.xlu0 %v2257_v8 }
 0x54e   : > { %1816 = vxpose.xlu0.c.b16.start.end [1/1] (short) (narrow) %v6332_v17, 16 }
 0x5ae   : > { %v2259_v33 = vpop.xlane.xlu0 %2258 }
 0x5af   : > { %v2261_v34 = vmul.f32 0.03125, %v2259_v33 }
 0x5b1   : > { %v2262_v23 = vsub.f32 %v2254_v30, %v2261_v34 }
 0x5b3   : > { %v2263_v35 = vmul.f32 %v2262_v23, %v2262_v23 }
 0x5b4   : > { %v1824_v29 = vpop.trf.xlu0 }
 0x5b5   : > { %5592 = vmatmul.mubr.msk.bf16.vlgmr.msra.gmra.mrb[16].mxu1 %vm1091_vm4, %v1824_v29  ;;  %v2264_v37 = vsel %vm605_vm3, %v2263_v35, 0.0 }
 0x5b6   : > { %5602 = vmatpush3.bf16.msra.mxu1 %v6483_v11  ;;  %2265 = vadd.xlane.f32.xlu1 %v2264_v37  ;;  %v5749_v11 = vld [vmem:[%s7337_s6 + $0x8] sm:$0xff]  }
 0x5b7   : > { %5603 = vmatprep.mubr.msk.bf16.mxu1 %vm6030_vm2, %v6029_v3  ;;  %5613 = vmatprep.subr.bf16.mxu1 %v6029_v3 }
 0x5e3   : > { %1934 = vxpose.xlu1.c.b16.start.end [1/1] (short) (narrow) %v6360_v15, 16 }
 0x643   : > { %v2266_v0 = vpop.xlane.xlu1 %2265 }
 0x644   : > { %v2267_v17 = vmul.f32 0.03125, %v2266_v0 }
 0x646   : > { %v2268_v38 = vadd.f32 1e-05, %v2267_v17 }
 0x648   : > { %5910 = vrsqrt.f32 %v2268_v38 }
 0x649   : > { %v1942_v41 = vpop.trf.xlu1 }
 0x64a   : > { %5604 = vmatmul.mubr.msk.bf16.vlgmr.msra.gmra.mrb[20].mxu1 %vm1091_vm4, %v1942_v41 }
 0x64b   : > { %5614 = vmatpush3.bf16.msra.mxu1 %v5748_v31  ;;  %5617 = vmatprep.mubr.msk.bf16.mxu1 %vm6030_vm2, %v6029_v3 }
 0x64c   : > { %5615 = vmatprep.subr.bf16.mxu1 %v6029_v3 }
 0x64f   : > { %5616 = vmatpush3.bf16.msra.mxu1 %v5749_v11 }
 0x650   : > { %5627 = vmatprep.subr.bf16.mxu1 %v6029_v3 }
 0x652   : > { %v5911_v15 = vpop.eup %5910 }
 0x653   : > { %v2270_v58 = vmul.f32 %v5911_v15, %v2262_v23 }
 0x655   : > { %v2277_v42 = vmul.f32 %v5094_v36, %v2270_v58 }
 0x657   : > { %v6559_v4 = vadd.f32 %v5095_v19, %v2277_v42 }
 0x659   : > { %v2285_v44 = vpack.c.bf16 %v6559_v4, %v6559_v4 }
 0x65b   : > { %5618 = vmatmul.mubr.msk.bf16.vlgmr.msra.gmra.mrb[24].mxu1 %vm605_vm3, %v2285_v44 }
 0x65c   : > { %5629 = vmatprep.mubr.msk.bf16.mxu1 %vm6030_vm2, %v6029_v3 }
 0x688   : > { %v1869_v45 = vpop.f32.mrb[16].mxu1 }
 0x689   : > { %v2052_v46 = vadd.f32 %v1869_v45, %v6372_v39  ;;  %v5593_v49 = vpop.f32.mrb[17].mxu1 }
 0x68a   : > { %v1872_v51 = vpop.f32.mrb[18].mxu1 }
 0x68b   : > { %2056 = vst.msk [vmem:[#allocation2] sm:$0xff] %vm1091_vm4, %v2052_v46  ;;  %v5594_v52 = vpop.f32.mrb[19].mxu1 }
 0x71d   : > { %v1987_v40 = vpop.f32.mrb[20].mxu1 }
 0x71e   : > { %v2054_v50 = vadd.f32 %v1987_v40, %v6426_v25  ;;  %v5605_v53 = vpop.f32.mrb[21].mxu1 }
 0x71f   : > { %v1990_v54 = vpop.f32.mrb[22].mxu1 }
 0x720   : > { %2058 = vst.msk [vmem:[#allocation2 + $0x10] sm:$0xff] %vm1091_vm4, %v2054_v50  ;;  %v5606_v55 = vpop.f32.mrb[23].mxu1 }
 0x72e   : > { %v2346_v43 = vpop.f32.mrb[24].mxu1 }
 0x72f   : > { %v2347_v59 = vadd.f32 %v5096_v57, %v2346_v43  ;;  %v5619_v39 = vpop.f32.mrb[25].mxu1 }
 0x730   : > { %v2349_v56 = vpop.f32.mrb[26].mxu1 }
 0x731   : > { %2356 = vrot.lane.b32.xlu1 %v2347_v59, %s6033_s18  ;;  %2353 = vrot.lane.b32.xlu0 %v2347_v59, %s6032_s20  ;;  %v5620_v60 = vpop.f32.mrb[27].mxu1  ;;  %s4961_s20 = sshll.u32 %s551_s30, 4  ;;  %s7275_s20 = int_to_ptr.vmem [resolvable:$true] %s4961_s20 }
 0x732   : > { %p5939_p5 = scmp.lt.s32.totalorder %s7275_s20, %s5937_s27 }
 0x735   : > { %2359 = vrot.lane.b32.xlu0 %v2347_v59, %s6031_s19 }
 0x7a3   : > { %v2357_v25 = vpop.permute.xlu1 %2356  ;;  %v2354_v61 = vpop.permute.xlu0 %2353 }
 0x7a4   : > { %v2362_v62 = vcombine.low %v2347_v59, %v2357_v25  ;;  %v2363_v1 = vcombine.high %v2347_v59, %v2357_v25 }
 0x7a6   : > { %v2370_v6 = vrot.slane %v2362_v62, %v6258_v22  ;;  %v2377_v7 = vrot.slane %v2363_v1, %v6258_v22 }
 0x7a7   : > { %v2360_v2 = vpop.permute.xlu0 %2359 }
 0x7a8   : > { %v2378_v14 = vcombine.low %v2354_v61, %v2360_v2  ;;  %v2379_v48 = vcombine.high %v2354_v61, %v2360_v2 }
 0x7aa   : > { %v2386_v10 = vrot.slane %v2378_v14, %v6258_v22  ;;  %v2393_v12 = vrot.slane %v2379_v48, %v6258_v22 }
 0x7ac   : > { %v2394_v13 = vcombine.low %v2370_v6, %v2386_v10  ;;  %v2395_v63 = vcombine.high %v2370_v6, %v2386_v10  ;;  %v2410_v21 = vcombine.low %v2377_v7, %v2393_v12  ;;  %v2411_v26 = vcombine.high %v2377_v7, %v2393_v12  ;;  %v2551_v10 = vld [vmem:[%s6211_s23 + $0x8] sm:$0xff] }
 0x7ad   : > { %v2555_v12 = vpack.c.bf16 %v2551_v10, %v2551_v10 }
 0x7ae   : > { %v2402_v27 = vrot.slane %v2394_v13, %v6271_v28  ;;  %v2409_v20 = vrot.slane %v2395_v63, %v6271_v28  ;;  %v2418_v5 = vrot.slane %v2410_v21, %v6271_v28  ;;  %v2425_v30 = vrot.slane %v2411_v26, %v6271_v28 }
 0x7af   : > { %v2608_v13 = vsel %vm1379_vm6, %v2555_v12, 0 }
 0x7b0   : > { %v2430_v8 = vcombine.low %v2402_v27, %v2409_v20  ;;  %v5100_v33 = vcombine.high %v2402_v27, %v2409_v20  ;;  %v2446_v34 = vcombine.low %v2418_v5, %v2425_v30  ;;  %v5101_v23 = vcombine.high %v2418_v5, %v2425_v30  ;;  %5628 = vmatpush3.bf16.msra.mxu1 %v2608_v13  ;;  %v2553_v20 = vld [vmem:[%s6211_s23 + $0x18] sm:$0xff] }
 0x7b1   : > { %5639 = vmatprep.subr.bf16.mxu1 %v6029_v3 }
 0x7b2   : > { %v2437_v35 = vrot.slane %v2430_v8, %v6258_v22  ;;  %v2445_v29 = vrot.slane %v5100_v33, %v6258_v22  ;;  %v2453_v37 = vrot.slane %v2446_v34, %v6258_v22  ;;  %v2461_v0 = vrot.slane %v5101_v23, %v6258_v22  ;;  %v2550_v8 = vld [vmem:[%s6211_s23] sm:$0xff] }
 0x7b3   : > { %v2557_v34 = vpack.c.bf16 %v2553_v20, %v2553_v20 }
 0x7b4   : > { %v2462_v17 = vcombine.low %v2437_v35, %v2445_v29  ;;  %v2478_v38 = vcombine.low %v2453_v37, %v2461_v0  ;;  %v2463_v31 = vcombine.high %v2437_v35, %v2445_v29  ;;  %v2479_v41 = vcombine.high %v2453_v37, %v2461_v0 }
 0x7b5   : > { %v2700_v29 = vsel %vm1379_vm6, %v2557_v34, 0 }
 0x7b6   : > { %v2470_v11 = vrot.slane %v2462_v17, %v6271_v28  ;;  %v2486_v15 = vrot.slane %v2478_v38, %v6271_v28  ;;  %v2477_v36 = vrot.slane %v2463_v31, %v6271_v28  ;;  %v2493_v58 = vrot.slane %v2479_v41, %v6271_v28  ;;  %v2552_v31 = vld [vmem:[%s6211_s23 + $0x10] sm:$0xff]  ;;  %s7384_s23 = sld [smem:[#allocation21_spill]] }
 0x7b8   : > { %v2495_v19 = vcombine.high %v2470_v11, %v2486_v15  ;;  %v2494_v42 = vcombine.low %v2470_v11, %v2486_v15  ;;  %v2496_v46 = vcombine.low %v2477_v36, %v2493_v58  ;;  %v2497_v49 = vcombine.high %v2477_v36, %v2493_v58 }
 0x7b9   : > { %v2556_v15 = vpack.c.bf16 %v2552_v31, %v2552_v31 }
 0x7ba   : > { %v2501_v44 = vsel %vm1091_vm4, %v2495_v19, -inf  ;;  %v2498_v45 = vsel %vm1091_vm4, %v2494_v42, -inf  ;;  %v2504_v51 = vsel %vm1091_vm4, %v2496_v46, -inf  ;;  %v2507_v52 = vsel %vm1091_vm4, %v2497_v49, -inf }
 0x7bb   : > { %2502 = vmax.xlane.f32.xlu0 %v2501_v44  ;;  %2499 = vmax.xlane.f32.xlu1 %v2498_v45  ;;  %v2654_v44 = vsel %vm1379_vm6, %v2556_v15, 0 }
 0x7bf   : > { %2505 = vmax.xlane.f32.xlu0 %v2504_v51  ;;  %2508 = vmax.xlane.f32.xlu1 %v2507_v52 }
 0x848   : > { %v2503_v40 = vpop.xlane.xlu0 %2502  ;;  %v2500_v50 = vpop.xlane.xlu1 %2499 }
 0x849   : > { %v2511_v53 = vsub.f32 %v2495_v19, %v2503_v40  ;;  %v2510_v54 = vsub.f32 %v2494_v42, %v2500_v50 }
 0x84b   : > { %v2516_v55 = vmul.f32 1.442695, %v2511_v53  ;;  %v2514_v57 = vmul.f32 1.442695, %v2510_v54 }
 0x84c   : > { %v2506_v43 = vpop.xlane.xlu0 %2505  ;;  %v2509_v59 = vpop.xlane.xlu1 %2508 }
 0x84d   : > { %5912 = vpow2.f32 %v2516_v55  ;;  %v2512_v39 = vsub.f32 %v2496_v46, %v2506_v43  ;;  %v2513_v56 = vsub.f32 %v2497_v49, %v2509_v59 }
 0x84e   : > { %5914 = vpow2.f32 %v2514_v57 }
 0x84f   : > { %v2518_v60 = vmul.f32 1.442695, %v2512_v39  ;;  %v2520_v25 = vmul.f32 1.442695, %v2513_v56 }
 0x851   : > { %5916 = vpow2.f32 %v2518_v60 }
 0x852   : > { %5918 = vpow2.f32 %v2520_v25 }
 0x857   : > { %v5913_v61 = vpop.eup %5912 }
 0x858   : > { %v5915_v62 = vpop.eup %5914  ;;  %v2525_v1 = vsel %vm1091_vm4, %v5913_v61, 0.0 }
 0x859   : > { %2526 = vadd.xlane.f32.xlu1 %v2525_v1  ;;  %v2522_v2 = vsel %vm1091_vm4, %v5915_v62, 0.0 }
 0x85a   : > { %2523 = vadd.xlane.f32.xlu0 %v2522_v2 }
 0x85b   : > { %v5917_v14 = vpop.eup %5916 }
 0x85c   : > { %v5919_v48 = vpop.eup %5918  ;;  %v2528_v6 = vsel %vm1091_vm4, %v5917_v14, 0.0 }
 0x85d   : > { %v2531_v7 = vsel %vm1091_vm4, %v5919_v48, 0.0 }
 0x85e   : > { %2529 = vadd.xlane.f32.xlu0 %v2528_v6  ;;  %2532 = vadd.xlane.f32.xlu1 %v2531_v7 }
 0x88b   : > { %1875 = vxpose.xlu0.c.b16.start.end [1/1] (short) (narrow) %v6337_v24, 16  ;;  %1993 = vxpose.xlu1.c.b16.start.end [1/1] (short) (narrow) %v6362_v16, 16  ;;  %v2554_v16 = vpack.c.bf16 %v2550_v8, %v2550_v8 }
 0x8e6   : > { %v2527_v63 = vpop.xlane.xlu1 %2526 }
 0x8e7   : > { %v2524_v21 = vpop.xlane.xlu0 %2523  ;;  %5920 = vrcp.f32 %v2527_v63 }
 0x8e8   : > { %5922 = vrcp.f32 %v2524_v21 }
 0x8eb   : > { %v2533_v26 = vpop.xlane.xlu1 %2532  ;;  %v2530_v27 = vpop.xlane.xlu0 %2529 }
 0x8ec   : > { %5924 = vrcp.f32 %v2533_v26 }
 0x8ed   : > { %5926 = vrcp.f32 %v2530_v27 }
 0x8f1   : > { %v5921_v5 = vpop.eup %5920  ;;  %v1883_v30 = vpop.trf.xlu0 }
 0x8f2   : > { %v2539_v33 = vmul.f32 %v5921_v5, %v5913_v61  ;;  %5598 = vmatmul.mubr.msk.bf16.vlgmr.msra.gmra.mrb[20].mxu0 %vm1091_vm4, %v1883_v30  ;;  %v5923_v23 = vpop.eup %5922  ;;  %v2001_v0 = vpop.trf.xlu1 }
 0x8f3   : > { %5608 = vmatpush3.bf16.msra.mxu0 %v6478_v9  ;;  %5609 = vmatprep.mubr.msk.bf16.mxu0 %vm6030_vm2, %v6029_v3  ;;  %v2538_v17 = vmul.f32 %v5923_v23, %v5915_v62  ;;  %v2562_v9 = vsel %vm1379_vm6, %v2554_v16, 0 }
 0x8f4   : > { %v2543_v24 = vmul.f32 0.35355338, %v2539_v33  ;;  %5621 = vmatprep.subr.bf16.mxu0 %v6029_v3 }
 0x8f5   : > { %v2542_v11 = vmul.f32 0.35355338, %v2538_v17 }
 0x8f6   : > { %v2547_v35 = vpack.c.bf16 %v2543_v24, %v2543_v24  ;;  %v5925_v37 = vpop.eup %5924 }
 0x8f7   : > { %v2541_v38 = vmul.f32 %v5925_v37, %v5919_v48  ;;  %v5927_v36 = vpop.eup %5926  ;;  %v2546_v42 = vpack.c.bf16 %v2542_v11, %v2542_v11 }
 0x8f8   : > { %5630 = vmatmul.mubr.msk.bf16.vlgmr.msra.gmra.mrb[28].mxu1 %vm1091_vm4, %v2547_v35  ;;  %v2540_v19 = vmul.f32 %v5927_v36, %v5917_v14 }
 0x8f9   : > { %5640 = vmatpush3.bf16.msra.mxu1 %v2700_v29  ;;  %5641 = vmatprep.mubr.msk.bf16.mxu1 %vm6030_vm2, %v6029_v3  ;;  %v2545_v41 = vmul.f32 0.35355338, %v2541_v38 }
 0x8fa   : > { %5610 = vmatmul.mubr.msk.bf16.vlgmr.msra.gmra.mrb[24].mxu0 %vm1091_vm4, %v2001_v0  ;;  %v2544_v45 = vmul.f32 0.35355338, %v2540_v19 }
 0x8fb   : > { %5622 = vmatpush3.bf16.msra.mxu0 %v2562_v9  ;;  %5623 = vmatprep.mubr.msk.bf16.mxu0 %vm6030_vm2, %v6029_v3  ;;  %v2549_v58 = vpack.c.bf16 %v2545_v41, %v2545_v41 }
 0x8fc   : > { %5633 = vmatprep.subr.bf16.mxu0 %v6029_v3  ;;  %v2548_v46 = vpack.c.bf16 %v2544_v45, %v2544_v45 }
 0x900   : > { %5642 = vmatmul.mubr.msk.bf16.vlgmr.msra.gmra.mrb[32].mxu1 %vm1091_vm4, %v2549_v58 }
 0x902   : > { %5624 = vmatmul.mubr.msk.bf16.vlgmr.msra.gmra.mrb[28].mxu0 %vm1091_vm4, %v2546_v42 }
 0x903   : > { %5634 = vmatpush3.bf16.msra.mxu0 %v2654_v44  ;;  %5635 = vmatprep.mubr.msk.bf16.mxu0 %vm6030_vm2, %v6029_v3 }
 0x90a   : > { %5636 = vmatmul.mubr.msk.bf16.vlgmr.msra.gmra.mrb[32].mxu0 %vm1091_vm4, %v2548_v46 }
 0x9c5   : > { %v1928_v49 = vpop.f32.mrb[20].mxu0 }
 0x9c6   : > { %v2053_v51 = vadd.f32 %v1928_v49, %v6380_v47  ;;  %v5599_v52 = vpop.f32.mrb[21].mxu0 }
 0x9c7   : > { %v1931_v40 = vpop.f32.mrb[22].mxu0 }
 0x9c8   : > { %2057 = vst.msk [vmem:[#allocation2 + $0x8] sm:$0xff] %vm1091_vm4, %v2053_v51  ;;  %v5600_v50 = vpop.f32.mrb[23].mxu0 }
 0x9cb   : > { %v2644_v53 = vpop.f32.mrb[28].mxu1 }
 0x9cc   : > { %v5631_v54 = vpop.f32.mrb[29].mxu1 }
 0x9cd   : > { %v2046_v55 = vpop.f32.mrb[24].mxu0  ;;  %v2647_v57 = vpop.f32.mrb[30].mxu1 }
 0x9ce   : > { %v2055_v43 = vadd.f32 %v2046_v55, %v6428_v32  ;;  %v5611_v59 = vpop.f32.mrb[25].mxu0  ;;  %v5632_v3 = vpop.f32.mrb[31].mxu1 }
 0x9cf   : > { %v2049_v39 = vpop.f32.mrb[26].mxu0 }
 0x9d0   : > { %2059 = vst.msk [vmem:[#allocation2 + $0x18] sm:$0xff] %vm1091_vm4, %v2055_v43  ;;  %v5612_v56 = vpop.f32.mrb[27].mxu0 }
 0x9d1   : > { %v2924_v56 = vld [vmem:[%s7341_s10] sm:$0xff] }
 0x9d3   : > { %v2736_v60 = vpop.f32.mrb[32].mxu1 }
 0x9d4   : > { %v2758_v25 = vcombine.low %v2644_v53, %v2736_v60  ;;  %v2759_v47 = vcombine.high %v2644_v53, %v2736_v60  ;;  %v5643_v61 = vpop.f32.mrb[33].mxu1  ;;  %v2932_v60 = vld [vmem:[%s7341_s10 + $0x40] sm:$0xff] }
 0x9d5   : > { %v2598_v62 = vpop.f32.mrb[28].mxu0  ;;  %v2739_v1 = vpop.f32.mrb[34].mxu1  ;;  %v5110_v61 = vcombine.low %v2924_v56, %v2932_v60 }
 0x9d6   : > { %v5625_v2 = vpop.f32.mrb[29].mxu0  ;;  %v5644_v14 = vpop.f32.mrb[35].mxu1  ;;  %v2766_v63 = vrot.slane %v2758_v25, %v6258_v22  ;;  %v2773_v21 = vrot.slane %v2759_v47, %v6258_v22  ;;  %v5111_v25 = vcombine.high %v2924_v56, %v2932_v60  ;;  %v2933_v47 = vld [vmem:[%s7341_s10 + $0x48] sm:$0xff] }
 0x9d7   : > { %v2601_v48 = vpop.f32.mrb[30].mxu0  ;;  %v2940_v2 = vld [vmem:[%s7341_s10 + $0x80] sm:$0xff] }
 0x9d8   : > { %v5626_v6 = vpop.f32.mrb[31].mxu0  ;;  %3203 = vmatprep.subr.bf16.mxu0 %v5111_v25  ;;  %v2948_v14 = vld [vmem:[%s7341_s10 + $0xc0] sm:$0xff]  ;;  %v2941_v48 = vld [vmem:[%s7341_s10 + $0x88] sm:$0xff]  ;;  %v2954_v25 = vld [vmem:[%s7341_s10 + $0xf0] sm:$0xff] }
 0x9d9   : > { %3204 = vmatpush1.bf16.msra.mxu0 %v5110_v61  ;;  %v5127_v6 = vcombine.high %v2940_v2, %v2948_v14  ;;  %v2955_v61 = vld [vmem:[%s7341_s10 + $0xf8] sm:$0xff] }
 0x9db   : > { %3205 = vmatprep.subr.bf16.mxu0 %v5127_v6 }
 0x9dd   : > { %v2690_v7 = vpop.f32.mrb[32].mxu0 }
 0x9de   : > { %v2742_v10 = vcombine.low %v2598_v62, %v2690_v7  ;;  %v2743_v12 = vcombine.high %v2598_v62, %v2690_v7  ;;  %v5637_v32 = vpop.f32.mrb[33].mxu0  ;;  %v2949_v7 = vld [vmem:[%s7341_s10 + $0xc8] sm:$0xff] }
 0x9df   : > { %v2693_v13 = vpop.f32.mrb[34].mxu0  ;;  %v5129_v32 = vcombine.high %v2941_v48, %v2949_v7 }
 0x9e0   : > { %v2750_v26 = vrot.slane %v2742_v10, %v6258_v22  ;;  %v2757_v27 = vrot.slane %v2743_v12, %v6258_v22  ;;  %v5638_v20 = vpop.f32.mrb[35].mxu0  ;;  %v5126_v10 = vcombine.low %v2940_v2, %v2948_v14  ;;  %v5128_v12 = vcombine.low %v2941_v48, %v2949_v7  ;;  %v2926_v13 = vld [vmem:[%s7341_s10 + $0x10] sm:$0xff]  ;;  %v5750_v7 = vld [vmem:[%s7343_s12 + $0x40] sm:$0xff]  }
 0x9e1   : > { %v2935_v20 = vld [vmem:[%s7341_s10 + $0x58] sm:$0xff] }
 0x9e2   : > { %v2774_v5 = vcombine.low %v2750_v26, %v2766_v63  ;;  %v2775_v30 = vcombine.high %v2750_v26, %v2766_v63  ;;  %v2790_v8 = vcombine.low %v2757_v27, %v2773_v21  ;;  %v2791_v33 = vcombine.high %v2757_v27, %v2773_v21  ;;  %3206 = vmatpush1.bf16.msra.mxu0 %v5126_v10  ;;  %v2934_v63 = vld [vmem:[%s7341_s10 + $0x50] sm:$0xff]  ;;  %v2927_v21 = vld [vmem:[%s7341_s10 + $0x18] sm:$0xff]  ;;  %v5751_v10 = vld [vmem:[%s7343_s12 + $0xc0] sm:$0xff]  }
 0x9e3   : > { %v6041_v26 = vmov 0   ;;  %v5115_v27 = vcombine.high %v2926_v13, %v2934_v63 }
 0x9e4   : > { %v2782_v34 = vrot.slane %v2774_v5, %v6271_v28  ;;  %v2789_v24 = vrot.slane %v2775_v30, %v6271_v28  ;;  %v2798_v16 = vrot.slane %v2790_v8, %v6271_v28  ;;  %v2805_v23 = vrot.slane %v2791_v33, %v6271_v28  ;;  %3235 = vmatprep.mubr.bf16.mxu0 %v6041_v26 }
 0x9e5   : > { %3276 = vmatprep.mubr.bf16.mxu1 %v6041_v26  ;;  %v5114_v5 = vcombine.low %v2926_v13, %v2934_v63  ;;  %v5116_v30 = vcombine.low %v2927_v21, %v2935_v20  ;;  %v5117_v8 = vcombine.high %v2927_v21, %v2935_v20  ;;  %3285 = vmatprep.subr.bf16.mxu0 %v5115_v27  ;;  %v5754_v13 = vld [vmem:[%s7343_s12 + $0x48] sm:$0xff]   ;;  %v5758_v27 = vld [vmem:[%s7343_s12 + $0x50] sm:$0xff]  }
 0x9e6   : > { %v2810_v35 = vcombine.low %v2782_v34, %v2789_v24  ;;  %v5106_v29 = vcombine.high %v2782_v34, %v2789_v24  ;;  %v2826_v37 = vcombine.low %v2798_v16, %v2805_v23  ;;  %v5107_v0 = vcombine.high %v2798_v16, %v2805_v23  ;;  %v5108_v23 = vld [vmem:[%s7339_s8] ss:$0 sm:$0xff]  ;;  %v5755_v63 = vld [vmem:[%s7343_s12 + $0xc8] sm:$0xff]   ;;  %v5759_v20 = vld [vmem:[%s7343_s12 + $0xd0] sm:$0xff]  }
 0x9e7   : > { %v5756_v21 = vld [vmem:[%s7343_s12 + $0x8] sm:$0xff]  }
 0x9e8   : > { %v2817_v17 = vrot.slane %v2810_v35, %v6258_v22  ;;  %v2825_v38 = vrot.slane %v5106_v29, %v6258_v22  ;;  %v2833_v9 = vrot.slane %v2826_v37, %v6258_v22  ;;  %v2841_v31 = vrot.slane %v5107_v0, %v6258_v22  ;;  %v5109_v29 = vld [vmem:[%s7340_s9] ss:$0 sm:$0xff]  ;;  %v2942_v0 = vld [vmem:[%s7341_s10 + $0x90] sm:$0xff] }
 0x9ea   : > { %v2843_v41 = vcombine.high %v2817_v17, %v2825_v38  ;;  %v2859_v11 = vcombine.high %v2833_v9, %v2841_v31  ;;  %v2842_v15 = vcombine.low %v2817_v17, %v2825_v38  ;;  %v2858_v36 = vcombine.low %v2833_v9, %v2841_v31  ;;  %v2950_v17 = vld [vmem:[%s7341_s10 + $0xd0] sm:$0xff]  ;;  %v2943_v38 = vld [vmem:[%s7341_s10 + $0x98] sm:$0xff] }
 0x9eb   : > { %v2951_v9 = vld [vmem:[%s7341_s10 + $0xd8] sm:$0xff] }
 0x9ec   : > { %v2857_v58 = vrot.slane %v2843_v41, %v6271_v28  ;;  %v2873_v19 = vrot.slane %v2859_v11, %v6271_v28  ;;  %v2850_v42 = vrot.slane %v2842_v15, %v6271_v28  ;;  %v2866_v44 = vrot.slane %v2858_v36, %v6271_v28  ;;  %v2928_v36 = vld [vmem:[%s7341_s10 + $0x20] sm:$0xff] }
 0x9ed   : > { %v5131_v11 = vcombine.high %v2942_v0, %v2950_v17  ;;  %v5133_v15 = vcombine.high %v2943_v38, %v2951_v9 }
 0x9ee   : > { %v2876_v45 = vcombine.low %v2857_v58, %v2873_v19  ;;  %v2875_v46 = vcombine.high %v2850_v42, %v2866_v44  ;;  %v2877_v49 = vcombine.high %v2857_v58, %v2873_v19  ;;  %v2874_v51 = vcombine.low %v2850_v42, %v2866_v44  ;;  %v2936_v58 = vld [vmem:[%s7341_s10 + $0x60] sm:$0xff]  ;;  %v2929_v19 = vld [vmem:[%s7341_s10 + $0x28] sm:$0xff] }
 0x9ef   : > { %v2937_v42 = vld [vmem:[%s7341_s10 + $0x68] sm:$0xff]  ;;  %v5130_v44 = vcombine.low %v2942_v0, %v2950_v17 }
 0x9f0   : > { %2883 = vrot.lane.b32.xlu1 %v2876_v45, %s6038_s16  ;;  %2879 = vrot.lane.b32.xlu0 %v2875_v46, %s6039_s21  ;;  %v5132_v45 = vcombine.low %v2943_v38, %v2951_v9  ;;  %v5119_v46 = vcombine.high %v2928_v36, %v2936_v58  ;;  %v5771_v0 = vld [vmem:[%s7343_s12 + $0xe8] sm:$0xff]   ;;  %v5774_v9 = vld [vmem:[%s7343_s12 + $0x70] sm:$0xff]   ;;  %s5282_s21 = sshll.u32 %s6014_s25, 1  ;;  %s7385_s25 = sld [smem:[#allocation22_spill]] }
 0x9f1   : > { %v5772_v17 = vld [vmem:[%s7343_s12 + $0x28] sm:$0xff]   ;;  %s4957_s29 = sadd.s32 %s6010_s24, %s5282_s21  ;;  %s7387_s24 = sand.u32 1, %s6002_s22  }
 0x9f2   : > { %v5773_v38 = vld [vmem:[%s7343_s12 + $0xa8] sm:$0xff]   ;;  %s5283_s19 = sshll.u32 %s4957_s29, 7  ;;  %s4946_s21 = scalar_lea.sflag [#allocation5], %s7387_s24 }
 0x9f3   : > { %s5932_s29 = scalar_lea.vmem %s7275_s20, 128 }
 0x9f4   : > { %2887 = vrot.lane.b32.xlu1 %v2877_v49, %s6040_s14  ;;  %v5121_v49 = vcombine.high %v2929_v19, %v2937_v42  ;;  %p5933_p1 = scmp.ne.s32.totalorder %s7275_s20, %s5932_s29 }
 0x9f6   : > { %s7386_s1 = smov %s7385_s25  ;;  %s7273_s2 = scalar_lea.hbm %s7385_s25, %s5283_s19 }
 0x9f7   : > { %p5934_p2 = pnand %p5933_p1, %p6179_p3 }
 0x9f9   : > { %p5935_p4 = pneg %p5934_p2 }
 0xa62   : > { %v2884_v22 = vpop.permute.xlu1 %2883  ;;  %v2880_v52 = vpop.permute.xlu0 %2879 }
 0xa63   : > { %v2890_v40 = vsel %vm1091_vm4, %v2874_v51, %v2880_v52  ;;  %v2944_v51 = vld [vmem:[%s7341_s10 + $0xa0] sm:$0xff]  ;;  %v2945_v52 = vld [vmem:[%s7341_s10 + $0xa8] sm:$0xff] }
 0xa64   : > { %v2891_v53 = vsel %vm2250_vm8, %v2890_v40, %v2884_v22  ;;  %v2952_v22 = vld [vmem:[%s7341_s10 + $0xe0] sm:$0xff]  ;;  %v2953_v40 = vld [vmem:[%s7341_s10 + $0xe8] sm:$0xff] }
 0xa66   : > { %v2888_v50 = vpop.permute.xlu1 %2887 }
 0xa67   : > { %v2892_v54 = vsel %vm2252_vm9, %v2891_v53, %v2888_v50  ;;  %v5118_v50 = vcombine.low %v2928_v36, %v2936_v58  ;;  %v5120_v53 = vcombine.low %v2929_v19, %v2937_v42  ;;  %v5778_v36 = vld [vmem:[%s7343_s12 + $0x78] sm:$0xff]  }
 0xa68   : > { %v2893_v28 = vadd.f32 %v2892_v54, %v6559_v4  ;;  %v2925_v4 = vld [vmem:[%s7341_s10 + $0x8] sm:$0xff]  ;;  %v5135_v54 = vcombine.high %v2944_v51, %v2952_v22  ;;  %v5779_v58 = vld [vmem:[%s7343_s12 + $0xf8] sm:$0xff]  }
 0xa69   : > { %v5112_v62 = vcombine.low %v2925_v4, %v2933_v47  ;;  %v5113_v1 = vcombine.high %v2925_v4, %v2933_v47  ;;  %v2946_v4 = vld [vmem:[%s7341_s10 + $0xb0] sm:$0xff]  ;;  %v2947_v47 = vld [vmem:[%s7341_s10 + $0xb8] sm:$0xff] }
 0xa6a   : > { %v2896_v55 = vsel %vm605_vm3, %v2893_v28, 0.0  ;;  %v5139_v2 = vcombine.high %v2946_v4, %v2954_v25  ;;  %v5141_v14 = vcombine.high %v2947_v47, %v2955_v61  ;;  %v5138_v48 = vcombine.low %v2946_v4, %v2954_v25  ;;  %v5780_v19 = vld [vmem:[%s7343_s12 + $0x38] sm:$0xff]  }
 0xa6b   : > { %2897 = vadd.xlane.f32.xlu0 %v2896_v55  ;;  %3244 = vmatprep.subr.bf16.mxu1 %v5113_v1  ;;  %v2930_v55 = vld [vmem:[%s7341_s10 + $0x30] sm:$0xff]  ;;  %v5140_v6 = vcombine.low %v2947_v47, %v2955_v61  ;;  %v5781_v42 = vld [vmem:[%s7343_s12 + $0xb8] sm:$0xff]  }
 0xa6c   : > { %3245 = vmatpush1.bf16.msra.mxu1 %v5112_v62 }
 0xa6d   : > { %3246 = vmatprep.subr.bf16.mxu1 %v5129_v32  ;;  %v5753_v32 = vld [vmem:[%s7343_s12 + $0x80] sm:$0xff]  }
 0xa70   : > { %3247 = vmatpush1.bf16.msra.mxu1 %v5128_v12  ;;  %v5752_v12 = vld [vmem:[%s7343_s12] sm:$0xff]  }
 0xa71   : > { %3326 = vmatprep.subr.bf16.mxu1 %v5117_v8  ;;  %v5762_v8 = vld [vmem:[%s7343_s12 + $0x58] sm:$0xff]  }
 0xaf8   : > { %v2898_v57 = vpop.xlane.xlu0 %2897 }
 0xaf9   : > { %v2899_v43 = vmul.f32 0.03125, %v2898_v57  ;;  %v2938_v57 = vld [vmem:[%s7341_s10 + $0x70] sm:$0xff] }
 0xafa   : > { %v5123_v56 = vcombine.high %v2930_v55, %v2938_v57  ;;  %v5122_v62 = vcombine.low %v2930_v55, %v2938_v57 }
 0xafb   : > { %v2900_v59 = vsub.f32 %v2893_v28, %v2899_v43  ;;  %v5137_v28 = vcombine.high %v2945_v52, %v2953_v40  ;;  %v2931_v43 = vld [vmem:[%s7341_s10 + $0x38] sm:$0xff] }
 0xafd   : > { %v2901_v3 = vmul.f32 %v2900_v59, %v2900_v59 }
 0xaff   : > { %v2902_v39 = vsel %vm605_vm3, %v2901_v3, 0.0  ;;  %v5134_v3 = vcombine.low %v2944_v51, %v2952_v22  ;;  %v2962_v22 = vsub.s32 0, %v6251_v18 }
 0xb00   : > { %2903 = vadd.xlane.f32.xlu1 %v2902_v39  ;;  %v5136_v39 = vcombine.low %v2945_v52, %v2953_v40  ;;  %v2970_v52 = vsub.s32 2, %v6251_v18  ;;  %v6907_v40 = vld [vmem:[%s7342_s11] sm:$0xff] }
 0xb8d   : > { %v2904_v33 = vpop.xlane.xlu1 %2903 }
 0xb8e   : > { %v2905_v34 = vmul.f32 0.03125, %v2904_v33  ;;  %v5763_v33 = vld [vmem:[%s7343_s12 + $0xd8] sm:$0xff]  }
 0xb90   : > { %v2906_v24 = vadd.f32 1e-05, %v2905_v34  ;;  %v5764_v34 = vld [vmem:[%s7343_s12 + $0x18] sm:$0xff]  }
 0xb92   : > { %5928 = vrsqrt.f32 %v2906_v24  ;;  %v5765_v24 = vld [vmem:[%s7343_s12 + $0x98] sm:$0xff]  }
 0xb9c   : > { %v5929_v16 = vpop.eup %5928 }
 0xb9d   : > { %v2908_v35 = vmul.f32 %v5929_v16, %v2900_v59  ;;  %v2939_v59 = vld [vmem:[%s7341_s10 + $0x78] sm:$0xff]  ;;  %v5766_v16 = vld [vmem:[%s7343_s12 + $0x60] sm:$0xff]  }
 0xb9e   : > { %v5125_v60 = vcombine.high %v2931_v43, %v2939_v59  ;;  %v5124_v1 = vcombine.low %v2931_v43, %v2939_v59 }
 0xb9f   : > { %v2915_v37 = vmul.f32 %v5108_v23, %v2908_v35  ;;  %v5767_v23 = vld [vmem:[%s7343_s12 + $0xe0] sm:$0xff]  }
 0xba0   : > { %v5768_v35 = vld [vmem:[%s7343_s12 + $0x20] sm:$0xff]  }
 0xba1   : > { %v6713_v31 = vadd.f32 %v5109_v29, %v2915_v37  ;;  %v5769_v29 = vld [vmem:[%s7343_s12 + $0xa0] sm:$0xff]   ;;  %v5770_v37 = vld [vmem:[%s7343_s12 + $0x68] sm:$0xff]  }
 0xba3   : > { %v6717_v41 = vpack.c.bf16 %v6713_v31, %v6713_v31 }
 0xba5   : > { %5142 = vmatmul.mubr.msk.bf16.vlgmr.msra.gmra.mrb[36].mxu0 %vm605_vm3, %v6717_v41  ;;  %5143 = vmatmul.mubr.msk.bf16.vlgmr.msra.gmra.mrb[36].mxu1 %vm605_vm3, %v6717_v41 }
 0xba6   : > { %3286 = vmatpush1.bf16.msra.mxu0 %v5114_v5  ;;  %3327 = vmatpush1.bf16.msra.mxu1 %v5116_v30  ;;  %v5760_v5 = vld [vmem:[%s7343_s12 + $0x10] sm:$0xff]  }
 0xba7   : > { %3287 = vmatprep.subr.bf16.mxu0 %v5131_v11  ;;  %3328 = vmatprep.subr.bf16.mxu1 %v5133_v15  ;;  %v5761_v30 = vld [vmem:[%s7343_s12 + $0x90] sm:$0xff]  }
 0xba8   : > { %3317 = vmatprep.mubr.bf16.mxu0 %v6041_v26  ;;  %3358 = vmatprep.mubr.bf16.mxu1 %v6041_v26  ;;  %v5776_v11 = vld [vmem:[%s7343_s12 + $0x30] sm:$0xff]  }
 0xba9   : > { %v5777_v15 = vld [vmem:[%s7343_s12 + $0xb0] sm:$0xff]  }
 0xbaa   : > { %3288 = vmatpush1.bf16.msra.mxu0 %v5130_v44  ;;  %3329 = vmatpush1.bf16.msra.mxu1 %v5132_v45  ;;  %v5782_v44 = vld [vmem:[%s7343_s12 + $0x140] sm:$0xff]  }
 0xbab   : > { %3367 = vmatprep.subr.bf16.mxu0 %v5119_v46  ;;  %3408 = vmatprep.subr.bf16.mxu1 %v5121_v49  ;;  %v5783_v45 = vld [vmem:[%s7343_s12 + $0x1c0] sm:$0xff]   ;;  %v2986_v46 = vsub.s32 6, %v6251_v18  ;;  %v6895_v49 = vld [vmem:[%s7342_s11 + $0x8] sm:$0xff] }
 0xbad   : > { %5144 = vmatmul.mubr.msk.bf16.vlgmr.msra.gmra.mrb[40].mxu0 %vm605_vm3, %v6717_v41  ;;  %5145 = vmatmul.mubr.msk.bf16.vlgmr.msra.gmra.mrb[40].mxu1 %vm605_vm3, %v6717_v41  ;;  %v6900_v51 = vrot.slane %v6895_v49, %v2986_v46 }
 0xbae   : > { %3368 = vmatpush1.bf16.msra.mxu0 %v5118_v50  ;;  %3409 = vmatpush1.bf16.msra.mxu1 %v5120_v53  ;;  %v2966_v50 = vsub.s32 1, %v6251_v18  ;;  %v2974_v53 = vsub.s32 3, %v6251_v18 }
 0xbaf   : > { %3369 = vmatprep.subr.bf16.mxu0 %v5135_v54  ;;  %3410 = vmatprep.subr.bf16.mxu1 %v5137_v28  ;;  %v2963_v54 = vrot.slane %v6907_v40, %v2962_v22  ;;  %v2971_v28 = vrot.slane %v6907_v40, %v2970_v52 }
 0xbb0   : > { %3399 = vmatprep.mubr.bf16.mxu0 %v6041_v26  ;;  %3440 = vmatprep.mubr.bf16.mxu1 %v6041_v26  ;;  %v2967_v55 = vrot.slane %v6907_v40, %v2966_v50  ;;  %v2975_v57 = vrot.slane %v6907_v40, %v2974_v53 }
 0xbb2   : > { %3370 = vmatpush1.bf16.msra.mxu0 %v5134_v3  ;;  %3411 = vmatpush1.bf16.msra.mxu1 %v5136_v39 }
 0xbb3   : > { %3449 = vmatprep.subr.bf16.mxu0 %v5123_v56  ;;  %3490 = vmatprep.subr.bf16.mxu1 %v5125_v60 }
 0xbb5   : > { %5146 = vmatmul.mubr.msk.bf16.vlgmr.msra.gmra.mrb[44].mxu0 %vm605_vm3, %v6717_v41  ;;  %5147 = vmatmul.mubr.msk.bf16.vlgmr.msra.gmra.mrb[44].mxu1 %vm605_vm3, %v6717_v41 }
 0xbb6   : > { %3450 = vmatpush1.bf16.msra.mxu0 %v5122_v62  ;;  %3491 = vmatpush1.bf16.msra.mxu1 %v5124_v1  ;;  %v2982_v62 = vsub.s32 5, %v6251_v18  ;;  %v2990_v1 = vsub.s32 7, %v6251_v18 }
 0xbb7   : > { %3451 = vmatprep.subr.bf16.mxu0 %v5139_v2  ;;  %3492 = vmatprep.subr.bf16.mxu1 %v5141_v14 }
 0xbb8   : > { %3481 = vmatprep.mubr.bf16.mxu0 %v6041_v26  ;;  %3522 = vmatprep.mubr.bf16.mxu1 %v6041_v26  ;;  %v5757_v26 = vld [vmem:[%s7343_s12 + $0x88] sm:$0xff]  }
 0xbba   : > { %3452 = vmatpush1.bf16.msra.mxu0 %v5138_v48  ;;  %3493 = vmatpush1.bf16.msra.mxu1 %v5140_v6 }
 0xbbb   : > { %5333 = vmatprep.subr.bf16.mxu0 %v5750_v7  ;;  %5355 = vmatprep.subr.bf16.mxu1 %v5751_v10 }
 0xbbd   : > { %5148 = vmatmul.mubr.msk.bf16.vlgmr.msra.gmra.mrb[48].mxu0 %vm605_vm3, %v6717_v41  ;;  %5149 = vmatmul.mubr.msk.bf16.vlgmr.msra.gmra.mrb[48].mxu1 %vm605_vm3, %v6717_v41  ;;  %v5775_v41 = vld [vmem:[%s7343_s12 + $0xf0] sm:$0xff]  }
 0xbbe   : > { %5334 = vmatpush3.bf16.msra.mxu0 %v5752_v12  ;;  %5356 = vmatpush3.bf16.msra.mxu1 %v5753_v32 }
 0xbbf   : > { %5335 = vmatprep.subr.bf16.mxu0 %v5754_v13  ;;  %5357 = vmatprep.subr.bf16.mxu1 %v5755_v63  ;;  %v2983_v13 = vrot.slane %v6907_v40, %v2982_v62  ;;  %v2991_v63 = vrot.slane %v6907_v40, %v2990_v1 }
 0xbc2   : > { %5336 = vmatpush3.bf16.msra.mxu0 %v5756_v21  ;;  %5358 = vmatpush3.bf16.msra.mxu1 %v5757_v26  ;;  %v5784_v21 = vld [vmem:[%s7343_s12 + $0x100] sm:$0xff]  }
 0xbc3   : > { %5337 = vmatprep.subr.bf16.mxu0 %v5758_v27  ;;  %5359 = vmatprep.subr.bf16.mxu1 %v5759_v20  ;;  %v5785_v26 = vld [vmem:[%s7343_s12 + $0x180] sm:$0xff]  }
 0xbc6   : > { %5338 = vmatpush3.bf16.msra.mxu0 %v5760_v5  ;;  %5360 = vmatpush3.bf16.msra.mxu1 %v5761_v30  ;;  %v5786_v5 = vld [vmem:[%s7343_s12 + $0x148] sm:$0xff]  }
 0xbc7   : > { %5339 = vmatprep.subr.bf16.mxu0 %v5762_v8  ;;  %5361 = vmatprep.subr.bf16.mxu1 %v5763_v33  ;;  %v5787_v30 = vld [vmem:[%s7343_s12 + $0x1c8] sm:$0xff]  }
 0xbca   : > { %5340 = vmatpush3.bf16.msra.mxu0 %v5764_v34  ;;  %5362 = vmatpush3.bf16.msra.mxu1 %v5765_v24 }
 0xbcb   : > { %5341 = vmatprep.subr.bf16.mxu0 %v5766_v16  ;;  %5363 = vmatprep.subr.bf16.mxu1 %v5767_v23 }
 0xbce   : > { %5342 = vmatpush3.bf16.msra.mxu0 %v5768_v35  ;;  %5364 = vmatpush3.bf16.msra.mxu1 %v5769_v29 }
 0xbcf   : > { %5343 = vmatprep.subr.bf16.mxu0 %v5770_v37  ;;  %5365 = vmatprep.subr.bf16.mxu1 %v5771_v0  ;;  %v5788_v37 = vld [vmem:[%s7343_s12 + $0x108] sm:$0xff]  }
 0xbd0   : > { %v5789_v0 = vld [vmem:[%s7343_s12 + $0x188] sm:$0xff]  }
 0xbd2   : > { %5344 = vmatpush3.bf16.msra.mxu0 %v5772_v17  ;;  %5366 = vmatpush3.bf16.msra.mxu1 %v5773_v38 }
 0xbd3   : > { %5345 = vmatprep.subr.bf16.mxu0 %v5774_v9  ;;  %5367 = vmatprep.subr.bf16.mxu1 %v5775_v41  ;;  %v5790_v9 = vld [vmem:[%s7343_s12 + $0x150] sm:$0xff]  }
 0xbd4   : > { %v5791_v41 = vld [vmem:[%s7343_s12 + $0x1d0] sm:$0xff]  }
 0xbd6   : > { %5346 = vmatpush3.bf16.msra.mxu0 %v5776_v11  ;;  %5368 = vmatpush3.bf16.msra.mxu1 %v5777_v15 }
 0xbd7   : > { %5347 = vmatprep.subr.bf16.mxu0 %v5778_v36  ;;  %5369 = vmatprep.subr.bf16.mxu1 %v5779_v58  ;;  %v2995_v36 = vrot.slane %v6895_v49, %v2962_v22  ;;  %v3003_v58 = vrot.slane %v6895_v49, %v2970_v52  ;;  %v5794_v22 = vld [vmem:[%s7343_s12 + $0x158] sm:$0xff]  }
 0xbd8   : > { %v5795_v52 = vld [vmem:[%s7343_s12 + $0x1d8] sm:$0xff]  }
 0xbda   : > { %5348 = vmatpush3.bf16.msra.mxu0 %v5780_v19  ;;  %5370 = vmatpush3.bf16.msra.mxu1 %v5781_v42 }
 0xbdb   : > { %5377 = vmatprep.subr.bf16.mxu0 %v5782_v44  ;;  %5399 = vmatprep.subr.bf16.mxu1 %v5783_v45  ;;  %v5792_v44 = vld [vmem:[%s7343_s12 + $0x110] sm:$0xff]  }
 0xbdc   : > { %v5793_v45 = vld [vmem:[%s7343_s12 + $0x190] sm:$0xff]  }
 0xc78   : > { %v3237_v43 = vpop.f32.mrb[36].mxu0  ;;  %v3278_v59 = vpop.f32.mrb[36].mxu1 }
 0xc79   : > { %v3238_v3 = vadd.f32 %v3237_v43, %v2963_v54  ;;  %v3279_v39 = vadd.f32 %v3278_v59, %v2971_v28  ;;  %v3239_v56 = vpop.f32.mrb[37].mxu0  ;;  %v3280_v60 = vpop.f32.mrb[37].mxu1 }
 0xc7a   : > { %v3240_v4 = vadd.f32 %v3239_v56, %v2967_v55  ;;  %v3281_v25 = vadd.f32 %v3280_v60, %v2975_v57  ;;  %v3241_v47 = vpop.f32.mrb[38].mxu0  ;;  %v3282_v61 = vpop.f32.mrb[38].mxu1  ;;  %v5796_v56 = vld [vmem:[%s7343_s12 + $0x118] sm:$0xff]  }
 0xc7b   : > { %v3531_v2 = vmax.f32 %v3238_v3, 0.0  ;;  %v3533_v14 = vmax.f32 %v3279_v39, 0.0  ;;  %v3242_v48 = vpop.f32.mrb[39].mxu0  ;;  %v3283_v6 = vpop.f32.mrb[39].mxu1  ;;  %v5797_v60 = vld [vmem:[%s7343_s12 + $0x198] sm:$0xff]   ;;  %v5798_v61 = vld [vmem:[%s7343_s12 + $0x160] sm:$0xff]  }
 0xc7c   : > { %v3532_v7 = vmax.f32 %v3240_v4, 0.0  ;;  %v3534_v10 = vmax.f32 %v3281_v25, 0.0  ;;  %v2978_v4 = vsub.s32 4, %v6251_v18  ;;  %v5800_v48 = vld [vmem:[%s7343_s12 + $0x120] sm:$0xff]   ;;  %v5843_v18 = vld [vmem:[%s7343_s12 + $0x2f8] sm:$0xff]  }
 0xc7d   : > { %v3547_v27 = vpack.c.bf16 %v3531_v2, %v3531_v2  ;;  %v3549_v20 = vpack.c.bf16 %v3533_v14, %v3533_v14  ;;  %v5799_v2 = vld [vmem:[%s7343_s12 + $0x1e0] sm:$0xff]  }
 0xc7e   : > { %v3548_v12 = vpack.c.bf16 %v3532_v7, %v3532_v7  ;;  %v3550_v32 = vpack.c.bf16 %v3534_v10, %v3534_v10  ;;  %v3011_v14 = vrot.slane %v6895_v49, %v2978_v4  ;;  %v5801_v6 = vld [vmem:[%s7343_s12 + $0x1a0] sm:$0xff]   ;;  %v5802_v7 = vld [vmem:[%s7343_s12 + $0x168] sm:$0xff]  }
 0xc7f   : > { %v5803_v10 = vld [vmem:[%s7343_s12 + $0x1e8] sm:$0xff]  }
 0xc80   : > { %v6939_v8 = vpop.f32.mrb[40].mxu0  ;;  %v6941_v33 = vpop.f32.mrb[40].mxu1  ;;  %4626 = vmatprep.mubr.bf16.mxu0 %v3548_v12  ;;  %4666 = vmatprep.mubr.bf16.mxu1 %v3550_v32 }
 0xc81   : > { %v3321_v34 = vpop.f32.mrb[41].mxu0  ;;  %v3362_v24 = vpop.f32.mrb[41].mxu1  ;;  %4627 = vmatmul.mubr.bf16.vlgmr.msra.gmra.mrb[52].mxu0 %v3547_v27  ;;  %4667 = vmatmul.mubr.bf16.vlgmr.msra.gmra.mrb[52].mxu1 %v3549_v20 }
 0xc82   : > { %v3322_v16 = vadd.f32 %v3321_v34, %v2983_v13  ;;  %v3363_v23 = vadd.f32 %v3362_v24, %v2991_v63  ;;  %5378 = vmatpush3.bf16.msra.mxu0 %v5784_v21  ;;  %5400 = vmatpush3.bf16.msra.mxu1 %v5785_v26  ;;  %v3323_v35 = vpop.f32.mrb[42].mxu0  ;;  %v3364_v29 = vpop.f32.mrb[42].mxu1  ;;  %v2979_v34 = vrot.slane %v6907_v40, %v2978_v4  ;;  %v5825_v4 = vld [vmem:[%s7343_s12 + $0x290] sm:$0xff]  }
 0xc83   : > { %v3324_v17 = vpop.f32.mrb[43].mxu0  ;;  %v3365_v38 = vpop.f32.mrb[43].mxu1  ;;  %5379 = vmatprep.subr.bf16.mxu0 %v5786_v5  ;;  %5401 = vmatprep.subr.bf16.mxu1 %v5787_v30  ;;  %v5804_v5 = vld [vmem:[%s7343_s12 + $0x128] sm:$0xff]   ;;  %v5807_v35 = vld [vmem:[%s7343_s12 + $0x1f0] sm:$0xff]   ;;  %v2999_v29 = vrot.slane %v6895_v49, %v2966_v50  ;;  %v5810_v50 = vld [vmem:[%s7343_s12 + $0x178] sm:$0xff]  }
 0xc84   : > { %v3536_v11 = vmax.f32 %v3322_v16, 0.0  ;;  %v3538_v15 = vmax.f32 %v3363_v23, 0.0  ;;  %v5805_v30 = vld [vmem:[%s7343_s12 + $0x1a8] sm:$0xff]   ;;  %v5806_v23 = vld [vmem:[%s7343_s12 + $0x170] sm:$0xff]  }
 0xc86   : > { %v3552_v19 = vpack.c.bf16 %v3536_v11, %v3536_v11  ;;  %v3554_v42 = vpack.c.bf16 %v3538_v15, %v3538_v15  ;;  %5380 = vmatpush3.bf16.msra.mxu0 %v5788_v37  ;;  %5402 = vmatpush3.bf16.msra.mxu1 %v5789_v0  ;;  %v5809_v37 = vld [vmem:[%s7343_s12 + $0x1b0] sm:$0xff]   ;;  %v3320_v0 = vadd.f32 %v6939_v8, %v2979_v34  ;;  %v5812_v8 = vld [vmem:[%s7343_s12 + $0x138] sm:$0xff]   ;;  %v5814_v15 = vld [vmem:[%s7343_s12 + $0x240] sm:$0xff]  }
 0xc87   : > { %5381 = vmatprep.subr.bf16.mxu0 %v5790_v9  ;;  %5403 = vmatprep.subr.bf16.mxu1 %v5791_v41  ;;  %v3023_v34 = vrot.slane %v6895_v49, %v2990_v1  ;;  %v5844_v1 = vld [vmem:[%s7343_s12 + $0x238] sm:$0xff]  }
 0xc88   : > { %v3401_v54 = vpop.f32.mrb[44].mxu0  ;;  %v3442_v28 = vpop.f32.mrb[44].mxu1  ;;  %4706 = vmatprep.mubr.bf16.mxu0 %v3552_v19  ;;  %4746 = vmatprep.mubr.bf16.mxu1 %v3554_v42  ;;  %v3535_v41 = vmax.f32 %v3320_v0, 0.0  ;;  %v5816_v42 = vld [vmem:[%s7343_s12 + $0x200] sm:$0xff]  }
 0xc89   : > { %v6969_v55 = vadd.f32 %v3401_v54, %v2995_v36  ;;  %v6971_v57 = vadd.f32 %v3442_v28, %v3003_v58  ;;  %v3403_v43 = vpop.f32.mrb[45].mxu0  ;;  %v3444_v59 = vpop.f32.mrb[45].mxu1  ;;  %v5815_v36 = vld [vmem:[%s7343_s12 + $0x2c0] sm:$0xff]   ;;  %v5818_v54 = vld [vmem:[%s7343_s12 + $0x248] sm:$0xff]  }
 0xc8a   : > { %5382 = vmatpush3.bf16.msra.mxu0 %v5792_v44  ;;  %5404 = vmatpush3.bf16.msra.mxu1 %v5793_v45  ;;  %v3405_v3 = vpop.f32.mrb[46].mxu0  ;;  %v3446_v39 = vpop.f32.mrb[46].mxu1  ;;  %v3404_v38 = vadd.f32 %v3403_v43, %v2999_v29  ;;  %v3551_v44 = vpack.c.bf16 %v3535_v41, %v3535_v41  ;;  %v5819_v28 = vld [vmem:[%s7343_s12 + $0x2c8] sm:$0xff]   ;;  %v5846_v29 = vld [vmem:[%s7343_s12 + $0x340] sm:$0xff]   ;;  %v5855_v41 = vld [vmem:[%s7343_s12 + $0x3d0] sm:$0xff]  }
 0xc8b   : > { %v3406_v25 = vpop.f32.mrb[47].mxu0  ;;  %v3447_v47 = vpop.f32.mrb[47].mxu1  ;;  %5383 = vmatprep.subr.bf16.mxu0 %v5794_v22  ;;  %5405 = vmatprep.subr.bf16.mxu1 %v5795_v52  ;;  %v5817_v22 = vld [vmem:[%s7343_s12 + $0x280] sm:$0xff]   ;;  %v5821_v3 = vld [vmem:[%s7343_s12 + $0x288] sm:$0xff]   ;;  %v5822_v39 = vld [vmem:[%s7343_s12 + $0x250] sm:$0xff]  }
 0xc8c   : > { %v3540_v58 = vmax.f32 %v3404_v38, 0.0  ;;  %v5826_v25 = vld [vmem:[%s7343_s12 + $0x258] sm:$0xff]   ;;  %v5849_v0 = vld [vmem:[%s7343_s12 + $0x380] sm:$0xff]  }
 0xc8d   : > { %v5827_v47 = vld [vmem:[%s7343_s12 + $0x2d8] sm:$0xff]  }
 0xc8e   : > { %5384 = vmatpush3.bf16.msra.mxu0 %v5796_v56  ;;  %5406 = vmatpush3.bf16.msra.mxu1 %v5797_v60  ;;  %v3556_v52 = vpack.c.bf16 %v3540_v58, %v3540_v58  ;;  %v5823_v56 = vld [vmem:[%s7343_s12 + $0x2d0] sm:$0xff]   ;;  %v5859_v58 = vld [vmem:[%s7343_s12 + $0x3d8] sm:$0xff]  }
 0xc8f   : > { %5385 = vmatprep.subr.bf16.mxu0 %v5798_v61  ;;  %5407 = vmatprep.subr.bf16.mxu1 %v5799_v2  ;;  %v5824_v60 = vld [vmem:[%s7343_s12 + $0x210] sm:$0xff]   ;;  %v5828_v61 = vld [vmem:[%s7343_s12 + $0x218] sm:$0xff]  }
 0xc90   : > { %v3483_v12 = vpop.f32.mrb[48].mxu0  ;;  %v3524_v32 = vpop.f32.mrb[48].mxu1  ;;  %v5829_v2 = vld [vmem:[%s7343_s12 + $0x298] sm:$0xff]  }
 0xc91   : > { %v6999_v13 = vadd.f32 %v3483_v12, %v3011_v14  ;;  %v7002_v63 = vadd.f32 %v3524_v32, %v6900_v51  ;;  %v7004_v21 = vpop.f32.mrb[49].mxu0  ;;  %v7006_v26 = vpop.f32.mrb[49].mxu1  ;;  %v2987_v51 = vrot.slane %v6907_v40, %v2986_v46  ;;  %v3007_v46 = vrot.slane %v6895_v49, %v2974_v53  ;;  %v5808_v40 = vld [vmem:[%s7343_s12 + $0x130] sm:$0xff]   ;;  %v5811_v53 = vld [vmem:[%s7343_s12 + $0x1f8] sm:$0xff]   ;;  %v5830_v14 = vld [vmem:[%s7343_s12 + $0x260] sm:$0xff]  }
 0xc92   : > { %5386 = vmatpush3.bf16.msra.mxu0 %v5800_v48  ;;  %5408 = vmatpush3.bf16.msra.mxu1 %v5801_v6  ;;  %v3487_v27 = vpop.f32.mrb[50].mxu0  ;;  %v3528_v20 = vpop.f32.mrb[50].mxu1  ;;  %v5831_v48 = vld [vmem:[%s7343_s12 + $0x2e0] sm:$0xff]   ;;  %v5835_v12 = vld [vmem:[%s7343_s12 + $0x2e8] sm:$0xff]  }
 0xc93   : > { %v3488_v24 = vpop.f32.mrb[51].mxu0  ;;  %v3529_v16 = vpop.f32.mrb[51].mxu1  ;;  %5387 = vmatprep.subr.bf16.mxu0 %v5802_v7  ;;  %5409 = vmatprep.subr.bf16.mxu1 %v5803_v10  ;;  %v3361_v17 = vadd.f32 %v6941_v33, %v2987_v51  ;;  %v3445_v9 = vadd.f32 %v3444_v59, %v3007_v46  ;;  %v5813_v33 = vld [vmem:[%s7343_s12 + $0x1b8] sm:$0xff]   ;;  %v5820_v59 = vld [vmem:[%s7343_s12 + $0x208] sm:$0xff]   ;;  %v5832_v6 = vld [vmem:[%s7343_s12 + $0x220] sm:$0xff]  }
 0xc94   : > { %v5833_v7 = vld [vmem:[%s7343_s12 + $0x2a0] sm:$0xff]   ;;  %v5834_v10 = vld [vmem:[%s7343_s12 + $0x268] sm:$0xff]   ;;  %v5838_v20 = vld [vmem:[%s7343_s12 + $0x270] sm:$0xff]  }
 0xc95   : > { %v3537_v11 = vmax.f32 %v3361_v17, 0.0  ;;  %v3542_v19 = vmax.f32 %v3445_v9, 0.0  ;;  %v5836_v32 = vld [vmem:[%s7343_s12 + $0x228] sm:$0xff]   ;;  %v5840_v51 = vld [vmem:[%s7343_s12 + $0x230] sm:$0xff]   ;;  %v5842_v16 = vld [vmem:[%s7343_s12 + $0x278] sm:$0xff]  }
 0xc96   : > { %5388 = vmatpush3.bf16.msra.mxu0 %v5804_v5  ;;  %5410 = vmatpush3.bf16.msra.mxu1 %v5805_v30  ;;  %v5837_v27 = vld [vmem:[%s7343_s12 + $0x2a8] sm:$0xff]   ;;  %v5839_v5 = vld [vmem:[%s7343_s12 + $0x2f0] sm:$0xff]   ;;  %v3015_v30 = vrot.slane %v6895_v49, %v2982_v62  ;;  %v3527_v62 = vadd.f32 %v7006_v26, %v3023_v34  ;;  %v5847_v26 = vld [vmem:[%s7343_s12 + $0x3c0] sm:$0xff]  }
 0xc97   : > { %5389 = vmatprep.subr.bf16.mxu0 %v5806_v23  ;;  %5411 = vmatprep.subr.bf16.mxu1 %v5807_v35  ;;  %v3553_v45 = vpack.c.bf16 %v3537_v11, %v3537_v11  ;;  %v3558_v43 = vpack.c.bf16 %v3542_v19, %v3542_v19  ;;  %v5841_v24 = vld [vmem:[%s7343_s12 + $0x2b0] sm:$0xff]   ;;  %v3539_v23 = vmax.f32 %v6969_v55, 0.0  ;;  %v5845_v35 = vld [vmem:[%s7343_s12 + $0x2b8] sm:$0xff]   ;;  %v5848_v55 = vld [vmem:[%s7343_s12 + $0x300] sm:$0xff]  }
 0xc98   : > { %v3486_v49 = vadd.f32 %v7004_v21, %v3015_v30  ;;  %v3541_v21 = vmax.f32 %v6971_v57, 0.0  ;;  %v5850_v17 = vld [vmem:[%s7343_s12 + $0x348] sm:$0xff]   ;;  %v5856_v11 = vld [vmem:[%s7343_s12 + $0x310] sm:$0xff]   ;;  %v5860_v19 = vld [vmem:[%s7343_s12 + $0x318] sm:$0xff]  }
 0xc99   : > { %v5852_v9 = vld [vmem:[%s7343_s12 + $0x308] sm:$0xff]  }
 0xc9a   : > { %5390 = vmatpush3.bf16.msra.mxu0 %v5808_v40  ;;  %5412 = vmatpush3.bf16.msra.mxu1 %v5809_v37  ;;  %v3544_v46 = vmax.f32 %v3486_v49, 0.0  ;;  %v3546_v40 = vmax.f32 %v3527_v62, 0.0  ;;  %v3555_v37 = vpack.c.bf16 %v3539_v23, %v3539_v23  ;;  %v3557_v57 = vpack.c.bf16 %v3541_v21, %v3541_v21 }
 0xc9b   : > { %5391 = vmatprep.subr.bf16.mxu0 %v5810_v50  ;;  %5413 = vmatprep.subr.bf16.mxu1 %v5811_v53  ;;  %v5851_v53 = vld [vmem:[%s7343_s12 + $0x3c8] sm:$0xff]  }
 0xc9c   : > { %v3560_v50 = vpack.c.bf16 %v3544_v46, %v3544_v46  ;;  %v3562_v38 = vpack.c.bf16 %v3546_v40, %v3546_v40 }
 0xc9e   : > { %5392 = vmatpush3.bf16.msra.mxu0 %v5812_v8  ;;  %5414 = vmatpush3.bf16.msra.mxu1 %v5813_v33  ;;  %v5853_v8 = vld [vmem:[%s7343_s12 + $0x388] sm:$0xff]   ;;  %v5854_v33 = vld [vmem:[%s7343_s12 + $0x350] sm:$0xff]  }
 0xc9f   : > { %5421 = vmatprep.subr.bf16.mxu0 %v5814_v15  ;;  %5443 = vmatprep.subr.bf16.mxu1 %v5815_v36  ;;  %v5857_v15 = vld [vmem:[%s7343_s12 + $0x390] sm:$0xff]   ;;  %v5858_v36 = vld [vmem:[%s7343_s12 + $0x358] sm:$0xff]  }
 0xca1   : > { %4707 = vmatmul.mubr.bf16.vlgmr.msra.gmra.mrb[56].mxu0 %v3551_v44  ;;  %4747 = vmatmul.mubr.bf16.vlgmr.msra.gmra.mrb[56].mxu1 %v3553_v45  ;;  %v5862_v44 = vld [vmem:[%s7343_s12 + $0x360] sm:$0xff]  }
 0xca2   : > { %5422 = vmatpush3.bf16.msra.mxu0 %v5816_v42  ;;  %4786 = vmatprep.mubr.bf16.mxu0 %v3556_v52  ;;  %v5861_v42 = vld [vmem:[%s7343_s12 + $0x398] sm:$0xff]   ;;  %v5863_v45 = vld [vmem:[%s7343_s12 + $0x3e0] sm:$0xff]  }
 0xca3   : > { %5444 = vmatpush3.bf16.msra.mxu1 %v5817_v22  ;;  %4826 = vmatprep.mubr.bf16.mxu1 %v3558_v43  ;;  %v5864_v22 = vld [vmem:[%s7343_s12 + $0x320] sm:$0xff]   ;;  %v5868_v43 = vld [vmem:[%s7343_s12 + $0x328] sm:$0xff]  }
 0xca4   : > { %5423 = vmatprep.subr.bf16.mxu0 %v5818_v54  ;;  %5445 = vmatprep.subr.bf16.mxu1 %v5819_v28  ;;  %v5865_v52 = vld [vmem:[%s7343_s12 + $0x3a0] sm:$0xff]   ;;  %v5866_v54 = vld [vmem:[%s7343_s12 + $0x368] sm:$0xff]  }
 0xca5   : > { %v5867_v28 = vld [vmem:[%s7343_s12 + $0x3e8] sm:$0xff]  }
 0xca6   : > { %5424 = vmatpush3.bf16.msra.mxu0 %v5820_v59  ;;  %v5869_v59 = vld [vmem:[%s7343_s12 + $0x3a8] sm:$0xff]  }
 0xca7   : > { %5446 = vmatpush3.bf16.msra.mxu1 %v5821_v3  ;;  %5425 = vmatprep.subr.bf16.mxu0 %v5822_v39  ;;  %v5870_v3 = vld [vmem:[%s7343_s12 + $0x370] sm:$0xff]  }
 0xca8   : > { %5447 = vmatprep.subr.bf16.mxu1 %v5823_v56  ;;  %v5871_v39 = vld [vmem:[%s7343_s12 + $0x3f0] sm:$0xff]  }
 0xca9   : > { %v5872_v56 = vld [vmem:[%s7343_s12 + $0x330] sm:$0xff]  }
 0xcaa   : > { %5426 = vmatpush3.bf16.msra.mxu0 %v5824_v60  ;;  %v5873_v60 = vld [vmem:[%s7343_s12 + $0x3b0] sm:$0xff]  }
 0xcab   : > { %5448 = vmatpush3.bf16.msra.mxu1 %v5825_v4  ;;  %5427 = vmatprep.subr.bf16.mxu0 %v5826_v25  ;;  %v5874_v4 = vld [vmem:[%s7343_s12 + $0x378] sm:$0xff]  }
 0xcac   : > { %5449 = vmatprep.subr.bf16.mxu1 %v5827_v47  ;;  %v5875_v25 = vld [vmem:[%s7343_s12 + $0x3f8] sm:$0xff]  }
 0xcad   : > { %v5876_v47 = vld [vmem:[%s7343_s12 + $0x338] sm:$0xff]  }
 0xcae   : > { %5428 = vmatpush3.bf16.msra.mxu0 %v5828_v61  ;;  %v3543_v61 = vmax.f32 %v6999_v13, 0.0  ;;  %v5150_v13 = vld [vmem:[%s7344_s13] ss:$0 sm:$0xff] }
 0xcaf   : > { %5450 = vmatpush3.bf16.msra.mxu1 %v5829_v2  ;;  %5429 = vmatprep.subr.bf16.mxu0 %v5830_v14  ;;  %v5877_v2 = vld [vmem:[%s7343_s12 + $0x3b8] sm:$0xff]   ;;  %v3545_v14 = vmax.f32 %v7002_v63, 0.0 }
 0xcb0   : > { %5451 = vmatprep.subr.bf16.mxu1 %v5831_v48  ;;  %v3559_v48 = vpack.c.bf16 %v3543_v61, %v3543_v61 }
 0xcb2   : > { %5430 = vmatpush3.bf16.msra.mxu0 %v5832_v6  ;;  %v3561_v6 = vpack.c.bf16 %v3545_v14, %v3545_v14 }
 0xcb3   : > { %5452 = vmatpush3.bf16.msra.mxu1 %v5833_v7  ;;  %5431 = vmatprep.subr.bf16.mxu0 %v5834_v10 }
 0xcb4   : > { %5453 = vmatprep.subr.bf16.mxu1 %v5835_v12 }
 0xcb6   : > { %5432 = vmatpush3.bf16.msra.mxu0 %v5836_v32 }
 0xcb7   : > { %5454 = vmatpush3.bf16.msra.mxu1 %v5837_v27  ;;  %5433 = vmatprep.subr.bf16.mxu0 %v5838_v20 }
 0xcb8   : > { %5455 = vmatprep.subr.bf16.mxu1 %v5839_v5 }
 0xcba   : > { %5434 = vmatpush3.bf16.msra.mxu0 %v5840_v51 }
 0xcbb   : > { %5456 = vmatpush3.bf16.msra.mxu1 %v5841_v24  ;;  %5435 = vmatprep.subr.bf16.mxu0 %v5842_v16 }
 0xcbc   : > { %5457 = vmatprep.subr.bf16.mxu1 %v5843_v18 }
 0xcbe   : > { %5436 = vmatpush3.bf16.msra.mxu0 %v5844_v1 }
 0xcbf   : > { %5458 = vmatpush3.bf16.msra.mxu1 %v5845_v35  ;;  %5465 = vmatprep.subr.bf16.mxu0 %v5846_v29 }
 0xcc0   : > { %5487 = vmatprep.subr.bf16.mxu1 %v5847_v26 }
 0xcc1   : > { %4787 = vmatmul.mubr.bf16.vlgmr.msra.gmra.mrb[60].mxu0 %v3555_v37 }
 0xcc2   : > { %4827 = vmatmul.mubr.bf16.vlgmr.msra.gmra.mrb[60].mxu1 %v3557_v57  ;;  %5466 = vmatpush3.bf16.msra.mxu0 %v5848_v55 }
 0xcc3   : > { %4866 = vmatprep.mubr.bf16.mxu0 %v3560_v50  ;;  %5488 = vmatpush3.bf16.msra.mxu1 %v5849_v0 }
 0xcc4   : > { %4906 = vmatprep.mubr.bf16.mxu1 %v3562_v38  ;;  %5467 = vmatprep.subr.bf16.mxu0 %v5850_v17 }
 0xcc5   : > { %5489 = vmatprep.subr.bf16.mxu1 %v5851_v53 }
 0xcc6   : > { %5468 = vmatpush3.bf16.msra.mxu0 %v5852_v9 }
 0xcc7   : > { %5490 = vmatpush3.bf16.msra.mxu1 %v5853_v8  ;;  %5469 = vmatprep.subr.bf16.mxu0 %v5854_v33 }
 0xcc8   : > { %5491 = vmatprep.subr.bf16.mxu1 %v5855_v41 }
 0xcca   : > { %5470 = vmatpush3.bf16.msra.mxu0 %v5856_v11 }
 0xccb   : > { %5492 = vmatpush3.bf16.msra.mxu1 %v5857_v15  ;;  %5471 = vmatprep.subr.bf16.mxu0 %v5858_v36 }
 0xccc   : > { %5493 = vmatprep.subr.bf16.mxu1 %v5859_v58 }
 0xcce   : > { %5472 = vmatpush3.bf16.msra.mxu0 %v5860_v19 }
 0xccf   : > { %5494 = vmatpush3.bf16.msra.mxu1 %v5861_v42  ;;  %5473 = vmatprep.subr.bf16.mxu0 %v5862_v44 }
 0xcd0   : > { %5495 = vmatprep.subr.bf16.mxu1 %v5863_v45 }
 0xcd2   : > { %5474 = vmatpush3.bf16.msra.mxu0 %v5864_v22 }
 0xcd3   : > { %5496 = vmatpush3.bf16.msra.mxu1 %v5865_v52  ;;  %5475 = vmatprep.subr.bf16.mxu0 %v5866_v54 }
 0xcd4   : > { %5497 = vmatprep.subr.bf16.mxu1 %v5867_v28 }
 0xcd6   : > { %5476 = vmatpush3.bf16.msra.mxu0 %v5868_v43 }
 0xcd7   : > { %5498 = vmatpush3.bf16.msra.mxu1 %v5869_v59  ;;  %5477 = vmatprep.subr.bf16.mxu0 %v5870_v3 }
 0xcd8   : > { %5499 = vmatprep.subr.bf16.mxu1 %v5871_v39 }
 0xcda   : > { %5478 = vmatpush3.bf16.msra.mxu0 %v5872_v56 }
 0xcdb   : > { %5500 = vmatpush3.bf16.msra.mxu1 %v5873_v60  ;;  %5479 = vmatprep.subr.bf16.mxu0 %v5874_v4 }
 0xcdc   : > { %5501 = vmatprep.subr.bf16.mxu1 %v5875_v25 }
 0xcde   : > { %5480 = vmatpush3.bf16.msra.mxu0 %v5876_v47 }
 0xcdf   : > { %5502 = vmatpush3.bf16.msra.mxu1 %v5877_v2  ;;  %v5279_v2 = vld [vmem:[%s7383_s28] ss:$0 sm:$0xff]  ;;  %s5938_s28 = scalar_lea.vmem %s5937_s27, 256 }
 0xce0   : > { %p5940_p6 = scmp.lt.s32.totalorder %s5938_s28, %s5932_s29 }
 0xce1   : > { %4867 = vmatmul.mubr.bf16.vlgmr.msra.gmra.mrb[64].mxu0 %v3559_v48  ;;  %v5280_v48 = vld [vmem:[%s7384_s23] ss:$0 sm:$0xff] }
 0xce2   : > { %4907 = vmatmul.mubr.bf16.vlgmr.msra.gmra.mrb[64].mxu1 %v3561_v6  ;;  %p5941_p7 = por %p5940_p6, %p5939_p5 }
 0xce4   : > { %p5942_p9 = pnand %p5941_p7, %p5935_p4 }
 0xd54   : > { %v5349_v7 = vpop.f32.mrb[52].mxu0  ;;  %v5371_v10 = vpop.f32.mrb[52].mxu1 }
 0xd55   : > { %v5350_v12 = vpop.f32.mrb[53].mxu0  ;;  %v5372_v32 = vpop.f32.mrb[53].mxu1 }
 0xd56   : > { %v5351_v27 = vadd.f32 %v5350_v12, %v5349_v7  ;;  %v5373_v20 = vadd.f32 %v5372_v32, %v5371_v10  ;;  %v5352_v5 = vpop.f32.mrb[54].mxu0  ;;  %v5374_v30 = vpop.f32.mrb[54].mxu1 }
 0xd57   : > { %v5353_v63 = vpop.f32.mrb[55].mxu0  ;;  %v5375_v34 = vpop.f32.mrb[55].mxu1 }
 0xd58   : > { %v4629_v51 = vadd.f32 %v5351_v27, %v5150_v13 }
 0xd5a   : > { %v4669_v24 = vadd.f32 %v5373_v20, %v4629_v51 }
 0xd74   : > { %v5393_v16 = vpop.f32.mrb[56].mxu0  ;;  %v5415_v18 = vpop.f32.mrb[56].mxu1 }
 0xd75   : > { %v5394_v49 = vpop.f32.mrb[57].mxu0  ;;  %v5416_v62 = vpop.f32.mrb[57].mxu1 }
 0xd76   : > { %v5395_v1 = vadd.f32 %v5394_v49, %v5393_v16  ;;  %v5417_v23 = vadd.f32 %v5416_v62, %v5415_v18  ;;  %v5396_v35 = vpop.f32.mrb[58].mxu0  ;;  %v5418_v29 = vpop.f32.mrb[58].mxu1 }
 0xd77   : > { %v5397_v21 = vpop.f32.mrb[59].mxu0  ;;  %v5419_v26 = vpop.f32.mrb[59].mxu1 }
 0xd78   : > { %v4709_v46 = vadd.f32 %v5395_v1, %v4669_v24 }
 0xd7a   : > { %v4749_v40 = vadd.f32 %v5417_v23, %v4709_v46 }
 0xd94   : > { %v5437_v55 = vpop.f32.mrb[60].mxu0 }
 0xd95   : > { %v5459_v37 = vpop.f32.mrb[60].mxu1  ;;  %v5438_v0 = vpop.f32.mrb[61].mxu0 }
 0xd96   : > { %v5439_v57 = vadd.f32 %v5438_v0, %v5437_v55  ;;  %v5460_v17 = vpop.f32.mrb[61].mxu1  ;;  %v5440_v50 = vpop.f32.mrb[62].mxu0 }
 0xd97   : > { %v5461_v53 = vadd.f32 %v5460_v17, %v5459_v37  ;;  %v5462_v38 = vpop.f32.mrb[62].mxu1  ;;  %v5441_v9 = vpop.f32.mrb[63].mxu0 }
 0xd98   : > { %v4789_v8 = vadd.f32 %v5439_v57, %v4749_v40  ;;  %v5463_v33 = vpop.f32.mrb[63].mxu1 }
 0xd9a   : > { %v4829_v41 = vadd.f32 %v5461_v53, %v4789_v8 }
 0xdb4   : > { %v5481_v11 = vpop.f32.mrb[64].mxu0 }
 0xdb5   : > { %v5503_v15 = vpop.f32.mrb[64].mxu1  ;;  %v5482_v36 = vpop.f32.mrb[65].mxu0 }
 0xdb6   : > { %v5483_v58 = vadd.f32 %v5482_v36, %v5481_v11  ;;  %v5504_v19 = vpop.f32.mrb[65].mxu1  ;;  %v5484_v42 = vpop.f32.mrb[66].mxu0 }
 0xdb7   : > { %v5505_v44 = vadd.f32 %v5504_v19, %v5503_v15  ;;  %v5506_v45 = vpop.f32.mrb[66].mxu1  ;;  %v5485_v22 = vpop.f32.mrb[67].mxu0 }
 0xdb8   : > { %v4869_v52 = vadd.f32 %v5483_v58, %v4829_v41  ;;  %v5507_v54 = vpop.f32.mrb[67].mxu1 }
 0xdba   : > { %v4909_v28 = vadd.f32 %v5505_v44, %v4869_v52 }
 0xdbc   : > { %v4914_v43 = vadd.f32 %v4909_v28, %v6713_v31 }
 0xdbe   : > { %v4917_v59 = vsel %vm605_vm3, %v4914_v43, 0.0 }
 0xdbf   : > { %4918 = vadd.xlane.f32.xlu0 %v4917_v59 }
 0xe4c   : > { %v4919_v3 = vpop.xlane.xlu0 %4918 }
 0xe4d   : > { %v4920_v39 = vmul.f32 0.03125, %v4919_v3 }
 0xe4f   : > { %v4921_v56 = vsub.f32 %v4914_v43, %v4920_v39 }
 0xe51   : > { %v4922_v60 = vmul.f32 %v4921_v56, %v4921_v56 }
 0xe53   : > { %v4923_v4 = vsel %vm605_vm3, %v4922_v60, 0.0 }
 0xe54   : > { %4924 = vadd.xlane.f32.xlu0 %v4923_v4 }
 0xee1   : > { %v4925_v25 = vpop.xlane.xlu0 %4924 }
 0xee2   : > { %v4926_v47 = vmul.f32 0.03125, %v4925_v25 }
 0xee4   : > { %v4927_v61 = vadd.f32 1e-05, %v4926_v47 }
 0xee6   : > { %5930 = vrsqrt.f32 %v4927_v61 }
 0xef0   : > { %v5931_v31 = vpop.eup %5930 }
 0xef1   : > { %v4929_v14 = vmul.f32 %v5931_v31, %v4921_v56 }
 0xef3   : > { %v4936_v6 = vmul.f32 %v5279_v2, %v4929_v14 }
 0xef5   : > { %v4943_v7 = vadd.f32 %v5280_v48, %v4936_v6 }
 0xef7   : > { %4944 = vst.msk [vmem:[%s551_s30] sm:$0xff] %vm605_vm3, %v4943_v7 }
 0xef8   : > { %5945 = shalt.err (!%p5942_p9)
}
 0xef9   : > { %s5946_s26 = scalar_lea.hbm %s7273_s2, 128  ;;  %s5950_s17 = scalar_lea.hbm %s7386_s1, 512 }
 0xefa   : > { %p5947_p10 = scmp.ne.s32.totalorder %s7273_s2, %s5946_s26  ;;  %p5951_p13 = scmp.lt.u32.totalorder %s7273_s2, %s7386_s1 }
 0xefb   : > { %p5952_p0 = scmp.lt.u32.totalorder %s5950_s17, %s5946_s26  ;;  %p5954_p2 = scmp.lt.u32.totalorder %s5946_s26, %s7273_s2 }
 0xefc   : > { %p5948_p11 = pnand %p5947_p10, %p6179_p3 }
 0xefd   : > { %p5953_p1 = por %p5952_p0, %p5951_p13 }
 0xefe   : > { %p5949_p12 = pneg %p5948_p11 }
 0xeff   : > { %p5955_p4 = por %p5954_p2, %p5953_p1 }
 0xf01   : > { %p5956_p5 = pnand %p5955_p4, %p5949_p12 }
 0xf03   : > { %5959 = shalt.err (!%p5956_p5)
}
 0xf04   : > { %5661 = dma.vmem_to_hbm [thread:$0]  (%p6179_p3), %s7275_s20, 128, %s7273_s2, %s4946_s21  }
 0xf05 PF: > { %s7388_s18 = sld [smem:[#allocation11_spill]]  ;;  %s7389_s16 = sld [smem:[#allocation7_spill]] }
 0xf0b   : > { %p5667_p6 = scmp.ge.s32.totalorder %s7388_s18, 2  ;;  %s4973_s24 = sand.u32 1, %s7389_s16  }
 0xf0c   : > { %s4974_s29 = scalar_lea.sflag [#allocation5], %s4973_s24 }
 0xf0d   : > { %p5664_p7 = pnand %p5667_p6, %p6188_p8 }
 0xf0f   : > { %5993 = dma.done.wait (!%p5664_p7), %s4974_s29, 128  }
 0xf10   : > { %5995 = vsyncadd (!%p5664_p7), %s4974_s29, 4294967168  ;;  %s29_s28 = sadd.s32 1, %s7388_s18   ;;  %s7391_s15 = sld [smem:[#allocation8_spill]] }
 0xf11   : > { %p26_p9 = scmp.ge.s32.totalorder %s29_s28, 6   ;;  %s7392_s23 = sld [smem:[#allocation16_spill]] }
 0xf12   : > { %s7393_s24 = sld [smem:[#allocation9_spill]]  ;;  %s7394_s25 = sld [smem:[#allocation10_spill]] }
 0xf13   : > { %s7395_s26 = sld [smem:[#allocation12_spill]]  ;;  %s7396_s27 = sld [smem:[#allocation14_spill]] }
 0xf14   : > { %s7397_s21 = smov %s6002_s22  ;;  %28 = sbr.rel (!%p26_p9) target bundleno = 12 (0xc), region = 126 }
 0xf16   : > { %s7398_s22 = smov %s7391_s15 }
 0xf1b   :  { %4979 = vsyncpa [#allocation5], 1 }
 0xf1c   :  { %4981 = vsyncpa [#allocation5 + $0x1], 1 }

// kernel: tpu_custom_call.1
= control target key start
LH: loop header
LB: loop body
LE: loop exit
PB: predicated region body
PF: predicated region fallthrough
CT: control target
= control target key end

     0   :  { %s7331_s0 = inlined_call_operand.vmem [shape: f32[2,16,32], index: 0, kind: input, shape index: {}]   ;;  %s7332_s1 = inlined_call_operand.vmem [shape: f32[2,4,8,8], index: 1, kind: input, shape index: {}]   ;;  %s7333_s2 = inlined_call_operand.vmem [shape: bf16[32,96], index: 2, kind: input, shape index: {}]   ;;  %s7334_s3 = inlined_call_operand.vmem [shape: f32[1,96], index: 3, kind: input, shape index: {}]   ;;  %s7335_s4 = inlined_call_operand.vmem [shape: f32[1,32], index: 4, kind: input, shape index: {}]   ;;  %s7336_s5 = inlined_call_operand.vmem [shape: f32[1,32], index: 5, kind: input, shape index: {}]   ;;  %s7337_s6 = inlined_call_operand.vmem [shape: bf16[32,32], index: 6, kind: input, shape index: {}]   ;;  %s7338_s7 = inlined_call_operand.vmem [shape: f32[1,32], index: 7, kind: input, shape index: {}]   ;;  %s7339_s8 = inlined_call_operand.vmem [shape: f32[1,32], index: 8, kind: input, shape index: {}]   ;;  %s7340_s9 = inlined_call_operand.vmem [shape: f32[1,32], index: 9, kind: input, shape index: {}]   ;;  %s7341_s10 = inlined_call_operand.vmem [shape: bf16[32,2048], index: 10, kind: input, shape index: {}]   ;;  %s7342_s11 = inlined_call_operand.vmem [shape: f32[1,2048], index: 11, kind: input, shape index: {}]   ;;  %s7343_s12 = inlined_call_operand.vmem [shape: bf16[2048,32], index: 12, kind: input, shape index: {}]   ;;  %s7344_s13 = inlined_call_operand.vmem [shape: f32[1,32], index: 13, kind: input, shape index: {}]   ;;  %s7345_s14 = inlined_call_operand.vmem [shape: f32[1,32], index: 14, kind: input, shape index: {}]   ;;  %s7346_s15 = inlined_call_operand.vmem [shape: f32[1,32], index: 15, kind: input, shape index: {}]   ;;  %s7347_s16 = inlined_call_operand.hbm [shape: f32[2,16,32], index: 16, kind: output, shape index: {}]  }
   0x1   :  { %7361 = sst [smem:[#allocation17_spill]] %s7331_s0 }
   0x2   :  { %7362 = sst [smem:[#allocation18_spill]] %s7332_s1 }
   0x3   :  { %7363 = sst [smem:[#allocation19_spill]] %s7333_s2 }
   0x4   :  { %7364 = sst [smem:[#allocation20_spill]] %s7345_s14 }
   0x5   :  { %7365 = sst [smem:[#allocation21_spill]] %s7346_s15 }
   0x6   :  { %7366 = sst [smem:[#allocation22_spill]] %s7347_s16 }
   0x7   :  { %21 = vsyncpa [#allocation5], 0 }
   0x8   :  { %23 = vsyncpa [#allocation5 + $0x1], 0  ;;  %s6128_s21 = smov 0   ;;  %s6130_s22 = smov 0  }
   0x9   :  { %s6132_s23 = smov 0   ;;  %s6134_s24 = smov 0  }
   0xa   :  { %s6136_s25 = smov 0   ;;  %s6138_s26 = smov 0  }
   0xb   :  { %s6140_s27 = smov 0   ;;  %s6142_s28 = smov 0  }
   0xc LB: > { %7367 = sst [smem:[#allocation7_spill]] %s5998_s21  ;;  %s5051_s29 = sadd.s32 4294967295, %s6026_s28   ;;  %s6026_s28 = sphi %s6142_s28, %s29_s28   ;;  %s6022_s27 = sphi %s6140_s27, %s7396_s27   ;;  %s6018_s26 = sphi %s6138_s26, %s7395_s26   ;;  %s6014_s25 = sphi %s6136_s25, %s7394_s25   ;;  %s6010_s24 = sphi %s6134_s24, %s7393_s24   ;;  %s6006_s23 = sphi %s6132_s23, %s7392_s23   ;;  %s6002_s22 = sphi %s6130_s22, %s7398_s22   ;;  %s5998_s21 = sphi %s6128_s21, %s7397_s21  }
   0xd   : > { %7368 = sst [smem:[#allocation8_spill]] %s6006_s23  ;;  %s5052_s30 = sadd.s32 4294967294, %s6026_s28  }
   0xe   : > { %7369 = sst [smem:[#allocation9_spill]] %s6018_s26  ;;  %s38_s0 = sadd.s32 1, %s6018_s26 }
   0xf   : > { %7370 = sst [smem:[#allocation10_spill]] %s6022_s27  ;;  %p39_p0 = scmp.ge.s32.totalorder %s38_s0, 2 }
  0x10   : > { %7371 = sst [smem:[#allocation11_spill]] %s6026_s28  ;;  %s41_s17 = sadd.s32 1, %s6022_s27 }
  0x11   : > { %p408_p1 = scmp.ne.s32.totalorder %s6006_s23, %s6002_s22  ;;  %p409_p2 = scmp.eq.s32.totalorder %s5051_s29, 3 }
  0x12   : > { %s7400_s0 = smov (%p39_p0, %s38_s0), 0  ;;  %s7402_s17 = smov (!%p39_p0, %s41_s17), %s6022_s27 }
  0x13   : > { %7372 = sst [smem:[#allocation12_spill]] %s7400_s0  ;;  %s394_s18 = ssub.s32 %s6018_s26, %s7400_s0 }
  0x14   : > { %p6179_p3 = por %p409_p2, %p408_p1  ;;  %p43_p4 = scmp.ge.s32.totalorder %s7402_s17, 2 }
  0x15   : > { %p414_p5 = scmp.ne.s32.totalorder %s6002_s22, %s5998_s21  ;;  %p415_p6 = scmp.eq.s32.totalorder %s5052_s30, 3 }
  0x16   : > { %s7373_s19 = scalar_select %p6179_p3, 1, 0 }
  0x17   : > { %p5055_p7 = scmp.ge.s32.totalorder %s6026_s28, 1  ;;  %s7404_s17 = smov (%p43_p4, %s7402_s17), 0 }
  0x18   : > { %7374 = sst [smem:[#allocation13_spill]] %s7373_s19  ;;  %p6188_p8 = por %p415_p6, %p414_p5 }
  0x19   : > { %7375 = sst [smem:[#allocation14_spill]] %s7404_s17  ;;  %p494_p9 = scmp.lt.s32.totalorder %s6026_s28, 5 }
  0x1a   : > { %s7376_s20 = scalar_select %p6188_p8, 1, 0 }
  0x1b   : > { %s393_s29 = ssub.s32 %s6022_s27, %s7404_s17  ;;  %s398_s16 = sadd.s32 1, %s6006_s23 }
  0x1c   : > { %7377 = sst [smem:[#allocation15_spill]] %s7376_s20  ;;  %s395_s15 = sor.u32 %s394_s18, %s393_s29 }
  0x1d   : > { %p495_p10 = pnand %p5055_p7, %p494_p9  ;;  %p396_p11 = scmp.eq.s32.totalorder %s395_s15, 0 }
  0x1e   : > { %s7360_s30 = sand.u32 (!%p495_p10), 1, %s6002_s22   ;;  %p552_p12 = scmp.lt.s32.totalorder (!%p495_p10), %s6014_s25, 1 }
  0x1f   : > { %s6197_s0 = scalar_select %p396_p11, %s6006_s23, %s398_s16  }
  0x20   : > { %498 = sbr.rel (%p495_p10) target bundleno = 3845 (0xf05), region = 84  ;;  %s6203_s26 = sshll.u32 (!%p495_p10), %s7360_s30, 3 }
  0x21   : > { %7378 = sst [smem:[#allocation16_spill]] %s6197_s0  ;;  %p554_p13 = scmp.lt.s32.totalorder (!%p495_p10), %s6010_s24, 1 }
  0x22   : > { %s7379_s1 = sld [smem:[#allocation18_spill]] (!%p495_p10)  ;;  %s7380_s14 = sld [smem:[#allocation17_spill]] (!%p495_p10) }
  0x23   : > { %s551_s30 = scalar_lea.vmem (!%p495_p10), [#allocation4], %s6203_s26  ;;  %p5061_p0 = scmp.ne.s32.totalorder (!%p495_p10), %s6010_s24, 0 }
  0x27   : > { %s553_s17 = scalar_select %p552_p12, %s6014_s25, 1 }
  0x28   : > { %s555_s18 = scalar_select %p554_p13, %s6010_s24, 1 }
  0x29   : > { %s5057_s29 = sshll.u32 %s553_s17, 1  ;;  %s5286_s15 = sshll.u32 %s553_s17, 5  ;;  %vm571_vm0 = vcmask (!%p5061_p0), 64512   ;;  %vm576_vm1 = vcmask (!%p5061_p0), 57344   ;;  %v6028_v1 = vmov (!%p5061_p0), 0.0  }
  0x2a   : > { %s557_s16 = sadd.s32 %s5057_s29, %s555_s18  ;;  %s6211_s23 = scalar_lea.vmem %s7379_s1, %s5286_s15  ;;  %572 = vst.msk [vmem:[#allocation2] sm:$0xff] (!%p5061_p0), %vm571_vm0, %v6028_v1  ;;  %573 = vst.msk [vmem:[#allocation2 + $0x8] sm:$0xff] (!%p5061_p0), %vm571_vm0, %v6028_v1 }
  0x2b   : > { %s5058_s20 = sshll.u32 %s557_s16, 3  ;;  %570 = sbr.rel (%p5061_p0) target bundleno = 50 (0x32), region = 88  ;;  %574 = vst.msk [vmem:[#allocation2 + $0x10] sm:$0xff] (!%p5061_p0), %vm571_vm0, %v6028_v1  ;;  %575 = vst.msk [vmem:[#allocation2 + $0x18] sm:$0xff] (!%p5061_p0), %vm571_vm0, %v6028_v1 }
  0x2c   : > { %s559_s19 = scalar_lea.vmem %s7380_s14, %s5058_s20  ;;  %577 = vst.msk [vmem:[#allocation3] sm:$0x1] (!%p5061_p0), %vm576_vm1, %v6028_v1  ;;  %578 = vst.msk [vmem:[#allocation3 + $0x1] sm:$0x1] (!%p5061_p0), %vm576_vm1, %v6028_v1 }
  0x2d   : > { %v6216_v0 = vld [vmem:[%s559_s19] sm:$0xff]  ;;  %579 = vst.msk [vmem:[#allocation3 + $0x2] sm:$0x1] (!%p5061_p0), %vm576_vm1, %v6028_v1  ;;  %580 = vst.msk [vmem:[#allocation3 + $0x3] sm:$0x1] (!%p5061_p0), %vm576_vm1, %v6028_v1 }
  0x32 PF: > { %s7381_s2 = sld [smem:[#allocation19_spill]]  ;;  %v6029_v3 = vmov 0.0   ;;  %vm6030_vm2 = vmmov 0   ;;  %vm605_vm3 = vcmask 261120   ;;  %v581_v5 = vpack.c.bf16 %v6216_v0, %v6216_v0  ;;  %v5062_v6 = vld [vmem:[%s7334_s3] ss:$0 sm:$0xff] }
  0x33   : > { %5509 = vmatprep.subr.bf16.mxu0 %v6029_v3  ;;  %5517 = vmatprep.subr.bf16.mxu1 %v6029_v3  ;;  %s6031_s19 = smov 104   ;;  %s6032_s20 = smov 120   ;;  %v6034_v12 = vmov 1983009808   ;;  %v664_v14 = vlaneseq  ;;  %v6035_v15 = vmov 1934713408  }
  0x34   : > { %5513 = vmatprep.mubr.msk.bf16.mxu0 %vm6030_vm2, %v6029_v3  ;;  %5519 = vmatprep.mubr.msk.bf16.mxu1 %vm6030_vm2, %v6029_v3  ;;  %s6033_s18 = smov 112   ;;  %v662_v13 = vunpack.c.l.s4 %v6034_v12  ;;  %v694_v16 = vunpack.c.l.s4 %v6035_v15  ;;  %vm1091_vm4 = vcmask 64512   ;;  %s6036_s29 = smov 64   ;;  %vm2096_vm5 = vcmask 57344  }
  0x35   : > { %v6251_v18 = vshrl.u32 %v664_v14, 7  ;;  %s6037_s15 = smov 96   ;;  %vm1379_vm6 = vcmask 1043456   ;;  %s6038_s16 = smov 16   ;;  %vm2250_vm8 = vcmask 130048   ;;  %vm2252_vm9 = vcmask 195584  }
  0x36   : > { %v663_v17 = vunpack.c.0.s8 %v662_v13  ;;  %v695_v21 = vunpack.c.0.s8 %v694_v16  ;;  %s6039_s21 = smov 8   ;;  %s6040_s14 = smov 24  }
  0x37   : > { %s7383_s28 = sld [smem:[#allocation20_spill]] }
  0x38   : > { %v5746_v2 = vld [vmem:[%s7381_s2] sm:$0xff]   ;;  %v5747_v4 = vld [vmem:[%s7381_s2 + $0x8] sm:$0xff]   ;;  %v6258_v22 = vsub.s32 %v663_v17, %v6251_v18  ;;  %v6271_v28 = vsub.s32 %v695_v21, %v6251_v18 }
  0x39   : > { %5510 = vmatpush3.bf16.msra.mxu0 %v5746_v2 }
  0x3a   : > { %5511 = vmatprep.subr.bf16.mxu0 %v6029_v3 }
  0x3d   : > { %5512 = vmatpush3.bf16.msra.mxu0 %v5747_v4 }
  0x3e   : > { %5523 = vmatprep.subr.bf16.mxu0 %v6029_v3 }
  0x40   : > { %5514 = vmatmul.mubr.msk.bf16.vlgmr.msra.gmra.mrb[0].mxu0 %vm605_vm3, %v581_v5 }
  0x41   : > { %5525 = vmatprep.mubr.msk.bf16.mxu0 %vm6030_vm2, %v6029_v3 }
 0x113   : > { %v643_v7 = vpop.f32.mrb[0].mxu0 }
 0x114   : > { %v6242_v8 = vadd.f32 %v5062_v6, %v643_v7  ;;  %v5515_v9 = vpop.f32.mrb[1].mxu0 }
 0x115   : > { %v646_v10 = vpop.f32.mrb[2].mxu0 }
 0x116   : > { %656 = vrot.lane.b32.xlu1 %v6242_v8, %s6031_s19  ;;  %650 = vrot.lane.b32.xlu0 %v6242_v8, %s6032_s20  ;;  %v5516_v11 = vpop.f32.mrb[3].mxu0 }
 0x11a   : > { %653 = vrot.lane.b32.xlu0 %v6242_v8, %s6033_s18 }
 0x188   : > { %v6253_v19 = vpop.permute.xlu1 %656  ;;  %v6255_v20 = vpop.permute.xlu0 %650 }
 0x189   : > { %v675_v23 = vcombine.low %v6255_v20, %v6253_v19  ;;  %v676_v24 = vcombine.high %v6255_v20, %v6253_v19 }
 0x18b   : > { %v683_v29 = vrot.slane %v675_v23, %v6258_v22  ;;  %v690_v30 = vrot.slane %v676_v24, %v6258_v22 }
 0x18c   : > { %v6264_v25 = vpop.permute.xlu0 %653 }
 0x18d   : > { %v659_v26 = vcombine.low %v6242_v8, %v6264_v25  ;;  %v660_v27 = vcombine.high %v6242_v8, %v6264_v25 }
 0x18f   : > { %v667_v31 = vrot.slane %v659_v26, %v6258_v22  ;;  %v674_v32 = vrot.slane %v660_v27, %v6258_v22 }
 0x191   : > { %v691_v33 = vcombine.low %v667_v31, %v683_v29  ;;  %v692_v34 = vcombine.high %v667_v31, %v683_v29  ;;  %v707_v35 = vcombine.low %v674_v32, %v690_v30  ;;  %v708_v36 = vcombine.high %v674_v32, %v690_v30 }
 0x193   : > { %v699_v37 = vrot.slane %v691_v33, %v6271_v28  ;;  %v706_v38 = vrot.slane %v692_v34, %v6271_v28  ;;  %v715_v39 = vrot.slane %v707_v35, %v6271_v28  ;;  %v722_v40 = vrot.slane %v708_v36, %v6271_v28 }
 0x195   : > { %v727_v41 = vcombine.low %v699_v37, %v706_v38  ;;  %v5066_v42 = vcombine.high %v699_v37, %v706_v38  ;;  %v743_v43 = vcombine.low %v715_v39, %v722_v40  ;;  %v5067_v44 = vcombine.high %v715_v39, %v722_v40 }
 0x197   : > { %v734_v45 = vrot.slane %v727_v41, %v6258_v22  ;;  %v742_v46 = vrot.slane %v5066_v42, %v6258_v22  ;;  %v750_v47 = vrot.slane %v743_v43, %v6258_v22  ;;  %v758_v48 = vrot.slane %v5067_v44, %v6258_v22 }
 0x199   : > { %v759_v49 = vcombine.low %v734_v45, %v742_v46  ;;  %v775_v50 = vcombine.low %v750_v47, %v758_v48  ;;  %v760_v51 = vcombine.high %v734_v45, %v742_v46  ;;  %v776_v52 = vcombine.high %v750_v47, %v758_v48 }
 0x19b   : > { %v767_v53 = vrot.slane %v759_v49, %v6271_v28  ;;  %v783_v54 = vrot.slane %v775_v50, %v6271_v28  ;;  %v774_v55 = vrot.slane %v760_v51, %v6271_v28  ;;  %v790_v56 = vrot.slane %v776_v52, %v6271_v28 }
 0x19d   : > { %v792_v57 = vcombine.high %v767_v53, %v783_v54  ;;  %v791_v58 = vcombine.low %v767_v53, %v783_v54  ;;  %v793_v61 = vcombine.low %v774_v55, %v790_v56  ;;  %v794_v62 = vcombine.high %v774_v55, %v790_v56 }
 0x19f   : > { %v1095_v59 = vsel %vm1091_vm4, %v792_v57, -inf  ;;  %v1092_v60 = vsel %vm1091_vm4, %v791_v58, -inf  ;;  %v1098_v63 = vsel %vm1091_vm4, %v793_v61, -inf  ;;  %v1101_v1 = vsel %vm1091_vm4, %v794_v62, -inf }
 0x1a0   : > { %1096 = vmax.xlane.f32.xlu0 %v1095_v59  ;;  %1093 = vmax.xlane.f32.xlu1 %v1092_v60 }
 0x1a4   : > { %1099 = vmax.xlane.f32.xlu0 %v1098_v63  ;;  %1102 = vmax.xlane.f32.xlu1 %v1101_v1 }
 0x1b5   : > { %945 = vrot.lane.b32.xlu1 %v6255_v20, %s6036_s29 }
 0x1b9   : > { %947 = vrot.lane.b32.xlu1 %v6264_v25, %s6036_s29 }
 0x1ba   : > { %943 = vrot.lane.b32.xlu0 %v6242_v8, %s6036_s29 }
 0x1be   : > { %949 = vrot.lane.b32.xlu0 %v6253_v19, %s6036_s29 }
 0x22d   : > { %v1097_v2 = vpop.xlane.xlu0 %1096  ;;  %v1094_v4 = vpop.xlane.xlu1 %1093 }
 0x22e   : > { %v1105_v5 = vsub.f32 %v792_v57, %v1097_v2  ;;  %v1104_v6 = vsub.f32 %v791_v58, %v1094_v4 }
 0x230   : > { %v1110_v7 = vmul.f32 1.442695, %v1105_v5  ;;  %v1108_v9 = vmul.f32 1.442695, %v1104_v6 }
 0x231   : > { %v1100_v10 = vpop.xlane.xlu0 %1099  ;;  %v1103_v11 = vpop.xlane.xlu1 %1102 }
 0x232   : > { %5878 = vpow2.f32 %v1110_v7  ;;  %v1106_v12 = vsub.f32 %v793_v61, %v1100_v10  ;;  %v1107_v13 = vsub.f32 %v794_v62, %v1103_v11 }
 0x233   : > { %5880 = vpow2.f32 %v1108_v9 }
 0x234   : > { %v1112_v15 = vmul.f32 1.442695, %v1106_v12  ;;  %v1114_v16 = vmul.f32 1.442695, %v1107_v13 }
 0x235   : > { %v944_v17 = vpop.permute.xlu0 %943  ;;  %v946_v21 = vpop.permute.xlu1 %945 }
 0x236   : > { %5882 = vpow2.f32 %v1112_v15 }
 0x237   : > { %5884 = vpow2.f32 %v1114_v16 }
 0x239   : > { %v950_v23 = vpop.permute.xlu0 %949  ;;  %v948_v24 = vpop.permute.xlu1 %947 }
 0x23a   : > { %v971_v26 = vcombine.low %v946_v21, %v950_v23  ;;  %v972_v27 = vcombine.high %v946_v21, %v950_v23  ;;  %v955_v29 = vcombine.low %v944_v17, %v948_v24  ;;  %v956_v30 = vcombine.high %v944_v17, %v948_v24 }
 0x23c   : > { %v6297_v31 = vpop.eup %5878  ;;  %v979_v32 = vrot.slane %v971_v26, %v6258_v22  ;;  %v986_v33 = vrot.slane %v972_v27, %v6258_v22  ;;  %v963_v34 = vrot.slane %v955_v29, %v6258_v22  ;;  %v970_v35 = vrot.slane %v956_v30, %v6258_v22 }
 0x23d   : > { %v6303_v36 = vpop.eup %5880  ;;  %v1119_v37 = vsel %vm1091_vm4, %v6297_v31, 0.0 }
 0x23e   : > { %v987_v38 = vcombine.low %v963_v34, %v979_v32  ;;  %v988_v39 = vcombine.high %v963_v34, %v979_v32  ;;  %v1003_v40 = vcombine.low %v970_v35, %v986_v33  ;;  %v1004_v41 = vcombine.high %v970_v35, %v986_v33  ;;  %1120 = vadd.xlane.f32.xlu0 %v1119_v37 }
 0x23f   : > { %v1116_v42 = vsel %vm1091_vm4, %v6303_v36, 0.0 }
 0x240   : > { %v6309_v43 = vpop.eup %5882  ;;  %v995_v44 = vrot.slane %v987_v38, %v6271_v28  ;;  %v1002_v45 = vrot.slane %v988_v39, %v6271_v28  ;;  %v1011_v46 = vrot.slane %v1003_v40, %v6271_v28  ;;  %v1018_v47 = vrot.slane %v1004_v41, %v6271_v28  ;;  %1117 = vadd.xlane.f32.xlu1 %v1116_v42 }
 0x241   : > { %v6315_v48 = vpop.eup %5884  ;;  %v1122_v49 = vsel %vm1091_vm4, %v6309_v43, 0.0 }
 0x242   : > { %v1023_v50 = vcombine.low %v995_v44, %v1002_v45  ;;  %v5070_v51 = vcombine.high %v995_v44, %v1002_v45  ;;  %v1039_v52 = vcombine.low %v1011_v46, %v1018_v47  ;;  %v5071_v53 = vcombine.high %v1011_v46, %v1018_v47  ;;  %1123 = vadd.xlane.f32.xlu0 %v1122_v49 }
 0x243   : > { %v1125_v54 = vsel %vm1091_vm4, %v6315_v48, 0.0 }
 0x244   : > { %v1030_v55 = vrot.slane %v1023_v50, %v6258_v22  ;;  %v1038_v56 = vrot.slane %v5070_v51, %v6258_v22  ;;  %v1046_v57 = vrot.slane %v1039_v52, %v6258_v22  ;;  %v1054_v58 = vrot.slane %v5071_v53, %v6258_v22  ;;  %1126 = vadd.xlane.f32.xlu1 %v1125_v54  ;;  %v2060_v50 = vld [vmem:[#allocation3] sm:$0x1]  ;;  %v2061_v51 = vld [vmem:[#allocation3 + $0x1] sm:$0x1] }
 0x246   : > { %v1055_v59 = vcombine.low %v1030_v55, %v1038_v56  ;;  %v1056_v60 = vcombine.high %v1030_v55, %v1038_v56  ;;  %v1071_v61 = vcombine.low %v1046_v57, %v1054_v58  ;;  %v1072_v62 = vcombine.high %v1046_v57, %v1054_v58  ;;  %v5084_v56 = vld [vmem:[#allocation3] ss:$0 sm:$0xff]  ;;  %v2062_v57 = vld [vmem:[#allocation3 + $0x2] sm:$0x1]  ;;  %v5085_v58 = vld [vmem:[#allocation3 + $0x1] ss:$0 sm:$0xff] }
 0x248   : > { %v1063_v63 = vrot.slane %v1055_v59, %v6271_v28  ;;  %v1070_v1 = vrot.slane %v1056_v60, %v6271_v28  ;;  %v1079_v2 = vrot.slane %v1071_v61, %v6271_v28  ;;  %v1086_v4 = vrot.slane %v1072_v62, %v6271_v28 }
 0x24a   : > { %v1087_v5 = vcombine.low %v1063_v63, %v1079_v2  ;;  %v1088_v6 = vcombine.high %v1063_v63, %v1079_v2  ;;  %v1089_v7 = vcombine.low %v1070_v1, %v1086_v4  ;;  %v1090_v9 = vcombine.high %v1070_v1, %v1086_v4  ;;  %v6350_v63 = vld [vmem:[#allocation3 + $0x2] ss:$0 sm:$0xff]  ;;  %v2063_v1 = vld [vmem:[#allocation3 + $0x3] sm:$0x1] }
 0x24c   : > { %v1140_v10 = vmul.f32 1.442695, %v1087_v5  ;;  %v1142_v11 = vmul.f32 1.442695, %v1088_v6  ;;  %v1144_v12 = vmul.f32 1.442695, %v1089_v7 }
 0x24d   : > { %v1146_v13 = vmul.f32 1.442695, %v1090_v9  ;;  %v6354_v5 = vld [vmem:[#allocation3 + $0x3] ss:$0 sm:$0xff] }
 0x24e   : > { %5886 = vpow2.f32 %v1140_v10 }
 0x24f   : > { %5888 = vpow2.f32 %v1142_v11 }
 0x250   : > { %5890 = vpow2.f32 %v1144_v12 }
 0x251   : > { %5892 = vpow2.f32 %v1146_v13 }
 0x255   : > { %797 = vrot.lane.b32.xlu1 %v6255_v20, %s6037_s15 }
 0x258   : > { %v5887_v15 = vpop.eup %5886  ;;  %795 = vrot.lane.b32.xlu0 %v6242_v8, %s6037_s15 }
 0x259   : > { %v5889_v16 = vpop.eup %5888  ;;  %799 = vrot.lane.b32.xlu1 %v6264_v25, %s6037_s15  ;;  %v6332_v17 = vpack.c.bf16 %v5887_v15, %v5887_v15  ;;  %v2064_v21 = vsel %vm1091_vm4, %v5887_v15, 0.0 }
 0x25a   : > { %v6335_v23 = vpop.eup %5890  ;;  %v6337_v24 = vpack.c.bf16 %v5889_v16, %v5889_v16  ;;  %v2071_v26 = vsel %vm1091_vm4, %v5889_v16, 0.0  ;;  %v2065_v27 = vrot.slane %v2064_v21, 4 }
 0x25b   : > { %v5893_v29 = vpop.eup %5892  ;;  %v1169_v20 = vsel %vm1091_vm4, %v6332_v17, 0  ;;  %v2072_v30 = vrot.slane %v2071_v26, 4  ;;  %v2078_v8 = vsel %vm1091_vm4, %v6335_v23, 0.0  ;;  %v6360_v15 = vpack.c.bf16 %v6335_v23, %v6335_v23 }
 0x25c   : > { %801 = vrot.lane.b32.xlu0 %v6253_v19, %s6037_s15  ;;  %5518 = vmatpush3.bf16.xpose.msra.mxu1 %v1169_v20  ;;  %v1215_v25 = vsel %vm1091_vm4, %v6337_v24, 0  ;;  %v2066_v32 = vadd.f32 %v2065_v27, %v2064_v21  ;;  %v2079_v33 = vrot.slane %v2078_v8, 4  ;;  %v2085_v35 = vsel %vm1091_vm4, %v5893_v29, 0.0  ;;  %s6042_s15 = smov [#allocation4]  }
 0x25d   : > { %5524 = vmatpush3.bf16.xpose.msra.mxu0 %v1215_v25  ;;  %5529 = vmatprep.subr.bf16.mxu1 %v6029_v3  ;;  %v2073_v34 = vadd.f32 %v2072_v30, %v2071_v26  ;;  %v2086_v39 = vrot.slane %v2085_v35, 4  ;;  %v6362_v16 = vpack.c.bf16 %v5893_v29, %v5893_v29  ;;  %s5936_s27 = sshll.u32 %s6042_s15, 4  ;;  %s5937_s27 = int_to_ptr.vmem [resolvable:$false] %s5936_s27 }
 0x25e   : > { %5535 = vmatprep.subr.bf16.mxu0 %v6029_v3  ;;  %v2067_v37 = vrot.slane %v2066_v32, 2  ;;  %v2080_v38 = vadd.f32 %v2079_v33, %v2078_v8 }
 0x25f   : > { %v2074_v40 = vrot.slane %v2073_v34, 2  ;;  %v2087_v42 = vadd.f32 %v2086_v39, %v2085_v35  ;;  %v1307_v23 = vsel %vm1091_vm4, %v6362_v16, 0  ;;  %v6372_v39 = vld [vmem:[#allocation2] sm:$0xff] }
 0x260   : > { %v2068_v41 = vadd.f32 %v2067_v37, %v2066_v32  ;;  %v2081_v19 = vrot.slane %v2080_v38, 2 }
 0x261   : > { %v2075_v44 = vadd.f32 %v2074_v40, %v2073_v34  ;;  %v2088_v47 = vrot.slane %v2087_v42, 2  ;;  %v1261_v34 = vsel %vm1091_vm4, %v6360_v15, 0 }
 0x262   : > { %v2069_v45 = vrot.slane %v2068_v41, 1  ;;  %v2082_v46 = vadd.f32 %v2081_v19, %v2080_v38 }
 0x263   : > { %v2076_v49 = vrot.slane %v2075_v44, 1  ;;  %v2089_v54 = vadd.f32 %v2088_v47, %v2087_v42  ;;  %v6380_v47 = vld [vmem:[#allocation2 + $0x8] sm:$0xff] }
 0x264   : > { %v2070_v52 = vadd.f32 %v2069_v45, %v2068_v41  ;;  %v2083_v53 = vrot.slane %v2082_v46, 1 }
 0x265   : > { %v2077_v55 = vadd.f32 %v2076_v49, %v2075_v44  ;;  %v2090_v61 = vrot.slane %v2089_v54, 1 }
 0x266   : > { %v2092_v59 = vadd.f32 %v2070_v52, %v2060_v50  ;;  %v2084_v60 = vadd.f32 %v2083_v53, %v2082_v46  ;;  %v1375_v52 = vpack.c.bf16 %v6372_v39, %v6372_v39 }
 0x267   : > { %v2093_v62 = vadd.f32 %v2077_v55, %v2061_v51  ;;  %v2091_v4 = vadd.f32 %v2090_v61, %v2089_v54 }
 0x268   : > { %2097 = vst.msk [vmem:[#allocation3] sm:$0x1] %vm2096_vm5, %v2092_v59  ;;  %v2094_v2 = vadd.f32 %v2084_v60, %v2062_v57 }
 0x269   : > { %2098 = vst.msk [vmem:[#allocation3 + $0x1] sm:$0x1] %vm2096_vm5, %v2093_v62  ;;  %v2095_v6 = vadd.f32 %v2091_v4, %v2063_v1 }
 0x26a   : > { %2099 = vst.msk [vmem:[#allocation3 + $0x2] sm:$0x1] %vm2096_vm5, %v2094_v2 }
 0x26b   : > { %2100 = vst.msk [vmem:[#allocation3 + $0x3] sm:$0x1] %vm2096_vm5, %v2095_v6 }
 0x2cb   : > { %v1121_v7 = vpop.xlane.xlu0 %1120 }
 0x2cc   : > { %5894 = vrcp.f32 %v1121_v7 }
 0x2cd   : > { %v1118_v9 = vpop.xlane.xlu1 %1117 }
 0x2ce   : > { %5896 = vrcp.f32 %v1118_v9 }
 0x2cf   : > { %v1124_v10 = vpop.xlane.xlu0 %1123 }
 0x2d0   : > { %5898 = vrcp.f32 %v1124_v10 }
 0x2d1   : > { %v1127_v11 = vpop.xlane.xlu1 %1126 }
 0x2d2   : > { %5900 = vrcp.f32 %v1127_v11 }
 0x2d3   : > { %v796_v12 = vpop.permute.xlu0 %795 }
 0x2d5   : > { %v798_v13 = vpop.permute.xlu1 %797 }
 0x2d6   : > { %v5895_v21 = vpop.eup %5894 }
 0x2d7   : > { %v802_v26 = vpop.permute.xlu0 %801  ;;  %v1133_v27 = vmul.f32 %v5895_v21, %v6297_v31 }
 0x2d8   : > { %v5897_v20 = vpop.eup %5896  ;;  %v823_v30 = vcombine.low %v798_v13, %v802_v26  ;;  %v824_v8 = vcombine.high %v798_v13, %v802_v26 }
 0x2d9   : > { %v800_v25 = vpop.permute.xlu1 %799  ;;  %v1137_v32 = vmul.f32 0.35355338, %v1133_v27  ;;  %v1132_v33 = vmul.f32 %v5897_v20, %v6303_v36 }
 0x2da   : > { %v5899_v35 = vpop.eup %5898  ;;  %v831_v29 = vrot.slane %v823_v30, %v6258_v22  ;;  %v838_v37 = vrot.slane %v824_v8, %v6258_v22  ;;  %v807_v38 = vcombine.low %v796_v12, %v800_v25  ;;  %v808_v31 = vcombine.high %v796_v12, %v800_v25  ;;  %v6426_v25 = vld [vmem:[#allocation2 + $0x10] sm:$0xff] }
 0x2db   : > { %v6374_v40 = vpack.c.bf16 %v1137_v32, %v1137_v32  ;;  %v1787_v41 = vsel %vm1091_vm4, %v1137_v32, 0.0  ;;  %v1136_v36 = vmul.f32 0.35355338, %v1132_v33  ;;  %v1765_v19 = vmul.f32 %v5085_v58, %v1137_v32  ;;  %v6428_v32 = vld [vmem:[#allocation2 + $0x18] sm:$0xff] }
 0x2dc   : > { %v5901_v42 = vpop.eup %5900  ;;  %v815_v44 = vrot.slane %v807_v38, %v6258_v22  ;;  %v822_v45 = vrot.slane %v808_v31, %v6258_v22  ;;  %1788 = vadd.xlane.f32.xlu1 %v1787_v41  ;;  %v1134_v46 = vmul.f32 %v5899_v35, %v6309_v43  ;;  %v1381_v12 = vsel %vm1379_vm6, %v1375_v52, 0 }
 0x2dd   : > { %v1784_v49 = vsel %vm1091_vm4, %v1136_v36, 0.0  ;;  %v6383_v50 = vpack.c.bf16 %v1136_v36, %v1136_v36  ;;  %5526 = vmatmul.mubr.msk.bf16.vlgmr.msra.gmra.mrb[4].mxu0 %vm1091_vm4, %v6374_v40  ;;  %v1764_v51 = vmul.f32 %v5084_v56, %v1136_v36  ;;  %v1771_v43 = vsel %vm1091_vm4, %v1765_v19, 0.0 }
 0x2de   : > { %v839_v53 = vcombine.low %v815_v44, %v831_v29  ;;  %v840_v54 = vcombine.high %v815_v44, %v831_v29  ;;  %v855_v55 = vcombine.low %v822_v45, %v838_v37  ;;  %v856_v57 = vcombine.high %v822_v45, %v838_v37  ;;  %1785 = vadd.xlane.f32.xlu0 %v1784_v49 }
 0x2df   : > { %5520 = vmatmul.mubr.msk.bf16.vlgmr.msra.gmra.mrb[0].mxu1 %vm1091_vm4, %v6383_v50  ;;  %5536 = vmatpush3.bf16.xpose.msra.mxu0 %v1307_v23  ;;  %v6392_v58 = vmul.f32 0.35355338, %v1134_v46  ;;  %v1135_v59 = vmul.f32 %v5901_v42, %v6315_v48  ;;  %v1376_v56 = vpack.c.bf16 %v6380_v47, %v6380_v47  ;;  %v1768_v2 = vsel %vm1091_vm4, %v1764_v51, 0.0 }
 0x2e0   : > { %v847_v60 = vrot.slane %v839_v53, %v6271_v28  ;;  %v854_v61 = vrot.slane %v840_v54, %v6271_v28  ;;  %v863_v62 = vrot.slane %v855_v55, %v6271_v28  ;;  %v870_v1 = vrot.slane %v856_v57, %v6271_v28  ;;  %5530 = vmatpush3.bf16.xpose.msra.mxu1 %v1261_v34 }
 0x2e1   : > { %1772 = vadd.xlane.f32.xlu1 %v1771_v43  ;;  %5537 = vmatprep.mubr.msk.bf16.mxu0 %vm6030_vm2, %v6029_v3  ;;  %v1766_v48 = vmul.f32 %v6350_v63, %v6392_v58  ;;  %v6406_v4 = vmul.f32 0.35355338, %v1135_v59  ;;  %v1424_v13 = vsel %vm1379_vm6, %v1376_v56, 0  ;;  %v1150_v20 = vpack.c.bf16 %v6392_v58, %v6392_v58 }
 0x2e2   : > { %v875_v6 = vcombine.low %v847_v60, %v854_v61  ;;  %v5068_v7 = vcombine.high %v847_v60, %v854_v61  ;;  %v891_v9 = vcombine.low %v863_v62, %v870_v1  ;;  %v5069_v10 = vcombine.high %v863_v62, %v870_v1  ;;  %1769 = vadd.xlane.f32.xlu0 %v1768_v2 }
 0x2e3   : > { %5531 = vmatprep.mubr.msk.bf16.mxu1 %vm6030_vm2, %v6029_v3  ;;  %v1767_v11 = vmul.f32 %v6354_v5, %v6406_v4  ;;  %5541 = vmatprep.subr.bf16.mxu1 %v6029_v3  ;;  %v1774_v5 = vsel %vm1091_vm4, %v1766_v48, 0.0  ;;  %v1151_v8 = vpack.c.bf16 %v6406_v4, %v6406_v4  ;;  %v1377_v37 = vpack.c.bf16 %v6426_v25, %v6426_v25 }
 0x2e4   : > { %v882_v63 = vrot.slane %v875_v6, %v6258_v22  ;;  %v890_v21 = vrot.slane %v5068_v7, %v6258_v22  ;;  %v898_v26 = vrot.slane %v891_v9, %v6258_v22  ;;  %v906_v27 = vrot.slane %v5069_v10, %v6258_v22  ;;  %5547 = vmatprep.subr.bf16.mxu0 %v6029_v3 }
 0x2e5   : > { %v1777_v30 = vsel %vm1091_vm4, %v1767_v11, 0.0  ;;  %v1378_v38 = vpack.c.bf16 %v6428_v32, %v6428_v32  ;;  %v1467_v44 = vsel %vm1379_vm6, %v1377_v37, 0  ;;  %v1163_v53 = vand.u32 127, %v664_v14 }
 0x2e6   : > { %1775 = vadd.xlane.f32.xlu0 %v1774_v5  ;;  %1778 = vadd.xlane.f32.xlu1 %v1777_v30  ;;  %v908_v33 = vcombine.high %v882_v63, %v890_v21  ;;  %v907_v34 = vcombine.low %v882_v63, %v890_v21  ;;  %v923_v23 = vcombine.low %v898_v26, %v906_v27  ;;  %v1793_v37 = vsel %vm1091_vm4, %v6406_v4, 0.0 }
 0x2e7   : > { %5532 = vmatmul.mubr.msk.bf16.vlgmr.msra.gmra.mrb[4].mxu1 %vm1091_vm4, %v1150_v20  ;;  %5538 = vmatmul.mubr.msk.bf16.vlgmr.msra.gmra.mrb[8].mxu0 %vm1091_vm4, %v1151_v8  ;;  %v924_v35 = vcombine.high %v898_v26, %v906_v27  ;;  %v1510_v45 = vsel %vm1379_vm6, %v1378_v38, 0  ;;  %vm1164_vm7 = vcmp.le.s32.totalorder %v1163_v53, %v6251_v18 }
 0x2e8   : > { %5542 = vmatpush3.bf16.msra.mxu1 %v1381_v12  ;;  %5548 = vmatpush3.bf16.msra.mxu0 %v1424_v13  ;;  %v922_v29 = vrot.slane %v908_v33, %v6271_v28  ;;  %v915_v41 = vrot.slane %v907_v34, %v6271_v28  ;;  %v931_v36 = vrot.slane %v923_v23, %v6271_v28 }
 0x2e9   : > { %5543 = vmatprep.mubr.msk.bf16.mxu1 %vm6030_vm2, %v6029_v3  ;;  %5549 = vmatprep.mubr.msk.bf16.mxu0 %vm6030_vm2, %v6029_v3  ;;  %v938_v31 = vrot.slane %v924_v35, %v6271_v28 }
 0x2ea   : > { %5553 = vmatprep.subr.bf16.mxu1 %v6029_v3  ;;  %5559 = vmatprep.subr.bf16.mxu0 %v6029_v3  ;;  %v939_v46 = vcombine.low %v915_v41, %v931_v36  ;;  %v940_v49 = vcombine.high %v915_v41, %v931_v36 }
 0x2eb   : > { %v941_v19 = vcombine.low %v922_v29, %v938_v31  ;;  %v942_v42 = vcombine.high %v922_v29, %v938_v31  ;;  %v1790_v29 = vsel %vm1091_vm4, %v6392_v58, 0.0 }
 0x2ec   : > { %v1156_v51 = vpack.c.bf16 %v939_v46, %v939_v46  ;;  %v1157_v52 = vpack.c.bf16 %v940_v49, %v940_v49 }
 0x2ed   : > { %v1159_v55 = vpack.c.bf16 %v942_v42, %v942_v42  ;;  %v1158_v62 = vpack.c.bf16 %v941_v19, %v941_v19 }
 0x2ef   : > { %5544 = vmatmul.mubr.msk.bf16.vlgmr.msra.gmra.mrb[8].mxu1 %vm1091_vm4, %v6383_v50  ;;  %5550 = vmatmul.mubr.msk.bf16.vlgmr.msra.gmra.mrb[12].mxu0 %vm1091_vm4, %v6374_v40  ;;  %v1556_v40 = vsel %vm1379_vm6, %v1156_v51, 0  ;;  %v1602_v50 = vsel %vm1379_vm6, %v1157_v52, 0  ;;  %v6478_v9 = vsel %vm1379_vm6, %v1159_v55, 0  ;;  %v6483_v11 = vsel %vm1379_vm6, %v1158_v62, 0 }
 0x2f0   : > { %5554 = vmatpush3.bf16.msra.mxu1 %v1467_v44  ;;  %5560 = vmatpush3.bf16.msra.mxu0 %v1510_v45 }
 0x2f1   : > { %5555 = vmatprep.mubr.msk.bf16.mxu1 %vm6030_vm2, %v6029_v3  ;;  %5561 = vmatprep.mubr.msk.bf16.mxu0 %vm6030_vm2, %v6029_v3 }
 0x2f2   : > { %5565 = vmatprep.subr.bf16.mxu1 %v6029_v3  ;;  %5571 = vmatprep.subr.bf16.mxu0 %v6029_v3 }
 0x2f7   : > { %5556 = vmatmul.mubr.msk.bf16.vlgmr.msra.gmra.mrb[12].mxu1 %vm1091_vm4, %v1150_v20  ;;  %5562 = vmatmul.mubr.msk.bf16.vlgmr.msra.gmra.mrb[16].mxu0 %vm1091_vm4, %v1151_v8 }
 0x2f8   : > { %5566 = vmatpush3.bf16.msra.mxu1 %v1556_v40  ;;  %5572 = vmatpush3.bf16.msra.mxu0 %v1602_v50 }
 0x2f9   : > { %5567 = vmatprep.mubr.msk.bf16.mxu1 %vm6030_vm2, %v6029_v3  ;;  %5573 = vmatprep.mubr.msk.bf16.mxu0 %vm6030_vm2, %v6029_v3 }
 0x2fa   : > { %5577 = vmatprep.subr.bf16.mxu1 %v6029_v3  ;;  %5583 = vmatprep.subr.bf16.mxu0 %v6029_v3 }
 0x369   : > { %v1789_v31 = vpop.xlane.xlu1 %1788 }
 0x36b   : > { %v1786_v38 = vpop.xlane.xlu0 %1785 }
 0x36c   : > { %v1796_v53 = vmul.f32 1e-06, %v1786_v38 }
 0x36e   : > { %v1773_v36 = vpop.xlane.xlu1 %1772 }
 0x36f   : > { %v1770_v41 = vpop.xlane.xlu0 %1769 }
 0x373   : > { %v1776_v58 = vpop.xlane.xlu0 %1775  ;;  %v1779_v19 = vpop.xlane.xlu1 %1778 }
 0x3b0   : > { %v1251_v54 = vpop.f32.mrb[4].mxu0 }
 0x3b1   : > { %v1352_v57 = vsel %vm1164_vm7, %v1251_v54, 0.0  ;;  %v5527_v43 = vpop.f32.mrb[5].mxu0 }
 0x3b2   : > { %v1205_v59 = vpop.f32.mrb[0].mxu1  ;;  %v1356_v56 = vpack.c.bf16 %v1352_v57, %v1352_v57  ;;  %v1254_v60 = vpop.f32.mrb[6].mxu0  ;;  %v1362_v61 = vsel %vm1091_vm4, %v1352_v57, 0.0 }
 0x3b3   : > { %v1351_v1 = vsel %vm1164_vm7, %v1205_v59, 0.0  ;;  %v5521_v2 = vpop.f32.mrb[1].mxu1  ;;  %1363 = vadd.xlane.f32.xlu0 %v1362_v61  ;;  %v5528_v14 = vpop.f32.mrb[7].mxu0 }
 0x3b4   : > { %v1355_v48 = vpack.c.bf16 %v1351_v1, %v1351_v1  ;;  %v1208_v6 = vpop.f32.mrb[2].mxu1  ;;  %v1359_v7 = vsel %vm1091_vm4, %v1351_v1, 0.0  ;;  %5574 = vmatmul.mubr.msk.bf16.vlgmr.msra.gmra.mrb[12].mxu0 %vm1091_vm4, %v1356_v56 }
 0x3b5   : > { %v5522_v10 = vpop.f32.mrb[3].mxu1  ;;  %1360 = vadd.xlane.f32.xlu1 %v1359_v7  ;;  %5584 = vmatpush3.bf16.msra.mxu0 %v6478_v9 }
 0x3b6   : > { %5568 = vmatmul.mubr.msk.bf16.vlgmr.msra.gmra.mrb[8].mxu1 %vm1091_vm4, %v1355_v48  ;;  %5585 = vmatprep.mubr.msk.bf16.mxu0 %vm6030_vm2, %v6029_v3 }
 0x3b7   : > { %5578 = vmatpush3.bf16.msra.mxu1 %v6483_v11  ;;  %5579 = vmatprep.mubr.msk.bf16.mxu1 %vm6030_vm2, %v6029_v3 }
 0x3b8   : > { %5589 = vmatprep.subr.bf16.mxu1 %v6029_v3  ;;  %5595 = vmatprep.subr.bf16.mxu0 %v6029_v3 }
 0x3ba   : > { %v1297_v12 = vpop.f32.mrb[4].mxu1  ;;  %v1343_v13 = vpop.f32.mrb[8].mxu0 }
 0x3bb   : > { %v1353_v63 = vsel %vm1164_vm7, %v1297_v12, 0.0  ;;  %v1354_v21 = vsel %vm1164_vm7, %v1343_v13, 0.0  ;;  %v5533_v26 = vpop.f32.mrb[5].mxu1  ;;  %v5539_v27 = vpop.f32.mrb[9].mxu0 }
 0x3bc   : > { %v1357_v20 = vpack.c.bf16 %v1353_v63, %v1353_v63  ;;  %v1358_v5 = vpack.c.bf16 %v1354_v21, %v1354_v21  ;;  %v1300_v30 = vpop.f32.mrb[6].mxu1  ;;  %v1346_v8 = vpop.f32.mrb[10].mxu0  ;;  %v1365_v33 = vsel %vm1091_vm4, %v1353_v63, 0.0  ;;  %v1368_v34 = vsel %vm1091_vm4, %v1354_v21, 0.0 }
 0x3bd   : > { %v5534_v23 = vpop.f32.mrb[7].mxu1  ;;  %1366 = vadd.xlane.f32.xlu0 %v1365_v33  ;;  %1369 = vadd.xlane.f32.xlu1 %v1368_v34  ;;  %v5540_v35 = vpop.f32.mrb[11].mxu0 }
 0x3be   : > { %5580 = vmatmul.mubr.msk.bf16.vlgmr.msra.gmra.mrb[12].mxu1 %vm1091_vm4, %v1357_v20  ;;  %5586 = vmatmul.mubr.msk.bf16.vlgmr.msra.gmra.mrb[16].mxu0 %vm1091_vm4, %v1358_v5 }
 0x3bf   : > { %5590 = vmatpush3.bf16.msra.mxu1 %v1556_v40  ;;  %5596 = vmatpush3.bf16.msra.mxu0 %v1602_v50  ;;  %v1797_v40 = vmul.f32 1e-06, %v1789_v31 }
 0x3c0   : > { %5591 = vmatprep.mubr.msk.bf16.mxu1 %vm6030_vm2, %v6029_v3  ;;  %5601 = vmatprep.subr.bf16.mxu1 %v6029_v3 }
 0x3c1   : > { %1791 = vadd.xlane.f32.xlu0 %v1790_v29  ;;  %1794 = vadd.xlane.f32.xlu1 %v1793_v37 }
 0x3c2   : > { %5597 = vmatprep.mubr.msk.bf16.mxu0 %vm6030_vm2, %v6029_v3  ;;  %5607 = vmatprep.subr.bf16.mxu0 %v6029_v3 }
 0x440   : > { %v1364_v42 = vpop.xlane.xlu0 %1363 }
 0x441   : > { %v1781_v49 = vadd.f32 %v1773_v36, %v1364_v42 }
 0x442   : > { %v1361_v4 = vpop.xlane.xlu1 %1360 }
 0x443   : > { %v1780_v52 = vadd.f32 %v1770_v41, %v1361_v4  ;;  %v1801_v55 = vadd.f32 %v1797_v40, %v1781_v49 }
 0x445   : > { %v1800_v43 = vadd.f32 %v1796_v53, %v1780_v52  ;;  %5902 = vrcp.f32 %v1801_v55 }
 0x447   : > { %5904 = vrcp.f32 %v1800_v43 }
 0x44a   : > { %v1367_v44 = vpop.xlane.xlu0 %1366  ;;  %v1370_v45 = vpop.xlane.xlu1 %1369 }
 0x44b   : > { %v1782_v57 = vadd.f32 %v1776_v58, %v1367_v44  ;;  %v1783_v59 = vadd.f32 %v1779_v19, %v1370_v45 }
 0x44e   : > { %v1792_v46 = vpop.xlane.xlu0 %1791  ;;  %v1795_v51 = vpop.xlane.xlu1 %1794 }
 0x44f   : > { %v1798_v50 = vmul.f32 1e-06, %v1792_v46  ;;  %v1799_v54 = vmul.f32 1e-06, %v1795_v51  ;;  %v5903_v10 = vpop.eup %5902 }
 0x451   : > { %v1802_v56 = vadd.f32 %v1798_v50, %v1782_v57  ;;  %v1803_v60 = vadd.f32 %v1799_v54, %v1783_v59  ;;  %v5905_v12 = vpop.eup %5904 }
 0x453   : > { %5906 = vrcp.f32 %v1802_v56 }
 0x454   : > { %5908 = vrcp.f32 %v1803_v60 }
 0x45d   : > { %v5907_v13 = vpop.eup %5906 }
 0x45e   : > { %v5909_v63 = vpop.eup %5908 }
 0x487   : > { %v1638_v61 = vpop.f32.mrb[12].mxu0 }
 0x488   : > { %v5575_v62 = vpop.f32.mrb[13].mxu0  ;;  %v1809_v20 = vmul.f32 %v5903_v10, %v1638_v61 }
 0x489   : > { %v1592_v1 = vpop.f32.mrb[8].mxu1  ;;  %v1641_v2 = vpop.f32.mrb[14].mxu0 }
 0x48a   : > { %v5569_v14 = vpop.f32.mrb[9].mxu1  ;;  %v5576_v48 = vpop.f32.mrb[15].mxu0  ;;  %v1808_v27 = vmul.f32 %v5905_v12, %v1592_v1 }
 0x48b   : > { %v1595_v6 = vpop.f32.mrb[10].mxu1 }
 0x48c   : > { %v5570_v7 = vpop.f32.mrb[11].mxu1 }
 0x491   : > { %v1684_v21 = vpop.f32.mrb[12].mxu1  ;;  %v1730_v26 = vpop.f32.mrb[16].mxu0 }
 0x492   : > { %v1810_v5 = vmul.f32 %v5907_v13, %v1684_v21  ;;  %v1811_v30 = vmul.f32 %v5909_v63, %v1730_v26  ;;  %v5581_v8 = vpop.f32.mrb[13].mxu1  ;;  %v5587_v33 = vpop.f32.mrb[17].mxu0 }
 0x493   : > { %v1687_v34 = vpop.f32.mrb[14].mxu1  ;;  %v1733_v23 = vpop.f32.mrb[18].mxu0 }
 0x494   : > { %v2101_v35 = vcombine.low %v1808_v27, %v1810_v5  ;;  %v2102_v29 = vcombine.high %v1808_v27, %v1810_v5  ;;  %v2117_v37 = vcombine.low %v1809_v20, %v1811_v30  ;;  %v2118_v38 = vcombine.high %v1809_v20, %v1811_v30  ;;  %v5582_v31 = vpop.f32.mrb[15].mxu1  ;;  %v5588_v41 = vpop.f32.mrb[19].mxu0 }
 0x495   : > { %v5748_v31 = vld [vmem:[%s7337_s6] sm:$0xff]  }
 0x496   : > { %v2109_v36 = vrot.slane %v2101_v35, %v6258_v22  ;;  %v2116_v58 = vrot.slane %v2102_v29, %v6258_v22  ;;  %v2125_v19 = vrot.slane %v2117_v37, %v6258_v22  ;;  %v2132_v42 = vrot.slane %v2118_v38, %v6258_v22 }
 0x498   : > { %v2133_v4 = vcombine.low %v2109_v36, %v2125_v19  ;;  %v2134_v44 = vcombine.high %v2109_v36, %v2125_v19  ;;  %v2149_v45 = vcombine.low %v2116_v58, %v2132_v42  ;;  %v2150_v46 = vcombine.high %v2116_v58, %v2132_v42  ;;  %v5094_v36 = vld [vmem:[%s7335_s4] ss:$0 sm:$0xff] }
 0x499   : > { %v5095_v19 = vld [vmem:[%s7336_s5] ss:$0 sm:$0xff] }
 0x49a   : > { %v2141_v49 = vrot.slane %v2133_v4, %v6271_v28  ;;  %v2148_v51 = vrot.slane %v2134_v44, %v6271_v28  ;;  %v2157_v52 = vrot.slane %v2149_v45, %v6271_v28  ;;  %v2164_v40 = vrot.slane %v2150_v46, %v6271_v28 }
 0x49c   : > { %v2169_v50 = vcombine.low %v2141_v49, %v2148_v51  ;;  %v5092_v53 = vcombine.high %v2141_v49, %v2148_v51  ;;  %v2185_v54 = vcombine.low %v2157_v52, %v2164_v40  ;;  %v5093_v55 = vcombine.high %v2157_v52, %v2164_v40 }
 0x49e   : > { %v2176_v57 = vrot.slane %v2169_v50, %v6258_v22  ;;  %v2184_v43 = vrot.slane %v5092_v53, %v6258_v22  ;;  %v2192_v59 = vrot.slane %v2185_v54, %v6258_v22  ;;  %v2200_v56 = vrot.slane %v5093_v55, %v6258_v22 }
 0x4a0   : > { %v2202_v60 = vcombine.high %v2176_v57, %v2184_v43  ;;  %v2218_v61 = vcombine.high %v2192_v59, %v2200_v56  ;;  %v2201_v62 = vcombine.low %v2176_v57, %v2184_v43  ;;  %v2217_v1 = vcombine.low %v2192_v59, %v2200_v56  ;;  %v5096_v57 = vld [vmem:[%s7338_s7] ss:$0 sm:$0xff] }
 0x4a2   : > { %v2216_v2 = vrot.slane %v2202_v60, %v6271_v28  ;;  %v2232_v14 = vrot.slane %v2218_v61, %v6271_v28  ;;  %v2209_v48 = vrot.slane %v2201_v62, %v6271_v28  ;;  %v2225_v6 = vrot.slane %v2217_v1, %v6271_v28 }
 0x4a4   : > { %v2235_v7 = vcombine.low %v2216_v2, %v2232_v14  ;;  %v2234_v10 = vcombine.high %v2209_v48, %v2225_v6  ;;  %v2236_v12 = vcombine.high %v2216_v2, %v2232_v14  ;;  %v2233_v13 = vcombine.low %v2209_v48, %v2225_v6 }
 0x4a6   : > { %2242 = vrot.lane.b32.xlu1 %v2235_v7, %s6038_s16  ;;  %2238 = vrot.lane.b32.xlu0 %v2234_v10, %s6039_s21 }
 0x4aa   : > { %2246 = vrot.lane.b32.xlu1 %v2236_v12, %s6040_s14 }
 0x518   : > { %v2243_v63 = vpop.permute.xlu1 %2242  ;;  %v2239_v21 = vpop.permute.xlu0 %2238 }
 0x519   : > { %v2249_v26 = vsel %vm1091_vm4, %v2233_v13, %v2239_v21 }
 0x51a   : > { %v2251_v20 = vsel %vm2250_vm8, %v2249_v26, %v2243_v63 }
 0x51c   : > { %v2247_v27 = vpop.permute.xlu1 %2246 }
 0x51d   : > { %v2253_v5 = vsel %vm2252_vm9, %v2251_v20, %v2247_v27 }
 0x51e   : > { %v2254_v30 = vadd.f32 %v2253_v5, %v6216_v0 }
 0x520   : > { %v2257_v8 = vsel %vm605_vm3, %v2254_v30, 0.0 }
 0x521   : > { %2258 = vadd.xlane.f32.xlu0 %v2257_v8 }
 0x54e   : > { %1816 = vxpose.xlu0.c.b16.start.end [1/1] (short) (narrow) %v6332_v17, 16 }
 0x5ae   : > { %v2259_v33 = vpop.xlane.xlu0 %2258 }
 0x5af   : > { %v2261_v34 = vmul.f32 0.03125, %v2259_v33 }
 0x5b1   : > { %v2262_v23 = vsub.f32 %v2254_v30, %v2261_v34 }
 0x5b3   : > { %v2263_v35 = vmul.f32 %v2262_v23, %v2262_v23 }
 0x5b4   : > { %v1824_v29 = vpop.trf.xlu0 }
 0x5b5   : > { %5592 = vmatmul.mubr.msk.bf16.vlgmr.msra.gmra.mrb[16].mxu1 %vm1091_vm4, %v1824_v29  ;;  %v2264_v37 = vsel %vm605_vm3, %v2263_v35, 0.0 }
 0x5b6   : > { %5602 = vmatpush3.bf16.msra.mxu1 %v6483_v11  ;;  %2265 = vadd.xlane.f32.xlu1 %v2264_v37  ;;  %v5749_v11 = vld [vmem:[%s7337_s6 + $0x8] sm:$0xff]  }
 0x5b7   : > { %5603 = vmatprep.mubr.msk.bf16.mxu1 %vm6030_vm2, %v6029_v3  ;;  %5613 = vmatprep.subr.bf16.mxu1 %v6029_v3 }
 0x5e3   : > { %1934 = vxpose.xlu1.c.b16.start.end [1/1] (short) (narrow) %v6360_v15, 16 }
 0x643   : > { %v2266_v0 = vpop.xlane.xlu1 %2265 }
 0x644   : > { %v2267_v17 = vmul.f32 0.03125, %v2266_v0 }
 0x646   : > { %v2268_v38 = vadd.f32 1e-05, %v2267_v17 }
 0x648   : > { %5910 = vrsqrt.f32 %v2268_v38 }
 0x649   : > { %v1942_v41 = vpop.trf.xlu1 }
 0x64a   : > { %5604 = vmatmul.mubr.msk.bf16.vlgmr.msra.gmra.mrb[20].mxu1 %vm1091_vm4, %v1942_v41 }
 0x64b   : > { %5614 = vmatpush3.bf16.msra.mxu1 %v5748_v31  ;;  %5617 = vmatprep.mubr.msk.bf16.mxu1 %vm6030_vm2, %v6029_v3 }
 0x64c   : > { %5615 = vmatprep.subr.bf16.mxu1 %v6029_v3 }
 0x64f   : > { %5616 = vmatpush3.bf16.msra.mxu1 %v5749_v11 }
 0x650   : > { %5627 = vmatprep.subr.bf16.mxu1 %v6029_v3 }
 0x652   : > { %v5911_v15 = vpop.eup %5910 }
 0x653   : > { %v2270_v58 = vmul.f32 %v5911_v15, %v2262_v23 }
 0x655   : > { %v2277_v42 = vmul.f32 %v5094_v36, %v2270_v58 }
 0x657   : > { %v6559_v4 = vadd.f32 %v5095_v19, %v2277_v42 }
 0x659   : > { %v2285_v44 = vpack.c.bf16 %v6559_v4, %v6559_v4 }
 0x65b   : > { %5618 = vmatmul.mubr.msk.bf16.vlgmr.msra.gmra.mrb[24].mxu1 %vm605_vm3, %v2285_v44 }
 0x65c   : > { %5629 = vmatprep.mubr.msk.bf16.mxu1 %vm6030_vm2, %v6029_v3 }
 0x688   : > { %v1869_v45 = vpop.f32.mrb[16].mxu1 }
 0x689   : > { %v2052_v46 = vadd.f32 %v1869_v45, %v6372_v39  ;;  %v5593_v49 = vpop.f32.mrb[17].mxu1 }
 0x68a   : > { %v1872_v51 = vpop.f32.mrb[18].mxu1 }
 0x68b   : > { %2056 = vst.msk [vmem:[#allocation2] sm:$0xff] %vm1091_vm4, %v2052_v46  ;;  %v5594_v52 = vpop.f32.mrb[19].mxu1 }
 0x71d   : > { %v1987_v40 = vpop.f32.mrb[20].mxu1 }
 0x71e   : > { %v2054_v50 = vadd.f32 %v1987_v40, %v6426_v25  ;;  %v5605_v53 = vpop.f32.mrb[21].mxu1 }
 0x71f   : > { %v1990_v54 = vpop.f32.mrb[22].mxu1 }
 0x720   : > { %2058 = vst.msk [vmem:[#allocation2 + $0x10] sm:$0xff] %vm1091_vm4, %v2054_v50  ;;  %v5606_v55 = vpop.f32.mrb[23].mxu1 }
 0x72e   : > { %v2346_v43 = vpop.f32.mrb[24].mxu1 }
 0x72f   : > { %v2347_v59 = vadd.f32 %v5096_v57, %v2346_v43  ;;  %v5619_v39 = vpop.f32.mrb[25].mxu1 }
 0x730   : > { %v2349_v56 = vpop.f32.mrb[26].mxu1 }
 0x731   : > { %2356 = vrot.lane.b32.xlu1 %v2347_v59, %s6033_s18  ;;  %2353 = vrot.lane.b32.xlu0 %v2347_v59, %s6032_s20  ;;  %v5620_v60 = vpop.f32.mrb[27].mxu1  ;;  %s4961_s20 = sshll.u32 %s551_s30, 4  ;;  %s7275_s20 = int_to_ptr.vmem [resolvable:$true] %s4961_s20 }
 0x732   : > { %p5939_p5 = scmp.lt.s32.totalorder %s7275_s20, %s5937_s27 }
 0x735   : > { %2359 = vrot.lane.b32.xlu0 %v2347_v59, %s6031_s19 }
 0x7a3   : > { %v2357_v25 = vpop.permute.xlu1 %2356  ;;  %v2354_v61 = vpop.permute.xlu0 %2353 }
 0x7a4   : > { %v2362_v62 = vcombine.low %v2347_v59, %v2357_v25  ;;  %v2363_v1 = vcombine.high %v2347_v59, %v2357_v25 }
 0x7a6   : > { %v2370_v6 = vrot.slane %v2362_v62, %v6258_v22  ;;  %v2377_v7 = vrot.slane %v2363_v1, %v6258_v22 }
 0x7a7   : > { %v2360_v2 = vpop.permute.xlu0 %2359 }
 0x7a8   : > { %v2378_v14 = vcombine.low %v2354_v61, %v2360_v2  ;;  %v2379_v48 = vcombine.high %v2354_v61, %v2360_v2 }
 0x7aa   : > { %v2386_v10 = vrot.slane %v2378_v14, %v6258_v22  ;;  %v2393_v12 = vrot.slane %v2379_v48, %v6258_v22 }
 0x7ac   : > { %v2394_v13 = vcombine.low %v2370_v6, %v2386_v10  ;;  %v2395_v63 = vcombine.high %v2370_v6, %v2386_v10  ;;  %v2410_v21 = vcombine.low %v2377_v7, %v2393_v12  ;;  %v2411_v26 = vcombine.high %v2377_v7, %v2393_v12  ;;  %v2551_v10 = vld [vmem:[%s6211_s23 + $0x8] sm:$0xff] }
 0x7ad   : > { %v2555_v12 = vpack.c.bf16 %v2551_v10, %v2551_v10 }
 0x7ae   : > { %v2402_v27 = vrot.slane %v2394_v13, %v6271_v28  ;;  %v2409_v20 = vrot.slane %v2395_v63, %v6271_v28  ;;  %v2418_v5 = vrot.slane %v2410_v21, %v6271_v28  ;;  %v2425_v30 = vrot.slane %v2411_v26, %v6271_v28 }
 0x7af   : > { %v2608_v13 = vsel %vm1379_vm6, %v2555_v12, 0 }
 0x7b0   : > { %v2430_v8 = vcombine.low %v2402_v27, %v2409_v20  ;;  %v5100_v33 = vcombine.high %v2402_v27, %v2409_v20  ;;  %v2446_v34 = vcombine.low %v2418_v5, %v2425_v30  ;;  %v5101_v23 = vcombine.high %v2418_v5, %v2425_v30  ;;  %5628 = vmatpush3.bf16.msra.mxu1 %v2608_v13  ;;  %v2553_v20 = vld [vmem:[%s6211_s23 + $0x18] sm:$0xff] }
 0x7b1   : > { %5639 = vmatprep.subr.bf16.mxu1 %v6029_v3 }
 0x7b2   : > { %v2437_v35 = vrot.slane %v2430_v8, %v6258_v22  ;;  %v2445_v29 = vrot.slane %v5100_v33, %v6258_v22  ;;  %v2453_v37 = vrot.slane %v2446_v34, %v6258_v22  ;;  %v2461_v0 = vrot.slane %v5101_v23, %v6258_v22  ;;  %v2550_v8 = vld [vmem:[%s6211_s23] sm:$0xff] }
 0x7b3   : > { %v2557_v34 = vpack.c.bf16 %v2553_v20, %v2553_v20 }
 0x7b4   : > { %v2462_v17 = vcombine.low %v2437_v35, %v2445_v29  ;;  %v2478_v38 = vcombine.low %v2453_v37, %v2461_v0  ;;  %v2463_v31 = vcombine.high %v2437_v35, %v2445_v29  ;;  %v2479_v41 = vcombine.high %v2453_v37, %v2461_v0 }
 0x7b5   : > { %v2700_v29 = vsel %vm1379_vm6, %v2557_v34, 0 }
 0x7b6   : > { %v2470_v11 = vrot.slane %v2462_v17, %v6271_v28  ;;  %v2486_v15 = vrot.slane %v2478_v38, %v6271_v28  ;;  %v2477_v36 = vrot.slane %v2463_v31, %v6271_v28  ;;  %v2493_v58 = vrot.slane %v2479_v41, %v6271_v28  ;;  %v2552_v31 = vld [vmem:[%s6211_s23 + $0x10] sm:$0xff]  ;;  %s7384_s23 = sld [smem:[#allocation21_spill]] }
 0x7b8   : > { %v2495_v19 = vcombine.high %v2470_v11, %v2486_v15  ;;  %v2494_v42 = vcombine.low %v2470_v11, %v2486_v15  ;;  %v2496_v46 = vcombine.low %v2477_v36, %v2493_v58  ;;  %v2497_v49 = vcombine.high %v2477_v36, %v2493_v58 }
 0x7b9   : > { %v2556_v15 = vpack.c.bf16 %v2552_v31, %v2552_v31 }
 0x7ba   : > { %v2501_v44 = vsel %vm1091_vm4, %v2495_v19, -inf  ;;  %v2498_v45 = vsel %vm1091_vm4, %v2494_v42, -inf  ;;  %v2504_v51 = vsel %vm1091_vm4, %v2496_v46, -inf  ;;  %v2507_v52 = vsel %vm1091_vm4, %v2497_v49, -inf }
 0x7bb   : > { %2502 = vmax.xlane.f32.xlu0 %v2501_v44  ;;  %2499 = vmax.xlane.f32.xlu1 %v2498_v45  ;;  %v2654_v44 = vsel %vm1379_vm6, %v2556_v15, 0 }
 0x7bf   : > { %2505 = vmax.xlane.f32.xlu0 %v2504_v51  ;;  %2508 = vmax.xlane.f32.xlu1 %v2507_v52 }
 0x848   : > { %v2503_v40 = vpop.xlane.xlu0 %2502  ;;  %v2500_v50 = vpop.xlane.xlu1 %2499 }
 0x849   : > { %v2511_v53 = vsub.f32 %v2495_v19, %v2503_v40  ;;  %v2510_v54 = vsub.f32 %v2494_v42, %v2500_v50 }
 0x84b   : > { %v2516_v55 = vmul.f32 1.442695, %v2511_v53  ;;  %v2514_v57 = vmul.f32 1.442695, %v2510_v54 }
 0x84c   : > { %v2506_v43 = vpop.xlane.xlu0 %2505  ;;  %v2509_v59 = vpop.xlane.xlu1 %2508 }
 0x84d   : > { %5912 = vpow2.f32 %v2516_v55  ;;  %v2512_v39 = vsub.f32 %v2496_v46, %v2506_v43  ;;  %v2513_v56 = vsub.f32 %v2497_v49, %v2509_v59 }
 0x84e   : > { %5914 = vpow2.f32 %v2514_v57 }
 0x84f   : > { %v2518_v60 = vmul.f32 1.442695, %v2512_v39  ;;  %v2520_v25 = vmul.f32 1.442695, %v2513_v56 }
 0x851   : > { %5916 = vpow2.f32 %v2518_v60 }
 0x852   : > { %5918 = vpow2.f32 %v2520_v25 }
 0x857   : > { %v5913_v61 = vpop.eup %5912 }
 0x858   : > { %v5915_v62 = vpop.eup %5914  ;;  %v2525_v1 = vsel %vm1091_vm4, %v5913_v61, 0.0 }
 0x859   : > { %2526 = vadd.xlane.f32.xlu1 %v2525_v1  ;;  %v2522_v2 = vsel %vm1091_vm4, %v5915_v62, 0.0 }
 0x85a   : > { %2523 = vadd.xlane.f32.xlu0 %v2522_v2 }
 0x85b   : > { %v5917_v14 = vpop.eup %5916 }
 0x85c   : > { %v5919_v48 = vpop.eup %5918  ;;  %v2528_v6 = vsel %vm1091_vm4, %v5917_v14, 0.0 }
 0x85d   : > { %v2531_v7 = vsel %vm1091_vm4, %v5919_v48, 0.0 }
 0x85e   : > { %2529 = vadd.xlane.f32.xlu0 %v2528_v6  ;;  %2532 = vadd.xlane.f32.xlu1 %v2531_v7 }
 0x88b   : > { %1875 = vxpose.xlu0.c.b16.start.end [1/1] (short) (narrow) %v6337_v24, 16  ;;  %1993 = vxpose.xlu1.c.b16.start.end [1/1] (short) (narrow) %v6362_v16, 16  ;;  %v2554_v16 = vpack.c.bf16 %v2550_v8, %v2550_v8 }
 0x8e6   : > { %v2527_v63 = vpop.xlane.xlu1 %2526 }
 0x8e7   : > { %v2524_v21 = vpop.xlane.xlu0 %2523  ;;  %5920 = vrcp.f32 %v2527_v63 }
 0x8e8   : > { %5922 = vrcp.f32 %v2524_v21 }
 0x8eb   : > { %v2533_v26 = vpop.xlane.xlu1 %2532  ;;  %v2530_v27 = vpop.xlane.xlu0 %2529 }
 0x8ec   : > { %5924 = vrcp.f32 %v2533_v26 }
 0x8ed   : > { %5926 = vrcp.f32 %v2530_v27 }
 0x8f1   : > { %v5921_v5 = vpop.eup %5920  ;;  %v1883_v30 = vpop.trf.xlu0 }
 0x8f2   : > { %v2539_v33 = vmul.f32 %v5921_v5, %v5913_v61  ;;  %5598 = vmatmul.mubr.msk.bf16.vlgmr.msra.gmra.mrb[20].mxu0 %vm1091_vm4, %v1883_v30  ;;  %v5923_v23 = vpop.eup %5922  ;;  %v2001_v0 = vpop.trf.xlu1 }
 0x8f3   : > { %5608 = vmatpush3.bf16.msra.mxu0 %v6478_v9  ;;  %5609 = vmatprep.mubr.msk.bf16.mxu0 %vm6030_vm2, %v6029_v3  ;;  %v2538_v17 = vmul.f32 %v5923_v23, %v5915_v62  ;;  %v2562_v9 = vsel %vm1379_vm6, %v2554_v16, 0 }
 0x8f4   : > { %v2543_v24 = vmul.f32 0.35355338, %v2539_v33  ;;  %5621 = vmatprep.subr.bf16.mxu0 %v6029_v3 }
 0x8f5   : > { %v2542_v11 = vmul.f32 0.35355338, %v2538_v17 }
 0x8f6   : > { %v2547_v35 = vpack.c.bf16 %v2543_v24, %v2543_v24  ;;  %v5925_v37 = vpop.eup %5924 }
 0x8f7   : > { %v2541_v38 = vmul.f32 %v5925_v37, %v5919_v48  ;;  %v5927_v36 = vpop.eup %5926  ;;  %v2546_v42 = vpack.c.bf16 %v2542_v11, %v2542_v11 }
 0x8f8   : > { %5630 = vmatmul.mubr.msk.bf16.vlgmr.msra.gmra.mrb[28].mxu1 %vm1091_vm4, %v2547_v35  ;;  %v2540_v19 = vmul.f32 %v5927_v36, %v5917_v14 }
 0x8f9   : > { %5640 = vmatpush3.bf16.msra.mxu1 %v2700_v29  ;;  %5641 = vmatprep.mubr.msk.bf16.mxu1 %vm6030_vm2, %v6029_v3  ;;  %v2545_v41 = vmul.f32 0.35355338, %v2541_v38 }
 0x8fa   : > { %5610 = vmatmul.mubr.msk.bf16.vlgmr.msra.gmra.mrb[24].mxu0 %vm1091_vm4, %v2001_v0  ;;  %v2544_v45 = vmul.f32 0.35355338, %v2540_v19 }
 0x8fb   : > { %5622 = vmatpush3.bf16.msra.mxu0 %v2562_v9  ;;  %5623 = vmatprep.mubr.msk.bf16.mxu0 %vm6030_vm2, %v6029_v3  ;;  %v2549_v58 = vpack.c.bf16 %v2545_v41, %v2545_v41 }
 0x8fc   : > { %5633 = vmatprep.subr.bf16.mxu0 %v6029_v3  ;;  %v2548_v46 = vpack.c.bf16 %v2544_v45, %v2544_v45 }
 0x900   : > { %5642 = vmatmul.mubr.msk.bf16.vlgmr.msra.gmra.mrb[32].mxu1 %vm1091_vm4, %v2549_v58 }
 0x902   : > { %5624 = vmatmul.mubr.msk.bf16.vlgmr.msra.gmra.mrb[28].mxu0 %vm1091_vm4, %v2546_v42 }
 0x903   : > { %5634 = vmatpush3.bf16.msra.mxu0 %v2654_v44  ;;  %5635 = vmatprep.mubr.msk.bf16.mxu0 %vm6030_vm2, %v6029_v3 }
 0x90a   : > { %5636 = vmatmul.mubr.msk.bf16.vlgmr.msra.gmra.mrb[32].mxu0 %vm1091_vm4, %v2548_v46 }
 0x9c5   : > { %v1928_v49 = vpop.f32.mrb[20].mxu0 }
 0x9c6   : > { %v2053_v51 = vadd.f32 %v1928_v49, %v6380_v47  ;;  %v5599_v52 = vpop.f32.mrb[21].mxu0 }
 0x9c7   : > { %v1931_v40 = vpop.f32.mrb[22].mxu0 }
 0x9c8   : > { %2057 = vst.msk [vmem:[#allocation2 + $0x8] sm:$0xff] %vm1091_vm4, %v2053_v51  ;;  %v5600_v50 = vpop.f32.mrb[23].mxu0 }
 0x9cb   : > { %v2644_v53 = vpop.f32.mrb[28].mxu1 }
 0x9cc   : > { %v5631_v54 = vpop.f32.mrb[29].mxu1 }
 0x9cd   : > { %v2046_v55 = vpop.f32.mrb[24].mxu0  ;;  %v2647_v57 = vpop.f32.mrb[30].mxu1 }
 0x9ce   : > { %v2055_v43 = vadd.f32 %v2046_v55, %v6428_v32  ;;  %v5611_v59 = vpop.f32.mrb[25].mxu0  ;;  %v5632_v3 = vpop.f32.mrb[31].mxu1 }
 0x9cf   : > { %v2049_v39 = vpop.f32.mrb[26].mxu0 }
 0x9d0   : > { %2059 = vst.msk [vmem:[#allocation2 + $0x18] sm:$0xff] %vm1091_vm4, %v2055_v43  ;;  %v5612_v56 = vpop.f32.mrb[27].mxu0 }
 0x9d1   : > { %v2924_v56 = vld [vmem:[%s7341_s10] sm:$0xff] }
 0x9d3   : > { %v2736_v60 = vpop.f32.mrb[32].mxu1 }
 0x9d4   : > { %v2758_v25 = vcombine.low %v2644_v53, %v2736_v60  ;;  %v2759_v47 = vcombine.high %v2644_v53, %v2736_v60  ;;  %v5643_v61 = vpop.f32.mrb[33].mxu1  ;;  %v2932_v60 = vld [vmem:[%s7341_s10 + $0x40] sm:$0xff] }
 0x9d5   : > { %v2598_v62 = vpop.f32.mrb[28].mxu0  ;;  %v2739_v1 = vpop.f32.mrb[34].mxu1  ;;  %v5110_v61 = vcombine.low %v2924_v56, %v2932_v60 }
 0x9d6   : > { %v5625_v2 = vpop.f32.mrb[29].mxu0  ;;  %v5644_v14 = vpop.f32.mrb[35].mxu1  ;;  %v2766_v63 = vrot.slane %v2758_v25, %v6258_v22  ;;  %v2773_v21 = vrot.slane %v2759_v47, %v6258_v22  ;;  %v5111_v25 = vcombine.high %v2924_v56, %v2932_v60  ;;  %v2933_v47 = vld [vmem:[%s7341_s10 + $0x48] sm:$0xff] }
 0x9d7   : > { %v2601_v48 = vpop.f32.mrb[30].mxu0  ;;  %v2940_v2 = vld [vmem:[%s7341_s10 + $0x80] sm:$0xff] }
 0x9d8   : > { %v5626_v6 = vpop.f32.mrb[31].mxu0  ;;  %3203 = vmatprep.subr.bf16.mxu0 %v5111_v25  ;;  %v2948_v14 = vld [vmem:[%s7341_s10 + $0xc0] sm:$0xff]  ;;  %v2941_v48 = vld [vmem:[%s7341_s10 + $0x88] sm:$0xff]  ;;  %v2954_v25 = vld [vmem:[%s7341_s10 + $0xf0] sm:$0xff] }
 0x9d9   : > { %3204 = vmatpush1.bf16.msra.mxu0 %v5110_v61  ;;  %v5127_v6 = vcombine.high %v2940_v2, %v2948_v14  ;;  %v2955_v61 = vld [vmem:[%s7341_s10 + $0xf8] sm:$0xff] }
 0x9db   : > { %3205 = vmatprep.subr.bf16.mxu0 %v5127_v6 }
 0x9dd   : > { %v2690_v7 = vpop.f32.mrb[32].mxu0 }
 0x9de   : > { %v2742_v10 = vcombine.low %v2598_v62, %v2690_v7  ;;  %v2743_v12 = vcombine.high %v2598_v62, %v2690_v7  ;;  %v5637_v32 = vpop.f32.mrb[33].mxu0  ;;  %v2949_v7 = vld [vmem:[%s7341_s10 + $0xc8] sm:$0xff] }
 0x9df   : > { %v2693_v13 = vpop.f32.mrb[34].mxu0  ;;  %v5129_v32 = vcombine.high %v2941_v48, %v2949_v7 }
 0x9e0   : > { %v2750_v26 = vrot.slane %v2742_v10, %v6258_v22  ;;  %v2757_v27 = vrot.slane %v2743_v12, %v6258_v22  ;;  %v5638_v20 = vpop.f32.mrb[35].mxu0  ;;  %v5126_v10 = vcombine.low %v2940_v2, %v2948_v14  ;;  %v5128_v12 = vcombine.low %v2941_v48, %v2949_v7  ;;  %v2926_v13 = vld [vmem:[%s7341_s10 + $0x10] sm:$0xff]  ;;  %v5750_v7 = vld [vmem:[%s7343_s12 + $0x40] sm:$0xff]  }
 0x9e1   : > { %v2935_v20 = vld [vmem:[%s7341_s10 + $0x58] sm:$0xff] }
 0x9e2   : > { %v2774_v5 = vcombine.low %v2750_v26, %v2766_v63  ;;  %v2775_v30 = vcombine.high %v2750_v26, %v2766_v63  ;;  %v2790_v8 = vcombine.low %v2757_v27, %v2773_v21  ;;  %v2791_v33 = vcombine.high %v2757_v27, %v2773_v21  ;;  %3206 = vmatpush1.bf16.msra.mxu0 %v5126_v10  ;;  %v2934_v63 = vld [vmem:[%s7341_s10 + $0x50] sm:$0xff]  ;;  %v2927_v21 = vld [vmem:[%s7341_s10 + $0x18] sm:$0xff]  ;;  %v5751_v10 = vld [vmem:[%s7343_s12 + $0xc0] sm:$0xff]  }
 0x9e3   : > { %v6041_v26 = vmov 0   ;;  %v5115_v27 = vcombine.high %v2926_v13, %v2934_v63 }
 0x9e4   : > { %v2782_v34 = vrot.slane %v2774_v5, %v6271_v28  ;;  %v2789_v24 = vrot.slane %v2775_v30, %v6271_v28  ;;  %v2798_v16 = vrot.slane %v2790_v8, %v6271_v28  ;;  %v2805_v23 = vrot.slane %v2791_v33, %v6271_v28  ;;  %3235 = vmatprep.mubr.bf16.mxu0 %v6041_v26 }
 0x9e5   : > { %3276 = vmatprep.mubr.bf16.mxu1 %v6041_v26  ;;  %v5114_v5 = vcombine.low %v2926_v13, %v2934_v63  ;;  %v5116_v30 = vcombine.low %v2927_v21, %v2935_v20  ;;  %v5117_v8 = vcombine.high %v2927_v21, %v2935_v20  ;;  %3285 = vmatprep.subr.bf16.mxu0 %v5115_v27  ;;  %v5754_v13 = vld [vmem:[%s7343_s12 + $0x48] sm:$0xff]   ;;  %v5758_v27 = vld [vmem:[%s7343_s12 + $0x50] sm:$0xff]  }
 0x9e6   : > { %v2810_v35 = vcombine.low %v2782_v34, %v2789_v24  ;;  %v5106_v29 = vcombine.high %v2782_v34, %v2789_v24  ;;  %v2826_v37 = vcombine.low %v2798_v16, %v2805_v23  ;;  %v5107_v0 = vcombine.high %v2798_v16, %v2805_v23  ;;  %v5108_v23 = vld [vmem:[%s7339_s8] ss:$0 sm:$0xff]  ;;  %v5755_v63 = vld [vmem:[%s7343_s12 + $0xc8] sm:$0xff]   ;;  %v5759_v20 = vld [vmem:[%s7343_s12 + $0xd0] sm:$0xff]  }
 0x9e7   : > { %v5756_v21 = vld [vmem:[%s7343_s12 + $0x8] sm:$0xff]  }
 0x9e8   : > { %v2817_v17 = vrot.slane %v2810_v35, %v6258_v22  ;;  %v2825_v38 = vrot.slane %v5106_v29, %v6258_v22  ;;  %v2833_v9 = vrot.slane %v2826_v37, %v6258_v22  ;;  %v2841_v31 = vrot.slane %v5107_v0, %v6258_v22  ;;  %v5109_v29 = vld [vmem:[%s7340_s9] ss:$0 sm:$0xff]  ;;  %v2942_v0 = vld [vmem:[%s7341_s10 + $0x90] sm:$0xff] }
 0x9ea   : > { %v2843_v41 = vcombine.high %v2817_v17, %v2825_v38  ;;  %v2859_v11 = vcombine.high %v2833_v9, %v2841_v31  ;;  %v2842_v15 = vcombine.low %v2817_v17, %v2825_v38  ;;  %v2858_v36 = vcombine.low %v2833_v9, %v2841_v31  ;;  %v2950_v17 = vld [vmem:[%s7341_s10 + $0xd0] sm:$0xff]  ;;  %v2943_v38 = vld [vmem:[%s7341_s10 + $0x98] sm:$0xff] }
 0x9eb   : > { %v2951_v9 = vld [vmem:[%s7341_s10 + $0xd8] sm:$0xff] }
 0x9ec   : > { %v2857_v58 = vrot.slane %v2843_v41, %v6271_v28  ;;  %v2873_v19 = vrot.slane %v2859_v11, %v6271_v28  ;;  %v2850_v42 = vrot.slane %v2842_v15, %v6271_v28  ;;  %v2866_v44 = vrot.slane %v2858_v36, %v6271_v28  ;;  %v2928_v36 = vld [vmem:[%s7341_s10 + $0x20] sm:$0xff] }
 0x9ed   : > { %v5131_v11 = vcombine.high %v2942_v0, %v2950_v17  ;;  %v5133_v15 = vcombine.high %v2943_v38, %v2951_v9 }
 0x9ee   : > { %v2876_v45 = vcombine.low %v2857_v58, %v2873_v19  ;;  %v2875_v46 = vcombine.high %v2850_v42, %v2866_v44  ;;  %v2877_v49 = vcombine.high %v2857_v58, %v2873_v19  ;;  %v2874_v51 = vcombine.low %v2850_v42, %v2866_v44  ;;  %v2936_v58 = vld [vmem:[%s7341_s10 + $0x60] sm:$0xff]  ;;  %v2929_v19 = vld [vmem:[%s7341_s10 + $0x28] sm:$0xff] }
 0x9ef   : > { %v2937_v42 = vld [vmem:[%s7341_s10 + $0x68] sm:$0xff]  ;;  %v5130_v44 = vcombine.low %v2942_v0, %v2950_v17 }
 0x9f0   : > { %2883 = vrot.lane.b32.xlu1 %v2876_v45, %s6038_s16  ;;  %2879 = vrot.lane.b32.xlu0 %v2875_v46, %s6039_s21  ;;  %v5132_v45 = vcombine.low %v2943_v38, %v2951_v9  ;;  %v5119_v46 = vcombine.high %v2928_v36, %v2936_v58  ;;  %v5771_v0 = vld [vmem:[%s7343_s12 + $0xe8] sm:$0xff]   ;;  %v5774_v9 = vld [vmem:[%s7343_s12 + $0x70] sm:$0xff]   ;;  %s5282_s21 = sshll.u32 %s6014_s25, 1  ;;  %s7385_s25 = sld [smem:[#allocation22_spill]] }
 0x9f1   : > { %v5772_v17 = vld [vmem:[%s7343_s12 + $0x28] sm:$0xff]   ;;  %s4957_s29 = sadd.s32 %s6010_s24, %s5282_s21  ;;  %s7387_s24 = sand.u32 1, %s6002_s22  }
 0x9f2   : > { %v5773_v38 = vld [vmem:[%s7343_s12 + $0xa8] sm:$0xff]   ;;  %s5283_s19 = sshll.u32 %s4957_s29, 7  ;;  %s4946_s21 = scalar_lea.sflag [#allocation5], %s7387_s24 }
 0x9f3   : > { %s5932_s29 = scalar_lea.vmem %s7275_s20, 128 }
 0x9f4   : > { %2887 = vrot.lane.b32.xlu1 %v2877_v49, %s6040_s14  ;;  %v5121_v49 = vcombine.high %v2929_v19, %v2937_v42  ;;  %p5933_p1 = scmp.ne.s32.totalorder %s7275_s20, %s5932_s29 }
 0x9f6   : > { %s7386_s1 = smov %s7385_s25  ;;  %s7273_s2 = scalar_lea.hbm %s7385_s25, %s5283_s19 }
 0x9f7   : > { %p5934_p2 = pnand %p5933_p1, %p6179_p3 }
 0x9f9   : > { %p5935_p4 = pneg %p5934_p2 }
 0xa62   : > { %v2884_v22 = vpop.permute.xlu1 %2883  ;;  %v2880_v52 = vpop.permute.xlu0 %2879 }
 0xa63   : > { %v2890_v40 = vsel %vm1091_vm4, %v2874_v51, %v2880_v52  ;;  %v2944_v51 = vld [vmem:[%s7341_s10 + $0xa0] sm:$0xff]  ;;  %v2945_v52 = vld [vmem:[%s7341_s10 + $0xa8] sm:$0xff] }
 0xa64   : > { %v2891_v53 = vsel %vm2250_vm8, %v2890_v40, %v2884_v22  ;;  %v2952_v22 = vld [vmem:[%s7341_s10 + $0xe0] sm:$0xff]  ;;  %v2953_v40 = vld [vmem:[%s7341_s10 + $0xe8] sm:$0xff] }
 0xa66   : > { %v2888_v50 = vpop.permute.xlu1 %2887 }
 0xa67   : > { %v2892_v54 = vsel %vm2252_vm9, %v2891_v53, %v2888_v50  ;;  %v5118_v50 = vcombine.low %v2928_v36, %v2936_v58  ;;  %v5120_v53 = vcombine.low %v2929_v19, %v2937_v42  ;;  %v5778_v36 = vld [vmem:[%s7343_s12 + $0x78] sm:$0xff]  }
 0xa68   : > { %v2893_v28 = vadd.f32 %v2892_v54, %v6559_v4  ;;  %v2925_v4 = vld [vmem:[%s7341_s10 + $0x8] sm:$0xff]  ;;  %v5135_v54 = vcombine.high %v2944_v51, %v2952_v22  ;;  %v5779_v58 = vld [vmem:[%s7343_s12 + $0xf8] sm:$0xff]  }
 0xa69   : > { %v5112_v62 = vcombine.low %v2925_v4, %v2933_v47  ;;  %v5113_v1 = vcombine.high %v2925_v4, %v2933_v47  ;;  %v2946_v4 = vld [vmem:[%s7341_s10 + $0xb0] sm:$0xff]  ;;  %v2947_v47 = vld [vmem:[%s7341_s10 + $0xb8] sm:$0xff] }
 0xa6a   : > { %v2896_v55 = vsel %vm605_vm3, %v2893_v28, 0.0  ;;  %v5139_v2 = vcombine.high %v2946_v4, %v2954_v25  ;;  %v5141_v14 = vcombine.high %v2947_v47, %v2955_v61  ;;  %v5138_v48 = vcombine.low %v2946_v4, %v2954_v25  ;;  %v5780_v19 = vld [vmem:[%s7343_s12 + $0x38] sm:$0xff]  }
 0xa6b   : > { %2897 = vadd.xlane.f32.xlu0 %v2896_v55  ;;  %3244 = vmatprep.subr.bf16.mxu1 %v5113_v1  ;;  %v2930_v55 = vld [vmem:[%s7341_s10 + $0x30] sm:$0xff]  ;;  %v5140_v6 = vcombine.low %v2947_v47, %v2955_v61  ;;  %v5781_v42 = vld [vmem:[%s7343_s12 + $0xb8] sm:$0xff]  }
 0xa6c   : > { %3245 = vmatpush1.bf16.msra.mxu1 %v5112_v62 }
 0xa6d   : > { %3246 = vmatprep.subr.bf16.mxu1 %v5129_v32  ;;  %v5753_v32 = vld [vmem:[%s7343_s12 + $0x80] sm:$0xff]  }
 0xa70   : > { %3247 = vmatpush1.bf16.msra.mxu1 %v5128_v12  ;;  %v5752_v12 = vld [vmem:[%s7343_s12] sm:$0xff]  }
 0xa71   : > { %3326 = vmatprep.subr.bf16.mxu1 %v5117_v8  ;;  %v5762_v8 = vld [vmem:[%s7343_s12 + $0x58] sm:$0xff]  }
 0xaf8   : > { %v2898_v57 = vpop.xlane.xlu0 %2897 }
 0xaf9   : > { %v2899_v43 = vmul.f32 0.03125, %v2898_v57  ;;  %v2938_v57 = vld [vmem:[%s7341_s10 + $0x70] sm:$0xff] }
 0xafa   : > { %v5123_v56 = vcombine.high %v2930_v55, %v2938_v57  ;;  %v5122_v62 = vcombine.low %v2930_v55, %v2938_v57 }
 0xafb   : > { %v2900_v59 = vsub.f32 %v2893_v28, %v2899_v43  ;;  %v5137_v28 = vcombine.high %v2945_v52, %v2953_v40  ;;  %v2931_v43 = vld [vmem:[%s7341_s10 + $0x38] sm:$0xff] }
 0xafd   : > { %v2901_v3 = vmul.f32 %v2900_v59, %v2900_v59 }
 0xaff   : > { %v2902_v39 = vsel %vm605_vm3, %v2901_v3, 0.0  ;;  %v5134_v3 = vcombine.low %v2944_v51, %v2952_v22  ;;  %v2962_v22 = vsub.s32 0, %v6251_v18 }
 0xb00   : > { %2903 = vadd.xlane.f32.xlu1 %v2902_v39  ;;  %v5136_v39 = vcombine.low %v2945_v52, %v2953_v40  ;;  %v2970_v52 = vsub.s32 2, %v6251_v18  ;;  %v6907_v40 = vld [vmem:[%s7342_s11] sm:$0xff] }
 0xb8d   : > { %v2904_v33 = vpop.xlane.xlu1 %2903 }
 0xb8e   : > { %v2905_v34 = vmul.f32 0.03125, %v2904_v33  ;;  %v5763_v33 = vld [vmem:[%s7343_s12 + $0xd8] sm:$0xff]  }
 0xb90   : > { %v2906_v24 = vadd.f32 1e-05, %v2905_v34  ;;  %v5764_v34 = vld [vmem:[%s7343_s12 + $0x18] sm:$0xff]  }
 0xb92   : > { %5928 = vrsqrt.f32 %v2906_v24  ;;  %v5765_v24 = vld [vmem:[%s7343_s12 + $0x98] sm:$0xff]  }
 0xb9c   : > { %v5929_v16 = vpop.eup %5928 }
 0xb9d   : > { %v2908_v35 = vmul.f32 %v5929_v16, %v2900_v59  ;;  %v2939_v59 = vld [vmem:[%s7341_s10 + $0x78] sm:$0xff]  ;;  %v5766_v16 = vld [vmem:[%s7343_s12 + $0x60] sm:$0xff]  }
 0xb9e   : > { %v5125_v60 = vcombine.high %v2931_v43, %v2939_v59  ;;  %v5124_v1 = vcombine.low %v2931_v43, %v2939_v59 }
 0xb9f   : > { %v2915_v37 = vmul.f32 %v5108_v23, %v2908_v35  ;;  %v5767_v23 = vld [vmem:[%s7343_s12 + $0xe0] sm:$0xff]  }
 0xba0   : > { %v5768_v35 = vld [vmem:[%s7343_s12 + $0x20] sm:$0xff]  }
 0xba1   : > { %v6713_v31 = vadd.f32 %v5109_v29, %v2915_v37  ;;  %v5769_v29 = vld [vmem:[%s7343_s12 + $0xa0] sm:$0xff]   ;;  %v5770_v37 = vld [vmem:[%s7343_s12 + $0x68] sm:$0xff]  }
 0xba3   : > { %v6717_v41 = vpack.c.bf16 %v6713_v31, %v6713_v31 }
 0xba5   : > { %5142 = vmatmul.mubr.msk.bf16.vlgmr.msra.gmra.mrb[36].mxu0 %vm605_vm3, %v6717_v41  ;;  %5143 = vmatmul.mubr.msk.bf16.vlgmr.msra.gmra.mrb[36].mxu1 %vm605_vm3, %v6717_v41 }
 0xba6   : > { %3286 = vmatpush1.bf16.msra.mxu0 %v5114_v5  ;;  %3327 = vmatpush1.bf16.msra.mxu1 %v5116_v30  ;;  %v5760_v5 = vld [vmem:[%s7343_s12 + $0x10] sm:$0xff]  }
 0xba7   : > { %3287 = vmatprep.subr.bf16.mxu0 %v5131_v11  ;;  %3328 = vmatprep.subr.bf16.mxu1 %v5133_v15  ;;  %v5761_v30 = vld [vmem:[%s7343_s12 + $0x90] sm:$0xff]  }
 0xba8   : > { %3317 = vmatprep.mubr.bf16.mxu0 %v6041_v26  ;;  %3358 = vmatprep.mubr.bf16.mxu1 %v6041_v26  ;;  %v5776_v11 = vld [vmem:[%s7343_s12 + $0x30] sm:$0xff]  }
 0xba9   : > { %v5777_v15 = vld [vmem:[%s7343_s12 + $0xb0] sm:$0xff]  }
 0xbaa   : > { %3288 = vmatpush1.bf16.msra.mxu0 %v5130_v44  ;;  %3329 = vmatpush1.bf16.msra.mxu1 %v5132_v45  ;;  %v5782_v44 = vld [vmem:[%s7343_s12 + $0x140] sm:$0xff]  }
 0xbab   : > { %3367 = vmatprep.subr.bf16.mxu0 %v5119_v46  ;;  %3408 = vmatprep.subr.bf16.mxu1 %v5121_v49  ;;  %v5783_v45 = vld [vmem:[%s7343_s12 + $0x1c0] sm:$0xff]   ;;  %v2986_v46 = vsub.s32 6, %v6251_v18  ;;  %v6895_v49 = vld [vmem:[%s7342_s11 + $0x8] sm:$0xff] }
 0xbad   : > { %5144 = vmatmul.mubr.msk.bf16.vlgmr.msra.gmra.mrb[40].mxu0 %vm605_vm3, %v6717_v41  ;;  %5145 = vmatmul.mubr.msk.bf16.vlgmr.msra.gmra.mrb[40].mxu1 %vm605_vm3, %v6717_v41  ;;  %v6900_v51 = vrot.slane %v6895_v49, %v2986_v46 }
 0xbae   : > { %3368 = vmatpush1.bf16.msra.mxu0 %v5118_v50  ;;  %3409 = vmatpush1.bf16.msra.mxu1 %v5120_v53  ;;  %v2966_v50 = vsub.s32 1, %v6251_v18  ;;  %v2974_v53 = vsub.s32 3, %v6251_v18 }
 0xbaf   : > { %3369 = vmatprep.subr.bf16.mxu0 %v5135_v54  ;;  %3410 = vmatprep.subr.bf16.mxu1 %v5137_v28  ;;  %v2963_v54 = vrot.slane %v6907_v40, %v2962_v22  ;;  %v2971_v28 = vrot.slane %v6907_v40, %v2970_v52 }
 0xbb0   : > { %3399 = vmatprep.mubr.bf16.mxu0 %v6041_v26  ;;  %3440 = vmatprep.mubr.bf16.mxu1 %v6041_v26  ;;  %v2967_v55 = vrot.slane %v6907_v40, %v2966_v50  ;;  %v2975_v57 = vrot.slane %v6907_v40, %v2974_v53 }
 0xbb2   : > { %3370 = vmatpush1.bf16.msra.mxu0 %v5134_v3  ;;  %3411 = vmatpush1.bf16.msra.mxu1 %v5136_v39 }
 0xbb3   : > { %3449 = vmatprep.subr.bf16.mxu0 %v5123_v56  ;;  %3490 = vmatprep.subr.bf16.mxu1 %v5125_v60 }
 0xbb5   : > { %5146 = vmatmul.mubr.msk.bf16.vlgmr.msra.gmra.mrb[44].mxu0 %vm605_vm3, %v6717_v41  ;;  %5147 = vmatmul.mubr.msk.bf16.vlgmr.msra.gmra.mrb[44].mxu1 %vm605_vm3, %v6717_v41 }
 0xbb6   : > { %3450 = vmatpush1.bf16.msra.mxu0 %v5122_v62  ;;  %3491 = vmatpush1.bf16.msra.mxu1 %v5124_v1  ;;  %v2982_v62 = vsub.s32 5, %v6251_v18  ;;  %v2990_v1 = vsub.s32 7, %v6251_v18 }
 0xbb7   : > { %3451 = vmatprep.subr.bf16.mxu0 %v5139_v2  ;;  %3492 = vmatprep.subr.bf16.mxu1 %v5141_v14 }
 0xbb8   : > { %3481 = vmatprep.mubr.bf16.mxu0 %v6041_v26  ;;  %3522 = vmatprep.mubr.bf16.mxu1 %v6041_v26  ;;  %v5757_v26 = vld [vmem:[%s7343_s12 + $0x88] sm:$0xff]  }
 0xbba   : > { %3452 = vmatpush1.bf16.msra.mxu0 %v5138_v48  ;;  %3493 = vmatpush1.bf16.msra.mxu1 %v5140_v6 }
 0xbbb   : > { %5333 = vmatprep.subr.bf16.mxu0 %v5750_v7  ;;  %5355 = vmatprep.subr.bf16.mxu1 %v5751_v10 }
 0xbbd   : > { %5148 = vmatmul.mubr.msk.bf16.vlgmr.msra.gmra.mrb[48].mxu0 %vm605_vm3, %v6717_v41  ;;  %5149 = vmatmul.mubr.msk.bf16.vlgmr.msra.gmra.mrb[48].mxu1 %vm605_vm3, %v6717_v41  ;;  %v5775_v41 = vld [vmem:[%s7343_s12 + $0xf0] sm:$0xff]  }
 0xbbe   : > { %5334 = vmatpush3.bf16.msra.mxu0 %v5752_v12  ;;  %5356 = vmatpush3.bf16.msra.mxu1 %v5753_v32 }
 0xbbf   : > { %5335 = vmatprep.subr.bf16.mxu0 %v5754_v13  ;;  %5357 = vmatprep.subr.bf16.mxu1 %v5755_v63  ;;  %v2983_v13 = vrot.slane %v6907_v40, %v2982_v62  ;;  %v2991_v63 = vrot.slane %v6907_v40, %v2990_v1 }
 0xbc2   : > { %5336 = vmatpush3.bf16.msra.mxu0 %v5756_v21  ;;  %5358 = vmatpush3.bf16.msra.mxu1 %v5757_v26  ;;  %v5784_v21 = vld [vmem:[%s7343_s12 + $0x100] sm:$0xff]  }
 0xbc3   : > { %5337 = vmatprep.subr.bf16.mxu0 %v5758_v27  ;;  %5359 = vmatprep.subr.bf16.mxu1 %v5759_v20  ;;  %v5785_v26 = vld [vmem:[%s7343_s12 + $0x180] sm:$0xff]  }
 0xbc6   : > { %5338 = vmatpush3.bf16.msra.mxu0 %v5760_v5  ;;  %5360 = vmatpush3.bf16.msra.mxu1 %v5761_v30  ;;  %v5786_v5 = vld [vmem:[%s7343_s12 + $0x148] sm:$0xff]  }
 0xbc7   : > { %5339 = vmatprep.subr.bf16.mxu0 %v5762_v8  ;;  %5361 = vmatprep.subr.bf16.mxu1 %v5763_v33  ;;  %v5787_v30 = vld [vmem:[%s7343_s12 + $0x1c8] sm:$0xff]  }
 0xbca   : > { %5340 = vmatpush3.bf16.msra.mxu0 %v5764_v34  ;;  %5362 = vmatpush3.bf16.msra.mxu1 %v5765_v24 }
 0xbcb   : > { %5341 = vmatprep.subr.bf16.mxu0 %v5766_v16  ;;  %5363 = vmatprep.subr.bf16.mxu1 %v5767_v23 }
 0xbce   : > { %5342 = vmatpush3.bf16.msra.mxu0 %v5768_v35  ;;  %5364 = vmatpush3.bf16.msra.mxu1 %v5769_v29 }
 0xbcf   : > { %5343 = vmatprep.subr.bf16.mxu0 %v5770_v37  ;;  %5365 = vmatprep.subr.bf16.mxu1 %v5771_v0  ;;  %v5788_v37 = vld [vmem:[%s7343_s12 + $0x108] sm:$0xff]  }
 0xbd0   : > { %v5789_v0 = vld [vmem:[%s7343_s12 + $0x188] sm:$0xff]  }
 0xbd2   : > { %5344 = vmatpush3.bf16.msra.mxu0 %v5772_v17  ;;  %5366 = vmatpush3.bf16.msra.mxu1 %v5773_v38 }
 0xbd3   : > { %5345 = vmatprep.subr.bf16.mxu0 %v5774_v9  ;;  %5367 = vmatprep.subr.bf16.mxu1 %v5775_v41  ;;  %v5790_v9 = vld [vmem:[%s7343_s12 + $0x150] sm:$0xff]  }
 0xbd4   : > { %v5791_v41 = vld [vmem:[%s7343_s12 + $0x1d0] sm:$0xff]  }
 0xbd6   : > { %5346 = vmatpush3.bf16.msra.mxu0 %v5776_v11  ;;  %5368 = vmatpush3.bf16.msra.mxu1 %v5777_v15 }
 0xbd7   : > { %5347 = vmatprep.subr.bf16.mxu0 %v5778_v36  ;;  %5369 = vmatprep.subr.bf16.mxu1 %v5779_v58  ;;  %v2995_v36 = vrot.slane %v6895_v49, %v2962_v22  ;;  %v3003_v58 = vrot.slane %v6895_v49, %v2970_v52  ;;  %v5794_v22 = vld [vmem:[%s7343_s12 + $0x158] sm:$0xff]  }
 0xbd8   : > { %v5795_v52 = vld [vmem:[%s7343_s12 + $0x1d8] sm:$0xff]  }
 0xbda   : > { %5348 = vmatpush3.bf16.msra.mxu0 %v5780_v19  ;;  %5370 = vmatpush3.bf16.msra.mxu1 %v5781_v42 }
 0xbdb   : > { %5377 = vmatprep.subr.bf16.mxu0 %v5782_v44  ;;  %5399 = vmatprep.subr.bf16.mxu1 %v5783_v45  ;;  %v5792_v44 = vld [vmem:[%s7343_s12 + $0x110] sm:$0xff]  }
 0xbdc   : > { %v5793_v45 = vld [vmem:[%s7343_s12 + $0x190] sm:$0xff]  }
 0xc78   : > { %v3237_v43 = vpop.f32.mrb[36].mxu0  ;;  %v3278_v59 = vpop.f32.mrb[36].mxu1 }
 0xc79   : > { %v3238_v3 = vadd.f32 %v3237_v43, %v2963_v54  ;;  %v3279_v39 = vadd.f32 %v3278_v59, %v2971_v28  ;;  %v3239_v56 = vpop.f32.mrb[37].mxu0  ;;  %v3280_v60 = vpop.f32.mrb[37].mxu1 }
 0xc7a   : > { %v3240_v4 = vadd.f32 %v3239_v56, %v2967_v55  ;;  %v3281_v25 = vadd.f32 %v3280_v60, %v2975_v57  ;;  %v3241_v47 = vpop.f32.mrb[38].mxu0  ;;  %v3282_v61 = vpop.f32.mrb[38].mxu1  ;;  %v5796_v56 = vld [vmem:[%s7343_s12 + $0x118] sm:$0xff]  }
 0xc7b   : > { %v3531_v2 = vmax.f32 %v3238_v3, 0.0  ;;  %v3533_v14 = vmax.f32 %v3279_v39, 0.0  ;;  %v3242_v48 = vpop.f32.mrb[39].mxu0  ;;  %v3283_v6 = vpop.f32.mrb[39].mxu1  ;;  %v5797_v60 = vld [vmem:[%s7343_s12 + $0x198] sm:$0xff]   ;;  %v5798_v61 = vld [vmem:[%s7343_s12 + $0x160] sm:$0xff]  }
 0xc7c   : > { %v3532_v7 = vmax.f32 %v3240_v4, 0.0  ;;  %v3534_v10 = vmax.f32 %v3281_v25, 0.0  ;;  %v2978_v4 = vsub.s32 4, %v6251_v18  ;;  %v5800_v48 = vld [vmem:[%s7343_s12 + $0x120] sm:$0xff]   ;;  %v5843_v18 = vld [vmem:[%s7343_s12 + $0x2f8] sm:$0xff]  }
 0xc7d   : > { %v3547_v27 = vpack.c.bf16 %v3531_v2, %v3531_v2  ;;  %v3549_v20 = vpack.c.bf16 %v3533_v14, %v3533_v14  ;;  %v5799_v2 = vld [vmem:[%s7343_s12 + $0x1e0] sm:$0xff]  }
 0xc7e   : > { %v3548_v12 = vpack.c.bf16 %v3532_v7, %v3532_v7  ;;  %v3550_v32 = vpack.c.bf16 %v3534_v10, %v3534_v10  ;;  %v3011_v14 = vrot.slane %v6895_v49, %v2978_v4  ;;  %v5801_v6 = vld [vmem:[%s7343_s12 + $0x1a0] sm:$0xff]   ;;  %v5802_v7 = vld [vmem:[%s7343_s12 + $0x168] sm:$0xff]  }
 0xc7f   : > { %v5803_v10 = vld [vmem:[%s7343_s12 + $0x1e8] sm:$0xff]  }
 0xc80   : > { %v6939_v8 = vpop.f32.mrb[40].mxu0  ;;  %v6941_v33 = vpop.f32.mrb[40].mxu1  ;;  %4626 = vmatprep.mubr.bf16.mxu0 %v3548_v12  ;;  %4666 = vmatprep.mubr.bf16.mxu1 %v3550_v32 }
 0xc81   : > { %v3321_v34 = vpop.f32.mrb[41].mxu0  ;;  %v3362_v24 = vpop.f32.mrb[41].mxu1  ;;  %4627 = vmatmul.mubr.bf16.vlgmr.msra.gmra.mrb[52].mxu0 %v3547_v27  ;;  %4667 = vmatmul.mubr.bf16.vlgmr.msra.gmra.mrb[52].mxu1 %v3549_v20 }
 0xc82   : > { %v3322_v16 = vadd.f32 %v3321_v34, %v2983_v13  ;;  %v3363_v23 = vadd.f32 %v3362_v24, %v2991_v63  ;;  %5378 = vmatpush3.bf16.msra.mxu0 %v5784_v21  ;;  %5400 = vmatpush3.bf16.msra.mxu1 %v5785_v26  ;;  %v3323_v35 = vpop.f32.mrb[42].mxu0  ;;  %v3364_v29 = vpop.f32.mrb[42].mxu1  ;;  %v2979_v34 = vrot.slane %v6907_v40, %v2978_v4  ;;  %v5825_v4 = vld [vmem:[%s7343_s12 + $0x290] sm:$0xff]  }
 0xc83   : > { %v3324_v17 = vpop.f32.mrb[43].mxu0  ;;  %v3365_v38 = vpop.f32.mrb[43].mxu1  ;;  %5379 = vmatprep.subr.bf16.mxu0 %v5786_v5  ;;  %5401 = vmatprep.subr.bf16.mxu1 %v5787_v30  ;;  %v5804_v5 = vld [vmem:[%s7343_s12 + $0x128] sm:$0xff]   ;;  %v5807_v35 = vld [vmem:[%s7343_s12 + $0x1f0] sm:$0xff]   ;;  %v2999_v29 = vrot.slane %v6895_v49, %v2966_v50  ;;  %v5810_v50 = vld [vmem:[%s7343_s12 + $0x178] sm:$0xff]  }
 0xc84   : > { %v3536_v11 = vmax.f32 %v3322_v16, 0.0  ;;  %v3538_v15 = vmax.f32 %v3363_v23, 0.0  ;;  %v5805_v30 = vld [vmem:[%s7343_s12 + $0x1a8] sm:$0xff]   ;;  %v5806_v23 = vld [vmem:[%s7343_s12 + $0x170] sm:$0xff]  }
 0xc86   : > { %v3552_v19 = vpack.c.bf16 %v3536_v11, %v3536_v11  ;;  %v3554_v42 = vpack.c.bf16 %v3538_v15, %v3538_v15  ;;  %5380 = vmatpush3.bf16.msra.mxu0 %v5788_v37  ;;  %5402 = vmatpush3.bf16.msra.mxu1 %v5789_v0  ;;  %v5809_v37 = vld [vmem:[%s7343_s12 + $0x1b0] sm:$0xff]   ;;  %v3320_v0 = vadd.f32 %v6939_v8, %v2979_v34  ;;  %v5812_v8 = vld [vmem:[%s7343_s12 + $0x138] sm:$0xff]   ;;  %v5814_v15 = vld [vmem:[%s7343_s12 + $0x240] sm:$0xff]  }
 0xc87   : > { %5381 = vmatprep.subr.bf16.mxu0 %v5790_v9  ;;  %5403 = vmatprep.subr.bf16.mxu1 %v5791_v41  ;;  %v3023_v34 = vrot.slane %v6895_v49, %v2990_v1  ;;  %v5844_v1 = vld [vmem:[%s7343_s12 + $0x238] sm:$0xff]  }
 0xc88   : > { %v3401_v54 = vpop.f32.mrb[44].mxu0  ;;  %v3442_v28 = vpop.f32.mrb[44].mxu1  ;;  %4706 = vmatprep.mubr.bf16.mxu0 %v3552_v19  ;;  %4746 = vmatprep.mubr.bf16.mxu1 %v3554_v42  ;;  %v3535_v41 = vmax.f32 %v3320_v0, 0.0  ;;  %v5816_v42 = vld [vmem:[%s7343_s12 + $0x200] sm:$0xff]  }
 0xc89   : > { %v6969_v55 = vadd.f32 %v3401_v54, %v2995_v36  ;;  %v6971_v57 = vadd.f32 %v3442_v28, %v3003_v58  ;;  %v3403_v43 = vpop.f32.mrb[45].mxu0  ;;  %v3444_v59 = vpop.f32.mrb[45].mxu1  ;;  %v5815_v36 = vld [vmem:[%s7343_s12 + $0x2c0] sm:$0xff]   ;;  %v5818_v54 = vld [vmem:[%s7343_s12 + $0x248] sm:$0xff]  }
 0xc8a   : > { %5382 = vmatpush3.bf16.msra.mxu0 %v5792_v44  ;;  %5404 = vmatpush3.bf16.msra.mxu1 %v5793_v45  ;;  %v3405_v3 = vpop.f32.mrb[46].mxu0  ;;  %v3446_v39 = vpop.f32.mrb[46].mxu1  ;;  %v3404_v38 = vadd.f32 %v3403_v43, %v2999_v29  ;;  %v3551_v44 = vpack.c.bf16 %v3535_v41, %v3535_v41  ;;  %v5819_v28 = vld [vmem:[%s7343_s12 + $0x2c8] sm:$0xff]   ;;  %v5846_v29 = vld [vmem:[%s7343_s12 + $0x340] sm:$0xff]   ;;  %v5855_v41 = vld [vmem:[%s7343_s12 + $0x3d0] sm:$0xff]  }
 0xc8b   : > { %v3406_v25 = vpop.f32.mrb[47].mxu0  ;;  %v3447_v47 = vpop.f32.mrb[47].mxu1  ;;  %5383 = vmatprep.subr.bf16.mxu0 %v5794_v22  ;;  %5405 = vmatprep.subr.bf16.mxu1 %v5795_v52  ;;  %v5817_v22 = vld [vmem:[%s7343_s12 + $0x280] sm:$0xff]   ;;  %v5821_v3 = vld [vmem:[%s7343_s12 + $0x288] sm:$0xff]   ;;  %v5822_v39 = vld [vmem:[%s7343_s12 + $0x250] sm:$0xff]  }
 0xc8c   : > { %v3540_v58 = vmax.f32 %v3404_v38, 0.0  ;;  %v5826_v25 = vld [vmem:[%s7343_s12 + $0x258] sm:$0xff]   ;;  %v5849_v0 = vld [vmem:[%s7343_s12 + $0x380] sm:$0xff]  }
 0xc8d   : > { %v5827_v47 = vld [vmem:[%s7343_s12 + $0x2d8] sm:$0xff]  }
 0xc8e   : > { %5384 = vmatpush3.bf16.msra.mxu0 %v5796_v56  ;;  %5406 = vmatpush3.bf16.msra.mxu1 %v5797_v60  ;;  %v3556_v52 = vpack.c.bf16 %v3540_v58, %v3540_v58  ;;  %v5823_v56 = vld [vmem:[%s7343_s12 + $0x2d0] sm:$0xff]   ;;  %v5859_v58 = vld [vmem:[%s7343_s12 + $0x3d8] sm:$0xff]  }
 0xc8f   : > { %5385 = vmatprep.subr.bf16.mxu0 %v5798_v61  ;;  %5407 = vmatprep.subr.bf16.mxu1 %v5799_v2  ;;  %v5824_v60 = vld [vmem:[%s7343_s12 + $0x210] sm:$0xff]   ;;  %v5828_v61 = vld [vmem:[%s7343_s12 + $0x218] sm:$0xff]  }
 0xc90   : > { %v3483_v12 = vpop.f32.mrb[48].mxu0  ;;  %v3524_v32 = vpop.f32.mrb[48].mxu1  ;;  %v5829_v2 = vld [vmem:[%s7343_s12 + $0x298] sm:$0xff]  }
 0xc91   : > { %v6999_v13 = vadd.f32 %v3483_v12, %v3011_v14  ;;  %v7002_v63 = vadd.f32 %v3524_v32, %v6900_v51  ;;  %v7004_v21 = vpop.f32.mrb[49].mxu0  ;;  %v7006_v26 = vpop.f32.mrb[49].mxu1  ;;  %v2987_v51 = vrot.slane %v6907_v40, %v2986_v46  ;;  %v3007_v46 = vrot.slane %v6895_v49, %v2974_v53  ;;  %v5808_v40 = vld [vmem:[%s7343_s12 + $0x130] sm:$0xff]   ;;  %v5811_v53 = vld [vmem:[%s7343_s12 + $0x1f8] sm:$0xff]   ;;  %v5830_v14 = vld [vmem:[%s7343_s12 + $0x260] sm:$0xff]  }
 0xc92   : > { %5386 = vmatpush3.bf16.msra.mxu0 %v5800_v48  ;;  %5408 = vmatpush3.bf16.msra.mxu1 %v5801_v6  ;;  %v3487_v27 = vpop.f32.mrb[50].mxu0  ;;  %v3528_v20 = vpop.f32.mrb[50].mxu1  ;;  %v5831_v48 = vld [vmem:[%s7343_s12 + $0x2e0] sm:$0xff]   ;;  %v5835_v12 = vld [vmem:[%s7343_s12 + $0x2e8] sm:$0xff]  }
 0xc93   : > { %v3488_v24 = vpop.f32.mrb[51].mxu0  ;;  %v3529_v16 = vpop.f32.mrb[51].mxu1  ;;  %5387 = vmatprep.subr.bf16.mxu0 %v5802_v7  ;;  %5409 = vmatprep.subr.bf16.mxu1 %v5803_v10  ;;  %v3361_v17 = vadd.f32 %v6941_v33, %v2987_v51  ;;  %v3445_v9 = vadd.f32 %v3444_v59, %v3007_v46  ;;  %v5813_v33 = vld [vmem:[%s7343_s12 + $0x1b8] sm:$0xff]   ;;  %v5820_v59 = vld [vmem:[%s7343_s12 + $0x208] sm:$0xff]   ;;  %v5832_v6 = vld [vmem:[%s7343_s12 + $0x220] sm:$0xff]  }
 0xc94   : > { %v5833_v7 = vld [vmem:[%s7343_s12 + $0x2a0] sm:$0xff]   ;;  %v5834_v10 = vld [vmem:[%s7343_s12 + $0x268] sm:$0xff]   ;;  %v5838_v20 = vld [vmem:[%s7343_s12 + $0x270] sm:$0xff]  }
 0xc95   : > { %v3537_v11 = vmax.f32 %v3361_v17, 0.0  ;;  %v3542_v19 = vmax.f32 %v3445_v9, 0.0  ;;  %v5836_v32 = vld [vmem:[%s7343_s12 + $0x228] sm:$0xff]   ;;  %v5840_v51 = vld [vmem:[%s7343_s12 + $0x230] sm:$0xff]   ;;  %v5842_v16 = vld [vmem:[%s7343_s12 + $0x278] sm:$0xff]  }
 0xc96   : > { %5388 = vmatpush3.bf16.msra.mxu0 %v5804_v5  ;;  %5410 = vmatpush3.bf16.msra.mxu1 %v5805_v30  ;;  %v5837_v27 = vld [vmem:[%s7343_s12 + $0x2a8] sm:$0xff]   ;;  %v5839_v5 = vld [vmem:[%s7343_s12 + $0x2f0] sm:$0xff]   ;;  %v3015_v30 = vrot.slane %v6895_v49, %v2982_v62  ;;  %v3527_v62 = vadd.f32 %v7006_v26, %v3023_v34  ;;  %v5847_v26 = vld [vmem:[%s7343_s12 + $0x3c0] sm:$0xff]  }
 0xc97   : > { %5389 = vmatprep.subr.bf16.mxu0 %v5806_v23  ;;  %5411 = vmatprep.subr.bf16.mxu1 %v5807_v35  ;;  %v3553_v45 = vpack.c.bf16 %v3537_v11, %v3537_v11  ;;  %v3558_v43 = vpack.c.bf16 %v3542_v19, %v3542_v19  ;;  %v5841_v24 = vld [vmem:[%s7343_s12 + $0x2b0] sm:$0xff]   ;;  %v3539_v23 = vmax.f32 %v6969_v55, 0.0  ;;  %v5845_v35 = vld [vmem:[%s7343_s12 + $0x2b8] sm:$0xff]   ;;  %v5848_v55 = vld [vmem:[%s7343_s12 + $0x300] sm:$0xff]  }
 0xc98   : > { %v3486_v49 = vadd.f32 %v7004_v21, %v3015_v30  ;;  %v3541_v21 = vmax.f32 %v6971_v57, 0.0  ;;  %v5850_v17 = vld [vmem:[%s7343_s12 + $0x348] sm:$0xff]   ;;  %v5856_v11 = vld [vmem:[%s7343_s12 + $0x310] sm:$0xff]   ;;  %v5860_v19 = vld [vmem:[%s7343_s12 + $0x318] sm:$0xff]  }
 0xc99   : > { %v5852_v9 = vld [vmem:[%s7343_s12 + $0x308] sm:$0xff]  }
 0xc9a   : > { %5390 = vmatpush3.bf16.msra.mxu0 %v5808_v40  ;;  %5412 = vmatpush3.bf16.msra.mxu1 %v5809_v37  ;;  %v3544_v46 = vmax.f32 %v3486_v49, 0.0  ;;  %v3546_v40 = vmax.f32 %v3527_v62, 0.0  ;;  %v3555_v37 = vpack.c.bf16 %v3539_v23, %v3539_v23  ;;  %v3557_v57 = vpack.c.bf16 %v3541_v21, %v3541_v21 }
 0xc9b   : > { %5391 = vmatprep.subr.bf16.mxu0 %v5810_v50  ;;  %5413 = vmatprep.subr.bf16.mxu1 %v5811_v53  ;;  %v5851_v53 = vld [vmem:[%s7343_s12 + $0x3c8] sm:$0xff]  }
 0xc9c   : > { %v3560_v50 = vpack.c.bf16 %v3544_v46, %v3544_v46  ;;  %v3562_v38 = vpack.c.bf16 %v3546_v40, %v3546_v40 }
 0xc9e   : > { %5392 = vmatpush3.bf16.msra.mxu0 %v5812_v8  ;;  %5414 = vmatpush3.bf16.msra.mxu1 %v5813_v33  ;;  %v5853_v8 = vld [vmem:[%s7343_s12 + $0x388] sm:$0xff]   ;;  %v5854_v33 = vld [vmem:[%s7343_s12 + $0x350] sm:$0xff]  }
 0xc9f   : > { %5421 = vmatprep.subr.bf16.mxu0 %v5814_v15  ;;  %5443 = vmatprep.subr.bf16.mxu1 %v5815_v36  ;;  %v5857_v15 = vld [vmem:[%s7343_s12 + $0x390] sm:$0xff]   ;;  %v5858_v36 = vld [vmem:[%s7343_s12 + $0x358] sm:$0xff]  }
 0xca1   : > { %4707 = vmatmul.mubr.bf16.vlgmr.msra.gmra.mrb[56].mxu0 %v3551_v44  ;;  %4747 = vmatmul.mubr.bf16.vlgmr.msra.gmra.mrb[56].mxu1 %v3553_v45  ;;  %v5862_v44 = vld [vmem:[%s7343_s12 + $0x360] sm:$0xff]  }
 0xca2   : > { %5422 = vmatpush3.bf16.msra.mxu0 %v5816_v42  ;;  %4786 = vmatprep.mubr.bf16.mxu0 %v3556_v52  ;;  %v5861_v42 = vld [vmem:[%s7343_s12 + $0x398] sm:$0xff]   ;;  %v5863_v45 = vld [vmem:[%s7343_s12 + $0x3e0] sm:$0xff]  }
 0xca3   : > { %5444 = vmatpush3.bf16.msra.mxu1 %v5817_v22  ;;  %4826 = vmatprep.mubr.bf16.mxu1 %v3558_v43  ;;  %v5864_v22 = vld [vmem:[%s7343_s12 + $0x320] sm:$0xff]   ;;  %v5868_v43 = vld [vmem:[%s7343_s12 + $0x328] sm:$0xff]  }
 0xca4   : > { %5423 = vmatprep.subr.bf16.mxu0 %v5818_v54  ;;  %5445 = vmatprep.subr.bf16.mxu1 %v5819_v28  ;;  %v5865_v52 = vld [vmem:[%s7343_s12 + $0x3a0] sm:$0xff]   ;;  %v5866_v54 = vld [vmem:[%s7343_s12 + $0x368] sm:$0xff]  }
 0xca5   : > { %v5867_v28 = vld [vmem:[%s7343_s12 + $0x3e8] sm:$0xff]  }
 0xca6   : > { %5424 = vmatpush3.bf16.msra.mxu0 %v5820_v59  ;;  %v5869_v59 = vld [vmem:[%s7343_s12 + $0x3a8] sm:$0xff]  }
 0xca7   : > { %5446 = vmatpush3.bf16.msra.mxu1 %v5821_v3  ;;  %5425 = vmatprep.subr.bf16.mxu0 %v5822_v39  ;;  %v5870_v3 = vld [vmem:[%s7343_s12 + $0x370] sm:$0xff]  }
 0xca8   : > { %5447 = vmatprep.subr.bf16.mxu1 %v5823_v56  ;;  %v5871_v39 = vld [vmem:[%s7343_s12 + $0x3f0] sm:$0xff]  }
 0xca9   : > { %v5872_v56 = vld [vmem:[%s7343_s12 + $0x330] sm:$0xff]  }
 0xcaa   : > { %5426 = vmatpush3.bf16.msra.mxu0 %v5824_v60  ;;  %v5873_v60 = vld [vmem:[%s7343_s12 + $0x3b0] sm:$0xff]  }
 0xcab   : > { %5448 = vmatpush3.bf16.msra.mxu1 %v5825_v4  ;;  %5427 = vmatprep.subr.bf16.mxu0 %v5826_v25  ;;  %v5874_v4 = vld [vmem:[%s7343_s12 + $0x378] sm:$0xff]  }
 0xcac   : > { %5449 = vmatprep.subr.bf16.mxu1 %v5827_v47  ;;  %v5875_v25 = vld [vmem:[%s7343_s12 + $0x3f8] sm:$0xff]  }
 0xcad   : > { %v5876_v47 = vld [vmem:[%s7343_s12 + $0x338] sm:$0xff]  }
 0xcae   : > { %5428 = vmatpush3.bf16.msra.mxu0 %v5828_v61  ;;  %v3543_v61 = vmax.f32 %v6999_v13, 0.0  ;;  %v5150_v13 = vld [vmem:[%s7344_s13] ss:$0 sm:$0xff] }
 0xcaf   : > { %5450 = vmatpush3.bf16.msra.mxu1 %v5829_v2  ;;  %5429 = vmatprep.subr.bf16.mxu0 %v5830_v14  ;;  %v5877_v2 = vld [vmem:[%s7343_s12 + $0x3b8] sm:$0xff]   ;;  %v3545_v14 = vmax.f32 %v7002_v63, 0.0 }
 0xcb0   : > { %5451 = vmatprep.subr.bf16.mxu1 %v5831_v48  ;;  %v3559_v48 = vpack.c.bf16 %v3543_v61, %v3543_v61 }
 0xcb2   : > { %5430 = vmatpush3.bf16.msra.mxu0 %v5832_v6  ;;  %v3561_v6 = vpack.c.bf16 %v3545_v14, %v3545_v14 }
 0xcb3   : > { %5452 = vmatpush3.bf16.msra.mxu1 %v5833_v7  ;;  %5431 = vmatprep.subr.bf16.mxu0 %v5834_v10 }
 0xcb4   : > { %5453 = vmatprep.subr.bf16.mxu1 %v5835_v12 }
 0xcb6   : > { %5432 = vmatpush3.bf16.msra.mxu0 %v5836_v32 }
 0xcb7   : > { %5454 = vmatpush3.bf16.msra.mxu1 %v5837_v27  ;;  %5433 = vmatprep.subr.bf16.mxu0 %v5838_v20 }
 0xcb8   : > { %5455 = vmatprep.subr.bf16.mxu1 %v5839_v5 }
 0xcba   : > { %5434 = vmatpush3.bf16.msra.mxu0 %v5840_v51 }
 0xcbb   : > { %5456 = vmatpush3.bf16.msra.mxu1 %v5841_v24  ;;  %5435 = vmatprep.subr.bf16.mxu0 %v5842_v16 }
 0xcbc   : > { %5457 = vmatprep.subr.bf16.mxu1 %v5843_v18 }
 0xcbe   : > { %5436 = vmatpush3.bf16.msra.mxu0 %v5844_v1 }
 0xcbf   : > { %5458 = vmatpush3.bf16.msra.mxu1 %v5845_v35  ;;  %5465 = vmatprep.subr.bf16.mxu0 %v5846_v29 }
 0xcc0   : > { %5487 = vmatprep.subr.bf16.mxu1 %v5847_v26 }
 0xcc1   : > { %4787 = vmatmul.mubr.bf16.vlgmr.msra.gmra.mrb[60].mxu0 %v3555_v37 }
 0xcc2   : > { %4827 = vmatmul.mubr.bf16.vlgmr.msra.gmra.mrb[60].mxu1 %v3557_v57  ;;  %5466 = vmatpush3.bf16.msra.mxu0 %v5848_v55 }
 0xcc3   : > { %4866 = vmatprep.mubr.bf16.mxu0 %v3560_v50  ;;  %5488 = vmatpush3.bf16.msra.mxu1 %v5849_v0 }
 0xcc4   : > { %4906 = vmatprep.mubr.bf16.mxu1 %v3562_v38  ;;  %5467 = vmatprep.subr.bf16.mxu0 %v5850_v17 }
 0xcc5   : > { %5489 = vmatprep.subr.bf16.mxu1 %v5851_v53 }
 0xcc6   : > { %5468 = vmatpush3.bf16.msra.mxu0 %v5852_v9 }
 0xcc7   : > { %5490 = vmatpush3.bf16.msra.mxu1 %v5853_v8  ;;  %5469 = vmatprep.subr.bf16.mxu0 %v5854_v33 }
 0xcc8   : > { %5491 = vmatprep.subr.bf16.mxu1 %v5855_v41 }
 0xcca   : > { %5470 = vmatpush3.bf16.msra.mxu0 %v5856_v11 }
 0xccb   : > { %5492 = vmatpush3.bf16.msra.mxu1 %v5857_v15  ;;  %5471 = vmatprep.subr.bf16.mxu0 %v5858_v36 }
 0xccc   : > { %5493 = vmatprep.subr.bf16.mxu1 %v5859_v58 }
 0xcce   : > { %5472 = vmatpush3.bf16.msra.mxu0 %v5860_v19 }
 0xccf   : > { %5494 = vmatpush3.bf16.msra.mxu1 %v5861_v42  ;;  %5473 = vmatprep.subr.bf16.mxu0 %v5862_v44 }
 0xcd0   : > { %5495 = vmatprep.subr.bf16.mxu1 %v5863_v45 }
 0xcd2   : > { %5474 = vmatpush3.bf16.msra.mxu0 %v5864_v22 }
 0xcd3   : > { %5496 = vmatpush3.bf16.msra.mxu1 %v5865_v52  ;;  %5475 = vmatprep.subr.bf16.mxu0 %v5866_v54 }
 0xcd4   : > { %5497 = vmatprep.subr.bf16.mxu1 %v5867_v28 }
 0xcd6   : > { %5476 = vmatpush3.bf16.msra.mxu0 %v5868_v43 }
 0xcd7   : > { %5498 = vmatpush3.bf16.msra.mxu1 %v5869_v59  ;;  %5477 = vmatprep.subr.bf16.mxu0 %v5870_v3 }
 0xcd8   : > { %5499 = vmatprep.subr.bf16.mxu1 %v5871_v39 }
 0xcda   : > { %5478 = vmatpush3.bf16.msra.mxu0 %v5872_v56 }
 0xcdb   : > { %5500 = vmatpush3.bf16.msra.mxu1 %v5873_v60  ;;  %5479 = vmatprep.subr.bf16.mxu0 %v5874_v4 }
 0xcdc   : > { %5501 = vmatprep.subr.bf16.mxu1 %v5875_v25 }
 0xcde   : > { %5480 = vmatpush3.bf16.msra.mxu0 %v5876_v47 }
 0xcdf   : > { %5502 = vmatpush3.bf16.msra.mxu1 %v5877_v2  ;;  %v5279_v2 = vld [vmem:[%s7383_s28] ss:$0 sm:$0xff]  ;;  %s5938_s28 = scalar_lea.vmem %s5937_s27, 256 }
 0xce0   : > { %p5940_p6 = scmp.lt.s32.totalorder %s5938_s28, %s5932_s29 }
 0xce1   : > { %4867 = vmatmul.mubr.bf16.vlgmr.msra.gmra.mrb[64].mxu0 %v3559_v48  ;;  %v5280_v48 = vld [vmem:[%s7384_s23] ss:$0 sm:$0xff] }
 0xce2   : > { %4907 = vmatmul.mubr.bf16.vlgmr.msra.gmra.mrb[64].mxu1 %v3561_v6  ;;  %p5941_p7 = por %p5940_p6, %p5939_p5 }
 0xce4   : > { %p5942_p9 = pnand %p5941_p7, %p5935_p4 }
 0xd54   : > { %v5349_v7 = vpop.f32.mrb[52].mxu0  ;;  %v5371_v10 = vpop.f32.mrb[52].mxu1 }
 0xd55   : > { %v5350_v12 = vpop.f32.mrb[53].mxu0  ;;  %v5372_v32 = vpop.f32.mrb[53].mxu1 }
 0xd56   : > { %v5351_v27 = vadd.f32 %v5350_v12, %v5349_v7  ;;  %v5373_v20 = vadd.f32 %v5372_v32, %v5371_v10  ;;  %v5352_v5 = vpop.f32.mrb[54].mxu0  ;;  %v5374_v30 = vpop.f32.mrb[54].mxu1 }
 0xd57   : > { %v5353_v63 = vpop.f32.mrb[55].mxu0  ;;  %v5375_v34 = vpop.f32.mrb[55].mxu1 }
 0xd58   : > { %v4629_v51 = vadd.f32 %v5351_v27, %v5150_v13 }
 0xd5a   : > { %v4669_v24 = vadd.f32 %v5373_v20, %v4629_v51 }
 0xd74   : > { %v5393_v16 = vpop.f32.mrb[56].mxu0  ;;  %v5415_v18 = vpop.f32.mrb[56].mxu1 }
 0xd75   : > { %v5394_v49 = vpop.f32.mrb[57].mxu0  ;;  %v5416_v62 = vpop.f32.mrb[57].mxu1 }
 0xd76   : > { %v5395_v1 = vadd.f32 %v5394_v49, %v5393_v16  ;;  %v5417_v23 = vadd.f32 %v5416_v62, %v5415_v18  ;;  %v5396_v35 = vpop.f32.mrb[58].mxu0  ;;  %v5418_v29 = vpop.f32.mrb[58].mxu1 }
 0xd77   : > { %v5397_v21 = vpop.f32.mrb[59].mxu0  ;;  %v5419_v26 = vpop.f32.mrb[59].mxu1 }
 0xd78   : > { %v4709_v46 = vadd.f32 %v5395_v1, %v4669_v24 }
 0xd7a   : > { %v4749_v40 = vadd.f32 %v5417_v23, %v4709_v46 }
 0xd94   : > { %v5437_v55 = vpop.f32.mrb[60].mxu0 }
 0xd95   : > { %v5459_v37 = vpop.f32.mrb[60].mxu1  ;;  %v5438_v0 = vpop.f32.mrb[61].mxu0 }
 0xd96   : > { %v5439_v57 = vadd.f32 %v5438_v0, %v5437_v55  ;;  %v5460_v17 = vpop.f32.mrb[61].mxu1  ;;  %v5440_v50 = vpop.f32.mrb[62].mxu0 }
 0xd97   : > { %v5461_v53 = vadd.f32 %v5460_v17, %v5459_v37  ;;  %v5462_v38 = vpop.f32.mrb[62].mxu1  ;;  %v5441_v9 = vpop.f32.mrb[63].mxu0 }
 0xd98   : > { %v4789_v8 = vadd.f32 %v5439_v57, %v4749_v40  ;;  %v5463_v33 = vpop.f32.mrb[63].mxu1 }
 0xd9a   : > { %v4829_v41 = vadd.f32 %v5461_v53, %v4789_v8 }
 0xdb4   : > { %v5481_v11 = vpop.f32.mrb[64].mxu0 }
 0xdb5   : > { %v5503_v15 = vpop.f32.mrb[64].mxu1  ;;  %v5482_v36 = vpop.f32.mrb[65].mxu0 }
 0xdb6   : > { %v5483_v58 = vadd.f32 %v5482_v36, %v5481_v11  ;;  %v5504_v19 = vpop.f32.mrb[65].mxu1  ;;  %v5484_v42 = vpop.f32.mrb[66].mxu0 }
 0xdb7   : > { %v5505_v44 = vadd.f32 %v5504_v19, %v5503_v15  ;;  %v5506_v45 = vpop.f32.mrb[66].mxu1  ;;  %v5485_v22 = vpop.f32.mrb[67].mxu0 }
 0xdb8   : > { %v4869_v52 = vadd.f32 %v5483_v58, %v4829_v41  ;;  %v5507_v54 = vpop.f32.mrb[67].mxu1 }
 0xdba   : > { %v4909_v28 = vadd.f32 %v5505_v44, %v4869_v52 }
 0xdbc   : > { %v4914_v43 = vadd.f32 %v4909_v28, %v6713_v31 }
 0xdbe   : > { %v4917_v59 = vsel %vm605_vm3, %v4914_v43, 0.0 }
 0xdbf   : > { %4918 = vadd.xlane.f32.xlu0 %v4917_v59 }
 0xe4c   : > { %v4919_v3 = vpop.xlane.xlu0 %4918 }
 0xe4d   : > { %v4920_v39 = vmul.f32 0.03125, %v4919_v3 }
 0xe4f   : > { %v4921_v56 = vsub.f32 %v4914_v43, %v4920_v39 }
 0xe51   : > { %v4922_v60 = vmul.f32 %v4921_v56, %v4921_v56 }
 0xe53   : > { %v4923_v4 = vsel %vm605_vm3, %v4922_v60, 0.0 }
 0xe54   : > { %4924 = vadd.xlane.f32.xlu0 %v4923_v4 }
 0xee1   : > { %v4925_v25 = vpop.xlane.xlu0 %4924 }
 0xee2   : > { %v4926_v47 = vmul.f32 0.03125, %v4925_v25 }
 0xee4   : > { %v4927_v61 = vadd.f32 1e-05, %v4926_v47 }
 0xee6   : > { %5930 = vrsqrt.f32 %v4927_v61 }
 0xef0   : > { %v5931_v31 = vpop.eup %5930 }
 0xef1   : > { %v4929_v14 = vmul.f32 %v5931_v31, %v4921_v56 }
 0xef3   : > { %v4936_v6 = vmul.f32 %v5279_v2, %v4929_v14 }
 0xef5   : > { %v4943_v7 = vadd.f32 %v5280_v48, %v4936_v6 }
 0xef7   : > { %4944 = vst.msk [vmem:[%s551_s30] sm:$0xff] %vm605_vm3, %v4943_v7 }
 0xef8   : > { %5945 = shalt.err (!%p5942_p9)
}
 0xef9   : > { %s5946_s26 = scalar_lea.hbm %s7273_s2, 128  ;;  %s5950_s17 = scalar_lea.hbm %s7386_s1, 512 }
 0xefa   : > { %p5947_p10 = scmp.ne.s32.totalorder %s7273_s2, %s5946_s26  ;;  %p5951_p13 = scmp.lt.u32.totalorder %s7273_s2, %s7386_s1 }
 0xefb   : > { %p5952_p0 = scmp.lt.u32.totalorder %s5950_s17, %s5946_s26  ;;  %p5954_p2 = scmp.lt.u32.totalorder %s5946_s26, %s7273_s2 }
 0xefc   : > { %p5948_p11 = pnand %p5947_p10, %p6179_p3 }
 0xefd   : > { %p5953_p1 = por %p5952_p0, %p5951_p13 }
 0xefe   : > { %p5949_p12 = pneg %p5948_p11 }
 0xeff   : > { %p5955_p4 = por %p5954_p2, %p5953_p1 }
 0xf01   : > { %p5956_p5 = pnand %p5955_p4, %p5949_p12 }
 0xf03   : > { %5959 = shalt.err (!%p5956_p5)
}
 0xf04   : > { %5661 = dma.vmem_to_hbm [thread:$0]  (%p6179_p3), %s7275_s20, 128, %s7273_s2, %s4946_s21  }
 0xf05 PF: > { %s7388_s18 = sld [smem:[#allocation11_spill]]  ;;  %s7389_s16 = sld [smem:[#allocation7_spill]] }
 0xf0b   : > { %p5667_p6 = scmp.ge.s32.totalorder %s7388_s18, 2  ;;  %s4973_s24 = sand.u32 1, %s7389_s16  }
 0xf0c   : > { %s4974_s29 = scalar_lea.sflag [#allocation5], %s4973_s24 }
 0xf0d   : > { %p5664_p7 = pnand %p5667_p6, %p6188_p8 }
 0xf0f   : > { %5993 = dma.done.wait (!%p5664_p7), %s4974_s29, 128  }
 0xf10   : > { %5995 = vsyncadd (!%p5664_p7), %s4974_s29, 4294967168  ;;  %s29_s28 = sadd.s32 1, %s7388_s18   ;;  %s7391_s15 = sld [smem:[#allocation8_spill]] }
 0xf11   : > { %p26_p9 = scmp.ge.s32.totalorder %s29_s28, 6   ;;  %s7392_s23 = sld [smem:[#allocation16_spill]] }
 0xf12   : > { %s7393_s24 = sld [smem:[#allocation9_spill]]  ;;  %s7394_s25 = sld [smem:[#allocation10_spill]] }
 0xf13   : > { %s7395_s26 = sld [smem:[#allocation12_spill]]  ;;  %s7396_s27 = sld [smem:[#allocation14_spill]] }
 0xf14   : > { %s7397_s21 = smov %s6002_s22  ;;  %28 = sbr.rel (!%p26_p9) target bundleno = 12 (0xc), region = 126 }
 0xf16   : > { %s7398_s22 = smov %s7391_s15 }
 0xf1b   :  { %4979 = vsyncpa [#allocation5], 1 }
 0xf1c   :  { %4981 = vsyncpa [#allocation5 + $0x1], 1 }

// kernel: tpu_custom_call.1
= control target key start
LH: loop header
LB: loop body
LE: loop exit
PB: predicated region body
PF: predicated region fallthrough
CT: control target
= control target key end

     0   :  { %s6494_s0 = inlined_call_operand.vmem [shape: f32[2,16,32], index: 0, kind: input, shape index: {}]   ;;  %s6495_s1 = inlined_call_operand.vmem [shape: f32[2,4,8,8], index: 1, kind: input, shape index: {}]   ;;  %s6496_s2 = inlined_call_operand.vmem [shape: bf16[32,96], index: 2, kind: input, shape index: {}]   ;;  %s6497_s3 = inlined_call_operand.vmem [shape: f32[1,96], index: 3, kind: input, shape index: {}]   ;;  %s6498_s4 = inlined_call_operand.vmem [shape: f32[1,32], index: 4, kind: input, shape index: {}]   ;;  %s6499_s5 = inlined_call_operand.vmem [shape: f32[1,32], index: 5, kind: input, shape index: {}]   ;;  %s6500_s6 = inlined_call_operand.vmem [shape: bf16[32,32], index: 6, kind: input, shape index: {}]   ;;  %s6501_s7 = inlined_call_operand.vmem [shape: f32[1,32], index: 7, kind: input, shape index: {}]   ;;  %s6502_s8 = inlined_call_operand.vmem [shape: f32[1,32], index: 8, kind: input, shape index: {}]   ;;  %s6503_s9 = inlined_call_operand.vmem [shape: f32[1,32], index: 9, kind: input, shape index: {}]   ;;  %s6504_s10 = inlined_call_operand.vmem [shape: bf16[32,2048], index: 10, kind: input, shape index: {}]   ;;  %s6505_s11 = inlined_call_operand.vmem [shape: f32[1,2048], index: 11, kind: input, shape index: {}]   ;;  %s6506_s12 = inlined_call_operand.vmem [shape: bf16[2048,32], index: 12, kind: input, shape index: {}]   ;;  %s6507_s13 = inlined_call_operand.vmem [shape: f32[1,32], index: 13, kind: input, shape index: {}]   ;;  %s6508_s14 = inlined_call_operand.vmem [shape: f32[1,32], index: 14, kind: input, shape index: {}]   ;;  %s6509_s15 = inlined_call_operand.vmem [shape: f32[1,32], index: 15, kind: input, shape index: {}]   ;;  %s6510_s16 = inlined_call_operand.hbm [shape: f32[2,16,32], index: 16, kind: output, shape index: {}]  }
   0x1   :  { %6524 = sst [smem:[#allocation17_spill]] %s6494_s0 }
   0x2   :  { %6525 = sst [smem:[#allocation18_spill]] %s6495_s1 }
   0x3   :  { %6526 = sst [smem:[#allocation19_spill]] %s6496_s2 }
   0x4   :  { %6527 = sst [smem:[#allocation20_spill]] %s6508_s14 }
   0x5   :  { %6528 = sst [smem:[#allocation21_spill]] %s6509_s15 }
   0x6   :  { %6529 = sst [smem:[#allocation22_spill]] %s6510_s16 }
   0x7   :  { %21 = vsyncpa [#allocation5], 0 }
   0x8   :  { %23 = vsyncpa [#allocation5 + $0x1], 0  ;;  %s5378_s21 = smov 0   ;;  %s5380_s22 = smov 0  }
   0x9   :  { %s5382_s23 = smov 0   ;;  %s5384_s24 = smov 0  }
   0xa   :  { %s5386_s25 = smov 0   ;;  %s5388_s26 = smov 0  }
   0xb   :  { %s5390_s27 = smov 0   ;;  %s5392_s28 = smov 0  }
   0xc LB: > { %6530 = sst [smem:[#allocation7_spill]] %s5249_s21  ;;  %s4315_s29 = sadd.s32 4294967295, %s5277_s28   ;;  %s5277_s28 = sphi %s5392_s28, %s29_s28   ;;  %s5273_s27 = sphi %s5390_s27, %s6564_s27   ;;  %s5269_s26 = sphi %s5388_s26, %s6560_s26   ;;  %s5265_s25 = sphi %s5386_s25, %s6559_s25   ;;  %s5261_s24 = sphi %s5384_s24, %s6558_s24   ;;  %s5257_s23 = sphi %s5382_s23, %s6557_s23   ;;  %s5253_s22 = sphi %s5380_s22, %s6563_s22   ;;  %s5249_s21 = sphi %s5378_s21, %s6562_s21  }
   0xd   : > { %6531 = sst [smem:[#allocation8_spill]] %s5257_s23  ;;  %s4316_s30 = sadd.s32 4294967294, %s5277_s28  }
   0xe   : > { %6532 = sst [smem:[#allocation9_spill]] %s5269_s26  ;;  %s38_s0 = sadd.s32 1, %s5269_s26 }
   0xf   : > { %6533 = sst [smem:[#allocation10_spill]] %s5273_s27  ;;  %p39_p0 = scmp.ge.s32.totalorder %s38_s0, 2 }
  0x10   : > { %6534 = sst [smem:[#allocation11_spill]] %s5277_s28  ;;  %s41_s17 = sadd.s32 1, %s5273_s27 }
  0x11   : > { %p408_p1 = scmp.ne.s32.totalorder %s5257_s23, %s5253_s22  ;;  %p409_p2 = scmp.eq.s32.totalorder %s4315_s29, 3 }
  0x12   : > { %s6566_s0 = smov (%p39_p0, %s38_s0), 0  ;;  %s6568_s17 = smov (!%p39_p0, %s41_s17), %s5273_s27 }
  0x13   : > { %6535 = sst [smem:[#allocation12_spill]] %s6566_s0  ;;  %s394_s18 = ssub.s32 %s5269_s26, %s6566_s0 }
  0x14   : > { %p5429_p3 = por %p409_p2, %p408_p1  ;;  %p43_p4 = scmp.ge.s32.totalorder %s6568_s17, 2 }
  0x15   : > { %p414_p5 = scmp.ne.s32.totalorder %s5253_s22, %s5249_s21  ;;  %p415_p6 = scmp.eq.s32.totalorder %s4316_s30, 3 }
  0x16   : > { %s6536_s19 = scalar_select %p5429_p3, 1, 0 }
  0x17   : > { %p4319_p7 = scmp.ge.s32.totalorder %s5277_s28, 1  ;;  %s6570_s17 = smov (%p43_p4, %s6568_s17), 0 }
  0x18   : > { %6537 = sst [smem:[#allocation13_spill]] %s6536_s19  ;;  %p5438_p8 = por %p415_p6, %p414_p5 }
  0x19   : > { %6538 = sst [smem:[#allocation14_spill]] %s6570_s17  ;;  %p494_p9 = scmp.lt.s32.totalorder %s5277_s28, 5 }
  0x1a   : > { %s6539_s20 = scalar_select %p5438_p8, 1, 0 }
  0x1b   : > { %s393_s29 = ssub.s32 %s5273_s27, %s6570_s17  ;;  %s398_s16 = sadd.s32 1, %s5257_s23 }
  0x1c   : > { %6540 = sst [smem:[#allocation15_spill]] %s6539_s20  ;;  %s395_s15 = sor.u32 %s394_s18, %s393_s29 }
  0x1d   : > { %p495_p10 = pnand %p4319_p7, %p494_p9  ;;  %p396_p11 = scmp.eq.s32.totalorder %s395_s15, 0 }
  0x1e   : > { %s6523_s30 = sand.u32 (!%p495_p10), 1, %s5253_s22   ;;  %p552_p12 = scmp.lt.s32.totalorder (!%p495_p10), %s5265_s25, 1 }
  0x1f   : > { %s5447_s0 = scalar_select %p396_p11, %s5257_s23, %s398_s16  }
  0x20   : > { %498 = sbr.rel (%p495_p10) target bundleno = 3758 (0xeae), region = 84  ;;  %s5453_s26 = sshll.u32 (!%p495_p10), %s6523_s30, 3 }
  0x21   : > { %6541 = sst [smem:[#allocation16_spill]] %s5447_s0  ;;  %p554_p13 = scmp.lt.s32.totalorder (!%p495_p10), %s5261_s24, 1 }
  0x22   : > { %s6542_s1 = sld [smem:[#allocation18_spill]] (!%p495_p10)  ;;  %s6543_s14 = sld [smem:[#allocation17_spill]] (!%p495_p10) }
  0x23   : > { %p4325_p0 = scmp.ne.s32.totalorder (!%p495_p10), %s5261_s24, 0 }
  0x27   : > { %s553_s17 = scalar_select %p552_p12, %s5265_s25, 1 }
  0x28   : > { %s555_s18 = scalar_select %p554_p13, %s5261_s24, 1 }
  0x29   : > { %s4321_s29 = sshll.u32 %s553_s17, 1  ;;  %s4538_s15 = sshll.u32 %s553_s17, 5  ;;  %vm571_vm0 = vcmask (!%p4325_p0), 64512   ;;  %vm576_vm1 = vcmask (!%p4325_p0), 57344   ;;  %v5279_v1 = vmov (!%p4325_p0), 0.0  }
  0x2a   : > { %s557_s16 = sadd.s32 %s4321_s29, %s555_s18  ;;  %s5461_s23 = scalar_lea.vmem %s6542_s1, %s4538_s15  ;;  %572 = vst.msk [vmem:[#allocation2] sm:$0xff] (!%p4325_p0), %vm571_vm0, %v5279_v1  ;;  %573 = vst.msk [vmem:[#allocation2 + $0x8] sm:$0xff] (!%p4325_p0), %vm571_vm0, %v5279_v1 }
  0x2b   : > { %s4322_s20 = sshll.u32 %s557_s16, 3  ;;  %570 = sbr.rel (%p4325_p0) target bundleno = 50 (0x32), region = 88  ;;  %574 = vst.msk [vmem:[#allocation2 + $0x10] sm:$0xff] (!%p4325_p0), %vm571_vm0, %v5279_v1  ;;  %575 = vst.msk [vmem:[#allocation2 + $0x18] sm:$0xff] (!%p4325_p0), %vm571_vm0, %v5279_v1 }
  0x2c   : > { %s559_s19 = scalar_lea.vmem %s6543_s14, %s4322_s20  ;;  %577 = vst.msk [vmem:[#allocation3] sm:$0x1] (!%p4325_p0), %vm576_vm1, %v5279_v1  ;;  %578 = vst.msk [vmem:[#allocation3 + $0x1] sm:$0x1] (!%p4325_p0), %vm576_vm1, %v5279_v1 }
  0x2d   : > { %v5466_v0 = vld [vmem:[%s559_s19] sm:$0xff]  ;;  %579 = vst.msk [vmem:[#allocation3 + $0x2] sm:$0x1] (!%p4325_p0), %vm576_vm1, %v5279_v1  ;;  %580 = vst.msk [vmem:[#allocation3 + $0x3] sm:$0x1] (!%p4325_p0), %vm576_vm1, %v5279_v1 }
  0x32 PF: > { %s6544_s2 = sld [smem:[#allocation19_spill]]  ;;  %v5280_v3 = vmov 0.0   ;;  %vm5281_vm2 = vmmov 0   ;;  %vm605_vm3 = vcmask 261120   ;;  %v581_v5 = vpack.c.bf16 %v5466_v0, %v5466_v0  ;;  %v4326_v6 = vld [vmem:[%s6497_s3] ss:$0 sm:$0xff] }
  0x33   : > { %4761 = vmatprep.subr.bf16.mxu0 %v5280_v3  ;;  %4769 = vmatprep.subr.bf16.mxu1 %v5280_v3  ;;  %s5282_s19 = smov 104   ;;  %s5283_s20 = smov 120   ;;  %vm659_vm4 = vcmask 64512   ;;  %vm959_vm5 = vcmask 1043456   ;;  %vm1786_vm7 = vcmask 130048   ;;  %vm1788_vm8 = vcmask 195584  }
  0x34   : > { %4765 = vmatprep.mubr.msk.bf16.mxu0 %vm5281_vm2, %v5280_v3  ;;  %4771 = vmatprep.mubr.msk.bf16.mxu1 %vm5281_vm2, %v5280_v3  ;;  %s5284_s18 = smov 112   ;;  %s5285_s29 = smov 64   ;;  %vm1663_vm9 = vcmask 589312   ;;  %vm1768_vm10 = vcmask 57344  }
  0x35   : > { %s5286_s15 = smov 96   ;;  %s5287_s16 = smov 8  }
  0x36   : > { %s5288_s21 = smov 16   ;;  %s5289_s14 = smov 24  }
  0x37   : > { %s6546_s28 = sld [smem:[#allocation20_spill]]  ;;  %s6547_s0 = sld [smem:[#allocation21_spill]] }
  0x38   : > { %v4997_v2 = vld [vmem:[%s6544_s2] sm:$0xff]   ;;  %v4998_v4 = vld [vmem:[%s6544_s2 + $0x8] sm:$0xff]   ;;  %s5292_s27 = smov [#allocation4]  }
  0x39   : > { %4762 = vmatpush3.bf16.msra.mxu0 %v4997_v2 }
  0x3a   : > { %4763 = vmatprep.subr.bf16.mxu0 %v5280_v3 }
  0x3d   : > { %4764 = vmatpush3.bf16.msra.mxu0 %v4998_v4 }
  0x3e   : > { %4775 = vmatprep.subr.bf16.mxu0 %v5280_v3 }
  0x40   : > { %4766 = vmatmul.mubr.msk.bf16.vlgmr.msra.gmra.mrb[0].mxu0 %vm605_vm3, %v581_v5 }
  0x41   : > { %4777 = vmatprep.mubr.msk.bf16.mxu0 %vm5281_vm2, %v5280_v3 }
 0x113   : > { %v643_v7 = vpop.f32.mrb[0].mxu0 }
 0x114   : > { %v5492_v8 = vadd.f32 %v4326_v6, %v643_v7  ;;  %v4767_v9 = vpop.f32.mrb[1].mxu0 }
 0x115   : > { %v646_v10 = vpop.f32.mrb[2].mxu0  ;;  %v5579_v9 = vld [vmem:[#allocation2] sm:$0xff] }
 0x116   : > { %656 = vrot.lane.b32.xlu1 %v5492_v8, %s5282_s19  ;;  %650 = vrot.lane.b32.xlu0 %v5492_v8, %s5283_s20  ;;  %v4768_v11 = vpop.f32.mrb[3].mxu0  ;;  %v660_v12 = vsel %vm659_vm4, %v5492_v8, -inf  ;;  %v708_v20 = vmul.f32 1.442695, %v5492_v8  ;;  %v724_v54 = vpack.c.bf16 %v5492_v8, %v5492_v8  ;;  %v4343_v10 = vld [vmem:[#allocation3 + $0x1] ss:$0 sm:$0xff] }
 0x11a   : > { %653 = vrot.lane.b32.xlu0 %v5492_v8, %s5284_s18 }
 0x13a   : > { %661 = vmax.xlane.f32.xlu1 %v660_v12 }
 0x188   : > { %v5502_v13 = vpop.permute.xlu1 %656  ;;  %v5504_v14 = vpop.permute.xlu0 %650 }
 0x189   : > { %v710_v15 = vmul.f32 1.442695, %v5504_v14  ;;  %v663_v16 = vsel %vm659_vm4, %v5504_v14, -inf  ;;  %v669_v17 = vsel %vm659_vm4, %v5502_v13, -inf  ;;  %v714_v50 = vmul.f32 1.442695, %v5502_v13 }
 0x18a   : > { %664 = vmax.xlane.f32.xlu0 %v663_v16  ;;  %670 = vmax.xlane.f32.xlu1 %v669_v17  ;;  %v725_v57 = vpack.c.bf16 %v5504_v14, %v5504_v14  ;;  %v727_v58 = vpack.c.bf16 %v5502_v13, %v5502_v13 }
 0x18b   : > { %5129 = vpow2.f32 %v710_v15 }
 0x18c   : > { %v5511_v18 = vpop.permute.xlu0 %653  ;;  %5131 = vpow2.f32 %v708_v20  ;;  %v5586_v20 = vld [vmem:[#allocation2 + $0x8] sm:$0xff] }
 0x18d   : > { %v666_v19 = vsel %vm659_vm4, %v5511_v18, -inf  ;;  %v712_v47 = vmul.f32 1.442695, %v5511_v18  ;;  %v726_v56 = vpack.c.bf16 %v5511_v18, %v5511_v18 }
 0x18e   : > { %667 = vmax.xlane.f32.xlu0 %v666_v19 }
 0x195   : > { %v5516_v21 = vpop.eup %5129 }
 0x196   : > { %v721_v22 = vpack.c.bf16 %v5516_v21, %v5516_v21  ;;  %v5521_v23 = vpop.eup %5131 }
 0x197   : > { %v720_v24 = vpack.c.bf16 %v5521_v23, %v5521_v23 }
 0x19b   : > { %783 = vrot.lane.b32.xlu1 %v721_v22, %s5285_s29 }
 0x1a4   : > { %734 = vrot.lane.b32.xlu0 %v720_v24, %s5285_s29  ;;  %v4344_v24 = vld [vmem:[#allocation3 + $0x2] ss:$0 sm:$0xff] }
 0x1c7   : > { %v662_v25 = vpop.xlane.xlu1 %661 }
 0x1c8   : > { %v672_v26 = vsub.f32 %v5492_v8, %v662_v25 }
 0x1ca   : > { %v676_v27 = vmul.f32 1.442695, %v672_v26 }
 0x1cc   : > { %5133 = vpow2.f32 %v676_v27 }
 0x1d6   : > { %v5134_v28 = vpop.eup %5133 }
 0x1d7   : > { %v684_v29 = vsel %vm659_vm4, %v5134_v28, 0.0 }
 0x1d8   : > { %685 = vadd.xlane.f32.xlu0 %v684_v29  ;;  %v956_v29 = vpack.c.bf16 %v5586_v20, %v5586_v20 }
 0x217   : > { %v665_v30 = vpop.xlane.xlu0 %664  ;;  %v671_v31 = vpop.xlane.xlu1 %670 }
 0x218   : > { %v673_v32 = vsub.f32 %v5504_v14, %v665_v30  ;;  %v675_v33 = vsub.f32 %v5502_v13, %v671_v31  ;;  %v955_v14 = vpack.c.bf16 %v5579_v9, %v5579_v9 }
 0x21a   : > { %v678_v34 = vmul.f32 1.442695, %v673_v32  ;;  %v682_v35 = vmul.f32 1.442695, %v675_v33 }
 0x21b   : > { %v668_v36 = vpop.xlane.xlu0 %667  ;;  %v5530_v37 = vpop.permute.xlu1 %783 }
 0x21c   : > { %5135 = vpow2.f32 %v678_v34  ;;  %v674_v38 = vsub.f32 %v5511_v18, %v668_v36  ;;  %v789_v39 = vsel %vm659_vm4, %v5530_v37, 0  ;;  %v5601_v34 = vld [vmem:[#allocation2 + $0x10] sm:$0xff] }
 0x21d   : > { %4776 = vmatpush3.bf16.xpose.msra.mxu0 %v789_v39  ;;  %5137 = vpow2.f32 %v682_v35  ;;  %v957_v39 = vpack.c.bf16 %v5601_v34, %v5601_v34 }
 0x21e   : > { %v680_v40 = vmul.f32 1.442695, %v674_v38  ;;  %4787 = vmatprep.subr.bf16.mxu0 %v5280_v3  ;;  %v1004_v38 = vsel %vm959_vm5, %v956_v29, 0 }
 0x21f   : > { %v5536_v41 = vpop.permute.xlu0 %734 }
 0x220   : > { %5139 = vpow2.f32 %v680_v40  ;;  %v740_v42 = vsel %vm659_vm4, %v5536_v41, 0  ;;  %v5613_v40 = vld [vmem:[#allocation2 + $0x18] sm:$0xff] }
 0x221   : > { %4770 = vmatpush3.bf16.xpose.msra.mxu1 %v740_v42  ;;  %5141 = vpow2.f32 %v712_v47  ;;  %v1047_v42 = vsel %vm959_vm5, %v957_v39, 0 }
 0x222   : > { %4781 = vmatprep.subr.bf16.mxu1 %v5280_v3  ;;  %5143 = vpow2.f32 %v714_v50 }
 0x226   : > { %v5136_v43 = vpop.eup %5135 }
 0x227   : > { %v687_v44 = vsel %vm659_vm4, %v5136_v43, 0.0  ;;  %v5138_v45 = vpop.eup %5137 }
 0x228   : > { %688 = vadd.xlane.f32.xlu1 %v687_v44  ;;  %v693_v49 = vsel %vm659_vm4, %v5138_v45, 0.0 }
 0x22a   : > { %v5140_v46 = vpop.eup %5139 }
 0x22b   : > { %v690_v48 = vsel %vm659_vm4, %v5140_v46, 0.0  ;;  %v5546_v51 = vpop.eup %5141 }
 0x22c   : > { %691 = vadd.xlane.f32.xlu0 %v690_v48  ;;  %694 = vadd.xlane.f32.xlu1 %v693_v49  ;;  %v722_v52 = vpack.c.bf16 %v5546_v51, %v5546_v51  ;;  %v5550_v53 = vpop.eup %5143  ;;  %v728_v49 = vlaneseq }
 0x22d   : > { %v723_v55 = vpack.c.bf16 %v5550_v53, %v5550_v53 }
 0x22e   : > { %v731_v50 = vand.u32 127, %v728_v49 }
 0x23d   : > { %832 = vrot.lane.b32.xlu1 %v722_v52, %s5285_s29  ;;  %v5642_v52 = vshrl.u32 %v728_v49, 7 }
 0x23f   : > { %vm732_vm6 = vcmp.le.s32.totalorder %v731_v50, %v5642_v52 }
 0x241   : > { %1133 = vrot.lane.b32.xlu1 %v724_v54, %s5286_s15 }
 0x242   : > { %881 = vrot.lane.b32.xlu0 %v723_v55, %s5285_s29 }
 0x245   : > { %1231 = vrot.lane.b32.xlu1 %v726_v56, %s5286_s15 }
 0x246   : > { %1182 = vrot.lane.b32.xlu0 %v725_v57, %s5286_s15 }
 0x24a   : > { %1280 = vrot.lane.b32.xlu0 %v727_v58, %s5286_s15 }
 0x265   : > { %v686_v59 = vpop.xlane.xlu0 %685 }
 0x266   : > { %5145 = vrcp.f32 %v686_v59 }
 0x270   : > { %v5146_v60 = vpop.eup %5145 }
 0x271   : > { %v700_v61 = vmul.f32 %v5146_v60, %v5134_v28  ;;  %v961_v28 = vsel %vm959_vm5, %v955_v14, 0 }
 0x273   : > { %v5564_v62 = vmul.f32 0.35355338, %v700_v61 }
 0x275   : > { %v5568_v63 = vpack.c.bf16 %v5564_v62, %v5564_v62 }
 0x277   : > { %4772 = vmatmul.mubr.msk.bf16.vlgmr.msra.gmra.mrb[0].mxu1 %vm659_vm4, %v5568_v63 }
 0x278   : > { %4783 = vmatprep.mubr.msk.bf16.mxu1 %vm5281_vm2, %v5280_v3 }
 0x2b5   : > { %v689_v1 = vpop.xlane.xlu1 %688 }
 0x2b6   : > { %5147 = vrcp.f32 %v689_v1 }
 0x2b9   : > { %v692_v2 = vpop.xlane.xlu0 %691  ;;  %v695_v4 = vpop.xlane.xlu1 %694 }
 0x2ba   : > { %5149 = vrcp.f32 %v692_v2 }
 0x2bb   : > { %5151 = vrcp.f32 %v695_v4 }
 0x2bd   : > { %v5574_v5 = vpop.permute.xlu1 %832  ;;  %v5581_v13 = vpop.permute.xlu0 %881 }
 0x2be   : > { %v838_v6 = vsel %vm659_vm4, %v5574_v5, 0  ;;  %v887_v25 = vsel %vm659_vm4, %v5581_v13, 0 }
 0x2bf   : > { %4782 = vmatpush3.bf16.xpose.msra.mxu1 %v838_v6 }
 0x2c0   : > { %v5148_v7 = vpop.eup %5147  ;;  %4793 = vmatprep.subr.bf16.mxu1 %v5280_v3 }
 0x2c1   : > { %v701_v8 = vmul.f32 %v5148_v7, %v5136_v43  ;;  %v958_v43 = vpack.c.bf16 %v5613_v40, %v5613_v40  ;;  %v1183_v47 = vpop.permute.xlu0 %1182 }
 0x2c2   : > { %v1188_v48 = vsel %vm959_vm5, %v1183_v47, 0 }
 0x2c3   : > { %v705_v11 = vmul.f32 0.35355338, %v701_v8  ;;  %v1090_v44 = vsel %vm959_vm5, %v958_v43, 0 }
 0x2c4   : > { %v5150_v12 = vpop.eup %5149 }
 0x2c5   : > { %v5152_v15 = vpop.eup %5151  ;;  %v1379_v16 = vsel %vm659_vm4, %v705_v11, 0.0  ;;  %v717_v17 = vpack.c.bf16 %v705_v11, %v705_v11  ;;  %v702_v18 = vmul.f32 %v5150_v12, %v5140_v46  ;;  %v1357_v19 = vmul.f32 %v4343_v10, %v705_v11  ;;  %v1281_v1 = vpop.permute.xlu0 %1280  ;;  %v4345_v11 = vld [vmem:[#allocation3 + $0x3] ss:$0 sm:$0xff] }
 0x2c6   : > { %v703_v22 = vmul.f32 %v5152_v15, %v5138_v45  ;;  %1380 = vadd.xlane.f32.xlu0 %v1379_v16  ;;  %v1134_v45 = vpop.permute.xlu1 %1133  ;;  %v5659_v12 = vsel %vm959_vm5, %v1281_v1, 0 }
 0x2c7   : > { %4778 = vmatmul.mubr.msk.bf16.vlgmr.msra.gmra.mrb[4].mxu0 %vm659_vm4, %v717_v17  ;;  %v706_v26 = vmul.f32 0.35355338, %v702_v18  ;;  %v1363_v27 = vsel %vm659_vm4, %v1357_v19, 0.0  ;;  %v1139_v46 = vsel %vm959_vm5, %v1134_v45, 0 }
 0x2c8   : > { %4788 = vmatpush3.bf16.xpose.msra.mxu0 %v887_v25  ;;  %4789 = vmatprep.mubr.msk.bf16.mxu0 %vm5281_vm2, %v5280_v3  ;;  %v5597_v30 = vmul.f32 0.35355338, %v703_v22 }
 0x2c9   : > { %v718_v31 = vpack.c.bf16 %v706_v26, %v706_v26  ;;  %v1382_v32 = vsel %vm659_vm4, %v706_v26, 0.0  ;;  %v1358_v33 = vmul.f32 %v4344_v24, %v706_v26  ;;  %4799 = vmatprep.subr.bf16.mxu0 %v5280_v3 }
 0x2ca   : > { %1383 = vadd.xlane.f32.xlu1 %v1382_v32  ;;  %1364 = vadd.xlane.f32.xlu0 %v1363_v27  ;;  %v719_v36 = vpack.c.bf16 %v5597_v30, %v5597_v30  ;;  %v1232_v55 = vpop.permute.xlu1 %1231  ;;  %v1359_v22 = vmul.f32 %v4345_v11, %v5597_v30 }
 0x2cb   : > { %4784 = vmatmul.mubr.msk.bf16.vlgmr.msra.gmra.mrb[4].mxu1 %vm659_vm4, %v718_v31  ;;  %v1366_v35 = vsel %vm659_vm4, %v1358_v33, 0.0  ;;  %v5648_v61 = vsel %vm959_vm5, %v1232_v55, 0 }
 0x2cc   : > { %4794 = vmatpush3.bf16.msra.mxu1 %v961_v28  ;;  %4795 = vmatprep.mubr.msk.bf16.mxu1 %vm5281_vm2, %v5280_v3 }
 0x2cd   : > { %4805 = vmatprep.subr.bf16.mxu1 %v5280_v3 }
 0x2ce   : > { %1367 = vadd.xlane.f32.xlu0 %v1366_v35  ;;  %v4342_v35 = vld [vmem:[#allocation3] ss:$0 sm:$0xff] }
 0x2cf   : > { %4790 = vmatmul.mubr.msk.bf16.vlgmr.msra.gmra.mrb[8].mxu0 %vm659_vm4, %v719_v36  ;;  %v1356_v39 = vmul.f32 %v4342_v35, %v5564_v62 }
 0x2d0   : > { %4800 = vmatpush3.bf16.msra.mxu0 %v1004_v38  ;;  %4801 = vmatprep.mubr.msk.bf16.mxu0 %vm5281_vm2, %v5280_v3  ;;  %v1385_v38 = vsel %vm659_vm4, %v5597_v30, 0.0 }
 0x2d1   : > { %4811 = vmatprep.subr.bf16.mxu0 %v5280_v3  ;;  %v1360_v43 = vsel %vm659_vm4, %v1356_v39, 0.0 }
 0x2d3   : > { %4796 = vmatmul.mubr.msk.bf16.vlgmr.msra.gmra.mrb[8].mxu1 %vm659_vm4, %v5568_v63 }
 0x2d4   : > { %4806 = vmatpush3.bf16.msra.mxu1 %v1047_v42  ;;  %4807 = vmatprep.mubr.msk.bf16.mxu1 %vm5281_vm2, %v5280_v3  ;;  %v1376_v42 = vsel %vm659_vm4, %v5564_v62, 0.0 }
 0x2d5   : > { %4817 = vmatprep.subr.bf16.mxu1 %v5280_v3 }
 0x2d7   : > { %4802 = vmatmul.mubr.msk.bf16.vlgmr.msra.gmra.mrb[12].mxu0 %vm659_vm4, %v717_v17 }
 0x2d8   : > { %4812 = vmatpush3.bf16.msra.mxu0 %v1090_v44  ;;  %4813 = vmatprep.mubr.msk.bf16.mxu0 %vm5281_vm2, %v5280_v3 }
 0x2d9   : > { %4823 = vmatprep.subr.bf16.mxu0 %v5280_v3 }
 0x2db   : > { %4808 = vmatmul.mubr.msk.bf16.vlgmr.msra.gmra.mrb[12].mxu1 %vm659_vm4, %v718_v31  ;;  %v1369_v31 = vsel %vm659_vm4, %v1359_v22, 0.0 }
 0x2dc   : > { %4818 = vmatpush3.bf16.msra.mxu1 %v1139_v46  ;;  %4819 = vmatprep.mubr.msk.bf16.mxu1 %vm5281_vm2, %v5280_v3 }
 0x2dd   : > { %4829 = vmatprep.subr.bf16.mxu1 %v5280_v3 }
 0x2df   : > { %4814 = vmatmul.mubr.msk.bf16.vlgmr.msra.gmra.mrb[16].mxu0 %vm659_vm4, %v719_v36 }
 0x2e0   : > { %4824 = vmatpush3.bf16.msra.mxu0 %v1188_v48  ;;  %4825 = vmatprep.mubr.msk.bf16.mxu0 %vm5281_vm2, %v5280_v3 }
 0x2e1   : > { %4835 = vmatprep.subr.bf16.mxu0 %v5280_v3 }
 0x34a   : > { %v776_v54 = vpop.f32.mrb[0].mxu1 }
 0x34b   : > { %v931_v56 = vsel %vm732_vm6, %v776_v54, 0.0  ;;  %v4773_v57 = vpop.f32.mrb[1].mxu1 }
 0x34c   : > { %v935_v58 = vpack.c.bf16 %v931_v56, %v931_v56  ;;  %v779_v59 = vpop.f32.mrb[2].mxu1  ;;  %v939_v36 = vsel %vm659_vm4, %v931_v56, 0.0 }
 0x34d   : > { %v4774_v60 = vpop.f32.mrb[3].mxu1 }
 0x34e   : > { %4820 = vmatmul.mubr.msk.bf16.vlgmr.msra.gmra.mrb[8].mxu1 %vm659_vm4, %v935_v58 }
 0x34f   : > { %4830 = vmatpush3.bf16.msra.mxu1 %v5648_v61  ;;  %4831 = vmatprep.mubr.msk.bf16.mxu1 %vm5281_vm2, %v5280_v3 }
 0x350   : > { %4841 = vmatprep.subr.bf16.mxu1 %v5280_v3 }
 0x357   : > { %v1384_v30 = vpop.xlane.xlu1 %1383 }
 0x39a   : > { %v825_v63 = vpop.f32.mrb[4].mxu0 }
 0x39b   : > { %v932_v2 = vsel %vm732_vm6, %v825_v63, 0.0  ;;  %v4779_v4 = vpop.f32.mrb[5].mxu0  ;;  %v1390_v63 = vmul.f32 1e-06, %v1384_v30 }
 0x39c   : > { %v936_v6 = vpack.c.bf16 %v932_v2, %v932_v2  ;;  %v828_v7 = vpop.f32.mrb[6].mxu0  ;;  %v942_v8 = vsel %vm659_vm4, %v932_v2, 0.0 }
 0x39d   : > { %943 = vadd.xlane.f32.xlu1 %v942_v8  ;;  %v4780_v10 = vpop.f32.mrb[7].mxu0 }
 0x39e   : > { %v874_v14 = vpop.f32.mrb[4].mxu1  ;;  %4826 = vmatmul.mubr.msk.bf16.vlgmr.msra.gmra.mrb[12].mxu0 %vm659_vm4, %v936_v6 }
 0x39f   : > { %v933_v15 = vsel %vm732_vm6, %v874_v14, 0.0  ;;  %4836 = vmatpush3.bf16.msra.mxu0 %v5659_v12  ;;  %v4785_v16 = vpop.f32.mrb[5].mxu1  ;;  %4837 = vmatprep.mubr.msk.bf16.mxu0 %vm5281_vm2, %v5280_v3 }
 0x3a0   : > { %v937_v17 = vpack.c.bf16 %v933_v15, %v933_v15  ;;  %v877_v18 = vpop.f32.mrb[6].mxu1  ;;  %v945_v19 = vsel %vm659_vm4, %v933_v15, 0.0  ;;  %4847 = vmatprep.subr.bf16.mxu0 %v5280_v3 }
 0x3a1   : > { %v4786_v24 = vpop.f32.mrb[7].mxu1  ;;  %946 = vadd.xlane.f32.xlu1 %v945_v19 }
 0x3a2   : > { %v923_v25 = vpop.f32.mrb[8].mxu0  ;;  %4832 = vmatmul.mubr.msk.bf16.vlgmr.msra.gmra.mrb[12].mxu1 %vm659_vm4, %v937_v17 }
 0x3a3   : > { %v934_v26 = vsel %vm732_vm6, %v923_v25, 0.0  ;;  %4842 = vmatpush3.bf16.msra.mxu1 %v1139_v46  ;;  %v4791_v27 = vpop.f32.mrb[9].mxu0  ;;  %4843 = vmatprep.mubr.msk.bf16.mxu1 %vm5281_vm2, %v5280_v3 }
 0x3a4   : > { %v938_v28 = vpack.c.bf16 %v934_v26, %v934_v26  ;;  %v926_v29 = vpop.f32.mrb[10].mxu0  ;;  %v948_v32 = vsel %vm659_vm4, %v934_v26, 0.0  ;;  %4853 = vmatprep.subr.bf16.mxu1 %v5280_v3 }
 0x3a5   : > { %1370 = vadd.xlane.f32.xlu1 %v1369_v31  ;;  %949 = vadd.xlane.f32.xlu0 %v948_v32  ;;  %v4792_v33 = vpop.f32.mrb[11].mxu0 }
 0x3a6   : > { %4838 = vmatmul.mubr.msk.bf16.vlgmr.msra.gmra.mrb[16].mxu0 %vm659_vm4, %v938_v28 }
 0x3a7   : > { %4848 = vmatpush3.bf16.msra.mxu0 %v1188_v48  ;;  %4849 = vmatprep.mubr.msk.bf16.mxu0 %vm5281_vm2, %v5280_v3  ;;  %v1381_v48 = vpop.xlane.xlu0 %1380 }
 0x3a8   : > { %4859 = vmatprep.subr.bf16.mxu0 %v5280_v3  ;;  %v1389_v58 = vmul.f32 1e-06, %v1381_v48 }
 0x3a9   : > { %940 = vadd.xlane.f32.xlu1 %v939_v36  ;;  %1386 = vadd.xlane.f32.xlu0 %v1385_v38 }
 0x3ab   : > { %v1365_v49 = vpop.xlane.xlu0 %1364 }
 0x3ad   : > { %1377 = vadd.xlane.f32.xlu1 %v1376_v42  ;;  %1361 = vadd.xlane.f32.xlu0 %v1360_v43 }
 0x3af   : > { %v1368_v50 = vpop.xlane.xlu0 %1367 }
 0x421   : > { %v1175_v44 = vpop.f32.mrb[8].mxu1 }
 0x422   : > { %v4821_v45 = vpop.f32.mrb[9].mxu1 }
 0x423   : > { %v1178_v46 = vpop.f32.mrb[10].mxu1 }
 0x424   : > { %v4822_v47 = vpop.f32.mrb[11].mxu1 }
 0x42a   : > { %v944_v54 = vpop.xlane.xlu1 %943 }
 0x42b   : > { %v1373_v56 = vadd.f32 %v1365_v49, %v944_v54 }
 0x42d   : > { %v1393_v59 = vadd.f32 %v1389_v58, %v1373_v56 }
 0x42e   : > { %v947_v57 = vpop.xlane.xlu1 %946 }
 0x42f   : > { %v1374_v60 = vadd.f32 %v1368_v50, %v947_v57  ;;  %5153 = vrcp.f32 %v1393_v59 }
 0x431   : > { %v1394_v2 = vadd.f32 %v1390_v63, %v1374_v60  ;;  %v4999_v63 = vld [vmem:[%s6500_s6] sm:$0xff]  }
 0x432   : > { %v950_v55 = vpop.xlane.xlu0 %949  ;;  %v1371_v1 = vpop.xlane.xlu1 %1370 }
 0x433   : > { %v1375_v6 = vadd.f32 %v1371_v1, %v950_v55  ;;  %5155 = vrcp.f32 %v1394_v2  ;;  %v4350_v2 = vld [vmem:[%s6498_s4] ss:$0 sm:$0xff] }
 0x436   : > { %v1387_v62 = vpop.xlane.xlu0 %1386  ;;  %v941_v33 = vpop.xlane.xlu1 %940 }
 0x437   : > { %v1391_v4 = vmul.f32 1e-06, %v1387_v62 }
 0x439   : > { %v1395_v7 = vadd.f32 %v1391_v4, %v1375_v6  ;;  %v5154_v8 = vpop.eup %5153  ;;  %v4351_v6 = vld [vmem:[%s6499_s5] ss:$0 sm:$0xff] }
 0x43a   : > { %v1378_v35 = vpop.xlane.xlu1 %1377  ;;  %v1362_v36 = vpop.xlane.xlu0 %1361 }
 0x43b   : > { %5157 = vrcp.f32 %v1395_v7  ;;  %v1388_v38 = vmul.f32 1e-06, %v1378_v35  ;;  %v1372_v39 = vadd.f32 %v1362_v36, %v941_v33 }
 0x43d   : > { %v5156_v17 = vpop.eup %5155  ;;  %v1392_v42 = vadd.f32 %v1388_v38, %v1372_v39 }
 0x43f   : > { %5159 = vrcp.f32 %v1392_v42 }
 0x445   : > { %v5158_v26 = vpop.eup %5157 }
 0x449   : > { %v5160_v43 = vpop.eup %5159 }
 0x44a   : > { %v1400_v47 = vmul.f32 %v5160_v43, %v1175_v44 }
 0x471   : > { %v1224_v10 = vpop.f32.mrb[12].mxu0 }
 0x472   : > { %v1401_v11 = vmul.f32 %v5154_v8, %v1224_v10  ;;  %v4827_v14 = vpop.f32.mrb[13].mxu0 }
 0x473   : > { %v1227_v15 = vpop.f32.mrb[14].mxu0 }
 0x474   : > { %1774 = vrot.lane.b32.xlu0 %v1401_v11, %s5287_s16  ;;  %v4828_v16 = vpop.f32.mrb[15].mxu0 }
 0x475   : > { %v1273_v18 = vpop.f32.mrb[12].mxu1 }
 0x476   : > { %v1402_v19 = vmul.f32 %v5156_v17, %v1273_v18  ;;  %v4833_v22 = vpop.f32.mrb[13].mxu1 }
 0x477   : > { %v1276_v24 = vpop.f32.mrb[14].mxu1 }
 0x478   : > { %v4834_v25 = vpop.f32.mrb[15].mxu1  ;;  %1778 = vrot.lane.b32.xlu1 %v1402_v19, %s5288_s21 }
 0x479   : > { %v1322_v27 = vpop.f32.mrb[16].mxu0 }
 0x47a   : > { %v1403_v28 = vmul.f32 %v5158_v26, %v1322_v27  ;;  %v4839_v29 = vpop.f32.mrb[17].mxu0  ;;  %v4352_v26 = vld [vmem:[%s6501_s7] ss:$0 sm:$0xff] }
 0x47b   : > { %v1325_v31 = vpop.f32.mrb[18].mxu0 }
 0x47c   : > { %1782 = vrot.lane.b32.xlu1 %v1403_v28, %s5289_s14  ;;  %v4840_v32 = vpop.f32.mrb[19].mxu0 }
 0x4e6   : > { %v1775_v45 = vpop.permute.xlu0 %1774 }
 0x4e7   : > { %v1785_v48 = vsel %vm659_vm4, %v1400_v47, %v1775_v45 }
 0x4ea   : > { %v1779_v46 = vpop.permute.xlu1 %1778 }
 0x4eb   : > { %v1787_v49 = vsel %vm1786_vm7, %v1785_v48, %v1779_v46 }
 0x4ee   : > { %v1783_v30 = vpop.permute.xlu1 %1782 }
 0x4ef   : > { %v1789_v50 = vsel %vm1788_vm8, %v1787_v49, %v1783_v30 }
 0x4f0   : > { %v1790_v54 = vadd.f32 %v1789_v50, %v5466_v0 }
 0x4f2   : > { %v1793_v55 = vsel %vm605_vm3, %v1790_v54, 0.0 }
 0x4f3   : > { %1794 = vadd.xlane.f32.xlu0 %v1793_v55 }
 0x520   : > { %1406 = vxpose.xlu0.c.b16.start.end [1/1] (short) (narrow) %v5536_v41, 16 }
 0x580   : > { %v1795_v56 = vpop.xlane.xlu0 %1794 }
 0x581   : > { %v1797_v57 = vmul.f32 0.03125, %v1795_v56 }
 0x583   : > { %v1798_v58 = vsub.f32 %v1790_v54, %v1797_v57 }
 0x585   : > { %v1799_v44 = vmul.f32 %v1798_v58, %v1798_v58 }
 0x586   : > { %v1414_v59 = vpop.trf.xlu0 }
 0x587   : > { %4844 = vmatmul.mubr.msk.bf16.vlgmr.msra.gmra.mrb[16].mxu1 %vm659_vm4, %v1414_v59  ;;  %v1800_v60 = vsel %vm605_vm3, %v1799_v44, 0.0 }
 0x588   : > { %4854 = vmatpush3.bf16.msra.mxu1 %v5648_v61  ;;  %1801 = vadd.xlane.f32.xlu1 %v1800_v60  ;;  %v5000_v61 = vld [vmem:[%s6500_s6 + $0x8] sm:$0xff]  }
 0x589   : > { %4855 = vmatprep.mubr.msk.bf16.mxu1 %vm5281_vm2, %v5280_v3  ;;  %4865 = vmatprep.subr.bf16.mxu1 %v5280_v3 }
 0x5b5   : > { %1534 = vxpose.xlu1.c.b16.start.end [1/1] (short) (narrow) %v5574_v5, 16 }
 0x615   : > { %v1802_v0 = vpop.xlane.xlu1 %1801 }
 0x616   : > { %v1803_v41 = vmul.f32 0.03125, %v1802_v0 }
 0x618   : > { %v1804_v62 = vadd.f32 1e-05, %v1803_v41 }
 0x61a   : > { %5161 = vrsqrt.f32 %v1804_v62 }
 0x61b   : > { %v1542_v1 = vpop.trf.xlu1 }
 0x61c   : > { %4856 = vmatmul.mubr.msk.bf16.vlgmr.msra.gmra.mrb[20].mxu1 %vm659_vm4, %v1542_v1 }
 0x61d   : > { %4866 = vmatpush3.bf16.msra.mxu1 %v4999_v63  ;;  %4869 = vmatprep.mubr.msk.bf16.mxu1 %vm5281_vm2, %v5280_v3  ;;  %v1951_v63 = vld [vmem:[%s5461_s23 + $0x8] sm:$0xff] }
 0x61e   : > { %4867 = vmatprep.subr.bf16.mxu1 %v5280_v3  ;;  %v1955_v1 = vpack.c.bf16 %v1951_v63, %v1951_v63 }
 0x621   : > { %4868 = vmatpush3.bf16.msra.mxu1 %v5000_v61  ;;  %v2008_v61 = vsel %vm959_vm5, %v1955_v1, 0 }
 0x622   : > { %4879 = vmatprep.subr.bf16.mxu1 %v5280_v3 }
 0x624   : > { %v5162_v5 = vpop.eup %5161 }
 0x625   : > { %v1806_v4 = vmul.f32 %v5162_v5, %v1798_v58 }
 0x627   : > { %v1813_v7 = vmul.f32 %v4350_v2, %v1806_v4 }
 0x629   : > { %v5722_v8 = vadd.f32 %v4351_v6, %v1813_v7  ;;  %v1953_v7 = vld [vmem:[%s5461_s23 + $0x18] sm:$0xff] }
 0x62b   : > { %v1821_v10 = vpack.c.bf16 %v5722_v8, %v5722_v8 }
 0x62d   : > { %4870 = vmatmul.mubr.msk.bf16.vlgmr.msra.gmra.mrb[24].mxu1 %vm605_vm3, %v1821_v10 }
 0x62e   : > { %4881 = vmatprep.mubr.msk.bf16.mxu1 %vm5281_vm2, %v5280_v3  ;;  %4880 = vmatpush3.bf16.msra.mxu1 %v2008_v61 }
 0x62f   : > { %4891 = vmatprep.subr.bf16.mxu1 %v5280_v3 }
 0x65a   : > { %v1459_v11 = vpop.f32.mrb[16].mxu1 }
 0x65b   : > { %v1465_v14 = vadd.f32 %v1459_v11, %v5579_v9  ;;  %v4845_v15 = vpop.f32.mrb[17].mxu1  ;;  %v1950_v11 = vld [vmem:[%s5461_s23] sm:$0xff] }
 0x65c   : > { %v1462_v16 = vpop.f32.mrb[18].mxu1 }
 0x65d   : > { %1466 = vst.msk [vmem:[#allocation2] sm:$0xff] %vm659_vm4, %v1465_v14  ;;  %v4846_v17 = vpop.f32.mrb[19].mxu1 }
 0x6ef   : > { %v1587_v18 = vpop.f32.mrb[20].mxu1 }
 0x6f0   : > { %v1593_v19 = vadd.f32 %v1587_v18, %v5601_v34  ;;  %v4857_v22 = vpop.f32.mrb[21].mxu1 }
 0x6f1   : > { %v1590_v24 = vpop.f32.mrb[22].mxu1 }
 0x6f2   : > { %1594 = vst.msk [vmem:[#allocation2 + $0x10] sm:$0xff] %vm659_vm4, %v1593_v19  ;;  %v4858_v25 = vpop.f32.mrb[23].mxu1 }
 0x700   : > { %v1882_v27 = vpop.f32.mrb[24].mxu1 }
 0x701   : > { %v1883_v28 = vadd.f32 %v4352_v26, %v1882_v27  ;;  %v4871_v9 = vpop.f32.mrb[25].mxu1 }
 0x702   : > { %v1885_v29 = vpop.f32.mrb[26].mxu1 }
 0x703   : > { %1892 = vrot.lane.b32.xlu1 %v1883_v28, %s5284_s18  ;;  %1889 = vrot.lane.b32.xlu0 %v1883_v28, %s5283_s20  ;;  %v4872_v31 = vpop.f32.mrb[27].mxu1  ;;  %v1898_v34 = vsel %vm659_vm4, %v1883_v28, -inf }
 0x707   : > { %1895 = vrot.lane.b32.xlu0 %v1883_v28, %s5282_s19  ;;  %s6548_s19 = scalar_lea.vmem [#allocation4], %s5453_s26 }
 0x708   : > { %s4225_s20 = sshll.u32 %s6548_s19, 4  ;;  %s6438_s20 = int_to_ptr.vmem [resolvable:$true] %s4225_s20 }
 0x727   : > { %1899 = vmax.xlane.f32.xlu1 %v1898_v34 }
 0x775   : > { %v1890_v32 = vpop.permute.xlu0 %1889  ;;  %v1893_v35 = vpop.permute.xlu1 %1892 }
 0x776   : > { %v1901_v33 = vsel %vm659_vm4, %v1890_v32, -inf  ;;  %v1904_v38 = vsel %vm659_vm4, %v1893_v35, -inf }
 0x777   : > { %1902 = vmax.xlane.f32.xlu0 %v1901_v33 }
 0x779   : > { %v1896_v36 = vpop.permute.xlu0 %1895 }
 0x77a   : > { %v1907_v39 = vsel %vm659_vm4, %v1896_v36, -inf }
 0x77b   : > { %1905 = vmax.xlane.f32.xlu0 %v1904_v38  ;;  %1908 = vmax.xlane.f32.xlu1 %v1907_v39 }
 0x7b4   : > { %v1900_v42 = vpop.xlane.xlu1 %1899 }
 0x7b5   : > { %v1910_v43 = vsub.f32 %v1883_v28, %v1900_v42 }
 0x7b7   : > { %v1914_v45 = vmul.f32 1.442695, %v1910_v43 }
 0x7b9   : > { %5163 = vpow2.f32 %v1914_v45 }
 0x7c3   : > { %v5164_v46 = vpop.eup %5163 }
 0x7c4   : > { %v1922_v47 = vsel %vm659_vm4, %v5164_v46, 0.0 }
 0x7c5   : > { %1923 = vadd.xlane.f32.xlu0 %v1922_v47 }
 0x804   : > { %v1903_v48 = vpop.xlane.xlu0 %1902 }
 0x805   : > { %v1911_v49 = vsub.f32 %v1890_v32, %v1903_v48 }
 0x807   : > { %v1916_v30 = vmul.f32 1.442695, %v1911_v49 }
 0x808   : > { %v1906_v50 = vpop.xlane.xlu0 %1905  ;;  %v1909_v54 = vpop.xlane.xlu1 %1908 }
 0x809   : > { %5165 = vpow2.f32 %v1916_v30  ;;  %v1912_v55 = vsub.f32 %v1893_v35, %v1906_v50  ;;  %v1913_v56 = vsub.f32 %v1896_v36, %v1909_v54 }
 0x80b   : > { %v1918_v57 = vmul.f32 1.442695, %v1912_v55  ;;  %v1920_v58 = vmul.f32 1.442695, %v1913_v56 }
 0x80d   : > { %5167 = vpow2.f32 %v1918_v57 }
 0x80e   : > { %5169 = vpow2.f32 %v1920_v58 }
 0x813   : > { %v5166_v44 = vpop.eup %5165 }
 0x814   : > { %v1925_v59 = vsel %vm659_vm4, %v5166_v44, 0.0 }
 0x815   : > { %1926 = vadd.xlane.f32.xlu1 %v1925_v59 }
 0x817   : > { %v5168_v60 = vpop.eup %5167 }
 0x818   : > { %v5170_v0 = vpop.eup %5169  ;;  %v1928_v41 = vsel %vm659_vm4, %v5168_v60, 0.0 }
 0x819   : > { %1929 = vadd.xlane.f32.xlu0 %v1928_v41  ;;  %v1931_v62 = vsel %vm659_vm4, %v5170_v0, 0.0 }
 0x81a   : > { %1932 = vadd.xlane.f32.xlu1 %v1931_v62 }
 0x846   : > { %1470 = vxpose.xlu0.c.b16.start.end [1/1] (short) (narrow) %v5530_v37, 16  ;;  %v1957_v37 = vpack.c.bf16 %v1953_v7, %v1953_v7 }
 0x847   : > { %1598 = vxpose.xlu1.c.b16.start.end [1/1] (short) (narrow) %v5581_v13, 16  ;;  %v1954_v13 = vpack.c.bf16 %v1950_v11, %v1950_v11 }
 0x848   : > { %v2100_v24 = vsel %vm959_vm5, %v1957_v37, 0  ;;  %v1678_v37 = vsel %vm1663_vm9, %v5546_v51, 0.0 }
 0x849   : > { %v1962_v27 = vsel %vm959_vm5, %v1954_v13, 0 }
 0x852   : > { %v1924_v2 = vpop.xlane.xlu0 %1923 }
 0x8a2   : > { %v1927_v5 = vpop.xlane.xlu1 %1926 }
 0x8a3   : > { %5171 = vrcp.f32 %v1927_v5 }
 0x8a4   : > { %5173 = vrcp.f32 %v1924_v2 }
 0x8a6   : > { %v1930_v6 = vpop.xlane.xlu0 %1929 }
 0x8a7   : > { %v1933_v4 = vpop.xlane.xlu1 %1932 }
 0x8a8   : > { %5175 = vrcp.f32 %v1933_v4 }
 0x8a9   : > { %5177 = vrcp.f32 %v1930_v6 }
 0x8ac   : > { %v1478_v10 = vpop.trf.xlu0 }
 0x8ad   : > { %v5172_v14 = vpop.eup %5171  ;;  %4850 = vmatmul.mubr.msk.bf16.vlgmr.msra.gmra.mrb[20].mxu0 %vm659_vm4, %v1478_v10  ;;  %v1606_v22 = vpop.trf.xlu1 }
 0x8ae   : > { %v1939_v15 = vmul.f32 %v5172_v14, %v5166_v44  ;;  %4860 = vmatpush3.bf16.msra.mxu0 %v5659_v12  ;;  %4861 = vmatprep.mubr.msk.bf16.mxu0 %vm5281_vm2, %v5280_v3  ;;  %v5174_v16 = vpop.eup %5173  ;;  %v1952_v12 = vld [vmem:[%s5461_s23 + $0x10] sm:$0xff]  ;;  %v1664_v14 = vsel %vm1663_vm9, %v5521_v23, 0.0  ;;  %v5290_v23 = vmov 1966171168  }
 0x8af   : > { %4873 = vmatprep.subr.bf16.mxu0 %v5280_v3  ;;  %v1938_v25 = vmul.f32 %v5174_v16, %v5164_v46  ;;  %v1956_v29 = vpack.c.bf16 %v1952_v12, %v1952_v12  ;;  %v1679_v16 = vrot.slane %v1678_v37, 4 }
 0x8b0   : > { %v1943_v17 = vmul.f32 0.35355338, %v1939_v15  ;;  %v1665_v15 = vrot.slane %v1664_v14, 4 }
 0x8b1   : > { %v1942_v9 = vmul.f32 0.35355338, %v1938_v25  ;;  %v2054_v35 = vsel %vm959_vm5, %v1956_v29, 0 }
 0x8b2   : > { %v5176_v18 = vpop.eup %5175  ;;  %v1947_v19 = vpack.c.bf16 %v1943_v17, %v1943_v17  ;;  %v1666_v13 = vadd.f32 %v1665_v15, %v1664_v14  ;;  %v1659_v15 = vld [vmem:[#allocation3] sm:$0x1] }
 0x8b3   : > { %v1941_v26 = vmul.f32 %v5176_v18, %v5170_v0  ;;  %v5178_v31 = vpop.eup %5177  ;;  %v1946_v33 = vpack.c.bf16 %v1942_v9, %v1942_v9  ;;  %v1685_v18 = vsel %vm1663_vm9, %v5550_v53, 0.0 }
 0x8b4   : > { %4882 = vmatmul.mubr.msk.bf16.vlgmr.msra.gmra.mrb[28].mxu1 %vm659_vm4, %v1947_v19  ;;  %v1940_v32 = vmul.f32 %v5178_v31, %v5168_v60  ;;  %v1686_v25 = vrot.slane %v1685_v18, 4 }
 0x8b5   : > { %4862 = vmatmul.mubr.msk.bf16.vlgmr.msra.gmra.mrb[24].mxu0 %vm659_vm4, %v1606_v22  ;;  %4892 = vmatpush3.bf16.msra.mxu1 %v2100_v24  ;;  %v1945_v28 = vmul.f32 0.35355338, %v1941_v26  ;;  %v1680_v24 = vadd.f32 %v1679_v16, %v1678_v37 }
 0x8b6   : > { %4874 = vmatpush3.bf16.msra.mxu0 %v1962_v27  ;;  %4893 = vmatprep.mubr.msk.bf16.mxu1 %vm5281_vm2, %v5280_v3  ;;  %v1944_v36 = vmul.f32 0.35355338, %v1940_v32  ;;  %v1697_v27 = vunpack.c.l.s4 %v5290_v23  ;;  %v1687_v9 = vadd.f32 %v1686_v25, %v1685_v18  ;;  %v4360_v23 = vld [vmem:[%s6502_s8] ss:$0 sm:$0xff] }
 0x8b7   : > { %4875 = vmatprep.mubr.msk.bf16.mxu0 %vm5281_vm2, %v5280_v3  ;;  %4885 = vmatprep.subr.bf16.mxu0 %v5280_v3  ;;  %v1949_v34 = vpack.c.bf16 %v1945_v28, %v1945_v28  ;;  %v1681_v28 = vrot.slane %v1680_v24, 2 }
 0x8b8   : > { %v1948_v38 = vpack.c.bf16 %v1944_v36, %v1944_v36  ;;  %v1698_v31 = vunpack.c.0.s8 %v1697_v27 }
 0x8b9   : > { %v1682_v53 = vadd.f32 %v1681_v28, %v1680_v24  ;;  %v2206_v28 = vld [vmem:[%s6504_s10 + $0x90] sm:$0xff] }
 0x8bc   : > { %4894 = vmatmul.mubr.msk.bf16.vlgmr.msra.gmra.mrb[32].mxu1 %vm659_vm4, %v1949_v34  ;;  %v1688_v34 = vrot.slane %v1687_v9, 2 }
 0x8bd   : > { %4876 = vmatmul.mubr.msk.bf16.vlgmr.msra.gmra.mrb[28].mxu0 %vm659_vm4, %v1946_v33  ;;  %v5799_v33 = vsub.s32 %v1698_v31, %v5642_v52 }
 0x8be   : > { %4886 = vmatpush3.bf16.msra.mxu0 %v2054_v35  ;;  %4887 = vmatprep.mubr.msk.bf16.mxu0 %vm5281_vm2, %v5280_v3  ;;  %v1683_v35 = vrot.slane %v1682_v53, 1  ;;  %v1689_v36 = vadd.f32 %v1688_v34, %v1687_v9  ;;  %v2214_v9 = vld [vmem:[%s6504_s10 + $0xd0] sm:$0xff] }
 0x8bf   : > { %v4383_v34 = vcombine.high %v2206_v28, %v2214_v9 }
 0x8c5   : > { %4888 = vmatmul.mubr.msk.bf16.vlgmr.msra.gmra.mrb[32].mxu0 %vm659_vm4, %v1948_v38 }
 0x980   : > { %v1523_v39 = vpop.f32.mrb[20].mxu0 }
 0x981   : > { %v1529_v42 = vadd.f32 %v1523_v39, %v5586_v20  ;;  %v4851_v43 = vpop.f32.mrb[21].mxu0  ;;  %v1684_v39 = vadd.f32 %v1683_v35, %v1682_v53  ;;  %v2192_v35 = vld [vmem:[%s6504_s10 + $0x20] sm:$0xff] }
 0x982   : > { %v1526_v45 = vpop.f32.mrb[22].mxu0 }
 0x983   : > { %1530 = vst.msk [vmem:[#allocation2 + $0x8] sm:$0xff] %vm659_vm4, %v1529_v42  ;;  %v4852_v46 = vpop.f32.mrb[23].mxu0  ;;  %v1690_v42 = vrot.slane %v1689_v36, 1  ;;  %v1730_v45 = vrot.slane %v1684_v39, %v5799_v33  ;;  %v2201_v39 = vld [vmem:[%s6504_s10 + $0x68] sm:$0xff] }
 0x985   : > { %v1691_v46 = vadd.f32 %v1690_v42, %v1689_v36  ;;  %v2200_v36 = vld [vmem:[%s6504_s10 + $0x60] sm:$0xff]  ;;  %v4382_v42 = vcombine.low %v2206_v28, %v2214_v9  ;;  %v5021_v9 = vld [vmem:[%s6506_s12 + $0x68] sm:$0xff]  }
 0x986   : > { %v5020_v28 = vld [vmem:[%s6506_s12 + $0xa0] sm:$0xff]  }
 0x987   : > { %v2044_v47 = vpop.f32.mrb[28].mxu1 }
 0x988   : > { %2143 = vrot.lane.b32.xlu0 %v2044_v47, %s5287_s16  ;;  %v1651_v48 = vpop.f32.mrb[24].mxu0  ;;  %v4883_v49 = vpop.f32.mrb[29].mxu1  ;;  %v1737_v47 = vrot.slane %v1730_v45, %v5799_v33  ;;  %v4371_v45 = vcombine.high %v2192_v35, %v2200_v36 }
 0x989   : > { %v1657_v30 = vadd.f32 %v1651_v48, %v5613_v40  ;;  %v4863_v3 = vpop.f32.mrb[25].mxu0  ;;  %v2047_v50 = vpop.f32.mrb[30].mxu1  ;;  %v1744_v48 = vrot.slane %v1691_v46, %v5799_v33 }
 0x98a   : > { %v1654_v54 = vpop.f32.mrb[26].mxu0  ;;  %v4884_v55 = vpop.f32.mrb[31].mxu1  ;;  %v2196_v3 = vld [vmem:[%s6504_s10 + $0x40] sm:$0xff]  ;;  %v2189_v50 = vld [vmem:[%s6504_s10 + $0x8] sm:$0xff] }
 0x98b   : > { %1658 = vst.msk [vmem:[#allocation2 + $0x18] sm:$0xff] %vm659_vm4, %v1657_v30  ;;  %v4864_v56 = vpop.f32.mrb[27].mxu0  ;;  %v1751_v49 = vrot.slane %v1744_v48, %v5799_v33  ;;  %v2188_v30 = vld [vmem:[%s6504_s10] sm:$0xff]  ;;  %v2197_v55 = vld [vmem:[%s6504_s10 + $0x48] sm:$0xff] }
 0x98c   : > { %v4363_v54 = vcombine.high %v2188_v30, %v2196_v3  ;;  %v4362_v56 = vcombine.low %v2188_v30, %v2196_v3  ;;  %v2216_v48 = vld [vmem:[%s6504_s10 + $0xe0] sm:$0xff]  ;;  %v2217_v30 = vld [vmem:[%s6504_s10 + $0xe8] sm:$0xff]  ;;  %v4370_v3 = vcombine.low %v2192_v35, %v2200_v36  ;;  %v5027_v35 = vld [vmem:[%s6506_s12 + $0x30] sm:$0xff]  }
 0x98d   : > { %v5028_v36 = vld [vmem:[%s6506_s12 + $0xb0] sm:$0xff]  }
 0x98e   : > { %2467 = vmatprep.subr.bf16.mxu0 %v4363_v54 }
 0x98f   : > { %v2136_v20 = vpop.f32.mrb[32].mxu1  ;;  %2468 = vmatpush1.bf16.msra.mxu0 %v4362_v56  ;;  %v2194_v56 = vld [vmem:[%s6504_s10 + $0x30] sm:$0xff] }
 0x990   : > { %v1998_v57 = vpop.f32.mrb[28].mxu0  ;;  %v4895_v58 = vpop.f32.mrb[33].mxu1 }
 0x991   : > { %v4877_v44 = vpop.f32.mrb[29].mxu0  ;;  %v2139_v59 = vpop.f32.mrb[34].mxu1  ;;  %v2204_v58 = vld [vmem:[%s6504_s10 + $0x80] sm:$0xff] }
 0x992   : > { %v2001_v60 = vpop.f32.mrb[30].mxu0  ;;  %v4896_v0 = vpop.f32.mrb[35].mxu1  ;;  %v2212_v44 = vld [vmem:[%s6504_s10 + $0xc0] sm:$0xff]  ;;  %v2205_v59 = vld [vmem:[%s6504_s10 + $0x88] sm:$0xff] }
 0x993   : > { %v4878_v41 = vpop.f32.mrb[31].mxu0  ;;  %v4379_v60 = vcombine.high %v2204_v58, %v2212_v44  ;;  %v2213_v0 = vld [vmem:[%s6504_s10 + $0xc8] sm:$0xff] }
 0x994   : > { %v4378_v41 = vcombine.low %v2204_v58, %v2212_v44  ;;  %v2203_v58 = vld [vmem:[%s6504_s10 + $0x78] sm:$0xff] }
 0x995   : > { %2469 = vmatprep.subr.bf16.mxu0 %v4379_v60 }
 0x996   : > { %2470 = vmatpush1.bf16.msra.mxu0 %v4378_v41  ;;  %v2210_v41 = vld [vmem:[%s6504_s10 + $0xb0] sm:$0xff] }
 0x998   : > { %v2090_v62 = vpop.f32.mrb[32].mxu0 }
 0x999   : > { %2147 = vrot.lane.b32.xlu1 %v2090_v62, %s5288_s21  ;;  %v4889_v63 = vpop.f32.mrb[33].mxu0  ;;  %v4380_v62 = vcombine.low %v2205_v59, %v2213_v0  ;;  %s4534_s21 = sshll.u32 %s5265_s25, 1  ;;  %s6549_s25 = sld [smem:[#allocation22_spill]] }
 0x99a   : > { %v2093_v40 = vpop.f32.mrb[34].mxu0  ;;  %v4381_v63 = vcombine.high %v2205_v59, %v2213_v0  ;;  %s4221_s17 = sadd.s32 %s5261_s24, %s4534_s21  ;;  %s6551_s24 = smov %s6548_s19 }
 0x99b   : > { %v4890_v1 = vpop.f32.mrb[35].mxu0  ;;  %v2190_v40 = vld [vmem:[%s6504_s10 + $0x10] sm:$0xff]  ;;  %s4535_s23 = sshll.u32 %s4221_s17, 7  ;;  %s6552_s21 = sand.u32 1, %s5253_s22  }
 0x99c   : > { %v2198_v1 = vld [vmem:[%s6504_s10 + $0x50] sm:$0xff]  ;;  %s4210_s15 = scalar_lea.sflag [#allocation5], %s6552_s21  ;;  %s5183_s17 = scalar_lea.vmem %s6438_s20, 128 }
 0x99d   : > { %2151 = vrot.lane.b32.xlu1 %v2136_v20, %s5289_s14  ;;  %v4364_v20 = vcombine.low %v2189_v50, %v2197_v55  ;;  %p5184_p1 = scmp.ne.s32.totalorder %s6438_s20, %s5183_s17 }
 0x99f   : > { %s6550_s1 = smov %s6549_s25  ;;  %s6436_s2 = scalar_lea.hbm %s6549_s25, %s4535_s23 }
 0x9a0   : > { %p5185_p2 = pnand %p5184_p1, %p5429_p3 }
 0x9a2   : > { %p5186_p4 = pneg %p5185_p2 }
 0x9fa   : > { %v2144_v61 = vpop.permute.xlu0 %2143 }
 0x9fb   : > { %v2154_v2 = vsel %vm659_vm4, %v1998_v57, %v2144_v61  ;;  %v4365_v57 = vcombine.high %v2189_v50, %v2197_v55  ;;  %v2191_v61 = vld [vmem:[%s6504_s10 + $0x18] sm:$0xff] }
 0x9fd   : > { %2508 = vmatprep.subr.bf16.mxu1 %v4365_v57  ;;  %v2195_v57 = vld [vmem:[%s6504_s10 + $0x38] sm:$0xff] }
 0x9fe   : > { %2509 = vmatpush1.bf16.msra.mxu1 %v4364_v20  ;;  %v2202_v20 = vld [vmem:[%s6504_s10 + $0x70] sm:$0xff]  ;;  %v4377_v0 = vcombine.high %v2195_v57, %v2203_v58 }
 0x9ff   : > { %2510 = vmatprep.subr.bf16.mxu1 %v4381_v63  ;;  %v4375_v60 = vcombine.high %v2194_v56, %v2202_v20  ;;  %v2211_v63 = vld [vmem:[%s6504_s10 + $0xb8] sm:$0xff] }
 0xa02   : > { %2511 = vmatpush1.bf16.msra.mxu1 %v4380_v62  ;;  %v2218_v62 = vld [vmem:[%s6504_s10 + $0xf0] sm:$0xff] }
 0xa0b   : > { %v2148_v5 = vpop.permute.xlu1 %2147 }
 0xa0c   : > { %v2155_v4 = vsel %vm1786_vm7, %v2154_v2, %v2148_v5  ;;  %v5291_v5 = vmov 0   ;;  %v4367_v2 = vcombine.high %v2190_v40, %v2198_v1 }
 0xa0d   : > { %2499 = vmatprep.mubr.bf16.mxu0 %v5291_v5  ;;  %2540 = vmatprep.mubr.bf16.mxu1 %v5291_v5 }
 0xa0e   : > { %2549 = vmatprep.subr.bf16.mxu0 %v4367_v2  ;;  %v4391_v2 = vcombine.high %v2210_v41, %v2218_v62 }
 0xa0f   : > { %v2152_v6 = vpop.permute.xlu1 %2151 }
 0xa10   : > { %v2156_v7 = vsel %vm1788_vm8, %v2155_v4, %v2152_v6  ;;  %v2199_v4 = vld [vmem:[%s6504_s10 + $0x58] sm:$0xff]  ;;  %v4366_v6 = vcombine.low %v2190_v40, %v2198_v1  ;;  %v4374_v1 = vcombine.low %v2194_v56, %v2202_v20 }
 0xa11   : > { %v2157_v10 = vadd.f32 %v2156_v7, %v5722_v8  ;;  %v1667_v8 = vrot.slane %v1666_v13, 2  ;;  %v4368_v7 = vcombine.low %v2191_v61, %v2199_v4  ;;  %v2219_v40 = vld [vmem:[%s6504_s10 + $0xf8] sm:$0xff] }
 0xa13   : > { %v2160_v11 = vsel %vm605_vm3, %v2157_v10, 0.0  ;;  %v1668_v51 = vadd.f32 %v1667_v8, %v1666_v13  ;;  %v1662_v8 = vld [vmem:[#allocation3 + $0x3] sm:$0x1] }
 0xa14   : > { %2161 = vadd.xlane.f32.xlu0 %v2160_v11 }
 0xa15   : > { %v1669_v29 = vrot.slane %v1668_v51, 1 }
 0xa17   : > { %v1670_v32 = vadd.f32 %v1669_v29, %v1668_v51  ;;  %v2207_v29 = vld [vmem:[%s6504_s10 + $0x98] sm:$0xff] }
 0xa19   : > { %v1702_v38 = vrot.slane %v1670_v32, %v5799_v33 }
 0xa1b   : > { %v1709_v43 = vrot.slane %v1702_v38, %v5799_v33  ;;  %v2193_v38 = vld [vmem:[%s6504_s10 + $0x28] sm:$0xff] }
 0xa1c   : > { %v4373_v46 = vcombine.high %v2193_v38, %v2201_v39  ;;  %v4372_v50 = vcombine.low %v2193_v38, %v2201_v39  ;;  %v5029_v38 = vld [vmem:[%s6506_s12 + $0x78] sm:$0xff]  }
 0xa1d   : > { %v5030_v39 = vld [vmem:[%s6506_s12 + $0xf8] sm:$0xff]  }
 0xaa1   : > { %v2162_v17 = vpop.xlane.xlu0 %2161 }
 0xaa2   : > { %v2163_v19 = vmul.f32 0.03125, %v2162_v17  ;;  %v1661_v17 = vld [vmem:[#allocation3 + $0x2] sm:$0x1] }
 0xaa4   : > { %v5793_v22 = vsub.f32 %v2157_v10, %v2163_v19  ;;  %v4369_v10 = vcombine.high %v2191_v61, %v2199_v4  ;;  %v4376_v61 = vcombine.low %v2195_v57, %v2203_v58  ;;  %v4393_v4 = vcombine.high %v2211_v63, %v2219_v40 }
 0xaa6   : > { %v2165_v26 = vmul.f32 %v5793_v22, %v5793_v22  ;;  %2590 = vmatprep.subr.bf16.mxu1 %v4369_v10  ;;  %v5001_v10 = vld [vmem:[%s6506_s12 + $0x40] sm:$0xff]  }
 0xaa8   : > { %v2166_v12 = vsel %vm605_vm3, %v2165_v26, 0.0 }
 0xaa9   : > { %2167 = vadd.xlane.f32.xlu1 %v2166_v12  ;;  %v4361_v12 = vld [vmem:[%s6503_s9] ss:$0 sm:$0xff] }
 0xaba   : > { %1752 = vrot.lane.b32.xlu1 %v1709_v43, %s5285_s29 }
 0xabe   : > { %1756 = vrot.lane.b32.xlu1 %v1737_v47, %s5285_s29  ;;  %v2208_v47 = vld [vmem:[%s6504_s10 + $0xa0] sm:$0xff] }
 0xabf   : > { %v4387_v54 = vcombine.high %v2208_v47, %v2216_v48  ;;  %v4386_v44 = vcombine.low %v2208_v47, %v2216_v48  ;;  %v2250_v47 = vsub.s32 6, %v5642_v52  ;;  %v6052_v48 = vld [vmem:[%s6505_s11 + $0x8] sm:$0xff] }
 0xac2   : > { %1758 = vrot.lane.b32.xlu1 %v1751_v49, %s5285_s29  ;;  %v2209_v49 = vld [vmem:[%s6504_s10 + $0xa8] sm:$0xff] }
 0xac3   : > { %v4389_v55 = vcombine.high %v2209_v49, %v2217_v30  ;;  %v4388_v59 = vcombine.low %v2209_v49, %v2217_v30  ;;  %v6057_v49 = vrot.slane %v6052_v48, %v2250_v47  ;;  %v2226_v30 = vsub.s32 0, %v5642_v52 }
 0xb36   : > { %v2168_v11 = vpop.xlane.xlu1 %2167 }
 0xb37   : > { %v2169_v14 = vmul.f32 0.03125, %v2168_v11  ;;  %v5002_v11 = vld [vmem:[%s6506_s12 + $0xc0] sm:$0xff]  }
 0xb39   : > { %v2170_v37 = vadd.f32 1e-05, %v2169_v14  ;;  %v5003_v14 = vld [vmem:[%s6506_s12] sm:$0xff]  }
 0xb3a   : > { %v1753_v13 = vpop.permute.xlu1 %1752 }
 0xb3b   : > { %5179 = vrsqrt.f32 %v2170_v37  ;;  %v1764_v16 = vadd.f32 %v1753_v13, %v1659_v15  ;;  %v5004_v15 = vld [vmem:[%s6506_s12 + $0x80] sm:$0xff]   ;;  %v5005_v37 = vld [vmem:[%s6506_s12 + $0x48] sm:$0xff]  }
 0xb3c   : > { %v5007_v13 = vld [vmem:[%s6506_s12 + $0x8] sm:$0xff]  }
 0xb3d   : > { %1769 = vst.msk [vmem:[#allocation3] sm:$0x1] %vm1768_vm10, %v1764_v16  ;;  %v5008_v16 = vld [vmem:[%s6506_s12 + $0x88] sm:$0xff]  }
 0xb3e   : > { %v1757_v18 = vpop.permute.xlu1 %1756 }
 0xb3f   : > { %v1766_v19 = vadd.f32 %v1757_v18, %v1661_v17  ;;  %v5009_v17 = vld [vmem:[%s6506_s12 + $0x50] sm:$0xff]  }
 0xb40   : > { %v5010_v18 = vld [vmem:[%s6506_s12 + $0xd0] sm:$0xff]  }
 0xb41   : > { %1771 = vst.msk [vmem:[#allocation3 + $0x2] sm:$0x1] %vm1768_vm10, %v1766_v19  ;;  %v5011_v19 = vld [vmem:[%s6506_s12 + $0x10] sm:$0xff]  }
 0xb42   : > { %v1759_v24 = vpop.permute.xlu1 %1758 }
 0xb43   : > { %v1767_v25 = vadd.f32 %v1759_v24, %v1662_v8  ;;  %v5012_v8 = vld [vmem:[%s6506_s12 + $0x90] sm:$0xff]   ;;  %v5013_v24 = vld [vmem:[%s6506_s12 + $0x58] sm:$0xff]  }
 0xb45   : > { %v5180_v26 = vpop.eup %5179  ;;  %1772 = vst.msk [vmem:[#allocation3 + $0x3] sm:$0x1] %vm1768_vm10, %v1767_v25  ;;  %v5014_v25 = vld [vmem:[%s6506_s12 + $0xd8] sm:$0xff]  }
 0xb46   : > { %v2172_v27 = vmul.f32 %v5180_v26, %v5793_v22  ;;  %v2215_v22 = vld [vmem:[%s6504_s10 + $0xd8] sm:$0xff] }
 0xb47   : > { %v4385_v32 = vcombine.high %v2207_v29, %v2215_v22  ;;  %v4384_v43 = vcombine.low %v2207_v29, %v2215_v22  ;;  %v5015_v26 = vld [vmem:[%s6506_s12 + $0x18] sm:$0xff]   ;;  %v5022_v29 = vld [vmem:[%s6506_s12 + $0xe8] sm:$0xff]  }
 0xb48   : > { %v2179_v51 = vmul.f32 %v4360_v23, %v2172_v27  ;;  %v5016_v23 = vld [vmem:[%s6506_s12 + $0x98] sm:$0xff]   ;;  %v5017_v27 = vld [vmem:[%s6506_s12 + $0x60] sm:$0xff]   ;;  %v5023_v22 = vld [vmem:[%s6506_s12 + $0x28] sm:$0xff]  }
 0xb4a   : > { %v5870_v31 = vadd.f32 %v4361_v12, %v2179_v51  ;;  %v5018_v12 = vld [vmem:[%s6506_s12 + $0xe0] sm:$0xff]  }
 0xb4b   : > { %v5019_v51 = vld [vmem:[%s6506_s12 + $0x20] sm:$0xff]  }
 0xb4c   : > { %v5874_v53 = vpack.c.bf16 %v5870_v31, %v5870_v31 }
 0xb4e   : > { %4394 = vmatmul.mubr.msk.bf16.vlgmr.msra.gmra.mrb[36].mxu0 %vm605_vm3, %v5874_v53  ;;  %4395 = vmatmul.mubr.msk.bf16.vlgmr.msra.gmra.mrb[36].mxu1 %vm605_vm3, %v5874_v53 }
 0xb4f   : > { %2550 = vmatpush1.bf16.msra.mxu0 %v4366_v6  ;;  %2591 = vmatpush1.bf16.msra.mxu1 %v4368_v7  ;;  %v4390_v6 = vcombine.low %v2210_v41, %v2218_v62  ;;  %v4392_v7 = vcombine.low %v2211_v63, %v2219_v40 }
 0xb50   : > { %2551 = vmatprep.subr.bf16.mxu0 %v4383_v34  ;;  %2592 = vmatprep.subr.bf16.mxu1 %v4385_v32  ;;  %v5025_v34 = vld [vmem:[%s6506_s12 + $0x70] sm:$0xff]  }
 0xb51   : > { %2581 = vmatprep.mubr.bf16.mxu0 %v5291_v5  ;;  %2622 = vmatprep.mubr.bf16.mxu1 %v5291_v5  ;;  %v5026_v32 = vld [vmem:[%s6506_s12 + $0xf0] sm:$0xff]  }
 0xb53   : > { %2552 = vmatpush1.bf16.msra.mxu0 %v4382_v42  ;;  %2593 = vmatpush1.bf16.msra.mxu1 %v4384_v43  ;;  %v5031_v42 = vld [vmem:[%s6506_s12 + $0x38] sm:$0xff]  }
 0xb54   : > { %2631 = vmatprep.subr.bf16.mxu0 %v4371_v45  ;;  %2672 = vmatprep.subr.bf16.mxu1 %v4373_v46  ;;  %v5032_v43 = vld [vmem:[%s6506_s12 + $0xb8] sm:$0xff]   ;;  %v5033_v45 = vld [vmem:[%s6506_s12 + $0x140] sm:$0xff]  }
 0xb55   : > { %v5034_v46 = vld [vmem:[%s6506_s12 + $0x1c0] sm:$0xff]  }
 0xb56   : > { %4396 = vmatmul.mubr.msk.bf16.vlgmr.msra.gmra.mrb[40].mxu0 %vm605_vm3, %v5874_v53  ;;  %4397 = vmatmul.mubr.msk.bf16.vlgmr.msra.gmra.mrb[40].mxu1 %vm605_vm3, %v5874_v53 }
 0xb57   : > { %2632 = vmatpush1.bf16.msra.mxu0 %v4370_v3  ;;  %2673 = vmatpush1.bf16.msra.mxu1 %v4372_v50  ;;  %v2234_v3 = vsub.s32 2, %v5642_v52  ;;  %v6064_v50 = vld [vmem:[%s6505_s11] sm:$0xff] }
 0xb58   : > { %2633 = vmatprep.subr.bf16.mxu0 %v4387_v54  ;;  %2674 = vmatprep.subr.bf16.mxu1 %v4389_v55  ;;  %v2230_v54 = vsub.s32 1, %v5642_v52  ;;  %v2238_v55 = vsub.s32 3, %v5642_v52  ;;  %v2227_v56 = vrot.slane %v6064_v50, %v2226_v30 }
 0xb59   : > { %2663 = vmatprep.mubr.bf16.mxu0 %v5291_v5  ;;  %2704 = vmatprep.mubr.bf16.mxu1 %v5291_v5  ;;  %v2235_v20 = vrot.slane %v6064_v50, %v2234_v3 }
 0xb5a   : > { %v2231_v57 = vrot.slane %v6064_v50, %v2230_v54  ;;  %v2239_v58 = vrot.slane %v6064_v50, %v2238_v55 }
 0xb5b   : > { %2634 = vmatpush1.bf16.msra.mxu0 %v4386_v44  ;;  %2675 = vmatpush1.bf16.msra.mxu1 %v4388_v59 }
 0xb5c   : > { %2713 = vmatprep.subr.bf16.mxu0 %v4375_v60  ;;  %2754 = vmatprep.subr.bf16.mxu1 %v4377_v0 }
 0xb5e   : > { %4398 = vmatmul.mubr.msk.bf16.vlgmr.msra.gmra.mrb[44].mxu0 %vm605_vm3, %v5874_v53  ;;  %4399 = vmatmul.mubr.msk.bf16.vlgmr.msra.gmra.mrb[44].mxu1 %vm605_vm3, %v5874_v53 }
 0xb5f   : > { %2714 = vmatpush1.bf16.msra.mxu0 %v4374_v1  ;;  %2755 = vmatpush1.bf16.msra.mxu1 %v4376_v61 }
 0xb60   : > { %2715 = vmatprep.subr.bf16.mxu0 %v4391_v2  ;;  %2756 = vmatprep.subr.bf16.mxu1 %v4393_v4  ;;  %v2246_v2 = vsub.s32 5, %v5642_v52  ;;  %v2254_v4 = vsub.s32 7, %v5642_v52 }
 0xb61   : > { %2745 = vmatprep.mubr.bf16.mxu0 %v5291_v5  ;;  %2786 = vmatprep.mubr.bf16.mxu1 %v5291_v5  ;;  %v5006_v5 = vld [vmem:[%s6506_s12 + $0xc8] sm:$0xff]  }
 0xb63   : > { %2716 = vmatpush1.bf16.msra.mxu0 %v4390_v6  ;;  %2757 = vmatpush1.bf16.msra.mxu1 %v4392_v7 }
 0xb64   : > { %4585 = vmatprep.subr.bf16.mxu0 %v5001_v10  ;;  %4607 = vmatprep.subr.bf16.mxu1 %v5002_v11 }
 0xb66   : > { %4400 = vmatmul.mubr.msk.bf16.vlgmr.msra.gmra.mrb[48].mxu0 %vm605_vm3, %v5874_v53  ;;  %4401 = vmatmul.mubr.msk.bf16.vlgmr.msra.gmra.mrb[48].mxu1 %vm605_vm3, %v5874_v53  ;;  %v5024_v53 = vld [vmem:[%s6506_s12 + $0xa8] sm:$0xff]  }
 0xb67   : > { %4586 = vmatpush3.bf16.msra.mxu0 %v5003_v14  ;;  %4608 = vmatpush3.bf16.msra.mxu1 %v5004_v15 }
 0xb68   : > { %4587 = vmatprep.subr.bf16.mxu0 %v5005_v37  ;;  %4609 = vmatprep.subr.bf16.mxu1 %v5006_v5 }
 0xb6b   : > { %4588 = vmatpush3.bf16.msra.mxu0 %v5007_v13  ;;  %4610 = vmatpush3.bf16.msra.mxu1 %v5008_v16  ;;  %v2247_v13 = vrot.slane %v6064_v50, %v2246_v2  ;;  %v2255_v16 = vrot.slane %v6064_v50, %v2254_v4 }
 0xb6c   : > { %4589 = vmatprep.subr.bf16.mxu0 %v5009_v17  ;;  %4611 = vmatprep.subr.bf16.mxu1 %v5010_v18  ;;  %v5035_v17 = vld [vmem:[%s6506_s12 + $0x100] sm:$0xff]  }
 0xb6d   : > { %v5036_v18 = vld [vmem:[%s6506_s12 + $0x180] sm:$0xff]  }
 0xb6f   : > { %4590 = vmatpush3.bf16.msra.mxu0 %v5011_v19  ;;  %4612 = vmatpush3.bf16.msra.mxu1 %v5012_v8 }
 0xb70   : > { %4591 = vmatprep.subr.bf16.mxu0 %v5013_v24  ;;  %4613 = vmatprep.subr.bf16.mxu1 %v5014_v25  ;;  %v5037_v24 = vld [vmem:[%s6506_s12 + $0x148] sm:$0xff]  }
 0xb71   : > { %v5038_v25 = vld [vmem:[%s6506_s12 + $0x1c8] sm:$0xff]  }
 0xb73   : > { %4592 = vmatpush3.bf16.msra.mxu0 %v5015_v26  ;;  %4614 = vmatpush3.bf16.msra.mxu1 %v5016_v23 }
 0xb74   : > { %4593 = vmatprep.subr.bf16.mxu0 %v5017_v27  ;;  %4615 = vmatprep.subr.bf16.mxu1 %v5018_v12 }
 0xb77   : > { %4594 = vmatpush3.bf16.msra.mxu0 %v5019_v51  ;;  %4616 = vmatpush3.bf16.msra.mxu1 %v5020_v28 }
 0xb78   : > { %4595 = vmatprep.subr.bf16.mxu0 %v5021_v9  ;;  %4617 = vmatprep.subr.bf16.mxu1 %v5022_v29 }
 0xb7b   : > { %4596 = vmatpush3.bf16.msra.mxu0 %v5023_v22  ;;  %4618 = vmatpush3.bf16.msra.mxu1 %v5024_v53  ;;  %v5039_v22 = vld [vmem:[%s6506_s12 + $0x108] sm:$0xff]  }
 0xb7c   : > { %4597 = vmatprep.subr.bf16.mxu0 %v5025_v34  ;;  %4619 = vmatprep.subr.bf16.mxu1 %v5026_v32  ;;  %v5040_v53 = vld [vmem:[%s6506_s12 + $0x188] sm:$0xff]  }
 0xb7f   : > { %4598 = vmatpush3.bf16.msra.mxu0 %v5027_v35  ;;  %4620 = vmatpush3.bf16.msra.mxu1 %v5028_v36  ;;  %v5041_v35 = vld [vmem:[%s6506_s12 + $0x150] sm:$0xff]  }
 0xb80   : > { %4599 = vmatprep.subr.bf16.mxu0 %v5029_v38  ;;  %4621 = vmatprep.subr.bf16.mxu1 %v5030_v39  ;;  %v5042_v36 = vld [vmem:[%s6506_s12 + $0x1d0] sm:$0xff]  }
 0xb83   : > { %4600 = vmatpush3.bf16.msra.mxu0 %v5031_v42  ;;  %4622 = vmatpush3.bf16.msra.mxu1 %v5032_v43  ;;  %v2259_v42 = vrot.slane %v6052_v48, %v2226_v30  ;;  %v2267_v43 = vrot.slane %v6052_v48, %v2234_v3  ;;  %v5045_v30 = vld [vmem:[%s6506_s12 + $0x158] sm:$0xff]  }
 0xb84   : > { %4629 = vmatprep.subr.bf16.mxu0 %v5033_v45  ;;  %4651 = vmatprep.subr.bf16.mxu1 %v5034_v46  ;;  %v5046_v3 = vld [vmem:[%s6506_s12 + $0x1d8] sm:$0xff]  }
 0xc21   : > { %v2501_v44 = vpop.f32.mrb[36].mxu0  ;;  %v2542_v59 = vpop.f32.mrb[36].mxu1 }
 0xc22   : > { %v2502_v60 = vadd.f32 %v2501_v44, %v2227_v56  ;;  %v2543_v0 = vadd.f32 %v2542_v59, %v2235_v20  ;;  %v2503_v41 = vpop.f32.mrb[37].mxu0  ;;  %v2544_v62 = vpop.f32.mrb[37].mxu1  ;;  %v5043_v56 = vld [vmem:[%s6506_s12 + $0x110] sm:$0xff]  }
 0xc23   : > { %v2504_v63 = vadd.f32 %v2503_v41, %v2231_v57  ;;  %v2545_v40 = vadd.f32 %v2544_v62, %v2239_v58  ;;  %v2505_v1 = vpop.f32.mrb[38].mxu0  ;;  %v2546_v61 = vpop.f32.mrb[38].mxu1  ;;  %v5044_v20 = vld [vmem:[%s6506_s12 + $0x190] sm:$0xff]  }
 0xc24   : > { %v2795_v6 = vmax.f32 %v2502_v60, 0.0  ;;  %v2797_v7 = vmax.f32 %v2543_v0, 0.0  ;;  %v2506_v10 = vpop.f32.mrb[39].mxu0  ;;  %v2547_v11 = vpop.f32.mrb[39].mxu1  ;;  %v2242_v1 = vsub.s32 4, %v5642_v52  ;;  %v5094_v52 = vld [vmem:[%s6506_s12 + $0x2f8] sm:$0xff]  }
 0xc25   : > { %v2796_v14 = vmax.f32 %v2504_v63, 0.0  ;;  %v2798_v15 = vmax.f32 %v2545_v40, 0.0  ;;  %v5047_v63 = vld [vmem:[%s6506_s12 + $0x118] sm:$0xff]   ;;  %v5050_v10 = vld [vmem:[%s6506_s12 + $0x1e0] sm:$0xff]  }
 0xc26   : > { %v2811_v19 = vpack.c.bf16 %v2795_v6, %v2795_v6  ;;  %v2813_v8 = vpack.c.bf16 %v2797_v7, %v2797_v7  ;;  %v5048_v40 = vld [vmem:[%s6506_s12 + $0x198] sm:$0xff]   ;;  %v5049_v7 = vld [vmem:[%s6506_s12 + $0x160] sm:$0xff]   ;;  %v2275_v11 = vrot.slane %v6052_v48, %v2242_v1 }
 0xc27   : > { %v2812_v37 = vpack.c.bf16 %v2796_v14, %v2796_v14  ;;  %v2814_v5 = vpack.c.bf16 %v2798_v15, %v2798_v15  ;;  %v5051_v14 = vld [vmem:[%s6506_s12 + $0x120] sm:$0xff]  }
 0xc28   : > { %v5052_v15 = vld [vmem:[%s6506_s12 + $0x1a0] sm:$0xff]  }
 0xc29   : > { %v6096_v26 = vpop.f32.mrb[40].mxu0  ;;  %v6098_v23 = vpop.f32.mrb[40].mxu1  ;;  %3890 = vmatprep.mubr.bf16.mxu0 %v2812_v37  ;;  %3930 = vmatprep.mubr.bf16.mxu1 %v2814_v5  ;;  %v5053_v37 = vld [vmem:[%s6506_s12 + $0x168] sm:$0xff]  }
 0xc2a   : > { %v2585_v27 = vpop.f32.mrb[41].mxu0  ;;  %v2626_v12 = vpop.f32.mrb[41].mxu1  ;;  %3891 = vmatmul.mubr.bf16.vlgmr.msra.gmra.mrb[52].mxu0 %v2811_v19  ;;  %3931 = vmatmul.mubr.bf16.vlgmr.msra.gmra.mrb[52].mxu1 %v2813_v8  ;;  %v5054_v5 = vld [vmem:[%s6506_s12 + $0x1e8] sm:$0xff]  }
 0xc2b   : > { %v2586_v51 = vadd.f32 %v2585_v27, %v2247_v13  ;;  %v2627_v28 = vadd.f32 %v2626_v12, %v2255_v16  ;;  %4630 = vmatpush3.bf16.msra.mxu0 %v5035_v17  ;;  %4652 = vmatpush3.bf16.msra.mxu1 %v5036_v18  ;;  %v2587_v9 = vpop.f32.mrb[42].mxu0  ;;  %v2628_v29 = vpop.f32.mrb[42].mxu1  ;;  %v5055_v27 = vld [vmem:[%s6506_s12 + $0x128] sm:$0xff]  }
 0xc2c   : > { %v2588_v34 = vpop.f32.mrb[43].mxu0  ;;  %v2629_v32 = vpop.f32.mrb[43].mxu1  ;;  %4631 = vmatprep.subr.bf16.mxu0 %v5037_v24  ;;  %4653 = vmatprep.subr.bf16.mxu1 %v5038_v25  ;;  %v5056_v12 = vld [vmem:[%s6506_s12 + $0x1a8] sm:$0xff]   ;;  %v5057_v29 = vld [vmem:[%s6506_s12 + $0x170] sm:$0xff]  }
 0xc2d   : > { %v2800_v38 = vmax.f32 %v2586_v51, 0.0  ;;  %v2802_v39 = vmax.f32 %v2627_v28, 0.0  ;;  %v2243_v51 = vrot.slane %v6064_v50, %v2242_v1  ;;  %v5060_v34 = vld [vmem:[%s6506_s12 + $0x1b0] sm:$0xff]  }
 0xc2e   : > { %v5074_v1 = vld [vmem:[%s6506_s12 + $0x2d0] sm:$0xff]  }
 0xc2f   : > { %v2816_v45 = vpack.c.bf16 %v2800_v38, %v2800_v38  ;;  %v2818_v46 = vpack.c.bf16 %v2802_v39, %v2802_v39  ;;  %4632 = vmatpush3.bf16.msra.mxu0 %v5039_v22  ;;  %4654 = vmatpush3.bf16.msra.mxu1 %v5040_v53  ;;  %v5058_v22 = vld [vmem:[%s6506_s12 + $0x1f0] sm:$0xff]   ;;  %v2263_v53 = vrot.slane %v6052_v48, %v2230_v54  ;;  %v5061_v54 = vld [vmem:[%s6506_s12 + $0x178] sm:$0xff]  }
 0xc30   : > { %4633 = vmatprep.subr.bf16.mxu0 %v5041_v35  ;;  %4655 = vmatprep.subr.bf16.mxu1 %v5042_v36  ;;  %v2584_v32 = vadd.f32 %v6096_v26, %v2243_v51  ;;  %v5063_v26 = vld [vmem:[%s6506_s12 + $0x138] sm:$0xff]   ;;  %v5090_v51 = vld [vmem:[%s6506_s12 + $0x2f0] sm:$0xff]  }
 0xc31   : > { %v2665_v57 = vpop.f32.mrb[44].mxu0  ;;  %v2706_v58 = vpop.f32.mrb[44].mxu1  ;;  %3970 = vmatprep.mubr.bf16.mxu0 %v2816_v45  ;;  %4010 = vmatprep.mubr.bf16.mxu1 %v2818_v46  ;;  %v5066_v45 = vld [vmem:[%s6506_s12 + $0x2c0] sm:$0xff]  }
 0xc32   : > { %v6126_v44 = vadd.f32 %v2665_v57, %v2259_v42  ;;  %v6128_v59 = vadd.f32 %v2706_v58, %v2267_v43  ;;  %v2667_v60 = vpop.f32.mrb[45].mxu0  ;;  %v2708_v0 = vpop.f32.mrb[45].mxu1  ;;  %v2799_v39 = vmax.f32 %v2584_v32, 0.0  ;;  %v5065_v43 = vld [vmem:[%s6506_s12 + $0x240] sm:$0xff]  }
 0xc33   : > { %4634 = vmatpush3.bf16.msra.mxu0 %v5043_v56  ;;  %4656 = vmatpush3.bf16.msra.mxu1 %v5044_v20  ;;  %v2669_v41 = vpop.f32.mrb[46].mxu0  ;;  %v2710_v62 = vpop.f32.mrb[46].mxu1  ;;  %v2668_v36 = vadd.f32 %v2667_v60, %v2263_v53  ;;  %v5067_v20 = vld [vmem:[%s6506_s12 + $0x200] sm:$0xff]   ;;  %v5069_v60 = vld [vmem:[%s6506_s12 + $0x248] sm:$0xff]  }
 0xc34   : > { %v2670_v61 = vpop.f32.mrb[47].mxu0  ;;  %v2711_v6 = vpop.f32.mrb[47].mxu1  ;;  %4635 = vmatprep.subr.bf16.mxu0 %v5045_v30  ;;  %4657 = vmatprep.subr.bf16.mxu1 %v5046_v3  ;;  %v2815_v30 = vpack.c.bf16 %v2799_v39, %v2799_v39  ;;  %v5068_v57 = vld [vmem:[%s6506_s12 + $0x280] sm:$0xff]   ;;  %v5071_v62 = vld [vmem:[%s6506_s12 + $0x208] sm:$0xff]   ;;  %v2803_v53 = vmax.f32 %v6126_v44, 0.0 }
 0xc35   : > { %v2804_v46 = vmax.f32 %v2668_v36, 0.0  ;;  %v5075_v61 = vld [vmem:[%s6506_s12 + $0x210] sm:$0xff]   ;;  %v5099_v44 = vld [vmem:[%s6506_s12 + $0x300] sm:$0xff]   ;;  %v5104_v39 = vld [vmem:[%s6506_s12 + $0x388] sm:$0xff]  }
 0xc36   : > { %v5076_v6 = vld [vmem:[%s6506_s12 + $0x290] sm:$0xff]  }
 0xc37   : > { %4636 = vmatpush3.bf16.msra.mxu0 %v5047_v63  ;;  %4658 = vmatpush3.bf16.msra.mxu1 %v5048_v40  ;;  %v2820_v58 = vpack.c.bf16 %v2804_v46, %v2804_v46  ;;  %v5072_v63 = vld [vmem:[%s6506_s12 + $0x288] sm:$0xff]   ;;  %v5073_v40 = vld [vmem:[%s6506_s12 + $0x250] sm:$0xff]  }
 0xc38   : > { %4637 = vmatprep.subr.bf16.mxu0 %v5049_v7  ;;  %4659 = vmatprep.subr.bf16.mxu1 %v5050_v10  ;;  %v5077_v7 = vld [vmem:[%s6506_s12 + $0x258] sm:$0xff]   ;;  %v5108_v46 = vld [vmem:[%s6506_s12 + $0x390] sm:$0xff]  }
 0xc39   : > { %v2747_v13 = vpop.f32.mrb[48].mxu0  ;;  %v2788_v16 = vpop.f32.mrb[48].mxu1  ;;  %v5078_v10 = vld [vmem:[%s6506_s12 + $0x2d8] sm:$0xff]  }
 0xc3a   : > { %v6156_v17 = vadd.f32 %v2747_v13, %v2275_v11  ;;  %v6159_v18 = vadd.f32 %v2788_v16, %v6057_v49  ;;  %v6161_v19 = vpop.f32.mrb[49].mxu0  ;;  %v6163_v8 = vpop.f32.mrb[49].mxu1  ;;  %v2251_v49 = vrot.slane %v6064_v50, %v2250_v47  ;;  %v2271_v47 = vrot.slane %v6052_v48, %v2238_v55  ;;  %v5059_v50 = vld [vmem:[%s6506_s12 + $0x130] sm:$0xff]   ;;  %v5062_v55 = vld [vmem:[%s6506_s12 + $0x1f8] sm:$0xff]   ;;  %v5084_v13 = vld [vmem:[%s6506_s12 + $0x2a0] sm:$0xff]  }
 0xc3b   : > { %4638 = vmatpush3.bf16.msra.mxu0 %v5051_v14  ;;  %4660 = vmatpush3.bf16.msra.mxu1 %v5052_v15  ;;  %v2751_v24 = vpop.f32.mrb[50].mxu0  ;;  %v2792_v25 = vpop.f32.mrb[50].mxu1  ;;  %v5079_v11 = vld [vmem:[%s6506_s12 + $0x218] sm:$0xff]   ;;  %v5081_v15 = vld [vmem:[%s6506_s12 + $0x260] sm:$0xff]   ;;  %v5085_v16 = vld [vmem:[%s6506_s12 + $0x268] sm:$0xff]  }
 0xc3c   : > { %v2752_v28 = vpop.f32.mrb[51].mxu0  ;;  %v2793_v9 = vpop.f32.mrb[51].mxu1  ;;  %4639 = vmatprep.subr.bf16.mxu0 %v5053_v37  ;;  %4661 = vmatprep.subr.bf16.mxu1 %v5054_v5  ;;  %v2625_v35 = vadd.f32 %v6098_v23, %v2251_v49  ;;  %v2709_v38 = vadd.f32 %v2708_v0, %v2271_v47  ;;  %v5064_v23 = vld [vmem:[%s6506_s12 + $0x1b8] sm:$0xff]   ;;  %v5070_v0 = vld [vmem:[%s6506_s12 + $0x2c8] sm:$0xff]   ;;  %v5082_v37 = vld [vmem:[%s6506_s12 + $0x2e0] sm:$0xff]   ;;  %v2279_v49 = vrot.slane %v6052_v48, %v2246_v2 }
 0xc3d   : > { %v5080_v14 = vld [vmem:[%s6506_s12 + $0x298] sm:$0xff]   ;;  %v5083_v5 = vld [vmem:[%s6506_s12 + $0x220] sm:$0xff]   ;;  %v5086_v24 = vld [vmem:[%s6506_s12 + $0x2e8] sm:$0xff]   ;;  %v2287_v28 = vrot.slane %v6052_v48, %v2254_v4 }
 0xc3e   : > { %v2801_v42 = vmax.f32 %v2625_v35, 0.0  ;;  %v2806_v56 = vmax.f32 %v2709_v38, 0.0  ;;  %v5087_v25 = vld [vmem:[%s6506_s12 + $0x228] sm:$0xff]   ;;  %v5091_v9 = vld [vmem:[%s6506_s12 + $0x230] sm:$0xff]   ;;  %v2750_v48 = vadd.f32 %v6161_v19, %v2279_v49  ;;  %v5095_v4 = vld [vmem:[%s6506_s12 + $0x238] sm:$0xff]   ;;  %v2805_v19 = vmax.f32 %v6128_v59, 0.0 }
 0xc3f   : > { %4640 = vmatpush3.bf16.msra.mxu0 %v5055_v27  ;;  %4662 = vmatpush3.bf16.msra.mxu1 %v5056_v12  ;;  %v5088_v27 = vld [vmem:[%s6506_s12 + $0x2a8] sm:$0xff]   ;;  %v5089_v12 = vld [vmem:[%s6506_s12 + $0x270] sm:$0xff]   ;;  %v2791_v2 = vadd.f32 %v6163_v8, %v2287_v28  ;;  %v5096_v47 = vld [vmem:[%s6506_s12 + $0x2b8] sm:$0xff]   ;;  %v2819_v35 = vpack.c.bf16 %v2803_v53, %v2803_v53 }
 0xc40   : > { %4641 = vmatprep.subr.bf16.mxu0 %v5057_v29  ;;  %4663 = vmatprep.subr.bf16.mxu1 %v5058_v22  ;;  %v2817_v3 = vpack.c.bf16 %v2801_v42, %v2801_v42  ;;  %v2822_v41 = vpack.c.bf16 %v2806_v56, %v2806_v56  ;;  %v5092_v29 = vld [vmem:[%s6506_s12 + $0x2b0] sm:$0xff]   ;;  %v5093_v22 = vld [vmem:[%s6506_s12 + $0x278] sm:$0xff]   ;;  %v5098_v8 = vld [vmem:[%s6506_s12 + $0x3c0] sm:$0xff]   ;;  %v2821_v59 = vpack.c.bf16 %v2805_v19, %v2805_v19 }
 0xc41   : > { %v2810_v32 = vmax.f32 %v2791_v2, 0.0  ;;  %v5102_v38 = vld [vmem:[%s6506_s12 + $0x3c8] sm:$0xff]   ;;  %v5105_v42 = vld [vmem:[%s6506_s12 + $0x350] sm:$0xff]   ;;  %v5109_v56 = vld [vmem:[%s6506_s12 + $0x358] sm:$0xff]  }
 0xc43   : > { %4642 = vmatpush3.bf16.msra.mxu0 %v5059_v50  ;;  %4664 = vmatpush3.bf16.msra.mxu1 %v5060_v34  ;;  %v5097_v50 = vld [vmem:[%s6506_s12 + $0x340] sm:$0xff]   ;;  %v2808_v34 = vmax.f32 %v2750_v48, 0.0 }
 0xc44   : > { %4643 = vmatprep.subr.bf16.mxu0 %v5061_v54  ;;  %4665 = vmatprep.subr.bf16.mxu1 %v5062_v55  ;;  %v5100_v54 = vld [vmem:[%s6506_s12 + $0x380] sm:$0xff]   ;;  %v5101_v55 = vld [vmem:[%s6506_s12 + $0x348] sm:$0xff]  }
 0xc45   : > { %v2824_v36 = vpack.c.bf16 %v2808_v34, %v2808_v34 }
 0xc47   : > { %4644 = vmatpush3.bf16.msra.mxu0 %v5063_v26  ;;  %4666 = vmatpush3.bf16.msra.mxu1 %v5064_v23  ;;  %v2826_v26 = vpack.c.bf16 %v2810_v32, %v2810_v32  ;;  %v5103_v23 = vld [vmem:[%s6506_s12 + $0x308] sm:$0xff]  }
 0xc48   : > { %4673 = vmatprep.subr.bf16.mxu0 %v5065_v43  ;;  %4695 = vmatprep.subr.bf16.mxu1 %v5066_v45  ;;  %v5106_v43 = vld [vmem:[%s6506_s12 + $0x3d0] sm:$0xff]  }
 0xc49   : > { %v5107_v45 = vld [vmem:[%s6506_s12 + $0x310] sm:$0xff]  }
 0xc4a   : > { %3971 = vmatmul.mubr.bf16.vlgmr.msra.gmra.mrb[56].mxu0 %v2815_v30  ;;  %4011 = vmatmul.mubr.bf16.vlgmr.msra.gmra.mrb[56].mxu1 %v2817_v3  ;;  %v5111_v30 = vld [vmem:[%s6506_s12 + $0x318] sm:$0xff]  }
 0xc4b   : > { %4674 = vmatpush3.bf16.msra.mxu0 %v5067_v20  ;;  %4050 = vmatprep.mubr.bf16.mxu0 %v2820_v58  ;;  %v5110_v20 = vld [vmem:[%s6506_s12 + $0x3d8] sm:$0xff]   ;;  %v5114_v58 = vld [vmem:[%s6506_s12 + $0x3e0] sm:$0xff]  }
 0xc4c   : > { %4696 = vmatpush3.bf16.msra.mxu1 %v5068_v57  ;;  %4090 = vmatprep.mubr.bf16.mxu1 %v2822_v41  ;;  %v5112_v3 = vld [vmem:[%s6506_s12 + $0x398] sm:$0xff]   ;;  %v5113_v57 = vld [vmem:[%s6506_s12 + $0x360] sm:$0xff]   ;;  %v5117_v41 = vld [vmem:[%s6506_s12 + $0x368] sm:$0xff]  }
 0xc4d   : > { %4675 = vmatprep.subr.bf16.mxu0 %v5069_v60  ;;  %4697 = vmatprep.subr.bf16.mxu1 %v5070_v0  ;;  %v5115_v60 = vld [vmem:[%s6506_s12 + $0x320] sm:$0xff]  }
 0xc4e   : > { %v5116_v0 = vld [vmem:[%s6506_s12 + $0x3a0] sm:$0xff]  }
 0xc4f   : > { %4676 = vmatpush3.bf16.msra.mxu0 %v5071_v62  ;;  %v5118_v62 = vld [vmem:[%s6506_s12 + $0x3e8] sm:$0xff]  }
 0xc50   : > { %4698 = vmatpush3.bf16.msra.mxu1 %v5072_v63  ;;  %4677 = vmatprep.subr.bf16.mxu0 %v5073_v40  ;;  %v5119_v63 = vld [vmem:[%s6506_s12 + $0x328] sm:$0xff]  }
 0xc51   : > { %4699 = vmatprep.subr.bf16.mxu1 %v5074_v1  ;;  %v5120_v40 = vld [vmem:[%s6506_s12 + $0x3a8] sm:$0xff]   ;;  %v5121_v1 = vld [vmem:[%s6506_s12 + $0x370] sm:$0xff]  }
 0xc53   : > { %4678 = vmatpush3.bf16.msra.mxu0 %v5075_v61  ;;  %v5122_v61 = vld [vmem:[%s6506_s12 + $0x3f0] sm:$0xff]  }
 0xc54   : > { %4700 = vmatpush3.bf16.msra.mxu1 %v5076_v6  ;;  %4679 = vmatprep.subr.bf16.mxu0 %v5077_v7  ;;  %v5123_v6 = vld [vmem:[%s6506_s12 + $0x330] sm:$0xff]  }
 0xc55   : > { %4701 = vmatprep.subr.bf16.mxu1 %v5078_v10  ;;  %v5124_v7 = vld [vmem:[%s6506_s12 + $0x3b0] sm:$0xff]   ;;  %v5125_v10 = vld [vmem:[%s6506_s12 + $0x378] sm:$0xff]  }
 0xc57   : > { %4680 = vmatpush3.bf16.msra.mxu0 %v5079_v11  ;;  %v5126_v11 = vld [vmem:[%s6506_s12 + $0x3f8] sm:$0xff]  }
 0xc58   : > { %4702 = vmatpush3.bf16.msra.mxu1 %v5080_v14  ;;  %4681 = vmatprep.subr.bf16.mxu0 %v5081_v15  ;;  %v5127_v14 = vld [vmem:[%s6506_s12 + $0x338] sm:$0xff]   ;;  %v2807_v15 = vmax.f32 %v6156_v17, 0.0  ;;  %v4402_v17 = vld [vmem:[%s6507_s13] ss:$0 sm:$0xff] }
 0xc59   : > { %4703 = vmatprep.subr.bf16.mxu1 %v5082_v37  ;;  %v5128_v37 = vld [vmem:[%s6506_s12 + $0x3b8] sm:$0xff]  }
 0xc5b   : > { %4682 = vmatpush3.bf16.msra.mxu0 %v5083_v5  ;;  %v2809_v5 = vmax.f32 %v6159_v18, 0.0 }
 0xc5c   : > { %4704 = vmatpush3.bf16.msra.mxu1 %v5084_v13  ;;  %4683 = vmatprep.subr.bf16.mxu0 %v5085_v16  ;;  %v2823_v13 = vpack.c.bf16 %v2807_v15, %v2807_v15 }
 0xc5d   : > { %4705 = vmatprep.subr.bf16.mxu1 %v5086_v24  ;;  %v2825_v16 = vpack.c.bf16 %v2809_v5, %v2809_v5 }
 0xc5f   : > { %4684 = vmatpush3.bf16.msra.mxu0 %v5087_v25 }
 0xc60   : > { %4706 = vmatpush3.bf16.msra.mxu1 %v5088_v27  ;;  %4685 = vmatprep.subr.bf16.mxu0 %v5089_v12 }
 0xc61   : > { %4707 = vmatprep.subr.bf16.mxu1 %v5090_v51 }
 0xc63   : > { %4686 = vmatpush3.bf16.msra.mxu0 %v5091_v9 }
 0xc64   : > { %4708 = vmatpush3.bf16.msra.mxu1 %v5092_v29  ;;  %4687 = vmatprep.subr.bf16.mxu0 %v5093_v22 }
 0xc65   : > { %4709 = vmatprep.subr.bf16.mxu1 %v5094_v52 }
 0xc67   : > { %4688 = vmatpush3.bf16.msra.mxu0 %v5095_v4 }
 0xc68   : > { %4710 = vmatpush3.bf16.msra.mxu1 %v5096_v47  ;;  %4717 = vmatprep.subr.bf16.mxu0 %v5097_v50 }
 0xc69   : > { %4739 = vmatprep.subr.bf16.mxu1 %v5098_v8 }
 0xc6a   : > { %4051 = vmatmul.mubr.bf16.vlgmr.msra.gmra.mrb[60].mxu0 %v2819_v35 }
 0xc6b   : > { %4091 = vmatmul.mubr.bf16.vlgmr.msra.gmra.mrb[60].mxu1 %v2821_v59  ;;  %4718 = vmatpush3.bf16.msra.mxu0 %v5099_v44 }
 0xc6c   : > { %4130 = vmatprep.mubr.bf16.mxu0 %v2824_v36  ;;  %4740 = vmatpush3.bf16.msra.mxu1 %v5100_v54 }
 0xc6d   : > { %4170 = vmatprep.mubr.bf16.mxu1 %v2826_v26  ;;  %4719 = vmatprep.subr.bf16.mxu0 %v5101_v55 }
 0xc6e   : > { %4741 = vmatprep.subr.bf16.mxu1 %v5102_v38 }
 0xc6f   : > { %4720 = vmatpush3.bf16.msra.mxu0 %v5103_v23 }
 0xc70   : > { %4742 = vmatpush3.bf16.msra.mxu1 %v5104_v39  ;;  %4721 = vmatprep.subr.bf16.mxu0 %v5105_v42 }
 0xc71   : > { %4743 = vmatprep.subr.bf16.mxu1 %v5106_v43 }
 0xc73   : > { %4722 = vmatpush3.bf16.msra.mxu0 %v5107_v45 }
 0xc74   : > { %4744 = vmatpush3.bf16.msra.mxu1 %v5108_v46  ;;  %4723 = vmatprep.subr.bf16.mxu0 %v5109_v56 }
 0xc75   : > { %4745 = vmatprep.subr.bf16.mxu1 %v5110_v20 }
 0xc77   : > { %4724 = vmatpush3.bf16.msra.mxu0 %v5111_v30 }
 0xc78   : > { %4746 = vmatpush3.bf16.msra.mxu1 %v5112_v3  ;;  %4725 = vmatprep.subr.bf16.mxu0 %v5113_v57 }
 0xc79   : > { %4747 = vmatprep.subr.bf16.mxu1 %v5114_v58 }
 0xc7b   : > { %4726 = vmatpush3.bf16.msra.mxu0 %v5115_v60 }
 0xc7c   : > { %4748 = vmatpush3.bf16.msra.mxu1 %v5116_v0  ;;  %4727 = vmatprep.subr.bf16.mxu0 %v5117_v41 }
 0xc7d   : > { %4749 = vmatprep.subr.bf16.mxu1 %v5118_v62 }
 0xc7f   : > { %4728 = vmatpush3.bf16.msra.mxu0 %v5119_v63 }
 0xc80   : > { %4750 = vmatpush3.bf16.msra.mxu1 %v5120_v40  ;;  %4729 = vmatprep.subr.bf16.mxu0 %v5121_v1 }
 0xc81   : > { %4751 = vmatprep.subr.bf16.mxu1 %v5122_v61 }
 0xc83   : > { %4730 = vmatpush3.bf16.msra.mxu0 %v5123_v6  ;;  %v1671_v6 = vsel %vm1663_vm9, %v5516_v21, 0.0 }
 0xc84   : > { %4752 = vmatpush3.bf16.msra.mxu1 %v5124_v7  ;;  %4731 = vmatprep.subr.bf16.mxu0 %v5125_v10  ;;  %v1672_v10 = vrot.slane %v1671_v6, 4 }
 0xc85   : > { %4753 = vmatprep.subr.bf16.mxu1 %v5126_v11 }
 0xc86   : > { %v1673_v15 = vadd.f32 %v1672_v10, %v1671_v6 }
 0xc87   : > { %4732 = vmatpush3.bf16.msra.mxu0 %v5127_v14 }
 0xc88   : > { %4754 = vmatpush3.bf16.msra.mxu1 %v5128_v37 }
 0xc8a   : > { %4131 = vmatmul.mubr.bf16.vlgmr.msra.gmra.mrb[64].mxu0 %v2823_v13  ;;  %v1674_v13 = vrot.slane %v1673_v15, 2 }
 0xc8b   : > { %4171 = vmatmul.mubr.bf16.vlgmr.msra.gmra.mrb[64].mxu1 %v2825_v16 }
 0xc8c   : > { %v1675_v16 = vadd.f32 %v1674_v13, %v1673_v15 }
 0xcfd   : > { %v4601_v24 = vpop.f32.mrb[52].mxu0  ;;  %v4623_v25 = vpop.f32.mrb[52].mxu1 }
 0xcfe   : > { %v4602_v27 = vpop.f32.mrb[53].mxu0  ;;  %v4624_v12 = vpop.f32.mrb[53].mxu1 }
 0xcff   : > { %v4603_v51 = vadd.f32 %v4602_v27, %v4601_v24  ;;  %v4625_v49 = vadd.f32 %v4624_v12, %v4623_v25  ;;  %v4604_v28 = vpop.f32.mrb[54].mxu0  ;;  %v4626_v9 = vpop.f32.mrb[54].mxu1  ;;  %v1660_v12 = vld [vmem:[#allocation3 + $0x1] sm:$0x1] }
 0xd00   : > { %v4605_v18 = vpop.f32.mrb[55].mxu0  ;;  %v4627_v29 = vpop.f32.mrb[55].mxu1 }
 0xd01   : > { %v3893_v22 = vadd.f32 %v4603_v51, %v4402_v17  ;;  %v4532_v29 = vld [vmem:[%s6547_s0] ss:$0 sm:$0xff] }
 0xd03   : > { %v3933_v52 = vadd.f32 %v4625_v49, %v3893_v22 }
 0xd1d   : > { %v4645_v48 = vpop.f32.mrb[56].mxu0  ;;  %v4667_v2 = vpop.f32.mrb[56].mxu1 }
 0xd1e   : > { %v4646_v4 = vpop.f32.mrb[57].mxu0  ;;  %v4668_v53 = vpop.f32.mrb[57].mxu1 }
 0xd1f   : > { %v4647_v47 = vadd.f32 %v4646_v4, %v4645_v48  ;;  %v4669_v50 = vadd.f32 %v4668_v53, %v4667_v2  ;;  %v4648_v19 = vpop.f32.mrb[58].mxu0  ;;  %v4670_v8 = vpop.f32.mrb[58].mxu1 }
 0xd20   : > { %v4649_v34 = vpop.f32.mrb[59].mxu0  ;;  %v4671_v32 = vpop.f32.mrb[59].mxu1 }
 0xd21   : > { %v3973_v44 = vadd.f32 %v4647_v47, %v3933_v52 }
 0xd23   : > { %v4013_v35 = vadd.f32 %v4669_v50, %v3973_v44 }
 0xd3d   : > { %v4689_v54 = vpop.f32.mrb[60].mxu0 }
 0xd3e   : > { %v4711_v59 = vpop.f32.mrb[60].mxu1  ;;  %v4690_v55 = vpop.f32.mrb[61].mxu0 }
 0xd3f   : > { %v4691_v36 = vadd.f32 %v4690_v55, %v4689_v54  ;;  %v4712_v38 = vpop.f32.mrb[61].mxu1  ;;  %v4692_v26 = vpop.f32.mrb[62].mxu0 }
 0xd40   : > { %v4713_v23 = vadd.f32 %v4712_v38, %v4711_v59  ;;  %v4714_v39 = vpop.f32.mrb[62].mxu1  ;;  %v4693_v42 = vpop.f32.mrb[63].mxu0 }
 0xd41   : > { %v4053_v43 = vadd.f32 %v4691_v36, %v4013_v35  ;;  %v4715_v45 = vpop.f32.mrb[63].mxu1 }
 0xd43   : > { %v4093_v46 = vadd.f32 %v4713_v23, %v4053_v43 }
 0xd5d   : > { %v4733_v56 = vpop.f32.mrb[64].mxu0 }
 0xd5e   : > { %v4755_v20 = vpop.f32.mrb[64].mxu1  ;;  %v4734_v30 = vpop.f32.mrb[65].mxu0 }
 0xd5f   : > { %v4735_v3 = vadd.f32 %v4734_v30, %v4733_v56  ;;  %v4756_v57 = vpop.f32.mrb[65].mxu1  ;;  %v4736_v58 = vpop.f32.mrb[66].mxu0 }
 0xd60   : > { %v4757_v60 = vadd.f32 %v4756_v57, %v4755_v20  ;;  %v4758_v0 = vpop.f32.mrb[66].mxu1  ;;  %v4737_v41 = vpop.f32.mrb[67].mxu0 }
 0xd61   : > { %v4133_v62 = vadd.f32 %v4735_v3, %v4093_v46  ;;  %v4759_v63 = vpop.f32.mrb[67].mxu1 }
 0xd63   : > { %v4173_v40 = vadd.f32 %v4757_v60, %v4133_v62 }
 0xd65   : > { %v4178_v1 = vadd.f32 %v4173_v40, %v5870_v31  ;;  %v1676_v31 = vrot.slane %v1675_v16, 1 }
 0xd67   : > { %v4181_v61 = vsel %vm605_vm3, %v4178_v1, 0.0  ;;  %v1677_v24 = vadd.f32 %v1676_v31, %v1675_v16 }
 0xd68   : > { %4182 = vadd.xlane.f32.xlu0 %v4181_v61 }
 0xd69   : > { %v1716_v25 = vrot.slane %v1677_v24, %v5799_v33 }
 0xd6b   : > { %v1723_v17 = vrot.slane %v1716_v25, %v5799_v33  ;;  %v4531_v33 = vld [vmem:[%s6546_s28] ss:$0 sm:$0xff]  ;;  %s5187_s28 = sshll.u32 %s5292_s27, 4  ;;  %s5188_s28 = int_to_ptr.vmem [resolvable:$false] %s5187_s28 }
 0xd6c   : > { %p5190_p5 = scmp.lt.s32.totalorder %s6438_s20, %s5188_s28 }
 0xdf5   : > { %v4183_v7 = vpop.xlane.xlu0 %4182 }
 0xdf6   : > { %v4184_v11 = vmul.f32 0.03125, %v4183_v7 }
 0xdf8   : > { %v4185_v14 = vsub.f32 %v4178_v1, %v4184_v11 }
 0xdfa   : > { %v4186_v37 = vmul.f32 %v4185_v14, %v4185_v14 }
 0xdfc   : > { %v4187_v5 = vsel %vm605_vm3, %v4186_v37, 0.0 }
 0xdfd   : > { %4188 = vadd.xlane.f32.xlu0 %v4187_v5 }
 0xe13   : > { %1754 = vrot.lane.b32.xlu0 %v1723_v17, %s5285_s29  ;;  %s5189_s29 = scalar_lea.vmem %s5188_s28, 256 }
 0xe14   : > { %p5191_p6 = scmp.lt.s32.totalorder %s5189_s29, %s5183_s17 }
 0xe16   : > { %p5192_p7 = por %p5191_p6, %p5190_p5 }
 0xe18   : > { %p5193_p9 = pnand %p5192_p7, %p5186_p4 }
 0xe8a   : > { %v4189_v21 = vpop.xlane.xlu0 %4188 }
 0xe8b   : > { %v4190_v27 = vmul.f32 0.03125, %v4189_v21 }
 0xe8d   : > { %v4191_v51 = vadd.f32 1e-05, %v4190_v27 }
 0xe8e   : > { %v1755_v49 = vpop.permute.xlu0 %1754 }
 0xe8f   : > { %5181 = vrsqrt.f32 %v4191_v51  ;;  %v1765_v28 = vadd.f32 %v1755_v49, %v1660_v12 }
 0xe91   : > { %1770 = vst.msk [vmem:[#allocation3 + $0x1] sm:$0x1] %vm1768_vm10, %v1765_v28 }
 0xe99   : > { %v5182_v9 = vpop.eup %5181 }
 0xe9a   : > { %v4193_v18 = vmul.f32 %v5182_v9, %v4185_v14 }
 0xe9c   : > { %v4200_v22 = vmul.f32 %v4531_v33, %v4193_v18 }
 0xe9e   : > { %v4207_v52 = vadd.f32 %v4532_v29, %v4200_v22 }
 0xea0   : > { %4208 = vst.msk [vmem:[%s6551_s24] sm:$0xff] %vm605_vm3, %v4207_v52 }
 0xea1   : > { %5196 = shalt.err (!%p5193_p9)
}
 0xea2   : > { %s5197_s26 = scalar_lea.hbm %s6436_s2, 128  ;;  %s5201_s23 = scalar_lea.hbm %s6550_s1, 512 }
 0xea3   : > { %p5198_p10 = scmp.ne.s32.totalorder %s6436_s2, %s5197_s26  ;;  %p5202_p13 = scmp.lt.u32.totalorder %s6436_s2, %s6550_s1 }
 0xea4   : > { %p5203_p0 = scmp.lt.u32.totalorder %s5201_s23, %s5197_s26  ;;  %p5205_p2 = scmp.lt.u32.totalorder %s5197_s26, %s6436_s2 }
 0xea5   : > { %p5199_p11 = pnand %p5198_p10, %p5429_p3 }
 0xea6   : > { %p5204_p1 = por %p5203_p0, %p5202_p13 }
 0xea7   : > { %p5200_p12 = pneg %p5199_p11 }
 0xea8   : > { %p5206_p4 = por %p5205_p2, %p5204_p1 }
 0xeaa   : > { %p5207_p5 = pnand %p5206_p4, %p5200_p12 }
 0xeac   : > { %5210 = shalt.err (!%p5207_p5)
}
 0xead   : > { %4913 = dma.vmem_to_hbm [thread:$0]  (%p5429_p3), %s6438_s20, 128, %s6436_s2, %s4210_s15  }
 0xeae PF: > { %s6553_s16 = sld [smem:[#allocation11_spill]]  ;;  %s6554_s25 = sld [smem:[#allocation7_spill]] }
 0xeb4   : > { %p4919_p6 = scmp.ge.s32.totalorder %s6553_s16, 2  ;;  %s4237_s21 = sand.u32 1, %s6554_s25  }
 0xeb5   : > { %s4238_s17 = scalar_lea.sflag [#allocation5], %s4237_s21 }
 0xeb6   : > { %p4916_p7 = pnand %p4919_p6, %p5438_p8 }
 0xeb8   : > { %5244 = dma.done.wait (!%p4916_p7), %s4238_s17, 128  }
 0xeb9   : > { %5246 = vsyncadd (!%p4916_p7), %s4238_s17, 4294967168  ;;  %s29_s28 = sadd.s32 1, %s6553_s16   ;;  %s6556_s27 = sld [smem:[#allocation8_spill]] }
 0xeba   : > { %p26_p9 = scmp.ge.s32.totalorder %s29_s28, 6   ;;  %s6557_s23 = sld [smem:[#allocation16_spill]] }
 0xebb   : > { %s6558_s24 = sld [smem:[#allocation9_spill]]  ;;  %s6559_s25 = sld [smem:[#allocation10_spill]] }
 0xebc   : > { %s6560_s26 = sld [smem:[#allocation12_spill]]  ;;  %s6561_s2 = sld [smem:[#allocation14_spill]] }
 0xebd   : > { %s6562_s21 = smov %s5253_s22  ;;  %28 = sbr.rel (!%p26_p9) target bundleno = 12 (0xc), region = 129 }
 0xebf   : > { %s6563_s22 = smov %s6556_s27 }
 0xec2   : > { %s6564_s27 = smov %s6561_s2 }
 0xec4   :  { %4243 = vsyncpa [#allocation5], 1 }
 0xec5   :  { %4245 = vsyncpa [#allocation5 + $0x1], 1 }

</bundles_post_ra>
